<compile_context>
chip_gen: v5e
topology: v5e:2x2
jax: 0.10.0
libtpu: 0.0.40
codegen_flags: <defaults>
</compile_context>

<pallas_src>
import math

import numpy as np
import jax
import jax.numpy as jnp
from jax.experimental import pallas as pl
from jax.experimental.pallas import tpu as pltpu

# ----------------------------- config ------------------------------------- #
D_MODEL = 32
NUM_HEADS = 4
HEAD_DIM = 8            # num_heads * head_dim == d_model
FFN_DIM = 64
NUM_LAYERS = 2
SRC_VOCAB = 50
TGT_VOCAB = 60
VOCAB_PAD = 128         # lane-dense padded logits width (sliced back to TGT_VOCAB)
MAX_SEQ_LEN = 8         # the PyTorch model requires seq_len == max_seq_length
BATCH = 2
LN_EPS = 1e-5
NEG_FILL = -1e9


# --------------------------- fused Pallas kernel --------------------------- #
def _fused_transformer_kernel(
    # activations / masks (masks are pre-scaled fill values: 0 / -1e9 / -2e9)
    enc_x_ref, dec_x_ref, enc_mask_ref, dec_pad_mask_ref, dec_self_mask_ref,
    # encoder stack weights (stacked over layers)
    e_wq_ref, e_wk_ref, e_wv_ref, e_fcw_ref, e_fcb_ref, e_ln1g_ref, e_ln1b_ref,
    e_w1_ref, e_b1_ref, e_w2_ref, e_b2_ref, e_ln2g_ref, e_ln2b_ref,
    # decoder stack weights (stacked over layers)
    d_wq_ref, d_wk_ref, d_wv_ref, d_fcw_ref, d_fcb_ref, d_ln1g_ref, d_ln1b_ref,
    d_w1_ref, d_b1_ref, d_w2_ref, d_b2_ref, d_ln2g_ref, d_ln2b_ref,
    # output projection
    out_w_ref, out_b_ref,
    # output
    o_ref,
):
    N, _ = enc_x_ref.shape          # N = batch * seq
    H, Dh = NUM_HEADS, HEAD_DIM
    scale = 1.0 / math.sqrt(Dh)

    def mm(x, w):                   # MXU matmul: bf16 operands, f32 accumulate
        return jnp.dot(x.astype(jnp.bfloat16), w.astype(jnp.bfloat16),
                       preferred_element_type=jnp.float32)

    def add_layernorm(x, y, gamma, beta):
        z = x + y
        mu = jnp.mean(z, axis=-1, keepdims=True)
        var = jnp.mean(jnp.square(z - mu), axis=-1, keepdims=True)
        return (z - mu) * jax.lax.rsqrt(var + LN_EPS) * gamma + beta

    def mha(x_qk, x_v, fill_c, wq, wk, wv, fcw, fcb, ln_g, ln_b):
        # x_qk / x_v: (N, D).  wq/wk/wv: H blocks of (D, Dh); fcw: H blocks of
        # (Dh, D).  fill_c: (H*N, H*N) chunk-frame additive-fill mask
        # (0 = keep, -1e9 = attention-masked, -2e9 = different group).
        # Head chunks stacked along rows (sublanes) — stays in vregs.
        qc = jnp.concatenate([mm(x_qk, wq[h]) for h in range(H)], axis=0)
        kc = jnp.concatenate([mm(x_qk, wk[h]) for h in range(H)], axis=0)
        vc = jnp.concatenate([mm(x_v, wv[h]) for h in range(H)], axis=0)
        # q @ k^T (contract head_dim) — one MXU matmul for all heads/batches.
        s = jax.lax.dot_general(
            qc.astype(jnp.bfloat16), kc.astype(jnp.bfloat16),
            (((1,), (1,)), ((), ())),
            preferred_element_type=jnp.float32) * scale
        s = jnp.where(fill_c < 0.0, fill_c, s)         # exact masked_fill values
        s = s - jnp.max(s, axis=-1, keepdims=True)
        ex = jnp.exp(s)
        p = ex * pl.reciprocal(jnp.sum(ex, axis=-1, keepdims=True), approx=True)
        ctx = mm(p, vc)                                # (H*N, Dh)
        out = fcb                                      # (1, D) bias
        for h in range(H):                             # head merge folded into fc
            out = out + mm(ctx[h * N:(h + 1) * N, :], fcw[h])
        return add_layernorm(x_qk, out, ln_g, ln_b)    # residual = query inputs

    def ffn(x, w1, b1, w2, b2, ln_g, ln_b):
        hidden = jnp.maximum(mm(x, w1) + b1, 0.0)
        y = mm(hidden, w2) + b2
        return add_layernorm(x, y, ln_g, ln_b)

    # ------------------------------ encoder -------------------------------- #
    enc = enc_x_ref[...]
    enc_mask = enc_mask_ref[...]
    for i in range(NUM_LAYERS):
        wq = [e_wq_ref[i, h] for h in range(H)]
        wk = [e_wk_ref[i, h] for h in range(H)]
        wv = [e_wv_ref[i, h] for h in range(H)]
        fcw = [e_fcw_ref[i, h] for h in range(H)]
        enc = mha(enc, enc, enc_mask, wq, wk, wv, fcw,
                  e_fcb_ref[i], e_ln1g_ref[i], e_ln1b_ref[i])
        enc = ffn(enc, e_w1_ref[i], e_b1_ref[i], e_w2_ref[i], e_b2_ref[i],
                  e_ln2g_ref[i], e_ln2b_ref[i])

    # ------------------------------ decoder -------------------------------- #
    dec = dec_x_ref[...]
    dec_pad_mask = dec_pad_mask_ref[...]
    dec_self_mask = dec_self_mask_ref[...]
    for i in range(NUM_LAYERS):
        wq = [d_wq_ref[i, h] for h in range(H)]
        wk = [d_wk_ref[i, h] for h in range(H)]
        wv = [d_wv_ref[i, h] for h in range(H)]
        fcw = [d_fcw_ref[i, h] for h in range(H)]
        # masked self-attention (uses the *padding* mask — PyTorch arg order)
        masked_attention = mha(dec, dec, dec_pad_mask, wq, wk, wv, fcw,
                               d_fcb_ref[i], d_ln1g_ref[i], d_ln1b_ref[i])
        # cross-attention: query = key = encoder outputs, value = masked attn,
        # mask = padding + causal; same weights as the masked self-attention.
        attention = mha(enc, masked_attention, dec_self_mask, wq, wk, wv, fcw,
                        d_fcb_ref[i], d_ln1g_ref[i], d_ln1b_ref[i])
        dec = ffn(attention, d_w1_ref[i], d_b1_ref[i], d_w2_ref[i], d_b2_ref[i],
                  d_ln2g_ref[i], d_ln2b_ref[i])

    # ------------------------ output projection ----------------------------- #
    o_ref[...] = mm(dec, out_w_ref[...]) + out_b_ref[...]


# ------------------------ masks & positional embedding --------------------- #
def padding_mask_fn(tokens):
    B, L = tokens.shape
    pm = (tokens == 0)[:, None, :]                 # (B, 1, L)
    return jnp.broadcast_to(pm, (B, L, L))


def _chunk_perm(B, L, H):
    # chunk-frame index (h, b, p) -> grouped-frame index g*L + l2 where the
    # grouped frame is the PyTorch .view(B*H, -1, head_dim) head split.
    perm = np.empty((H, B, L), np.int32)
    for h in range(H):
        for b in range(B):
            for p in range(L):
                j = (p * H + h) // L
                l2 = (p * H + h) % L
                perm[h, b, p] = (b * H + j) * L + l2
    return perm.reshape(-1)


def chunk_frame_mask(mask_bll):
    """Builds the (H*B*L, H*B*L) chunk-frame additive-fill mask that exactly
    reproduces the PyTorch grouped attention: .repeat(H,1,1) mask tiling inside
    groups (fill -1e9, exactly the masked_fill value) and block-diagonal group
    structure (fill -2e9, which underflows to exactly 0 after softmax).
    Unmasked entries are 0."""
    B, L, _ = mask_bll.shape
    H = NUM_HEADS
    G = B * H
    m_t = jnp.tile(mask_bll.astype(jnp.float32), (H, 1, 1))       # torch .repeat
    same_g = jnp.eye(G, dtype=bool)[:, None, :, None]              # (G,1,G,1)
    big = jnp.where(same_g, m_t[:, :, None, :], 2.0)               # (G,L,G,L)
    big = big.reshape(G * L, G * L)
    perm = jnp.asarray(_chunk_perm(B, L, H))
    return big[perm][:, perm] * NEG_FILL                           # 0 / -1e9 / -2e9


def make_position_encoding(d_model, max_seq_length):
    pe = np.array(
        [[pos / np.power(10000, 2.0 * i / d_model) for i in range(d_model)]
         for pos in range(max_seq_length)]
    )
    pe[:, 0::2] = np.sin(pe[:, 0::2])
    pe[:, 1::2] = np.cos(pe[:, 1::2])
    return pe.astype(np.float32)


def positional_embedding(pos_enc, batch_size, batch_length):
    max_len, d = pos_enc.shape
    emb = np.zeros((batch_size, max_len, d), np.float32)
    # replicate the zip(position_encoding, batch_length) loop exactly
    for idx in range(min(max_len, batch_size)):
        sl = int(batch_length[idx])
        emb[idx, :sl, :] = pos_enc[:sl, :]
    return jnp.asarray(emb)


# ------------------------------- forward ------------------------------------ #
@jax.jit
def transformer_forward(params, enc_tokens, dec_tokens, enc_pos_emb, dec_pos_emb):
    B, L = enc_tokens.shape
    N = B * L

    enc_emb = jnp.take(params["enc_embed"], enc_tokens, axis=0) + enc_pos_emb
    dec_emb = jnp.take(params["dec_embed"], dec_tokens, axis=0) + dec_pos_emb

    enc_pad = padding_mask_fn(enc_tokens)
    dec_pad = padding_mask_fn(dec_tokens)
    seq_mask = jnp.triu(jnp.ones((L, L), jnp.int32), k=1)
    dec_self = (dec_pad.astype(jnp.int32) + seq_mask[None, :, :]) > 0

    enc_mc = chunk_frame_mask(enc_pad)
    dec_pad_mc = chunk_frame_mask(dec_pad)
    dec_self_mc = chunk_frame_mask(dec_self)

    ep, dp = params["enc"], params["dec"]
    inputs = [
        enc_emb.reshape(N, D_MODEL), dec_emb.reshape(N, D_MODEL),
        enc_mc, dec_pad_mc, dec_self_mc,
        ep["wq"], ep["wk"], ep["wv"], ep["fcw"], ep["fcb"], ep["ln1g"], ep["ln1b"],
        ep["w1"], ep["b1"], ep["w2"], ep["b2"], ep["ln2g"], ep["ln2b"],
        dp["wq"], dp["wk"], dp["wv"], dp["fcw"], dp["fcb"], dp["ln1g"], dp["ln1b"],
        dp["w1"], dp["b1"], dp["w2"], dp["b2"], dp["ln2g"], dp["ln2b"],
        params["out_w"], params["out_b"],
    ]

    logits = pl.pallas_call(
        _fused_transformer_kernel,
        out_shape=jax.ShapeDtypeStruct((N, VOCAB_PAD), jnp.float32),
    )(*inputs)

    return logits[:, :TGT_VOCAB].reshape(B, L, TGT_VOCAB)


# ------------------------- pure-JAX reference (check) ----------------------- #
@jax.jit
def reference_forward(params, enc_tokens, dec_tokens, enc_pos_emb, dec_pos_emb):
    """Plain XLA replica of the PyTorch forward (view/repeat formulation), with
    the same bf16-operand / f32-accumulate matmul convention as the kernel."""
    H, Dh = NUM_HEADS, HEAD_DIM
    scale = 1.0 / math.sqrt(Dh)

    def mm(x, w):
        return jnp.dot(x.astype(jnp.bfloat16), w.astype(jnp.bfloat16),
                       preferred_element_type=jnp.float32)

    def add_ln(x, y, g, b):
        z = x + y
        mu = jnp.mean(z, axis=-1, keepdims=True)
        var = jnp.mean(jnp.square(z - mu), axis=-1, keepdims=True)
        return (z - mu) * jax.lax.rsqrt(var + LN_EPS) * g + b

    def mha(stack, i, q_in, k_in, v_in, mask_bll):
        B, L, Dm = q_in.shape
        wq = jnp.concatenate([stack["wq"][i, h] for h in range(H)], axis=1)
        wk = jnp.concatenate([stack["wk"][i, h] for h in range(H)], axis=1)
        wv = jnp.concatenate([stack["wv"][i, h] for h in range(H)], axis=1)
        fcw = jnp.concatenate([stack["fcw"][i, h] for h in range(H)], axis=0)
        q = mm(q_in.reshape(-1, Dm), wq).reshape(B * H, -1, Dh)
        k = mm(k_in.reshape(-1, Dm), wk).reshape(B * H, -1, Dh)
        v = mm(v_in.reshape(-1, Dm), wv).reshape(B * H, -1, Dh)
        m = jnp.tile(mask_bll, (H, 1, 1))
        s = jnp.einsum("gqd,gkd->gqk", q.astype(jnp.bfloat16), k.astype(jnp.bfloat16),
                       preferred_element_type=jnp.float32) * scale
        s = jnp.where(m, -1e9, s)
        p = jax.nn.softmax(s, axis=-1)
        ctx = jnp.einsum("gqk,gkd->gqd", p.astype(jnp.bfloat16), v.astype(jnp.bfloat16),
                         preferred_element_type=jnp.float32)
        ctx = ctx.reshape(B, -1, H * Dh)
        out = mm(ctx.reshape(-1, H * Dh), fcw) + stack["fcb"][i]
        out = add_ln(q_in.reshape(-1, Dm), out, stack["ln1g"][i], stack["ln1b"][i])
        return out.reshape(B, L, Dm)

    def ffn(stack, i, x):
        B, L, Dm = x.shape
        x2 = x.reshape(-1, Dm)
        h1 = jnp.maximum(mm(x2, stack["w1"][i]) + stack["b1"][i], 0.0)
        y = mm(h1, stack["w2"][i]) + stack["b2"][i]
        return add_ln(x2, y, stack["ln2g"][i], stack["ln2b"][i]).reshape(B, L, Dm)

    B, L = enc_tokens.shape
    enc = jnp.take(params["enc_embed"], enc_tokens, axis=0) + enc_pos_emb
    enc_pad = padding_mask_fn(enc_tokens)
    for i in range(NUM_LAYERS):
        enc = mha(params["enc"], i, enc, enc, enc, enc_pad)
        enc = ffn(params["enc"], i, enc)

    dec = jnp.take(params["dec_embed"], dec_tokens, axis=0) + dec_pos_emb
    dec_pad = padding_mask_fn(dec_tokens)
    seq_mask = jnp.triu(jnp.ones((L, L), jnp.int32), k=1)
    dec_self = (dec_pad.astype(jnp.int32) + seq_mask[None, :, :]) > 0
    for i in range(NUM_LAYERS):
        masked = mha(params["dec"], i, dec, dec, dec, dec_pad)
        attn = mha(params["dec"], i, enc, enc, masked, dec_self)
        dec = ffn(params["dec"], i, attn)

    logits = mm(dec.reshape(-1, D_MODEL), params["out_w"]) + params["out_b"]
    return logits[:, :TGT_VOCAB].reshape(B, L, TGT_VOCAB)


# ------------------------------- params ------------------------------------- #
def _init_linear(key, out_dim, in_dim, bias=True):
    kw, kb = jax.random.split(key)
    w = jax.random.normal(kw, (out_dim, in_dim), jnp.float32) * 0.05
    b = jax.random.normal(kb, (out_dim,), jnp.float32) * 0.05 if bias else None
    return w, b


def _pack_mha(key):
    keys = jax.random.split(key, 4)
    wq, _ = _init_linear(keys[0], NUM_HEADS * HEAD_DIM, D_MODEL, bias=False)
    wk, _ = _init_linear(keys[1], NUM_HEADS * HEAD_DIM, D_MODEL, bias=False)
    wv, _ = _init_linear(keys[2], NUM_HEADS * HEAD_DIM, D_MODEL, bias=False)
    fc_w, fc_b = _init_linear(keys[3], D_MODEL, NUM_HEADS * HEAD_DIM)

    def split_qkv(w):   # torch (H*Dh, D) -> (H, D, Dh), pre-transposed per head
        return jnp.stack(
            [w[h * HEAD_DIM:(h + 1) * HEAD_DIM, :].T for h in range(NUM_HEADS)], 0)

    def split_fc(w):    # torch (D, H*Dh) -> (H, Dh, D), pre-transposed per head
        return jnp.stack(
            [w[:, h * HEAD_DIM:(h + 1) * HEAD_DIM].T for h in range(NUM_HEADS)], 0)

    return {
        "wq": split_qkv(wq).astype(jnp.bfloat16),
        "wk": split_qkv(wk).astype(jnp.bfloat16),
        "wv": split_qkv(wv).astype(jnp.bfloat16),
        "fcw": split_fc(fc_w).astype(jnp.bfloat16),
        "fcb": fc_b.reshape(1, D_MODEL),
        "ln1g": jnp.ones((1, D_MODEL), jnp.float32),
        "ln1b": jnp.zeros((1, D_MODEL), jnp.float32),
    }


def _pack_ffn(key):
    k1, k2 = jax.random.split(key)
    fc1_w, fc1_b = _init_linear(k1, FFN_DIM, D_MODEL)
    fc2_w, fc2_b = _init_linear(k2, D_MODEL, FFN_DIM)
    return {
        "w1": fc1_w.T.astype(jnp.bfloat16), "b1": fc1_b.reshape(1, FFN_DIM),
        "w2": fc2_w.T.astype(jnp.bfloat16), "b2": fc2_b.reshape(1, D_MODEL),
        "ln2g": jnp.ones((1, D_MODEL), jnp.float32),
        "ln2b": jnp.zeros((1, D_MODEL), jnp.float32),
    }


def _init_stack(key, vocab_size, pad_idx):
    keys = jax.random.split(key, NUM_LAYERS * 2 + 1)
    embed = jax.random.normal(keys[0], (vocab_size, D_MODEL), jnp.float32) * 0.05
    embed = embed.at[pad_idx].set(0.0)                 # padding_idx row zeroed
    layer_dicts = []
    for i in range(NUM_LAYERS):
        d = {}
        d.update(_pack_mha(keys[1 + 2 * i]))
        d.update(_pack_ffn(keys[2 + 2 * i]))
        layer_dicts.append(d)
    stacked = {k: jnp.stack([ld[k] for ld in layer_dicts], axis=0)
               for k in layer_dicts[0]}
    return embed, stacked


def init_transformer_params(key):
    k_enc, k_dec, k_out = jax.random.split(key, 3)
    enc_embed, enc_stack = _init_stack(k_enc, SRC_VOCAB, pad_idx=0)
    dec_embed, dec_stack = _init_stack(k_dec, TGT_VOCAB, pad_idx=0)
    out_w, out_b = _init_linear(k_out, TGT_VOCAB, D_MODEL)           # (V, D)
    out_w_p = jnp.zeros((D_MODEL, VOCAB_PAD), jnp.float32).at[:, :TGT_VOCAB].set(out_w.T)
    out_b_p = jnp.zeros((1, VOCAB_PAD), jnp.float32).at[:, :TGT_VOCAB].set(out_b[None, :])
    return {
        "enc_embed": enc_embed,
        "dec_embed": dec_embed,
        "enc": enc_stack,
        "dec": dec_stack,
        "out_w": out_w_p.astype(jnp.bfloat16),
        "out_b": out_b_p,
        "pos_enc": make_position_encoding(D_MODEL, MAX_SEQ_LEN),     # numpy, host-side
    }


# -------------------------------- main -------------------------------------- #
if __name__ == "__main__":
    key = jax.random.PRNGKey(0)
    k_params, k_enc_tok, k_dec_tok = jax.random.split(key, 3)
    params = init_transformer_params(k_params)

    # Deterministic token inputs with trailing padding (id 0 == pad).
    enc_in = jax.random.randint(k_enc_tok, (BATCH, MAX_SEQ_LEN), 1, SRC_VOCAB,
                                dtype=jnp.int32)
    dec_in = jax.random.randint(k_dec_tok, (BATCH, MAX_SEQ_LEN), 1, TGT_VOCAB,
                                dtype=jnp.int32)
    enc_len = [6, 4]
    dec_len = [7, 5]
    pos = jnp.arange(MAX_SEQ_LEN)[None, :]
    enc_in = jnp.where(pos < jnp.asarray(enc_len)[:, None], enc_in, 0)
    dec_in = jnp.where(pos < jnp.asarray(dec_len)[:, None], dec_in, 0)

    # Positional embeddings precomputed once (host side), replicating the
    # PyTorch PositionalEncoding.forward loop exactly.
    enc_pos = positional_embedding(params["pos_enc"], BATCH, enc_len)
    dec_pos = positional_embedding(params["pos_enc"], BATCH, dec_len)

    logits = transformer_forward(params, enc_in, dec_in, enc_pos, dec_pos)
    logits = jax.block_until_ready(logits)

    ref = reference_forward(params, enc_in, dec_in, enc_pos, dec_pos)
    ref = jax.block_until_ready(ref)

    assert logits.shape == (BATCH, MAX_SEQ_LEN, TGT_VOCAB)
    assert bool(jnp.all(jnp.isfinite(logits)))
    max_err = float(jnp.max(jnp.abs(logits - ref)))
    assert max_err < 2e-2, f"kernel vs reference mismatch: {max_err}"
    print("KERNEL_OK")
</pallas_src>

<mosaic_0001>
module attributes {stable_mosaic.version = 11 : i64} {
  func.func @_fused_transformer_kernel(%arg0: memref<16x32xf32, #tpu.memory_space<vmem>>, %arg1: memref<16x32xf32, #tpu.memory_space<vmem>>, %arg2: memref<64x64xf32, #tpu.memory_space<vmem>>, %arg3: memref<64x64xf32, #tpu.memory_space<vmem>>, %arg4: memref<64x64xf32, #tpu.memory_space<vmem>>, %arg5: memref<2x4x32x8xbf16, #tpu.memory_space<vmem>>, %arg6: memref<2x4x32x8xbf16, #tpu.memory_space<vmem>>, %arg7: memref<2x4x32x8xbf16, #tpu.memory_space<vmem>>, %arg8: memref<2x4x8x32xbf16, #tpu.memory_space<vmem>>, %arg9: memref<2x1x32xf32, #tpu.memory_space<vmem>>, %arg10: memref<2x1x32xf32, #tpu.memory_space<vmem>>, %arg11: memref<2x1x32xf32, #tpu.memory_space<vmem>>, %arg12: memref<2x32x64xbf16, #tpu.memory_space<vmem>>, %arg13: memref<2x1x64xf32, #tpu.memory_space<vmem>>, %arg14: memref<2x64x32xbf16, #tpu.memory_space<vmem>>, %arg15: memref<2x1x32xf32, #tpu.memory_space<vmem>>, %arg16: memref<2x1x32xf32, #tpu.memory_space<vmem>>, %arg17: memref<2x1x32xf32, #tpu.memory_space<vmem>>, %arg18: memref<2x4x32x8xbf16, #tpu.memory_space<vmem>>, %arg19: memref<2x4x32x8xbf16, #tpu.memory_space<vmem>>, %arg20: memref<2x4x32x8xbf16, #tpu.memory_space<vmem>>, %arg21: memref<2x4x8x32xbf16, #tpu.memory_space<vmem>>, %arg22: memref<2x1x32xf32, #tpu.memory_space<vmem>>, %arg23: memref<2x1x32xf32, #tpu.memory_space<vmem>>, %arg24: memref<2x1x32xf32, #tpu.memory_space<vmem>>, %arg25: memref<2x32x64xbf16, #tpu.memory_space<vmem>>, %arg26: memref<2x1x64xf32, #tpu.memory_space<vmem>>, %arg27: memref<2x64x32xbf16, #tpu.memory_space<vmem>>, %arg28: memref<2x1x32xf32, #tpu.memory_space<vmem>>, %arg29: memref<2x1x32xf32, #tpu.memory_space<vmem>>, %arg30: memref<2x1x32xf32, #tpu.memory_space<vmem>>, %arg31: memref<32x128xbf16, #tpu.memory_space<vmem>>, %arg32: memref<1x128xf32, #tpu.memory_space<vmem>>, %arg33: memref<16x128xf32, #tpu.memory_space<vmem>>) attributes {dimension_semantics = [], scalar_prefetch = 0 : i64, scratch_operands = 0 : i64, tpu.core_type = #tpu.core_type<tc>} {
    %c0 = arith.constant 0 : index
    %c0_0 = arith.constant 0 : index
    %0 = vector.load %arg0[%c0, %c0_0] : memref<16x32xf32, #tpu.memory_space<vmem>>, vector<16x32xf32>
    %c0_1 = arith.constant 0 : index
    %c0_2 = arith.constant 0 : index
    %1 = vector.load %arg2[%c0_1, %c0_2] : memref<64x64xf32, #tpu.memory_space<vmem>>, vector<64x64xf32>
    %c0_3 = arith.constant 0 : index
    %c0_4 = arith.constant 0 : index
    %c0_5 = arith.constant 0 : index
    %c0_6 = arith.constant 0 : index
    %2 = vector.load %arg5[%c0_3, %c0_4, %c0_5, %c0_6] : memref<2x4x32x8xbf16, #tpu.memory_space<vmem>>, vector<1x1x32x8xbf16>
    %3 = vector.shape_cast %2 : vector<1x1x32x8xbf16> to vector<32x8xbf16>
    %c0_7 = arith.constant 0 : index
    %c1 = arith.constant 1 : index
    %c0_8 = arith.constant 0 : index
    %c0_9 = arith.constant 0 : index
    %4 = vector.load %arg5[%c0_7, %c1, %c0_8, %c0_9] : memref<2x4x32x8xbf16, #tpu.memory_space<vmem>>, vector<1x1x32x8xbf16>
    %5 = vector.shape_cast %4 : vector<1x1x32x8xbf16> to vector<32x8xbf16>
    %c0_10 = arith.constant 0 : index
    %c2 = arith.constant 2 : index
    %c0_11 = arith.constant 0 : index
    %c0_12 = arith.constant 0 : index
    %6 = vector.load %arg5[%c0_10, %c2, %c0_11, %c0_12] : memref<2x4x32x8xbf16, #tpu.memory_space<vmem>>, vector<1x1x32x8xbf16>
    %7 = vector.shape_cast %6 : vector<1x1x32x8xbf16> to vector<32x8xbf16>
    %c0_13 = arith.constant 0 : index
    %c3 = arith.constant 3 : index
    %c0_14 = arith.constant 0 : index
    %c0_15 = arith.constant 0 : index
    %8 = vector.load %arg5[%c0_13, %c3, %c0_14, %c0_15] : memref<2x4x32x8xbf16, #tpu.memory_space<vmem>>, vector<1x1x32x8xbf16>
    %9 = vector.shape_cast %8 : vector<1x1x32x8xbf16> to vector<32x8xbf16>
    %c0_16 = arith.constant 0 : index
    %c0_17 = arith.constant 0 : index
    %c0_18 = arith.constant 0 : index
    %c0_19 = arith.constant 0 : index
    %10 = vector.load %arg6[%c0_16, %c0_17, %c0_18, %c0_19] : memref<2x4x32x8xbf16, #tpu.memory_space<vmem>>, vector<1x1x32x8xbf16>
    %11 = vector.shape_cast %10 : vector<1x1x32x8xbf16> to vector<32x8xbf16>
    %c0_20 = arith.constant 0 : index
    %c1_21 = arith.constant 1 : index
    %c0_22 = arith.constant 0 : index
    %c0_23 = arith.constant 0 : index
    %12 = vector.load %arg6[%c0_20, %c1_21, %c0_22, %c0_23] : memref<2x4x32x8xbf16, #tpu.memory_space<vmem>>, vector<1x1x32x8xbf16>
    %13 = vector.shape_cast %12 : vector<1x1x32x8xbf16> to vector<32x8xbf16>
    %c0_24 = arith.constant 0 : index
    %c2_25 = arith.constant 2 : index
    %c0_26 = arith.constant 0 : index
    %c0_27 = arith.constant 0 : index
    %14 = vector.load %arg6[%c0_24, %c2_25, %c0_26, %c0_27] : memref<2x4x32x8xbf16, #tpu.memory_space<vmem>>, vector<1x1x32x8xbf16>
    %15 = vector.shape_cast %14 : vector<1x1x32x8xbf16> to vector<32x8xbf16>
    %c0_28 = arith.constant 0 : index
    %c3_29 = arith.constant 3 : index
    %c0_30 = arith.constant 0 : index
    %c0_31 = arith.constant 0 : index
    %16 = vector.load %arg6[%c0_28, %c3_29, %c0_30, %c0_31] : memref<2x4x32x8xbf16, #tpu.memory_space<vmem>>, vector<1x1x32x8xbf16>
    %17 = vector.shape_cast %16 : vector<1x1x32x8xbf16> to vector<32x8xbf16>
    %c0_32 = arith.constant 0 : index
    %c0_33 = arith.constant 0 : index
    %c0_34 = arith.constant 0 : index
    %c0_35 = arith.constant 0 : index
    %18 = vector.load %arg7[%c0_32, %c0_33, %c0_34, %c0_35] : memref<2x4x32x8xbf16, #tpu.memory_space<vmem>>, vector<1x1x32x8xbf16>
    %19 = vector.shape_cast %18 : vector<1x1x32x8xbf16> to vector<32x8xbf16>
    %c0_36 = arith.constant 0 : index
    %c1_37 = arith.constant 1 : index
    %c0_38 = arith.constant 0 : index
    %c0_39 = arith.constant 0 : index
    %20 = vector.load %arg7[%c0_36, %c1_37, %c0_38, %c0_39] : memref<2x4x32x8xbf16, #tpu.memory_space<vmem>>, vector<1x1x32x8xbf16>
    %21 = vector.shape_cast %20 : vector<1x1x32x8xbf16> to vector<32x8xbf16>
    %c0_40 = arith.constant 0 : index
    %c2_41 = arith.constant 2 : index
    %c0_42 = arith.constant 0 : index
    %c0_43 = arith.constant 0 : index
    %22 = vector.load %arg7[%c0_40, %c2_41, %c0_42, %c0_43] : memref<2x4x32x8xbf16, #tpu.memory_space<vmem>>, vector<1x1x32x8xbf16>
    %23 = vector.shape_cast %22 : vector<1x1x32x8xbf16> to vector<32x8xbf16>
    %c0_44 = arith.constant 0 : index
    %c3_45 = arith.constant 3 : index
    %c0_46 = arith.constant 0 : index
    %c0_47 = arith.constant 0 : index
    %24 = vector.load %arg7[%c0_44, %c3_45, %c0_46, %c0_47] : memref<2x4x32x8xbf16, #tpu.memory_space<vmem>>, vector<1x1x32x8xbf16>
    %25 = vector.shape_cast %24 : vector<1x1x32x8xbf16> to vector<32x8xbf16>
    %c0_48 = arith.constant 0 : index
    %c0_49 = arith.constant 0 : index
    %c0_50 = arith.constant 0 : index
    %c0_51 = arith.constant 0 : index
    %26 = vector.load %arg8[%c0_48, %c0_49, %c0_50, %c0_51] : memref<2x4x8x32xbf16, #tpu.memory_space<vmem>>, vector<1x1x8x32xbf16>
    %27 = vector.shape_cast %26 : vector<1x1x8x32xbf16> to vector<8x32xbf16>
    %c0_52 = arith.constant 0 : index
    %c1_53 = arith.constant 1 : index
    %c0_54 = arith.constant 0 : index
    %c0_55 = arith.constant 0 : index
    %28 = vector.load %arg8[%c0_52, %c1_53, %c0_54, %c0_55] : memref<2x4x8x32xbf16, #tpu.memory_space<vmem>>, vector<1x1x8x32xbf16>
    %29 = vector.shape_cast %28 : vector<1x1x8x32xbf16> to vector<8x32xbf16>
    %c0_56 = arith.constant 0 : index
    %c2_57 = arith.constant 2 : index
    %c0_58 = arith.constant 0 : index
    %c0_59 = arith.constant 0 : index
    %30 = vector.load %arg8[%c0_56, %c2_57, %c0_58, %c0_59] : memref<2x4x8x32xbf16, #tpu.memory_space<vmem>>, vector<1x1x8x32xbf16>
    %31 = vector.shape_cast %30 : vector<1x1x8x32xbf16> to vector<8x32xbf16>
    %c0_60 = arith.constant 0 : index
    %c3_61 = arith.constant 3 : index
    %c0_62 = arith.constant 0 : index
    %c0_63 = arith.constant 0 : index
    %32 = vector.load %arg8[%c0_60, %c3_61, %c0_62, %c0_63] : memref<2x4x8x32xbf16, #tpu.memory_space<vmem>>, vector<1x1x8x32xbf16>
    %33 = vector.shape_cast %32 : vector<1x1x8x32xbf16> to vector<8x32xbf16>
    %c0_64 = arith.constant 0 : index
    %c0_65 = arith.constant 0 : index
    %c0_66 = arith.constant 0 : index
    %34 = vector.load %arg9[%c0_64, %c0_65, %c0_66] : memref<2x1x32xf32, #tpu.memory_space<vmem>>, vector<1x1x32xf32>
    %35 = vector.shape_cast %34 : vector<1x1x32xf32> to vector<1x32xf32>
    %c0_67 = arith.constant 0 : index
    %c0_68 = arith.constant 0 : index
    %c0_69 = arith.constant 0 : index
    %36 = vector.load %arg10[%c0_67, %c0_68, %c0_69] : memref<2x1x32xf32, #tpu.memory_space<vmem>>, vector<1x1x32xf32>
    %37 = vector.shape_cast %36 : vector<1x1x32xf32> to vector<1x32xf32>
    %c0_70 = arith.constant 0 : index
    %c0_71 = arith.constant 0 : index
    %c0_72 = arith.constant 0 : index
    %38 = vector.load %arg11[%c0_70, %c0_71, %c0_72] : memref<2x1x32xf32, #tpu.memory_space<vmem>>, vector<1x1x32xf32>
    %39 = vector.shape_cast %38 : vector<1x1x32xf32> to vector<1x32xf32>
    %40 = arith.truncf %0 : vector<16x32xf32> to vector<16x32xbf16>
    %cst = arith.constant dense<0.000000e+00> : vector<16x8xf32>
    %41 = tpu.matmul %40, %3, %cst {dimension_numbers = #tpu.dot_dimension_numbers<[1], [0], [0], [1], [0, 0, 1, 1], [], []>} : vector<16x32xbf16>, vector<32x8xbf16>, vector<16x8xf32> -> vector<16x8xf32>
    %42 = arith.truncf %0 : vector<16x32xf32> to vector<16x32xbf16>
    %cst_73 = arith.constant dense<0.000000e+00> : vector<16x8xf32>
    %43 = tpu.matmul %42, %5, %cst_73 {dimension_numbers = #tpu.dot_dimension_numbers<[1], [0], [0], [1], [0, 0, 1, 1], [], []>} : vector<16x32xbf16>, vector<32x8xbf16>, vector<16x8xf32> -> vector<16x8xf32>
    %44 = arith.truncf %0 : vector<16x32xf32> to vector<16x32xbf16>
    %cst_74 = arith.constant dense<0.000000e+00> : vector<16x8xf32>
    %45 = tpu.matmul %44, %7, %cst_74 {dimension_numbers = #tpu.dot_dimension_numbers<[1], [0], [0], [1], [0, 0, 1, 1], [], []>} : vector<16x32xbf16>, vector<32x8xbf16>, vector<16x8xf32> -> vector<16x8xf32>
    %46 = arith.truncf %0 : vector<16x32xf32> to vector<16x32xbf16>
    %cst_75 = arith.constant dense<0.000000e+00> : vector<16x8xf32>
    %47 = tpu.matmul %46, %9, %cst_75 {dimension_numbers = #tpu.dot_dimension_numbers<[1], [0], [0], [1], [0, 0, 1, 1], [], []>} : vector<16x32xbf16>, vector<32x8xbf16>, vector<16x8xf32> -> vector<16x8xf32>
    %48 = tpu.concatenate %41, %43, %45, %47 in 0 : vector<16x8xf32>, vector<16x8xf32>, vector<16x8xf32>, vector<16x8xf32> -> vector<64x8xf32>
    %49 = arith.truncf %0 : vector<16x32xf32> to vector<16x32xbf16>
    %cst_76 = arith.constant dense<0.000000e+00> : vector<16x8xf32>
    %50 = tpu.matmul %49, %11, %cst_76 {dimension_numbers = #tpu.dot_dimension_numbers<[1], [0], [0], [1], [0, 0, 1, 1], [], []>} : vector<16x32xbf16>, vector<32x8xbf16>, vector<16x8xf32> -> vector<16x8xf32>
    %51 = arith.truncf %0 : vector<16x32xf32> to vector<16x32xbf16>
    %cst_77 = arith.constant dense<0.000000e+00> : vector<16x8xf32>
    %52 = tpu.matmul %51, %13, %cst_77 {dimension_numbers = #tpu.dot_dimension_numbers<[1], [0], [0], [1], [0, 0, 1, 1], [], []>} : vector<16x32xbf16>, vector<32x8xbf16>, vector<16x8xf32> -> vector<16x8xf32>
    %53 = arith.truncf %0 : vector<16x32xf32> to vector<16x32xbf16>
    %cst_78 = arith.constant dense<0.000000e+00> : vector<16x8xf32>
    %54 = tpu.matmul %53, %15, %cst_78 {dimension_numbers = #tpu.dot_dimension_numbers<[1], [0], [0], [1], [0, 0, 1, 1], [], []>} : vector<16x32xbf16>, vector<32x8xbf16>, vector<16x8xf32> -> vector<16x8xf32>
    %55 = arith.truncf %0 : vector<16x32xf32> to vector<16x32xbf16>
    %cst_79 = arith.constant dense<0.000000e+00> : vector<16x8xf32>
    %56 = tpu.matmul %55, %17, %cst_79 {dimension_numbers = #tpu.dot_dimension_numbers<[1], [0], [0], [1], [0, 0, 1, 1], [], []>} : vector<16x32xbf16>, vector<32x8xbf16>, vector<16x8xf32> -> vector<16x8xf32>
    %57 = tpu.concatenate %50, %52, %54, %56 in 0 : vector<16x8xf32>, vector<16x8xf32>, vector<16x8xf32>, vector<16x8xf32> -> vector<64x8xf32>
    %58 = arith.truncf %0 : vector<16x32xf32> to vector<16x32xbf16>
    %cst_80 = arith.constant dense<0.000000e+00> : vector<16x8xf32>
    %59 = tpu.matmul %58, %19, %cst_80 {dimension_numbers = #tpu.dot_dimension_numbers<[1], [0], [0], [1], [0, 0, 1, 1], [], []>} : vector<16x32xbf16>, vector<32x8xbf16>, vector<16x8xf32> -> vector<16x8xf32>
    %60 = arith.truncf %0 : vector<16x32xf32> to vector<16x32xbf16>
    %cst_81 = arith.constant dense<0.000000e+00> : vector<16x8xf32>
    %61 = tpu.matmul %60, %21, %cst_81 {dimension_numbers = #tpu.dot_dimension_numbers<[1], [0], [0], [1], [0, 0, 1, 1], [], []>} : vector<16x32xbf16>, vector<32x8xbf16>, vector<16x8xf32> -> vector<16x8xf32>
    %62 = arith.truncf %0 : vector<16x32xf32> to vector<16x32xbf16>
    %cst_82 = arith.constant dense<0.000000e+00> : vector<16x8xf32>
    %63 = tpu.matmul %62, %23, %cst_82 {dimension_numbers = #tpu.dot_dimension_numbers<[1], [0], [0], [1], [0, 0, 1, 1], [], []>} : vector<16x32xbf16>, vector<32x8xbf16>, vector<16x8xf32> -> vector<16x8xf32>
    %64 = arith.truncf %0 : vector<16x32xf32> to vector<16x32xbf16>
    %cst_83 = arith.constant dense<0.000000e+00> : vector<16x8xf32>
    %65 = tpu.matmul %64, %25, %cst_83 {dimension_numbers = #tpu.dot_dimension_numbers<[1], [0], [0], [1], [0, 0, 1, 1], [], []>} : vector<16x32xbf16>, vector<32x8xbf16>, vector<16x8xf32> -> vector<16x8xf32>
    %66 = tpu.concatenate %59, %61, %63, %65 in 0 : vector<16x8xf32>, vector<16x8xf32>, vector<16x8xf32>, vector<16x8xf32> -> vector<64x8xf32>
    %67 = arith.truncf %48 : vector<64x8xf32> to vector<64x8xbf16>
    %68 = arith.truncf %57 : vector<64x8xf32> to vector<64x8xbf16>
    %cst_84 = arith.constant dense<0.000000e+00> : vector<64x64xf32>
    %69 = tpu.matmul %67, %68, %cst_84 {dimension_numbers = #tpu.dot_dimension_numbers<[1], [1], [0], [0], [0, 0, 1, 0], [], []>} : vector<64x8xbf16>, vector<64x8xbf16>, vector<64x64xf32> -> vector<64x64xf32>
    %cst_85 = arith.constant 0.353553385 : f32
    %70 = vector.broadcast %cst_85 : f32 to vector<64x64xf32>
    %71 = arith.mulf %69, %70 : vector<64x64xf32>
    %cst_86 = arith.constant 0.000000e+00 : f32
    %72 = vector.broadcast %cst_86 : f32 to vector<64x64xf32>
    %73 = arith.cmpf olt, %1, %72 : vector<64x64xf32>
    %74 = arith.select %73, %1, %71 : vector<64x64xi1>, vector<64x64xf32>
    %cst_87 = arith.constant dense<0xFF800000> : vector<64xf32>
    %75 = vector.multi_reduction <maximumf>, %74, %cst_87 [1] : vector<64x64xf32> to vector<64xf32>
    %76 = vector.shape_cast %75 : vector<64xf32> to vector<64x1xf32>
    %77 = vector.broadcast %76 : vector<64x1xf32> to vector<64x64xf32>
    %78 = arith.subf %74, %77 : vector<64x64xf32>
    %79 = math.exp %78 : vector<64x64xf32>
    %cst_88 = arith.constant dense<0.000000e+00> : vector<64xf32>
    %80 = vector.multi_reduction <add>, %79, %cst_88 [1] : vector<64x64xf32> to vector<64xf32>
    %81 = vector.shape_cast %80 : vector<64xf32> to vector<64x1xf32>
    %82 = tpu.reciprocal %81 {approx = true} : vector<64x1xf32> -> vector<64x1xf32>
    %83 = vector.broadcast %82 : vector<64x1xf32> to vector<64x64xf32>
    %84 = arith.mulf %79, %83 : vector<64x64xf32>
    %85 = arith.truncf %84 : vector<64x64xf32> to vector<64x64xbf16>
    %86 = arith.truncf %66 : vector<64x8xf32> to vector<64x8xbf16>
    %cst_89 = arith.constant dense<0.000000e+00> : vector<64x8xf32>
    %87 = tpu.matmul %85, %86, %cst_89 {dimension_numbers = #tpu.dot_dimension_numbers<[1], [0], [0], [1], [0, 0, 1, 1], [], []>} : vector<64x64xbf16>, vector<64x8xbf16>, vector<64x8xf32> -> vector<64x8xf32>
    %88 = vector.extract_strided_slice %87 {offsets = [0, 0], sizes = [16, 8], strides = [1, 1]} : vector<64x8xf32> to vector<16x8xf32>
    %89 = arith.truncf %88 : vector<16x8xf32> to vector<16x8xbf16>
    %cst_90 = arith.constant dense<0.000000e+00> : vector<16x32xf32>
    %90 = tpu.matmul %89, %27, %cst_90 {dimension_numbers = #tpu.dot_dimension_numbers<[1], [0], [0], [1], [0, 0, 1, 1], [], []>} : vector<16x8xbf16>, vector<8x32xbf16>, vector<16x32xf32> -> vector<16x32xf32>
    %91 = vector.broadcast %35 : vector<1x32xf32> to vector<16x32xf32>
    %92 = arith.addf %91, %90 : vector<16x32xf32>
    %93 = vector.extract_strided_slice %87 {offsets = [16, 0], sizes = [16, 8], strides = [1, 1]} : vector<64x8xf32> to vector<16x8xf32>
    %94 = arith.truncf %93 : vector<16x8xf32> to vector<16x8xbf16>
    %cst_91 = arith.constant dense<0.000000e+00> : vector<16x32xf32>
    %95 = tpu.matmul %94, %29, %cst_91 {dimension_numbers = #tpu.dot_dimension_numbers<[1], [0], [0], [1], [0, 0, 1, 1], [], []>} : vector<16x8xbf16>, vector<8x32xbf16>, vector<16x32xf32> -> vector<16x32xf32>
    %96 = arith.addf %92, %95 : vector<16x32xf32>
    %97 = vector.extract_strided_slice %87 {offsets = [32, 0], sizes = [16, 8], strides = [1, 1]} : vector<64x8xf32> to vector<16x8xf32>
    %98 = arith.truncf %97 : vector<16x8xf32> to vector<16x8xbf16>
    %cst_92 = arith.constant dense<0.000000e+00> : vector<16x32xf32>
    %99 = tpu.matmul %98, %31, %cst_92 {dimension_numbers = #tpu.dot_dimension_numbers<[1], [0], [0], [1], [0, 0, 1, 1], [], []>} : vector<16x8xbf16>, vector<8x32xbf16>, vector<16x32xf32> -> vector<16x32xf32>
    %100 = arith.addf %96, %99 : vector<16x32xf32>
    %101 = vector.extract_strided_slice %87 {offsets = [48, 0], sizes = [16, 8], strides = [1, 1]} : vector<64x8xf32> to vector<16x8xf32>
    %102 = arith.truncf %101 : vector<16x8xf32> to vector<16x8xbf16>
    %cst_93 = arith.constant dense<0.000000e+00> : vector<16x32xf32>
    %103 = tpu.matmul %102, %33, %cst_93 {dimension_numbers = #tpu.dot_dimension_numbers<[1], [0], [0], [1], [0, 0, 1, 1], [], []>} : vector<16x8xbf16>, vector<8x32xbf16>, vector<16x32xf32> -> vector<16x32xf32>
    %104 = arith.addf %100, %103 : vector<16x32xf32>
    %105 = arith.addf %0, %104 : vector<16x32xf32>
    %cst_94 = arith.constant dense<0.000000e+00> : vector<16xf32>
    %106 = vector.multi_reduction <add>, %105, %cst_94 [1] : vector<16x32xf32> to vector<16xf32>
    %107 = vector.shape_cast %106 : vector<16xf32> to vector<16x1xf32>
    %cst_95 = arith.constant 3.200000e+01 : f32
    %108 = vector.broadcast %cst_95 : f32 to vector<16x1xf32>
    %109 = arith.divf %107, %108 : vector<16x1xf32>
    %110 = vector.broadcast %109 : vector<16x1xf32> to vector<16x32xf32>
    %111 = arith.subf %105, %110 : vector<16x32xf32>
    %112 = arith.mulf %111, %111 : vector<16x32xf32>
    %cst_96 = arith.constant dense<0.000000e+00> : vector<16xf32>
    %113 = vector.multi_reduction <add>, %112, %cst_96 [1] : vector<16x32xf32> to vector<16xf32>
    %114 = vector.shape_cast %113 : vector<16xf32> to vector<16x1xf32>
    %cst_97 = arith.constant 3.200000e+01 : f32
    %115 = vector.broadcast %cst_97 : f32 to vector<16x1xf32>
    %116 = arith.divf %114, %115 : vector<16x1xf32>
    %117 = vector.broadcast %109 : vector<16x1xf32> to vector<16x32xf32>
    %118 = arith.subf %105, %117 : vector<16x32xf32>
    %cst_98 = arith.constant 9.99999974E-6 : f32
    %119 = vector.broadcast %cst_98 : f32 to vector<16x1xf32>
    %120 = arith.addf %116, %119 : vector<16x1xf32>
    %121 = math.rsqrt %120 : vector<16x1xf32>
    %122 = vector.broadcast %121 : vector<16x1xf32> to vector<16x32xf32>
    %123 = arith.mulf %118, %122 : vector<16x32xf32>
    %124 = vector.broadcast %37 : vector<1x32xf32> to vector<16x32xf32>
    %125 = arith.mulf %123, %124 : vector<16x32xf32>
    %126 = vector.broadcast %39 : vector<1x32xf32> to vector<16x32xf32>
    %127 = arith.addf %125, %126 : vector<16x32xf32>
    %c0_99 = arith.constant 0 : index
    %c0_100 = arith.constant 0 : index
    %c0_101 = arith.constant 0 : index
    %128 = vector.load %arg12[%c0_99, %c0_100, %c0_101] : memref<2x32x64xbf16, #tpu.memory_space<vmem>>, vector<1x32x64xbf16>
    %129 = vector.shape_cast %128 : vector<1x32x64xbf16> to vector<32x64xbf16>
    %c0_102 = arith.constant 0 : index
    %c0_103 = arith.constant 0 : index
    %c0_104 = arith.constant 0 : index
    %130 = vector.load %arg13[%c0_102, %c0_103, %c0_104] : memref<2x1x64xf32, #tpu.memory_space<vmem>>, vector<1x1x64xf32>
    %131 = vector.shape_cast %130 : vector<1x1x64xf32> to vector<1x64xf32>
    %c0_105 = arith.constant 0 : index
    %c0_106 = arith.constant 0 : index
    %c0_107 = arith.constant 0 : index
    %132 = vector.load %arg14[%c0_105, %c0_106, %c0_107] : memref<2x64x32xbf16, #tpu.memory_space<vmem>>, vector<1x64x32xbf16>
    %133 = vector.shape_cast %132 : vector<1x64x32xbf16> to vector<64x32xbf16>
    %c0_108 = arith.constant 0 : index
    %c0_109 = arith.constant 0 : index
    %c0_110 = arith.constant 0 : index
    %134 = vector.load %arg15[%c0_108, %c0_109, %c0_110] : memref<2x1x32xf32, #tpu.memory_space<vmem>>, vector<1x1x32xf32>
    %135 = vector.shape_cast %134 : vector<1x1x32xf32> to vector<1x32xf32>
    %c0_111 = arith.constant 0 : index
    %c0_112 = arith.constant 0 : index
    %c0_113 = arith.constant 0 : index
    %136 = vector.load %arg16[%c0_111, %c0_112, %c0_113] : memref<2x1x32xf32, #tpu.memory_space<vmem>>, vector<1x1x32xf32>
    %137 = vector.shape_cast %136 : vector<1x1x32xf32> to vector<1x32xf32>
    %c0_114 = arith.constant 0 : index
    %c0_115 = arith.constant 0 : index
    %c0_116 = arith.constant 0 : index
    %138 = vector.load %arg17[%c0_114, %c0_115, %c0_116] : memref<2x1x32xf32, #tpu.memory_space<vmem>>, vector<1x1x32xf32>
    %139 = vector.shape_cast %138 : vector<1x1x32xf32> to vector<1x32xf32>
    %140 = arith.truncf %127 : vector<16x32xf32> to vector<16x32xbf16>
    %cst_117 = arith.constant dense<0.000000e+00> : vector<16x64xf32>
    %141 = tpu.matmul %140, %129, %cst_117 {dimension_numbers = #tpu.dot_dimension_numbers<[1], [0], [0], [1], [0, 0, 1, 1], [], []>} : vector<16x32xbf16>, vector<32x64xbf16>, vector<16x64xf32> -> vector<16x64xf32>
    %142 = vector.broadcast %131 : vector<1x64xf32> to vector<16x64xf32>
    %143 = arith.addf %141, %142 : vector<16x64xf32>
    %cst_118 = arith.constant 0.000000e+00 : f32
    %144 = vector.broadcast %cst_118 : f32 to vector<16x64xf32>
    %145 = arith.maximumf %143, %144 : vector<16x64xf32>
    %146 = arith.truncf %145 : vector<16x64xf32> to vector<16x64xbf16>
    %cst_119 = arith.constant dense<0.000000e+00> : vector<16x32xf32>
    %147 = tpu.matmul %146, %133, %cst_119 {dimension_numbers = #tpu.dot_dimension_numbers<[1], [0], [0], [1], [0, 0, 1, 1], [], []>} : vector<16x64xbf16>, vector<64x32xbf16>, vector<16x32xf32> -> vector<16x32xf32>
    %148 = vector.broadcast %135 : vector<1x32xf32> to vector<16x32xf32>
    %149 = arith.addf %147, %148 : vector<16x32xf32>
    %150 = arith.addf %127, %149 : vector<16x32xf32>
    %cst_120 = arith.constant dense<0.000000e+00> : vector<16xf32>
    %151 = vector.multi_reduction <add>, %150, %cst_120 [1] : vector<16x32xf32> to vector<16xf32>
    %152 = vector.shape_cast %151 : vector<16xf32> to vector<16x1xf32>
    %cst_121 = arith.constant 3.200000e+01 : f32
    %153 = vector.broadcast %cst_121 : f32 to vector<16x1xf32>
    %154 = arith.divf %152, %153 : vector<16x1xf32>
    %155 = vector.broadcast %154 : vector<16x1xf32> to vector<16x32xf32>
    %156 = arith.subf %150, %155 : vector<16x32xf32>
    %157 = arith.mulf %156, %156 : vector<16x32xf32>
    %cst_122 = arith.constant dense<0.000000e+00> : vector<16xf32>
    %158 = vector.multi_reduction <add>, %157, %cst_122 [1] : vector<16x32xf32> to vector<16xf32>
    %159 = vector.shape_cast %158 : vector<16xf32> to vector<16x1xf32>
    %cst_123 = arith.constant 3.200000e+01 : f32
    %160 = vector.broadcast %cst_123 : f32 to vector<16x1xf32>
    %161 = arith.divf %159, %160 : vector<16x1xf32>
    %162 = vector.broadcast %154 : vector<16x1xf32> to vector<16x32xf32>
    %163 = arith.subf %150, %162 : vector<16x32xf32>
    %cst_124 = arith.constant 9.99999974E-6 : f32
    %164 = vector.broadcast %cst_124 : f32 to vector<16x1xf32>
    %165 = arith.addf %161, %164 : vector<16x1xf32>
    %166 = math.rsqrt %165 : vector<16x1xf32>
    %167 = vector.broadcast %166 : vector<16x1xf32> to vector<16x32xf32>
    %168 = arith.mulf %163, %167 : vector<16x32xf32>
    %169 = vector.broadcast %137 : vector<1x32xf32> to vector<16x32xf32>
    %170 = arith.mulf %168, %169 : vector<16x32xf32>
    %171 = vector.broadcast %139 : vector<1x32xf32> to vector<16x32xf32>
    %172 = arith.addf %170, %171 : vector<16x32xf32>
    %c1_125 = arith.constant 1 : index
    %c0_126 = arith.constant 0 : index
    %c0_127 = arith.constant 0 : index
    %c0_128 = arith.constant 0 : index
    %173 = vector.load %arg5[%c1_125, %c0_126, %c0_127, %c0_128] : memref<2x4x32x8xbf16, #tpu.memory_space<vmem>>, vector<1x1x32x8xbf16>
    %174 = vector.shape_cast %173 : vector<1x1x32x8xbf16> to vector<32x8xbf16>
    %c1_129 = arith.constant 1 : index
    %c1_130 = arith.constant 1 : index
    %c0_131 = arith.constant 0 : index
    %c0_132 = arith.constant 0 : index
    %175 = vector.load %arg5[%c1_129, %c1_130, %c0_131, %c0_132] : memref<2x4x32x8xbf16, #tpu.memory_space<vmem>>, vector<1x1x32x8xbf16>
    %176 = vector.shape_cast %175 : vector<1x1x32x8xbf16> to vector<32x8xbf16>
    %c1_133 = arith.constant 1 : index
    %c2_134 = arith.constant 2 : index
    %c0_135 = arith.constant 0 : index
    %c0_136 = arith.constant 0 : index
    %177 = vector.load %arg5[%c1_133, %c2_134, %c0_135, %c0_136] : memref<2x4x32x8xbf16, #tpu.memory_space<vmem>>, vector<1x1x32x8xbf16>
    %178 = vector.shape_cast %177 : vector<1x1x32x8xbf16> to vector<32x8xbf16>
    %c1_137 = arith.constant 1 : index
    %c3_138 = arith.constant 3 : index
    %c0_139 = arith.constant 0 : index
    %c0_140 = arith.constant 0 : index
    %179 = vector.load %arg5[%c1_137, %c3_138, %c0_139, %c0_140] : memref<2x4x32x8xbf16, #tpu.memory_space<vmem>>, vector<1x1x32x8xbf16>
    %180 = vector.shape_cast %179 : vector<1x1x32x8xbf16> to vector<32x8xbf16>
    %c1_141 = arith.constant 1 : index
    %c0_142 = arith.constant 0 : index
    %c0_143 = arith.constant 0 : index
    %c0_144 = arith.constant 0 : index
    %181 = vector.load %arg6[%c1_141, %c0_142, %c0_143, %c0_144] : memref<2x4x32x8xbf16, #tpu.memory_space<vmem>>, vector<1x1x32x8xbf16>
    %182 = vector.shape_cast %181 : vector<1x1x32x8xbf16> to vector<32x8xbf16>
    %c1_145 = arith.constant 1 : index
    %c1_146 = arith.constant 1 : index
    %c0_147 = arith.constant 0 : index
    %c0_148 = arith.constant 0 : index
    %183 = vector.load %arg6[%c1_145, %c1_146, %c0_147, %c0_148] : memref<2x4x32x8xbf16, #tpu.memory_space<vmem>>, vector<1x1x32x8xbf16>
    %184 = vector.shape_cast %183 : vector<1x1x32x8xbf16> to vector<32x8xbf16>
    %c1_149 = arith.constant 1 : index
    %c2_150 = arith.constant 2 : index
    %c0_151 = arith.constant 0 : index
    %c0_152 = arith.constant 0 : index
    %185 = vector.load %arg6[%c1_149, %c2_150, %c0_151, %c0_152] : memref<2x4x32x8xbf16, #tpu.memory_space<vmem>>, vector<1x1x32x8xbf16>
    %186 = vector.shape_cast %185 : vector<1x1x32x8xbf16> to vector<32x8xbf16>
    %c1_153 = arith.constant 1 : index
    %c3_154 = arith.constant 3 : index
    %c0_155 = arith.constant 0 : index
    %c0_156 = arith.constant 0 : index
    %187 = vector.load %arg6[%c1_153, %c3_154, %c0_155, %c0_156] : memref<2x4x32x8xbf16, #tpu.memory_space<vmem>>, vector<1x1x32x8xbf16>
    %188 = vector.shape_cast %187 : vector<1x1x32x8xbf16> to vector<32x8xbf16>
    %c1_157 = arith.constant 1 : index
    %c0_158 = arith.constant 0 : index
    %c0_159 = arith.constant 0 : index
    %c0_160 = arith.constant 0 : index
    %189 = vector.load %arg7[%c1_157, %c0_158, %c0_159, %c0_160] : memref<2x4x32x8xbf16, #tpu.memory_space<vmem>>, vector<1x1x32x8xbf16>
    %190 = vector.shape_cast %189 : vector<1x1x32x8xbf16> to vector<32x8xbf16>
    %c1_161 = arith.constant 1 : index
    %c1_162 = arith.constant 1 : index
    %c0_163 = arith.constant 0 : index
    %c0_164 = arith.constant 0 : index
    %191 = vector.load %arg7[%c1_161, %c1_162, %c0_163, %c0_164] : memref<2x4x32x8xbf16, #tpu.memory_space<vmem>>, vector<1x1x32x8xbf16>
    %192 = vector.shape_cast %191 : vector<1x1x32x8xbf16> to vector<32x8xbf16>
    %c1_165 = arith.constant 1 : index
    %c2_166 = arith.constant 2 : index
    %c0_167 = arith.constant 0 : index
    %c0_168 = arith.constant 0 : index
    %193 = vector.load %arg7[%c1_165, %c2_166, %c0_167, %c0_168] : memref<2x4x32x8xbf16, #tpu.memory_space<vmem>>, vector<1x1x32x8xbf16>
    %194 = vector.shape_cast %193 : vector<1x1x32x8xbf16> to vector<32x8xbf16>
    %c1_169 = arith.constant 1 : index
    %c3_170 = arith.constant 3 : index
    %c0_171 = arith.constant 0 : index
    %c0_172 = arith.constant 0 : index
    %195 = vector.load %arg7[%c1_169, %c3_170, %c0_171, %c0_172] : memref<2x4x32x8xbf16, #tpu.memory_space<vmem>>, vector<1x1x32x8xbf16>
    %196 = vector.shape_cast %195 : vector<1x1x32x8xbf16> to vector<32x8xbf16>
    %c1_173 = arith.constant 1 : index
    %c0_174 = arith.constant 0 : index
    %c0_175 = arith.constant 0 : index
    %c0_176 = arith.constant 0 : index
    %197 = vector.load %arg8[%c1_173, %c0_174, %c0_175, %c0_176] : memref<2x4x8x32xbf16, #tpu.memory_space<vmem>>, vector<1x1x8x32xbf16>
    %198 = vector.shape_cast %197 : vector<1x1x8x32xbf16> to vector<8x32xbf16>
    %c1_177 = arith.constant 1 : index
    %c1_178 = arith.constant 1 : index
    %c0_179 = arith.constant 0 : index
    %c0_180 = arith.constant 0 : index
    %199 = vector.load %arg8[%c1_177, %c1_178, %c0_179, %c0_180] : memref<2x4x8x32xbf16, #tpu.memory_space<vmem>>, vector<1x1x8x32xbf16>
    %200 = vector.shape_cast %199 : vector<1x1x8x32xbf16> to vector<8x32xbf16>
    %c1_181 = arith.constant 1 : index
    %c2_182 = arith.constant 2 : index
    %c0_183 = arith.constant 0 : index
    %c0_184 = arith.constant 0 : index
    %201 = vector.load %arg8[%c1_181, %c2_182, %c0_183, %c0_184] : memref<2x4x8x32xbf16, #tpu.memory_space<vmem>>, vector<1x1x8x32xbf16>
    %202 = vector.shape_cast %201 : vector<1x1x8x32xbf16> to vector<8x32xbf16>
    %c1_185 = arith.constant 1 : index
    %c3_186 = arith.constant 3 : index
    %c0_187 = arith.constant 0 : index
    %c0_188 = arith.constant 0 : index
    %203 = vector.load %arg8[%c1_185, %c3_186, %c0_187, %c0_188] : memref<2x4x8x32xbf16, #tpu.memory_space<vmem>>, vector<1x1x8x32xbf16>
    %204 = vector.shape_cast %203 : vector<1x1x8x32xbf16> to vector<8x32xbf16>
    %c1_189 = arith.constant 1 : index
    %c0_190 = arith.constant 0 : index
    %c0_191 = arith.constant 0 : index
    %205 = vector.load %arg9[%c1_189, %c0_190, %c0_191] : memref<2x1x32xf32, #tpu.memory_space<vmem>>, vector<1x1x32xf32>
    %206 = vector.shape_cast %205 : vector<1x1x32xf32> to vector<1x32xf32>
    %c1_192 = arith.constant 1 : index
    %c0_193 = arith.constant 0 : index
    %c0_194 = arith.constant 0 : index
    %207 = vector.load %arg10[%c1_192, %c0_193, %c0_194] : memref<2x1x32xf32, #tpu.memory_space<vmem>>, vector<1x1x32xf32>
    %208 = vector.shape_cast %207 : vector<1x1x32xf32> to vector<1x32xf32>
    %c1_195 = arith.constant 1 : index
    %c0_196 = arith.constant 0 : index
    %c0_197 = arith.constant 0 : index
    %209 = vector.load %arg11[%c1_195, %c0_196, %c0_197] : memref<2x1x32xf32, #tpu.memory_space<vmem>>, vector<1x1x32xf32>
    %210 = vector.shape_cast %209 : vector<1x1x32xf32> to vector<1x32xf32>
    %211 = arith.truncf %172 : vector<16x32xf32> to vector<16x32xbf16>
    %cst_198 = arith.constant dense<0.000000e+00> : vector<16x8xf32>
    %212 = tpu.matmul %211, %174, %cst_198 {dimension_numbers = #tpu.dot_dimension_numbers<[1], [0], [0], [1], [0, 0, 1, 1], [], []>} : vector<16x32xbf16>, vector<32x8xbf16>, vector<16x8xf32> -> vector<16x8xf32>
    %213 = arith.truncf %172 : vector<16x32xf32> to vector<16x32xbf16>
    %cst_199 = arith.constant dense<0.000000e+00> : vector<16x8xf32>
    %214 = tpu.matmul %213, %176, %cst_199 {dimension_numbers = #tpu.dot_dimension_numbers<[1], [0], [0], [1], [0, 0, 1, 1], [], []>} : vector<16x32xbf16>, vector<32x8xbf16>, vector<16x8xf32> -> vector<16x8xf32>
    %215 = arith.truncf %172 : vector<16x32xf32> to vector<16x32xbf16>
    %cst_200 = arith.constant dense<0.000000e+00> : vector<16x8xf32>
    %216 = tpu.matmul %215, %178, %cst_200 {dimension_numbers = #tpu.dot_dimension_numbers<[1], [0], [0], [1], [0, 0, 1, 1], [], []>} : vector<16x32xbf16>, vector<32x8xbf16>, vector<16x8xf32> -> vector<16x8xf32>
    %217 = arith.truncf %172 : vector<16x32xf32> to vector<16x32xbf16>
    %cst_201 = arith.constant dense<0.000000e+00> : vector<16x8xf32>
    %218 = tpu.matmul %217, %180, %cst_201 {dimension_numbers = #tpu.dot_dimension_numbers<[1], [0], [0], [1], [0, 0, 1, 1], [], []>} : vector<16x32xbf16>, vector<32x8xbf16>, vector<16x8xf32> -> vector<16x8xf32>
    %219 = tpu.concatenate %212, %214, %216, %218 in 0 : vector<16x8xf32>, vector<16x8xf32>, vector<16x8xf32>, vector<16x8xf32> -> vector<64x8xf32>
    %220 = arith.truncf %172 : vector<16x32xf32> to vector<16x32xbf16>
    %cst_202 = arith.constant dense<0.000000e+00> : vector<16x8xf32>
    %221 = tpu.matmul %220, %182, %cst_202 {dimension_numbers = #tpu.dot_dimension_numbers<[1], [0], [0], [1], [0, 0, 1, 1], [], []>} : vector<16x32xbf16>, vector<32x8xbf16>, vector<16x8xf32> -> vector<16x8xf32>
    %222 = arith.truncf %172 : vector<16x32xf32> to vector<16x32xbf16>
    %cst_203 = arith.constant dense<0.000000e+00> : vector<16x8xf32>
    %223 = tpu.matmul %222, %184, %cst_203 {dimension_numbers = #tpu.dot_dimension_numbers<[1], [0], [0], [1], [0, 0, 1, 1], [], []>} : vector<16x32xbf16>, vector<32x8xbf16>, vector<16x8xf32> -> vector<16x8xf32>
    %224 = arith.truncf %172 : vector<16x32xf32> to vector<16x32xbf16>
    %cst_204 = arith.constant dense<0.000000e+00> : vector<16x8xf32>
    %225 = tpu.matmul %224, %186, %cst_204 {dimension_numbers = #tpu.dot_dimension_numbers<[1], [0], [0], [1], [0, 0, 1, 1], [], []>} : vector<16x32xbf16>, vector<32x8xbf16>, vector<16x8xf32> -> vector<16x8xf32>
    %226 = arith.truncf %172 : vector<16x32xf32> to vector<16x32xbf16>
    %cst_205 = arith.constant dense<0.000000e+00> : vector<16x8xf32>
    %227 = tpu.matmul %226, %188, %cst_205 {dimension_numbers = #tpu.dot_dimension_numbers<[1], [0], [0], [1], [0, 0, 1, 1], [], []>} : vector<16x32xbf16>, vector<32x8xbf16>, vector<16x8xf32> -> vector<16x8xf32>
    %228 = tpu.concatenate %221, %223, %225, %227 in 0 : vector<16x8xf32>, vector<16x8xf32>, vector<16x8xf32>, vector<16x8xf32> -> vector<64x8xf32>
    %229 = arith.truncf %172 : vector<16x32xf32> to vector<16x32xbf16>
    %cst_206 = arith.constant dense<0.000000e+00> : vector<16x8xf32>
    %230 = tpu.matmul %229, %190, %cst_206 {dimension_numbers = #tpu.dot_dimension_numbers<[1], [0], [0], [1], [0, 0, 1, 1], [], []>} : vector<16x32xbf16>, vector<32x8xbf16>, vector<16x8xf32> -> vector<16x8xf32>
    %231 = arith.truncf %172 : vector<16x32xf32> to vector<16x32xbf16>
    %cst_207 = arith.constant dense<0.000000e+00> : vector<16x8xf32>
    %232 = tpu.matmul %231, %192, %cst_207 {dimension_numbers = #tpu.dot_dimension_numbers<[1], [0], [0], [1], [0, 0, 1, 1], [], []>} : vector<16x32xbf16>, vector<32x8xbf16>, vector<16x8xf32> -> vector<16x8xf32>
    %233 = arith.truncf %172 : vector<16x32xf32> to vector<16x32xbf16>
    %cst_208 = arith.constant dense<0.000000e+00> : vector<16x8xf32>
    %234 = tpu.matmul %233, %194, %cst_208 {dimension_numbers = #tpu.dot_dimension_numbers<[1], [0], [0], [1], [0, 0, 1, 1], [], []>} : vector<16x32xbf16>, vector<32x8xbf16>, vector<16x8xf32> -> vector<16x8xf32>
    %235 = arith.truncf %172 : vector<16x32xf32> to vector<16x32xbf16>
    %cst_209 = arith.constant dense<0.000000e+00> : vector<16x8xf32>
    %236 = tpu.matmul %235, %196, %cst_209 {dimension_numbers = #tpu.dot_dimension_numbers<[1], [0], [0], [1], [0, 0, 1, 1], [], []>} : vector<16x32xbf16>, vector<32x8xbf16>, vector<16x8xf32> -> vector<16x8xf32>
    %237 = tpu.concatenate %230, %232, %234, %236 in 0 : vector<16x8xf32>, vector<16x8xf32>, vector<16x8xf32>, vector<16x8xf32> -> vector<64x8xf32>
    %238 = arith.truncf %219 : vector<64x8xf32> to vector<64x8xbf16>
    %239 = arith.truncf %228 : vector<64x8xf32> to vector<64x8xbf16>
    %cst_210 = arith.constant dense<0.000000e+00> : vector<64x64xf32>
    %240 = tpu.matmul %238, %239, %cst_210 {dimension_numbers = #tpu.dot_dimension_numbers<[1], [1], [0], [0], [0, 0, 1, 0], [], []>} : vector<64x8xbf16>, vector<64x8xbf16>, vector<64x64xf32> -> vector<64x64xf32>
    %cst_211 = arith.constant 0.353553385 : f32
    %241 = vector.broadcast %cst_211 : f32 to vector<64x64xf32>
    %242 = arith.mulf %240, %241 : vector<64x64xf32>
    %cst_212 = arith.constant 0.000000e+00 : f32
    %243 = vector.broadcast %cst_212 : f32 to vector<64x64xf32>
    %244 = arith.cmpf olt, %1, %243 : vector<64x64xf32>
    %245 = arith.select %244, %1, %242 : vector<64x64xi1>, vector<64x64xf32>
    %cst_213 = arith.constant dense<0xFF800000> : vector<64xf32>
    %246 = vector.multi_reduction <maximumf>, %245, %cst_213 [1] : vector<64x64xf32> to vector<64xf32>
    %247 = vector.shape_cast %246 : vector<64xf32> to vector<64x1xf32>
    %248 = vector.broadcast %247 : vector<64x1xf32> to vector<64x64xf32>
    %249 = arith.subf %245, %248 : vector<64x64xf32>
    %250 = math.exp %249 : vector<64x64xf32>
    %cst_214 = arith.constant dense<0.000000e+00> : vector<64xf32>
    %251 = vector.multi_reduction <add>, %250, %cst_214 [1] : vector<64x64xf32> to vector<64xf32>
    %252 = vector.shape_cast %251 : vector<64xf32> to vector<64x1xf32>
    %253 = tpu.reciprocal %252 {approx = true} : vector<64x1xf32> -> vector<64x1xf32>
    %254 = vector.broadcast %253 : vector<64x1xf32> to vector<64x64xf32>
    %255 = arith.mulf %250, %254 : vector<64x64xf32>
    %256 = arith.truncf %255 : vector<64x64xf32> to vector<64x64xbf16>
    %257 = arith.truncf %237 : vector<64x8xf32> to vector<64x8xbf16>
    %cst_215 = arith.constant dense<0.000000e+00> : vector<64x8xf32>
    %258 = tpu.matmul %256, %257, %cst_215 {dimension_numbers = #tpu.dot_dimension_numbers<[1], [0], [0], [1], [0, 0, 1, 1], [], []>} : vector<64x64xbf16>, vector<64x8xbf16>, vector<64x8xf32> -> vector<64x8xf32>
    %259 = vector.extract_strided_slice %258 {offsets = [0, 0], sizes = [16, 8], strides = [1, 1]} : vector<64x8xf32> to vector<16x8xf32>
    %260 = arith.truncf %259 : vector<16x8xf32> to vector<16x8xbf16>
    %cst_216 = arith.constant dense<0.000000e+00> : vector<16x32xf32>
    %261 = tpu.matmul %260, %198, %cst_216 {dimension_numbers = #tpu.dot_dimension_numbers<[1], [0], [0], [1], [0, 0, 1, 1], [], []>} : vector<16x8xbf16>, vector<8x32xbf16>, vector<16x32xf32> -> vector<16x32xf32>
    %262 = vector.broadcast %206 : vector<1x32xf32> to vector<16x32xf32>
    %263 = arith.addf %262, %261 : vector<16x32xf32>
    %264 = vector.extract_strided_slice %258 {offsets = [16, 0], sizes = [16, 8], strides = [1, 1]} : vector<64x8xf32> to vector<16x8xf32>
    %265 = arith.truncf %264 : vector<16x8xf32> to vector<16x8xbf16>
    %cst_217 = arith.constant dense<0.000000e+00> : vector<16x32xf32>
    %266 = tpu.matmul %265, %200, %cst_217 {dimension_numbers = #tpu.dot_dimension_numbers<[1], [0], [0], [1], [0, 0, 1, 1], [], []>} : vector<16x8xbf16>, vector<8x32xbf16>, vector<16x32xf32> -> vector<16x32xf32>
    %267 = arith.addf %263, %266 : vector<16x32xf32>
    %268 = vector.extract_strided_slice %258 {offsets = [32, 0], sizes = [16, 8], strides = [1, 1]} : vector<64x8xf32> to vector<16x8xf32>
    %269 = arith.truncf %268 : vector<16x8xf32> to vector<16x8xbf16>
    %cst_218 = arith.constant dense<0.000000e+00> : vector<16x32xf32>
    %270 = tpu.matmul %269, %202, %cst_218 {dimension_numbers = #tpu.dot_dimension_numbers<[1], [0], [0], [1], [0, 0, 1, 1], [], []>} : vector<16x8xbf16>, vector<8x32xbf16>, vector<16x32xf32> -> vector<16x32xf32>
    %271 = arith.addf %267, %270 : vector<16x32xf32>
    %272 = vector.extract_strided_slice %258 {offsets = [48, 0], sizes = [16, 8], strides = [1, 1]} : vector<64x8xf32> to vector<16x8xf32>
    %273 = arith.truncf %272 : vector<16x8xf32> to vector<16x8xbf16>
    %cst_219 = arith.constant dense<0.000000e+00> : vector<16x32xf32>
    %274 = tpu.matmul %273, %204, %cst_219 {dimension_numbers = #tpu.dot_dimension_numbers<[1], [0], [0], [1], [0, 0, 1, 1], [], []>} : vector<16x8xbf16>, vector<8x32xbf16>, vector<16x32xf32> -> vector<16x32xf32>
    %275 = arith.addf %271, %274 : vector<16x32xf32>
    %276 = arith.addf %172, %275 : vector<16x32xf32>
    %cst_220 = arith.constant dense<0.000000e+00> : vector<16xf32>
    %277 = vector.multi_reduction <add>, %276, %cst_220 [1] : vector<16x32xf32> to vector<16xf32>
    %278 = vector.shape_cast %277 : vector<16xf32> to vector<16x1xf32>
    %cst_221 = arith.constant 3.200000e+01 : f32
    %279 = vector.broadcast %cst_221 : f32 to vector<16x1xf32>
    %280 = arith.divf %278, %279 : vector<16x1xf32>
    %281 = vector.broadcast %280 : vector<16x1xf32> to vector<16x32xf32>
    %282 = arith.subf %276, %281 : vector<16x32xf32>
    %283 = arith.mulf %282, %282 : vector<16x32xf32>
    %cst_222 = arith.constant dense<0.000000e+00> : vector<16xf32>
    %284 = vector.multi_reduction <add>, %283, %cst_222 [1] : vector<16x32xf32> to vector<16xf32>
    %285 = vector.shape_cast %284 : vector<16xf32> to vector<16x1xf32>
    %cst_223 = arith.constant 3.200000e+01 : f32
    %286 = vector.broadcast %cst_223 : f32 to vector<16x1xf32>
    %287 = arith.divf %285, %286 : vector<16x1xf32>
    %288 = vector.broadcast %280 : vector<16x1xf32> to vector<16x32xf32>
    %289 = arith.subf %276, %288 : vector<16x32xf32>
    %cst_224 = arith.constant 9.99999974E-6 : f32
    %290 = vector.broadcast %cst_224 : f32 to vector<16x1xf32>
    %291 = arith.addf %287, %290 : vector<16x1xf32>
    %292 = math.rsqrt %291 : vector<16x1xf32>
    %293 = vector.broadcast %292 : vector<16x1xf32> to vector<16x32xf32>
    %294 = arith.mulf %289, %293 : vector<16x32xf32>
    %295 = vector.broadcast %208 : vector<1x32xf32> to vector<16x32xf32>
    %296 = arith.mulf %294, %295 : vector<16x32xf32>
    %297 = vector.broadcast %210 : vector<1x32xf32> to vector<16x32xf32>
    %298 = arith.addf %296, %297 : vector<16x32xf32>
    %c1_225 = arith.constant 1 : index
    %c0_226 = arith.constant 0 : index
    %c0_227 = arith.constant 0 : index
    %299 = vector.load %arg12[%c1_225, %c0_226, %c0_227] : memref<2x32x64xbf16, #tpu.memory_space<vmem>>, vector<1x32x64xbf16>
    %300 = vector.shape_cast %299 : vector<1x32x64xbf16> to vector<32x64xbf16>
    %c1_228 = arith.constant 1 : index
    %c0_229 = arith.constant 0 : index
    %c0_230 = arith.constant 0 : index
    %301 = vector.load %arg13[%c1_228, %c0_229, %c0_230] : memref<2x1x64xf32, #tpu.memory_space<vmem>>, vector<1x1x64xf32>
    %302 = vector.shape_cast %301 : vector<1x1x64xf32> to vector<1x64xf32>
    %c1_231 = arith.constant 1 : index
    %c0_232 = arith.constant 0 : index
    %c0_233 = arith.constant 0 : index
    %303 = vector.load %arg14[%c1_231, %c0_232, %c0_233] : memref<2x64x32xbf16, #tpu.memory_space<vmem>>, vector<1x64x32xbf16>
    %304 = vector.shape_cast %303 : vector<1x64x32xbf16> to vector<64x32xbf16>
    %c1_234 = arith.constant 1 : index
    %c0_235 = arith.constant 0 : index
    %c0_236 = arith.constant 0 : index
    %305 = vector.load %arg15[%c1_234, %c0_235, %c0_236] : memref<2x1x32xf32, #tpu.memory_space<vmem>>, vector<1x1x32xf32>
    %306 = vector.shape_cast %305 : vector<1x1x32xf32> to vector<1x32xf32>
    %c1_237 = arith.constant 1 : index
    %c0_238 = arith.constant 0 : index
    %c0_239 = arith.constant 0 : index
    %307 = vector.load %arg16[%c1_237, %c0_238, %c0_239] : memref<2x1x32xf32, #tpu.memory_space<vmem>>, vector<1x1x32xf32>
    %308 = vector.shape_cast %307 : vector<1x1x32xf32> to vector<1x32xf32>
    %c1_240 = arith.constant 1 : index
    %c0_241 = arith.constant 0 : index
    %c0_242 = arith.constant 0 : index
    %309 = vector.load %arg17[%c1_240, %c0_241, %c0_242] : memref<2x1x32xf32, #tpu.memory_space<vmem>>, vector<1x1x32xf32>
    %310 = vector.shape_cast %309 : vector<1x1x32xf32> to vector<1x32xf32>
    %311 = arith.truncf %298 : vector<16x32xf32> to vector<16x32xbf16>
    %cst_243 = arith.constant dense<0.000000e+00> : vector<16x64xf32>
    %312 = tpu.matmul %311, %300, %cst_243 {dimension_numbers = #tpu.dot_dimension_numbers<[1], [0], [0], [1], [0, 0, 1, 1], [], []>} : vector<16x32xbf16>, vector<32x64xbf16>, vector<16x64xf32> -> vector<16x64xf32>
    %313 = vector.broadcast %302 : vector<1x64xf32> to vector<16x64xf32>
    %314 = arith.addf %312, %313 : vector<16x64xf32>
    %cst_244 = arith.constant 0.000000e+00 : f32
    %315 = vector.broadcast %cst_244 : f32 to vector<16x64xf32>
    %316 = arith.maximumf %314, %315 : vector<16x64xf32>
    %317 = arith.truncf %316 : vector<16x64xf32> to vector<16x64xbf16>
    %cst_245 = arith.constant dense<0.000000e+00> : vector<16x32xf32>
    %318 = tpu.matmul %317, %304, %cst_245 {dimension_numbers = #tpu.dot_dimension_numbers<[1], [0], [0], [1], [0, 0, 1, 1], [], []>} : vector<16x64xbf16>, vector<64x32xbf16>, vector<16x32xf32> -> vector<16x32xf32>
    %319 = vector.broadcast %306 : vector<1x32xf32> to vector<16x32xf32>
    %320 = arith.addf %318, %319 : vector<16x32xf32>
    %321 = arith.addf %298, %320 : vector<16x32xf32>
    %cst_246 = arith.constant dense<0.000000e+00> : vector<16xf32>
    %322 = vector.multi_reduction <add>, %321, %cst_246 [1] : vector<16x32xf32> to vector<16xf32>
    %323 = vector.shape_cast %322 : vector<16xf32> to vector<16x1xf32>
    %cst_247 = arith.constant 3.200000e+01 : f32
    %324 = vector.broadcast %cst_247 : f32 to vector<16x1xf32>
    %325 = arith.divf %323, %324 : vector<16x1xf32>
    %326 = vector.broadcast %325 : vector<16x1xf32> to vector<16x32xf32>
    %327 = arith.subf %321, %326 : vector<16x32xf32>
    %328 = arith.mulf %327, %327 : vector<16x32xf32>
    %cst_248 = arith.constant dense<0.000000e+00> : vector<16xf32>
    %329 = vector.multi_reduction <add>, %328, %cst_248 [1] : vector<16x32xf32> to vector<16xf32>
    %330 = vector.shape_cast %329 : vector<16xf32> to vector<16x1xf32>
    %cst_249 = arith.constant 3.200000e+01 : f32
    %331 = vector.broadcast %cst_249 : f32 to vector<16x1xf32>
    %332 = arith.divf %330, %331 : vector<16x1xf32>
    %333 = vector.broadcast %325 : vector<16x1xf32> to vector<16x32xf32>
    %334 = arith.subf %321, %333 : vector<16x32xf32>
    %cst_250 = arith.constant 9.99999974E-6 : f32
    %335 = vector.broadcast %cst_250 : f32 to vector<16x1xf32>
    %336 = arith.addf %332, %335 : vector<16x1xf32>
    %337 = math.rsqrt %336 : vector<16x1xf32>
    %338 = vector.broadcast %337 : vector<16x1xf32> to vector<16x32xf32>
    %339 = arith.mulf %334, %338 : vector<16x32xf32>
    %340 = vector.broadcast %308 : vector<1x32xf32> to vector<16x32xf32>
    %341 = arith.mulf %339, %340 : vector<16x32xf32>
    %342 = vector.broadcast %310 : vector<1x32xf32> to vector<16x32xf32>
    %343 = arith.addf %341, %342 : vector<16x32xf32>
    %c0_251 = arith.constant 0 : index
    %c0_252 = arith.constant 0 : index
    %344 = vector.load %arg1[%c0_251, %c0_252] : memref<16x32xf32, #tpu.memory_space<vmem>>, vector<16x32xf32>
    %c0_253 = arith.constant 0 : index
    %c0_254 = arith.constant 0 : index
    %345 = vector.load %arg3[%c0_253, %c0_254] : memref<64x64xf32, #tpu.memory_space<vmem>>, vector<64x64xf32>
    %c0_255 = arith.constant 0 : index
    %c0_256 = arith.constant 0 : index
    %346 = vector.load %arg4[%c0_255, %c0_256] : memref<64x64xf32, #tpu.memory_space<vmem>>, vector<64x64xf32>
    %c0_257 = arith.constant 0 : index
    %c0_258 = arith.constant 0 : index
    %c0_259 = arith.constant 0 : index
    %c0_260 = arith.constant 0 : index
    %347 = vector.load %arg18[%c0_257, %c0_258, %c0_259, %c0_260] : memref<2x4x32x8xbf16, #tpu.memory_space<vmem>>, vector<1x1x32x8xbf16>
    %348 = vector.shape_cast %347 : vector<1x1x32x8xbf16> to vector<32x8xbf16>
    %c0_261 = arith.constant 0 : index
    %c1_262 = arith.constant 1 : index
    %c0_263 = arith.constant 0 : index
    %c0_264 = arith.constant 0 : index
    %349 = vector.load %arg18[%c0_261, %c1_262, %c0_263, %c0_264] : memref<2x4x32x8xbf16, #tpu.memory_space<vmem>>, vector<1x1x32x8xbf16>
    %350 = vector.shape_cast %349 : vector<1x1x32x8xbf16> to vector<32x8xbf16>
    %c0_265 = arith.constant 0 : index
    %c2_266 = arith.constant 2 : index
    %c0_267 = arith.constant 0 : index
    %c0_268 = arith.constant 0 : index
    %351 = vector.load %arg18[%c0_265, %c2_266, %c0_267, %c0_268] : memref<2x4x32x8xbf16, #tpu.memory_space<vmem>>, vector<1x1x32x8xbf16>
    %352 = vector.shape_cast %351 : vector<1x1x32x8xbf16> to vector<32x8xbf16>
    %c0_269 = arith.constant 0 : index
    %c3_270 = arith.constant 3 : index
    %c0_271 = arith.constant 0 : index
    %c0_272 = arith.constant 0 : index
    %353 = vector.load %arg18[%c0_269, %c3_270, %c0_271, %c0_272] : memref<2x4x32x8xbf16, #tpu.memory_space<vmem>>, vector<1x1x32x8xbf16>
    %354 = vector.shape_cast %353 : vector<1x1x32x8xbf16> to vector<32x8xbf16>
    %c0_273 = arith.constant 0 : index
    %c0_274 = arith.constant 0 : index
    %c0_275 = arith.constant 0 : index
    %c0_276 = arith.constant 0 : index
    %355 = vector.load %arg19[%c0_273, %c0_274, %c0_275, %c0_276] : memref<2x4x32x8xbf16, #tpu.memory_space<vmem>>, vector<1x1x32x8xbf16>
    %356 = vector.shape_cast %355 : vector<1x1x32x8xbf16> to vector<32x8xbf16>
    %c0_277 = arith.constant 0 : index
    %c1_278 = arith.constant 1 : index
    %c0_279 = arith.constant 0 : index
    %c0_280 = arith.constant 0 : index
    %357 = vector.load %arg19[%c0_277, %c1_278, %c0_279, %c0_280] : memref<2x4x32x8xbf16, #tpu.memory_space<vmem>>, vector<1x1x32x8xbf16>
    %358 = vector.shape_cast %357 : vector<1x1x32x8xbf16> to vector<32x8xbf16>
    %c0_281 = arith.constant 0 : index
    %c2_282 = arith.constant 2 : index
    %c0_283 = arith.constant 0 : index
    %c0_284 = arith.constant 0 : index
    %359 = vector.load %arg19[%c0_281, %c2_282, %c0_283, %c0_284] : memref<2x4x32x8xbf16, #tpu.memory_space<vmem>>, vector<1x1x32x8xbf16>
    %360 = vector.shape_cast %359 : vector<1x1x32x8xbf16> to vector<32x8xbf16>
    %c0_285 = arith.constant 0 : index
    %c3_286 = arith.constant 3 : index
    %c0_287 = arith.constant 0 : index
    %c0_288 = arith.constant 0 : index
    %361 = vector.load %arg19[%c0_285, %c3_286, %c0_287, %c0_288] : memref<2x4x32x8xbf16, #tpu.memory_space<vmem>>, vector<1x1x32x8xbf16>
    %362 = vector.shape_cast %361 : vector<1x1x32x8xbf16> to vector<32x8xbf16>
    %c0_289 = arith.constant 0 : index
    %c0_290 = arith.constant 0 : index
    %c0_291 = arith.constant 0 : index
    %c0_292 = arith.constant 0 : index
    %363 = vector.load %arg20[%c0_289, %c0_290, %c0_291, %c0_292] : memref<2x4x32x8xbf16, #tpu.memory_space<vmem>>, vector<1x1x32x8xbf16>
    %364 = vector.shape_cast %363 : vector<1x1x32x8xbf16> to vector<32x8xbf16>
    %c0_293 = arith.constant 0 : index
    %c1_294 = arith.constant 1 : index
    %c0_295 = arith.constant 0 : index
    %c0_296 = arith.constant 0 : index
    %365 = vector.load %arg20[%c0_293, %c1_294, %c0_295, %c0_296] : memref<2x4x32x8xbf16, #tpu.memory_space<vmem>>, vector<1x1x32x8xbf16>
    %366 = vector.shape_cast %365 : vector<1x1x32x8xbf16> to vector<32x8xbf16>
    %c0_297 = arith.constant 0 : index
    %c2_298 = arith.constant 2 : index
    %c0_299 = arith.constant 0 : index
    %c0_300 = arith.constant 0 : index
    %367 = vector.load %arg20[%c0_297, %c2_298, %c0_299, %c0_300] : memref<2x4x32x8xbf16, #tpu.memory_space<vmem>>, vector<1x1x32x8xbf16>
    %368 = vector.shape_cast %367 : vector<1x1x32x8xbf16> to vector<32x8xbf16>
    %c0_301 = arith.constant 0 : index
    %c3_302 = arith.constant 3 : index
    %c0_303 = arith.constant 0 : index
    %c0_304 = arith.constant 0 : index
    %369 = vector.load %arg20[%c0_301, %c3_302, %c0_303, %c0_304] : memref<2x4x32x8xbf16, #tpu.memory_space<vmem>>, vector<1x1x32x8xbf16>
    %370 = vector.shape_cast %369 : vector<1x1x32x8xbf16> to vector<32x8xbf16>
    %c0_305 = arith.constant 0 : index
    %c0_306 = arith.constant 0 : index
    %c0_307 = arith.constant 0 : index
    %c0_308 = arith.constant 0 : index
    %371 = vector.load %arg21[%c0_305, %c0_306, %c0_307, %c0_308] : memref<2x4x8x32xbf16, #tpu.memory_space<vmem>>, vector<1x1x8x32xbf16>
    %372 = vector.shape_cast %371 : vector<1x1x8x32xbf16> to vector<8x32xbf16>
    %c0_309 = arith.constant 0 : index
    %c1_310 = arith.constant 1 : index
    %c0_311 = arith.constant 0 : index
    %c0_312 = arith.constant 0 : index
    %373 = vector.load %arg21[%c0_309, %c1_310, %c0_311, %c0_312] : memref<2x4x8x32xbf16, #tpu.memory_space<vmem>>, vector<1x1x8x32xbf16>
    %374 = vector.shape_cast %373 : vector<1x1x8x32xbf16> to vector<8x32xbf16>
    %c0_313 = arith.constant 0 : index
    %c2_314 = arith.constant 2 : index
    %c0_315 = arith.constant 0 : index
    %c0_316 = arith.constant 0 : index
    %375 = vector.load %arg21[%c0_313, %c2_314, %c0_315, %c0_316] : memref<2x4x8x32xbf16, #tpu.memory_space<vmem>>, vector<1x1x8x32xbf16>
    %376 = vector.shape_cast %375 : vector<1x1x8x32xbf16> to vector<8x32xbf16>
    %c0_317 = arith.constant 0 : index
    %c3_318 = arith.constant 3 : index
    %c0_319 = arith.constant 0 : index
    %c0_320 = arith.constant 0 : index
    %377 = vector.load %arg21[%c0_317, %c3_318, %c0_319, %c0_320] : memref<2x4x8x32xbf16, #tpu.memory_space<vmem>>, vector<1x1x8x32xbf16>
    %378 = vector.shape_cast %377 : vector<1x1x8x32xbf16> to vector<8x32xbf16>
    %c0_321 = arith.constant 0 : index
    %c0_322 = arith.constant 0 : index
    %c0_323 = arith.constant 0 : index
    %379 = vector.load %arg22[%c0_321, %c0_322, %c0_323] : memref<2x1x32xf32, #tpu.memory_space<vmem>>, vector<1x1x32xf32>
    %380 = vector.shape_cast %379 : vector<1x1x32xf32> to vector<1x32xf32>
    %c0_324 = arith.constant 0 : index
    %c0_325 = arith.constant 0 : index
    %c0_326 = arith.constant 0 : index
    %381 = vector.load %arg23[%c0_324, %c0_325, %c0_326] : memref<2x1x32xf32, #tpu.memory_space<vmem>>, vector<1x1x32xf32>
    %382 = vector.shape_cast %381 : vector<1x1x32xf32> to vector<1x32xf32>
    %c0_327 = arith.constant 0 : index
    %c0_328 = arith.constant 0 : index
    %c0_329 = arith.constant 0 : index
    %383 = vector.load %arg24[%c0_327, %c0_328, %c0_329] : memref<2x1x32xf32, #tpu.memory_space<vmem>>, vector<1x1x32xf32>
    %384 = vector.shape_cast %383 : vector<1x1x32xf32> to vector<1x32xf32>
    %385 = arith.truncf %344 : vector<16x32xf32> to vector<16x32xbf16>
    %cst_330 = arith.constant dense<0.000000e+00> : vector<16x8xf32>
    %386 = tpu.matmul %385, %348, %cst_330 {dimension_numbers = #tpu.dot_dimension_numbers<[1], [0], [0], [1], [0, 0, 1, 1], [], []>} : vector<16x32xbf16>, vector<32x8xbf16>, vector<16x8xf32> -> vector<16x8xf32>
    %387 = arith.truncf %344 : vector<16x32xf32> to vector<16x32xbf16>
    %cst_331 = arith.constant dense<0.000000e+00> : vector<16x8xf32>
    %388 = tpu.matmul %387, %350, %cst_331 {dimension_numbers = #tpu.dot_dimension_numbers<[1], [0], [0], [1], [0, 0, 1, 1], [], []>} : vector<16x32xbf16>, vector<32x8xbf16>, vector<16x8xf32> -> vector<16x8xf32>
    %389 = arith.truncf %344 : vector<16x32xf32> to vector<16x32xbf16>
    %cst_332 = arith.constant dense<0.000000e+00> : vector<16x8xf32>
    %390 = tpu.matmul %389, %352, %cst_332 {dimension_numbers = #tpu.dot_dimension_numbers<[1], [0], [0], [1], [0, 0, 1, 1], [], []>} : vector<16x32xbf16>, vector<32x8xbf16>, vector<16x8xf32> -> vector<16x8xf32>
    %391 = arith.truncf %344 : vector<16x32xf32> to vector<16x32xbf16>
    %cst_333 = arith.constant dense<0.000000e+00> : vector<16x8xf32>
    %392 = tpu.matmul %391, %354, %cst_333 {dimension_numbers = #tpu.dot_dimension_numbers<[1], [0], [0], [1], [0, 0, 1, 1], [], []>} : vector<16x32xbf16>, vector<32x8xbf16>, vector<16x8xf32> -> vector<16x8xf32>
    %393 = tpu.concatenate %386, %388, %390, %392 in 0 : vector<16x8xf32>, vector<16x8xf32>, vector<16x8xf32>, vector<16x8xf32> -> vector<64x8xf32>
    %394 = arith.truncf %344 : vector<16x32xf32> to vector<16x32xbf16>
    %cst_334 = arith.constant dense<0.000000e+00> : vector<16x8xf32>
    %395 = tpu.matmul %394, %356, %cst_334 {dimension_numbers = #tpu.dot_dimension_numbers<[1], [0], [0], [1], [0, 0, 1, 1], [], []>} : vector<16x32xbf16>, vector<32x8xbf16>, vector<16x8xf32> -> vector<16x8xf32>
    %396 = arith.truncf %344 : vector<16x32xf32> to vector<16x32xbf16>
    %cst_335 = arith.constant dense<0.000000e+00> : vector<16x8xf32>
    %397 = tpu.matmul %396, %358, %cst_335 {dimension_numbers = #tpu.dot_dimension_numbers<[1], [0], [0], [1], [0, 0, 1, 1], [], []>} : vector<16x32xbf16>, vector<32x8xbf16>, vector<16x8xf32> -> vector<16x8xf32>
    %398 = arith.truncf %344 : vector<16x32xf32> to vector<16x32xbf16>
    %cst_336 = arith.constant dense<0.000000e+00> : vector<16x8xf32>
    %399 = tpu.matmul %398, %360, %cst_336 {dimension_numbers = #tpu.dot_dimension_numbers<[1], [0], [0], [1], [0, 0, 1, 1], [], []>} : vector<16x32xbf16>, vector<32x8xbf16>, vector<16x8xf32> -> vector<16x8xf32>
    %400 = arith.truncf %344 : vector<16x32xf32> to vector<16x32xbf16>
    %cst_337 = arith.constant dense<0.000000e+00> : vector<16x8xf32>
    %401 = tpu.matmul %400, %362, %cst_337 {dimension_numbers = #tpu.dot_dimension_numbers<[1], [0], [0], [1], [0, 0, 1, 1], [], []>} : vector<16x32xbf16>, vector<32x8xbf16>, vector<16x8xf32> -> vector<16x8xf32>
    %402 = tpu.concatenate %395, %397, %399, %401 in 0 : vector<16x8xf32>, vector<16x8xf32>, vector<16x8xf32>, vector<16x8xf32> -> vector<64x8xf32>
    %403 = arith.truncf %344 : vector<16x32xf32> to vector<16x32xbf16>
    %cst_338 = arith.constant dense<0.000000e+00> : vector<16x8xf32>
    %404 = tpu.matmul %403, %364, %cst_338 {dimension_numbers = #tpu.dot_dimension_numbers<[1], [0], [0], [1], [0, 0, 1, 1], [], []>} : vector<16x32xbf16>, vector<32x8xbf16>, vector<16x8xf32> -> vector<16x8xf32>
    %405 = arith.truncf %344 : vector<16x32xf32> to vector<16x32xbf16>
    %cst_339 = arith.constant dense<0.000000e+00> : vector<16x8xf32>
    %406 = tpu.matmul %405, %366, %cst_339 {dimension_numbers = #tpu.dot_dimension_numbers<[1], [0], [0], [1], [0, 0, 1, 1], [], []>} : vector<16x32xbf16>, vector<32x8xbf16>, vector<16x8xf32> -> vector<16x8xf32>
    %407 = arith.truncf %344 : vector<16x32xf32> to vector<16x32xbf16>
    %cst_340 = arith.constant dense<0.000000e+00> : vector<16x8xf32>
    %408 = tpu.matmul %407, %368, %cst_340 {dimension_numbers = #tpu.dot_dimension_numbers<[1], [0], [0], [1], [0, 0, 1, 1], [], []>} : vector<16x32xbf16>, vector<32x8xbf16>, vector<16x8xf32> -> vector<16x8xf32>
    %409 = arith.truncf %344 : vector<16x32xf32> to vector<16x32xbf16>
    %cst_341 = arith.constant dense<0.000000e+00> : vector<16x8xf32>
    %410 = tpu.matmul %409, %370, %cst_341 {dimension_numbers = #tpu.dot_dimension_numbers<[1], [0], [0], [1], [0, 0, 1, 1], [], []>} : vector<16x32xbf16>, vector<32x8xbf16>, vector<16x8xf32> -> vector<16x8xf32>
    %411 = tpu.concatenate %404, %406, %408, %410 in 0 : vector<16x8xf32>, vector<16x8xf32>, vector<16x8xf32>, vector<16x8xf32> -> vector<64x8xf32>
    %412 = arith.truncf %393 : vector<64x8xf32> to vector<64x8xbf16>
    %413 = arith.truncf %402 : vector<64x8xf32> to vector<64x8xbf16>
    %cst_342 = arith.constant dense<0.000000e+00> : vector<64x64xf32>
    %414 = tpu.matmul %412, %413, %cst_342 {dimension_numbers = #tpu.dot_dimension_numbers<[1], [1], [0], [0], [0, 0, 1, 0], [], []>} : vector<64x8xbf16>, vector<64x8xbf16>, vector<64x64xf32> -> vector<64x64xf32>
    %cst_343 = arith.constant 0.353553385 : f32
    %415 = vector.broadcast %cst_343 : f32 to vector<64x64xf32>
    %416 = arith.mulf %414, %415 : vector<64x64xf32>
    %cst_344 = arith.constant 0.000000e+00 : f32
    %417 = vector.broadcast %cst_344 : f32 to vector<64x64xf32>
    %418 = arith.cmpf olt, %345, %417 : vector<64x64xf32>
    %419 = arith.select %418, %345, %416 : vector<64x64xi1>, vector<64x64xf32>
    %cst_345 = arith.constant dense<0xFF800000> : vector<64xf32>
    %420 = vector.multi_reduction <maximumf>, %419, %cst_345 [1] : vector<64x64xf32> to vector<64xf32>
    %421 = vector.shape_cast %420 : vector<64xf32> to vector<64x1xf32>
    %422 = vector.broadcast %421 : vector<64x1xf32> to vector<64x64xf32>
    %423 = arith.subf %419, %422 : vector<64x64xf32>
    %424 = math.exp %423 : vector<64x64xf32>
    %cst_346 = arith.constant dense<0.000000e+00> : vector<64xf32>
    %425 = vector.multi_reduction <add>, %424, %cst_346 [1] : vector<64x64xf32> to vector<64xf32>
    %426 = vector.shape_cast %425 : vector<64xf32> to vector<64x1xf32>
    %427 = tpu.reciprocal %426 {approx = true} : vector<64x1xf32> -> vector<64x1xf32>
    %428 = vector.broadcast %427 : vector<64x1xf32> to vector<64x64xf32>
    %429 = arith.mulf %424, %428 : vector<64x64xf32>
    %430 = arith.truncf %429 : vector<64x64xf32> to vector<64x64xbf16>
    %431 = arith.truncf %411 : vector<64x8xf32> to vector<64x8xbf16>
    %cst_347 = arith.constant dense<0.000000e+00> : vector<64x8xf32>
    %432 = tpu.matmul %430, %431, %cst_347 {dimension_numbers = #tpu.dot_dimension_numbers<[1], [0], [0], [1], [0, 0, 1, 1], [], []>} : vector<64x64xbf16>, vector<64x8xbf16>, vector<64x8xf32> -> vector<64x8xf32>
    %433 = vector.extract_strided_slice %432 {offsets = [0, 0], sizes = [16, 8], strides = [1, 1]} : vector<64x8xf32> to vector<16x8xf32>
    %434 = arith.truncf %433 : vector<16x8xf32> to vector<16x8xbf16>
    %cst_348 = arith.constant dense<0.000000e+00> : vector<16x32xf32>
    %435 = tpu.matmul %434, %372, %cst_348 {dimension_numbers = #tpu.dot_dimension_numbers<[1], [0], [0], [1], [0, 0, 1, 1], [], []>} : vector<16x8xbf16>, vector<8x32xbf16>, vector<16x32xf32> -> vector<16x32xf32>
    %436 = vector.broadcast %380 : vector<1x32xf32> to vector<16x32xf32>
    %437 = arith.addf %436, %435 : vector<16x32xf32>
    %438 = vector.extract_strided_slice %432 {offsets = [16, 0], sizes = [16, 8], strides = [1, 1]} : vector<64x8xf32> to vector<16x8xf32>
    %439 = arith.truncf %438 : vector<16x8xf32> to vector<16x8xbf16>
    %cst_349 = arith.constant dense<0.000000e+00> : vector<16x32xf32>
    %440 = tpu.matmul %439, %374, %cst_349 {dimension_numbers = #tpu.dot_dimension_numbers<[1], [0], [0], [1], [0, 0, 1, 1], [], []>} : vector<16x8xbf16>, vector<8x32xbf16>, vector<16x32xf32> -> vector<16x32xf32>
    %441 = arith.addf %437, %440 : vector<16x32xf32>
    %442 = vector.extract_strided_slice %432 {offsets = [32, 0], sizes = [16, 8], strides = [1, 1]} : vector<64x8xf32> to vector<16x8xf32>
    %443 = arith.truncf %442 : vector<16x8xf32> to vector<16x8xbf16>
    %cst_350 = arith.constant dense<0.000000e+00> : vector<16x32xf32>
    %444 = tpu.matmul %443, %376, %cst_350 {dimension_numbers = #tpu.dot_dimension_numbers<[1], [0], [0], [1], [0, 0, 1, 1], [], []>} : vector<16x8xbf16>, vector<8x32xbf16>, vector<16x32xf32> -> vector<16x32xf32>
    %445 = arith.addf %441, %444 : vector<16x32xf32>
    %446 = vector.extract_strided_slice %432 {offsets = [48, 0], sizes = [16, 8], strides = [1, 1]} : vector<64x8xf32> to vector<16x8xf32>
    %447 = arith.truncf %446 : vector<16x8xf32> to vector<16x8xbf16>
    %cst_351 = arith.constant dense<0.000000e+00> : vector<16x32xf32>
    %448 = tpu.matmul %447, %378, %cst_351 {dimension_numbers = #tpu.dot_dimension_numbers<[1], [0], [0], [1], [0, 0, 1, 1], [], []>} : vector<16x8xbf16>, vector<8x32xbf16>, vector<16x32xf32> -> vector<16x32xf32>
    %449 = arith.addf %445, %448 : vector<16x32xf32>
    %450 = arith.addf %344, %449 : vector<16x32xf32>
    %cst_352 = arith.constant dense<0.000000e+00> : vector<16xf32>
    %451 = vector.multi_reduction <add>, %450, %cst_352 [1] : vector<16x32xf32> to vector<16xf32>
    %452 = vector.shape_cast %451 : vector<16xf32> to vector<16x1xf32>
    %cst_353 = arith.constant 3.200000e+01 : f32
    %453 = vector.broadcast %cst_353 : f32 to vector<16x1xf32>
    %454 = arith.divf %452, %453 : vector<16x1xf32>
    %455 = vector.broadcast %454 : vector<16x1xf32> to vector<16x32xf32>
    %456 = arith.subf %450, %455 : vector<16x32xf32>
    %457 = arith.mulf %456, %456 : vector<16x32xf32>
    %cst_354 = arith.constant dense<0.000000e+00> : vector<16xf32>
    %458 = vector.multi_reduction <add>, %457, %cst_354 [1] : vector<16x32xf32> to vector<16xf32>
    %459 = vector.shape_cast %458 : vector<16xf32> to vector<16x1xf32>
    %cst_355 = arith.constant 3.200000e+01 : f32
    %460 = vector.broadcast %cst_355 : f32 to vector<16x1xf32>
    %461 = arith.divf %459, %460 : vector<16x1xf32>
    %462 = vector.broadcast %454 : vector<16x1xf32> to vector<16x32xf32>
    %463 = arith.subf %450, %462 : vector<16x32xf32>
    %cst_356 = arith.constant 9.99999974E-6 : f32
    %464 = vector.broadcast %cst_356 : f32 to vector<16x1xf32>
    %465 = arith.addf %461, %464 : vector<16x1xf32>
    %466 = math.rsqrt %465 : vector<16x1xf32>
    %467 = vector.broadcast %466 : vector<16x1xf32> to vector<16x32xf32>
    %468 = arith.mulf %463, %467 : vector<16x32xf32>
    %469 = vector.broadcast %382 : vector<1x32xf32> to vector<16x32xf32>
    %470 = arith.mulf %468, %469 : vector<16x32xf32>
    %471 = vector.broadcast %384 : vector<1x32xf32> to vector<16x32xf32>
    %472 = arith.addf %470, %471 : vector<16x32xf32>
    %c0_357 = arith.constant 0 : index
    %c0_358 = arith.constant 0 : index
    %c0_359 = arith.constant 0 : index
    %473 = vector.load %arg22[%c0_357, %c0_358, %c0_359] : memref<2x1x32xf32, #tpu.memory_space<vmem>>, vector<1x1x32xf32>
    %474 = vector.shape_cast %473 : vector<1x1x32xf32> to vector<1x32xf32>
    %c0_360 = arith.constant 0 : index
    %c0_361 = arith.constant 0 : index
    %c0_362 = arith.constant 0 : index
    %475 = vector.load %arg23[%c0_360, %c0_361, %c0_362] : memref<2x1x32xf32, #tpu.memory_space<vmem>>, vector<1x1x32xf32>
    %476 = vector.shape_cast %475 : vector<1x1x32xf32> to vector<1x32xf32>
    %c0_363 = arith.constant 0 : index
    %c0_364 = arith.constant 0 : index
    %c0_365 = arith.constant 0 : index
    %477 = vector.load %arg24[%c0_363, %c0_364, %c0_365] : memref<2x1x32xf32, #tpu.memory_space<vmem>>, vector<1x1x32xf32>
    %478 = vector.shape_cast %477 : vector<1x1x32xf32> to vector<1x32xf32>
    %479 = arith.truncf %343 : vector<16x32xf32> to vector<16x32xbf16>
    %cst_366 = arith.constant dense<0.000000e+00> : vector<16x8xf32>
    %480 = tpu.matmul %479, %348, %cst_366 {dimension_numbers = #tpu.dot_dimension_numbers<[1], [0], [0], [1], [0, 0, 1, 1], [], []>} : vector<16x32xbf16>, vector<32x8xbf16>, vector<16x8xf32> -> vector<16x8xf32>
    %481 = arith.truncf %343 : vector<16x32xf32> to vector<16x32xbf16>
    %cst_367 = arith.constant dense<0.000000e+00> : vector<16x8xf32>
    %482 = tpu.matmul %481, %350, %cst_367 {dimension_numbers = #tpu.dot_dimension_numbers<[1], [0], [0], [1], [0, 0, 1, 1], [], []>} : vector<16x32xbf16>, vector<32x8xbf16>, vector<16x8xf32> -> vector<16x8xf32>
    %483 = arith.truncf %343 : vector<16x32xf32> to vector<16x32xbf16>
    %cst_368 = arith.constant dense<0.000000e+00> : vector<16x8xf32>
    %484 = tpu.matmul %483, %352, %cst_368 {dimension_numbers = #tpu.dot_dimension_numbers<[1], [0], [0], [1], [0, 0, 1, 1], [], []>} : vector<16x32xbf16>, vector<32x8xbf16>, vector<16x8xf32> -> vector<16x8xf32>
    %485 = arith.truncf %343 : vector<16x32xf32> to vector<16x32xbf16>
    %cst_369 = arith.constant dense<0.000000e+00> : vector<16x8xf32>
    %486 = tpu.matmul %485, %354, %cst_369 {dimension_numbers = #tpu.dot_dimension_numbers<[1], [0], [0], [1], [0, 0, 1, 1], [], []>} : vector<16x32xbf16>, vector<32x8xbf16>, vector<16x8xf32> -> vector<16x8xf32>
    %487 = tpu.concatenate %480, %482, %484, %486 in 0 : vector<16x8xf32>, vector<16x8xf32>, vector<16x8xf32>, vector<16x8xf32> -> vector<64x8xf32>
    %488 = arith.truncf %343 : vector<16x32xf32> to vector<16x32xbf16>
    %cst_370 = arith.constant dense<0.000000e+00> : vector<16x8xf32>
    %489 = tpu.matmul %488, %356, %cst_370 {dimension_numbers = #tpu.dot_dimension_numbers<[1], [0], [0], [1], [0, 0, 1, 1], [], []>} : vector<16x32xbf16>, vector<32x8xbf16>, vector<16x8xf32> -> vector<16x8xf32>
    %490 = arith.truncf %343 : vector<16x32xf32> to vector<16x32xbf16>
    %cst_371 = arith.constant dense<0.000000e+00> : vector<16x8xf32>
    %491 = tpu.matmul %490, %358, %cst_371 {dimension_numbers = #tpu.dot_dimension_numbers<[1], [0], [0], [1], [0, 0, 1, 1], [], []>} : vector<16x32xbf16>, vector<32x8xbf16>, vector<16x8xf32> -> vector<16x8xf32>
    %492 = arith.truncf %343 : vector<16x32xf32> to vector<16x32xbf16>
    %cst_372 = arith.constant dense<0.000000e+00> : vector<16x8xf32>
    %493 = tpu.matmul %492, %360, %cst_372 {dimension_numbers = #tpu.dot_dimension_numbers<[1], [0], [0], [1], [0, 0, 1, 1], [], []>} : vector<16x32xbf16>, vector<32x8xbf16>, vector<16x8xf32> -> vector<16x8xf32>
    %494 = arith.truncf %343 : vector<16x32xf32> to vector<16x32xbf16>
    %cst_373 = arith.constant dense<0.000000e+00> : vector<16x8xf32>
    %495 = tpu.matmul %494, %362, %cst_373 {dimension_numbers = #tpu.dot_dimension_numbers<[1], [0], [0], [1], [0, 0, 1, 1], [], []>} : vector<16x32xbf16>, vector<32x8xbf16>, vector<16x8xf32> -> vector<16x8xf32>
    %496 = tpu.concatenate %489, %491, %493, %495 in 0 : vector<16x8xf32>, vector<16x8xf32>, vector<16x8xf32>, vector<16x8xf32> -> vector<64x8xf32>
    %497 = arith.truncf %472 : vector<16x32xf32> to vector<16x32xbf16>
    %cst_374 = arith.constant dense<0.000000e+00> : vector<16x8xf32>
    %498 = tpu.matmul %497, %364, %cst_374 {dimension_numbers = #tpu.dot_dimension_numbers<[1], [0], [0], [1], [0, 0, 1, 1], [], []>} : vector<16x32xbf16>, vector<32x8xbf16>, vector<16x8xf32> -> vector<16x8xf32>
    %499 = arith.truncf %472 : vector<16x32xf32> to vector<16x32xbf16>
    %cst_375 = arith.constant dense<0.000000e+00> : vector<16x8xf32>
    %500 = tpu.matmul %499, %366, %cst_375 {dimension_numbers = #tpu.dot_dimension_numbers<[1], [0], [0], [1], [0, 0, 1, 1], [], []>} : vector<16x32xbf16>, vector<32x8xbf16>, vector<16x8xf32> -> vector<16x8xf32>
    %501 = arith.truncf %472 : vector<16x32xf32> to vector<16x32xbf16>
    %cst_376 = arith.constant dense<0.000000e+00> : vector<16x8xf32>
    %502 = tpu.matmul %501, %368, %cst_376 {dimension_numbers = #tpu.dot_dimension_numbers<[1], [0], [0], [1], [0, 0, 1, 1], [], []>} : vector<16x32xbf16>, vector<32x8xbf16>, vector<16x8xf32> -> vector<16x8xf32>
    %503 = arith.truncf %472 : vector<16x32xf32> to vector<16x32xbf16>
    %cst_377 = arith.constant dense<0.000000e+00> : vector<16x8xf32>
    %504 = tpu.matmul %503, %370, %cst_377 {dimension_numbers = #tpu.dot_dimension_numbers<[1], [0], [0], [1], [0, 0, 1, 1], [], []>} : vector<16x32xbf16>, vector<32x8xbf16>, vector<16x8xf32> -> vector<16x8xf32>
    %505 = tpu.concatenate %498, %500, %502, %504 in 0 : vector<16x8xf32>, vector<16x8xf32>, vector<16x8xf32>, vector<16x8xf32> -> vector<64x8xf32>
    %506 = arith.truncf %487 : vector<64x8xf32> to vector<64x8xbf16>
    %507 = arith.truncf %496 : vector<64x8xf32> to vector<64x8xbf16>
    %cst_378 = arith.constant dense<0.000000e+00> : vector<64x64xf32>
    %508 = tpu.matmul %506, %507, %cst_378 {dimension_numbers = #tpu.dot_dimension_numbers<[1], [1], [0], [0], [0, 0, 1, 0], [], []>} : vector<64x8xbf16>, vector<64x8xbf16>, vector<64x64xf32> -> vector<64x64xf32>
    %cst_379 = arith.constant 0.353553385 : f32
    %509 = vector.broadcast %cst_379 : f32 to vector<64x64xf32>
    %510 = arith.mulf %508, %509 : vector<64x64xf32>
    %cst_380 = arith.constant 0.000000e+00 : f32
    %511 = vector.broadcast %cst_380 : f32 to vector<64x64xf32>
    %512 = arith.cmpf olt, %346, %511 : vector<64x64xf32>
    %513 = arith.select %512, %346, %510 : vector<64x64xi1>, vector<64x64xf32>
    %cst_381 = arith.constant dense<0xFF800000> : vector<64xf32>
    %514 = vector.multi_reduction <maximumf>, %513, %cst_381 [1] : vector<64x64xf32> to vector<64xf32>
    %515 = vector.shape_cast %514 : vector<64xf32> to vector<64x1xf32>
    %516 = vector.broadcast %515 : vector<64x1xf32> to vector<64x64xf32>
    %517 = arith.subf %513, %516 : vector<64x64xf32>
    %518 = math.exp %517 : vector<64x64xf32>
    %cst_382 = arith.constant dense<0.000000e+00> : vector<64xf32>
    %519 = vector.multi_reduction <add>, %518, %cst_382 [1] : vector<64x64xf32> to vector<64xf32>
    %520 = vector.shape_cast %519 : vector<64xf32> to vector<64x1xf32>
    %521 = tpu.reciprocal %520 {approx = true} : vector<64x1xf32> -> vector<64x1xf32>
    %522 = vector.broadcast %521 : vector<64x1xf32> to vector<64x64xf32>
    %523 = arith.mulf %518, %522 : vector<64x64xf32>
    %524 = arith.truncf %523 : vector<64x64xf32> to vector<64x64xbf16>
    %525 = arith.truncf %505 : vector<64x8xf32> to vector<64x8xbf16>
    %cst_383 = arith.constant dense<0.000000e+00> : vector<64x8xf32>
    %526 = tpu.matmul %524, %525, %cst_383 {dimension_numbers = #tpu.dot_dimension_numbers<[1], [0], [0], [1], [0, 0, 1, 1], [], []>} : vector<64x64xbf16>, vector<64x8xbf16>, vector<64x8xf32> -> vector<64x8xf32>
    %527 = vector.extract_strided_slice %526 {offsets = [0, 0], sizes = [16, 8], strides = [1, 1]} : vector<64x8xf32> to vector<16x8xf32>
    %528 = arith.truncf %527 : vector<16x8xf32> to vector<16x8xbf16>
    %cst_384 = arith.constant dense<0.000000e+00> : vector<16x32xf32>
    %529 = tpu.matmul %528, %372, %cst_384 {dimension_numbers = #tpu.dot_dimension_numbers<[1], [0], [0], [1], [0, 0, 1, 1], [], []>} : vector<16x8xbf16>, vector<8x32xbf16>, vector<16x32xf32> -> vector<16x32xf32>
    %530 = vector.broadcast %474 : vector<1x32xf32> to vector<16x32xf32>
    %531 = arith.addf %530, %529 : vector<16x32xf32>
    %532 = vector.extract_strided_slice %526 {offsets = [16, 0], sizes = [16, 8], strides = [1, 1]} : vector<64x8xf32> to vector<16x8xf32>
    %533 = arith.truncf %532 : vector<16x8xf32> to vector<16x8xbf16>
    %cst_385 = arith.constant dense<0.000000e+00> : vector<16x32xf32>
    %534 = tpu.matmul %533, %374, %cst_385 {dimension_numbers = #tpu.dot_dimension_numbers<[1], [0], [0], [1], [0, 0, 1, 1], [], []>} : vector<16x8xbf16>, vector<8x32xbf16>, vector<16x32xf32> -> vector<16x32xf32>
    %535 = arith.addf %531, %534 : vector<16x32xf32>
    %536 = vector.extract_strided_slice %526 {offsets = [32, 0], sizes = [16, 8], strides = [1, 1]} : vector<64x8xf32> to vector<16x8xf32>
    %537 = arith.truncf %536 : vector<16x8xf32> to vector<16x8xbf16>
    %cst_386 = arith.constant dense<0.000000e+00> : vector<16x32xf32>
    %538 = tpu.matmul %537, %376, %cst_386 {dimension_numbers = #tpu.dot_dimension_numbers<[1], [0], [0], [1], [0, 0, 1, 1], [], []>} : vector<16x8xbf16>, vector<8x32xbf16>, vector<16x32xf32> -> vector<16x32xf32>
    %539 = arith.addf %535, %538 : vector<16x32xf32>
    %540 = vector.extract_strided_slice %526 {offsets = [48, 0], sizes = [16, 8], strides = [1, 1]} : vector<64x8xf32> to vector<16x8xf32>
    %541 = arith.truncf %540 : vector<16x8xf32> to vector<16x8xbf16>
    %cst_387 = arith.constant dense<0.000000e+00> : vector<16x32xf32>
    %542 = tpu.matmul %541, %378, %cst_387 {dimension_numbers = #tpu.dot_dimension_numbers<[1], [0], [0], [1], [0, 0, 1, 1], [], []>} : vector<16x8xbf16>, vector<8x32xbf16>, vector<16x32xf32> -> vector<16x32xf32>
    %543 = arith.addf %539, %542 : vector<16x32xf32>
    %544 = arith.addf %343, %543 : vector<16x32xf32>
    %cst_388 = arith.constant dense<0.000000e+00> : vector<16xf32>
    %545 = vector.multi_reduction <add>, %544, %cst_388 [1] : vector<16x32xf32> to vector<16xf32>
    %546 = vector.shape_cast %545 : vector<16xf32> to vector<16x1xf32>
    %cst_389 = arith.constant 3.200000e+01 : f32
    %547 = vector.broadcast %cst_389 : f32 to vector<16x1xf32>
    %548 = arith.divf %546, %547 : vector<16x1xf32>
    %549 = vector.broadcast %548 : vector<16x1xf32> to vector<16x32xf32>
    %550 = arith.subf %544, %549 : vector<16x32xf32>
    %551 = arith.mulf %550, %550 : vector<16x32xf32>
    %cst_390 = arith.constant dense<0.000000e+00> : vector<16xf32>
    %552 = vector.multi_reduction <add>, %551, %cst_390 [1] : vector<16x32xf32> to vector<16xf32>
    %553 = vector.shape_cast %552 : vector<16xf32> to vector<16x1xf32>
    %cst_391 = arith.constant 3.200000e+01 : f32
    %554 = vector.broadcast %cst_391 : f32 to vector<16x1xf32>
    %555 = arith.divf %553, %554 : vector<16x1xf32>
    %556 = vector.broadcast %548 : vector<16x1xf32> to vector<16x32xf32>
    %557 = arith.subf %544, %556 : vector<16x32xf32>
    %cst_392 = arith.constant 9.99999974E-6 : f32
    %558 = vector.broadcast %cst_392 : f32 to vector<16x1xf32>
    %559 = arith.addf %555, %558 : vector<16x1xf32>
    %560 = math.rsqrt %559 : vector<16x1xf32>
    %561 = vector.broadcast %560 : vector<16x1xf32> to vector<16x32xf32>
    %562 = arith.mulf %557, %561 : vector<16x32xf32>
    %563 = vector.broadcast %476 : vector<1x32xf32> to vector<16x32xf32>
    %564 = arith.mulf %562, %563 : vector<16x32xf32>
    %565 = vector.broadcast %478 : vector<1x32xf32> to vector<16x32xf32>
    %566 = arith.addf %564, %565 : vector<16x32xf32>
    %c0_393 = arith.constant 0 : index
    %c0_394 = arith.constant 0 : index
    %c0_395 = arith.constant 0 : index
    %567 = vector.load %arg25[%c0_393, %c0_394, %c0_395] : memref<2x32x64xbf16, #tpu.memory_space<vmem>>, vector<1x32x64xbf16>
    %568 = vector.shape_cast %567 : vector<1x32x64xbf16> to vector<32x64xbf16>
    %c0_396 = arith.constant 0 : index
    %c0_397 = arith.constant 0 : index
    %c0_398 = arith.constant 0 : index
    %569 = vector.load %arg26[%c0_396, %c0_397, %c0_398] : memref<2x1x64xf32, #tpu.memory_space<vmem>>, vector<1x1x64xf32>
    %570 = vector.shape_cast %569 : vector<1x1x64xf32> to vector<1x64xf32>
    %c0_399 = arith.constant 0 : index
    %c0_400 = arith.constant 0 : index
    %c0_401 = arith.constant 0 : index
    %571 = vector.load %arg27[%c0_399, %c0_400, %c0_401] : memref<2x64x32xbf16, #tpu.memory_space<vmem>>, vector<1x64x32xbf16>
    %572 = vector.shape_cast %571 : vector<1x64x32xbf16> to vector<64x32xbf16>
    %c0_402 = arith.constant 0 : index
    %c0_403 = arith.constant 0 : index
    %c0_404 = arith.constant 0 : index
    %573 = vector.load %arg28[%c0_402, %c0_403, %c0_404] : memref<2x1x32xf32, #tpu.memory_space<vmem>>, vector<1x1x32xf32>
    %574 = vector.shape_cast %573 : vector<1x1x32xf32> to vector<1x32xf32>
    %c0_405 = arith.constant 0 : index
    %c0_406 = arith.constant 0 : index
    %c0_407 = arith.constant 0 : index
    %575 = vector.load %arg29[%c0_405, %c0_406, %c0_407] : memref<2x1x32xf32, #tpu.memory_space<vmem>>, vector<1x1x32xf32>
    %576 = vector.shape_cast %575 : vector<1x1x32xf32> to vector<1x32xf32>
    %c0_408 = arith.constant 0 : index
    %c0_409 = arith.constant 0 : index
    %c0_410 = arith.constant 0 : index
    %577 = vector.load %arg30[%c0_408, %c0_409, %c0_410] : memref<2x1x32xf32, #tpu.memory_space<vmem>>, vector<1x1x32xf32>
    %578 = vector.shape_cast %577 : vector<1x1x32xf32> to vector<1x32xf32>
    %579 = arith.truncf %566 : vector<16x32xf32> to vector<16x32xbf16>
    %cst_411 = arith.constant dense<0.000000e+00> : vector<16x64xf32>
    %580 = tpu.matmul %579, %568, %cst_411 {dimension_numbers = #tpu.dot_dimension_numbers<[1], [0], [0], [1], [0, 0, 1, 1], [], []>} : vector<16x32xbf16>, vector<32x64xbf16>, vector<16x64xf32> -> vector<16x64xf32>
    %581 = vector.broadcast %570 : vector<1x64xf32> to vector<16x64xf32>
    %582 = arith.addf %580, %581 : vector<16x64xf32>
    %cst_412 = arith.constant 0.000000e+00 : f32
    %583 = vector.broadcast %cst_412 : f32 to vector<16x64xf32>
    %584 = arith.maximumf %582, %583 : vector<16x64xf32>
    %585 = arith.truncf %584 : vector<16x64xf32> to vector<16x64xbf16>
    %cst_413 = arith.constant dense<0.000000e+00> : vector<16x32xf32>
    %586 = tpu.matmul %585, %572, %cst_413 {dimension_numbers = #tpu.dot_dimension_numbers<[1], [0], [0], [1], [0, 0, 1, 1], [], []>} : vector<16x64xbf16>, vector<64x32xbf16>, vector<16x32xf32> -> vector<16x32xf32>
    %587 = vector.broadcast %574 : vector<1x32xf32> to vector<16x32xf32>
    %588 = arith.addf %586, %587 : vector<16x32xf32>
    %589 = arith.addf %566, %588 : vector<16x32xf32>
    %cst_414 = arith.constant dense<0.000000e+00> : vector<16xf32>
    %590 = vector.multi_reduction <add>, %589, %cst_414 [1] : vector<16x32xf32> to vector<16xf32>
    %591 = vector.shape_cast %590 : vector<16xf32> to vector<16x1xf32>
    %cst_415 = arith.constant 3.200000e+01 : f32
    %592 = vector.broadcast %cst_415 : f32 to vector<16x1xf32>
    %593 = arith.divf %591, %592 : vector<16x1xf32>
    %594 = vector.broadcast %593 : vector<16x1xf32> to vector<16x32xf32>
    %595 = arith.subf %589, %594 : vector<16x32xf32>
    %596 = arith.mulf %595, %595 : vector<16x32xf32>
    %cst_416 = arith.constant dense<0.000000e+00> : vector<16xf32>
    %597 = vector.multi_reduction <add>, %596, %cst_416 [1] : vector<16x32xf32> to vector<16xf32>
    %598 = vector.shape_cast %597 : vector<16xf32> to vector<16x1xf32>
    %cst_417 = arith.constant 3.200000e+01 : f32
    %599 = vector.broadcast %cst_417 : f32 to vector<16x1xf32>
    %600 = arith.divf %598, %599 : vector<16x1xf32>
    %601 = vector.broadcast %593 : vector<16x1xf32> to vector<16x32xf32>
    %602 = arith.subf %589, %601 : vector<16x32xf32>
    %cst_418 = arith.constant 9.99999974E-6 : f32
    %603 = vector.broadcast %cst_418 : f32 to vector<16x1xf32>
    %604 = arith.addf %600, %603 : vector<16x1xf32>
    %605 = math.rsqrt %604 : vector<16x1xf32>
    %606 = vector.broadcast %605 : vector<16x1xf32> to vector<16x32xf32>
    %607 = arith.mulf %602, %606 : vector<16x32xf32>
    %608 = vector.broadcast %576 : vector<1x32xf32> to vector<16x32xf32>
    %609 = arith.mulf %607, %608 : vector<16x32xf32>
    %610 = vector.broadcast %578 : vector<1x32xf32> to vector<16x32xf32>
    %611 = arith.addf %609, %610 : vector<16x32xf32>
    %c1_419 = arith.constant 1 : index
    %c0_420 = arith.constant 0 : index
    %c0_421 = arith.constant 0 : index
    %c0_422 = arith.constant 0 : index
    %612 = vector.load %arg18[%c1_419, %c0_420, %c0_421, %c0_422] : memref<2x4x32x8xbf16, #tpu.memory_space<vmem>>, vector<1x1x32x8xbf16>
    %613 = vector.shape_cast %612 : vector<1x1x32x8xbf16> to vector<32x8xbf16>
    %c1_423 = arith.constant 1 : index
    %c1_424 = arith.constant 1 : index
    %c0_425 = arith.constant 0 : index
    %c0_426 = arith.constant 0 : index
    %614 = vector.load %arg18[%c1_423, %c1_424, %c0_425, %c0_426] : memref<2x4x32x8xbf16, #tpu.memory_space<vmem>>, vector<1x1x32x8xbf16>
    %615 = vector.shape_cast %614 : vector<1x1x32x8xbf16> to vector<32x8xbf16>
    %c1_427 = arith.constant 1 : index
    %c2_428 = arith.constant 2 : index
    %c0_429 = arith.constant 0 : index
    %c0_430 = arith.constant 0 : index
    %616 = vector.load %arg18[%c1_427, %c2_428, %c0_429, %c0_430] : memref<2x4x32x8xbf16, #tpu.memory_space<vmem>>, vector<1x1x32x8xbf16>
    %617 = vector.shape_cast %616 : vector<1x1x32x8xbf16> to vector<32x8xbf16>
    %c1_431 = arith.constant 1 : index
    %c3_432 = arith.constant 3 : index
    %c0_433 = arith.constant 0 : index
    %c0_434 = arith.constant 0 : index
    %618 = vector.load %arg18[%c1_431, %c3_432, %c0_433, %c0_434] : memref<2x4x32x8xbf16, #tpu.memory_space<vmem>>, vector<1x1x32x8xbf16>
    %619 = vector.shape_cast %618 : vector<1x1x32x8xbf16> to vector<32x8xbf16>
    %c1_435 = arith.constant 1 : index
    %c0_436 = arith.constant 0 : index
    %c0_437 = arith.constant 0 : index
    %c0_438 = arith.constant 0 : index
    %620 = vector.load %arg19[%c1_435, %c0_436, %c0_437, %c0_438] : memref<2x4x32x8xbf16, #tpu.memory_space<vmem>>, vector<1x1x32x8xbf16>
    %621 = vector.shape_cast %620 : vector<1x1x32x8xbf16> to vector<32x8xbf16>
    %c1_439 = arith.constant 1 : index
    %c1_440 = arith.constant 1 : index
    %c0_441 = arith.constant 0 : index
    %c0_442 = arith.constant 0 : index
    %622 = vector.load %arg19[%c1_439, %c1_440, %c0_441, %c0_442] : memref<2x4x32x8xbf16, #tpu.memory_space<vmem>>, vector<1x1x32x8xbf16>
    %623 = vector.shape_cast %622 : vector<1x1x32x8xbf16> to vector<32x8xbf16>
    %c1_443 = arith.constant 1 : index
    %c2_444 = arith.constant 2 : index
    %c0_445 = arith.constant 0 : index
    %c0_446 = arith.constant 0 : index
    %624 = vector.load %arg19[%c1_443, %c2_444, %c0_445, %c0_446] : memref<2x4x32x8xbf16, #tpu.memory_space<vmem>>, vector<1x1x32x8xbf16>
    %625 = vector.shape_cast %624 : vector<1x1x32x8xbf16> to vector<32x8xbf16>
    %c1_447 = arith.constant 1 : index
    %c3_448 = arith.constant 3 : index
    %c0_449 = arith.constant 0 : index
    %c0_450 = arith.constant 0 : index
    %626 = vector.load %arg19[%c1_447, %c3_448, %c0_449, %c0_450] : memref<2x4x32x8xbf16, #tpu.memory_space<vmem>>, vector<1x1x32x8xbf16>
    %627 = vector.shape_cast %626 : vector<1x1x32x8xbf16> to vector<32x8xbf16>
    %c1_451 = arith.constant 1 : index
    %c0_452 = arith.constant 0 : index
    %c0_453 = arith.constant 0 : index
    %c0_454 = arith.constant 0 : index
    %628 = vector.load %arg20[%c1_451, %c0_452, %c0_453, %c0_454] : memref<2x4x32x8xbf16, #tpu.memory_space<vmem>>, vector<1x1x32x8xbf16>
    %629 = vector.shape_cast %628 : vector<1x1x32x8xbf16> to vector<32x8xbf16>
    %c1_455 = arith.constant 1 : index
    %c1_456 = arith.constant 1 : index
    %c0_457 = arith.constant 0 : index
    %c0_458 = arith.constant 0 : index
    %630 = vector.load %arg20[%c1_455, %c1_456, %c0_457, %c0_458] : memref<2x4x32x8xbf16, #tpu.memory_space<vmem>>, vector<1x1x32x8xbf16>
    %631 = vector.shape_cast %630 : vector<1x1x32x8xbf16> to vector<32x8xbf16>
    %c1_459 = arith.constant 1 : index
    %c2_460 = arith.constant 2 : index
    %c0_461 = arith.constant 0 : index
    %c0_462 = arith.constant 0 : index
    %632 = vector.load %arg20[%c1_459, %c2_460, %c0_461, %c0_462] : memref<2x4x32x8xbf16, #tpu.memory_space<vmem>>, vector<1x1x32x8xbf16>
    %633 = vector.shape_cast %632 : vector<1x1x32x8xbf16> to vector<32x8xbf16>
    %c1_463 = arith.constant 1 : index
    %c3_464 = arith.constant 3 : index
    %c0_465 = arith.constant 0 : index
    %c0_466 = arith.constant 0 : index
    %634 = vector.load %arg20[%c1_463, %c3_464, %c0_465, %c0_466] : memref<2x4x32x8xbf16, #tpu.memory_space<vmem>>, vector<1x1x32x8xbf16>
    %635 = vector.shape_cast %634 : vector<1x1x32x8xbf16> to vector<32x8xbf16>
    %c1_467 = arith.constant 1 : index
    %c0_468 = arith.constant 0 : index
    %c0_469 = arith.constant 0 : index
    %c0_470 = arith.constant 0 : index
    %636 = vector.load %arg21[%c1_467, %c0_468, %c0_469, %c0_470] : memref<2x4x8x32xbf16, #tpu.memory_space<vmem>>, vector<1x1x8x32xbf16>
    %637 = vector.shape_cast %636 : vector<1x1x8x32xbf16> to vector<8x32xbf16>
    %c1_471 = arith.constant 1 : index
    %c1_472 = arith.constant 1 : index
    %c0_473 = arith.constant 0 : index
    %c0_474 = arith.constant 0 : index
    %638 = vector.load %arg21[%c1_471, %c1_472, %c0_473, %c0_474] : memref<2x4x8x32xbf16, #tpu.memory_space<vmem>>, vector<1x1x8x32xbf16>
    %639 = vector.shape_cast %638 : vector<1x1x8x32xbf16> to vector<8x32xbf16>
    %c1_475 = arith.constant 1 : index
    %c2_476 = arith.constant 2 : index
    %c0_477 = arith.constant 0 : index
    %c0_478 = arith.constant 0 : index
    %640 = vector.load %arg21[%c1_475, %c2_476, %c0_477, %c0_478] : memref<2x4x8x32xbf16, #tpu.memory_space<vmem>>, vector<1x1x8x32xbf16>
    %641 = vector.shape_cast %640 : vector<1x1x8x32xbf16> to vector<8x32xbf16>
    %c1_479 = arith.constant 1 : index
    %c3_480 = arith.constant 3 : index
    %c0_481 = arith.constant 0 : index
    %c0_482 = arith.constant 0 : index
    %642 = vector.load %arg21[%c1_479, %c3_480, %c0_481, %c0_482] : memref<2x4x8x32xbf16, #tpu.memory_space<vmem>>, vector<1x1x8x32xbf16>
    %643 = vector.shape_cast %642 : vector<1x1x8x32xbf16> to vector<8x32xbf16>
    %c1_483 = arith.constant 1 : index
    %c0_484 = arith.constant 0 : index
    %c0_485 = arith.constant 0 : index
    %644 = vector.load %arg22[%c1_483, %c0_484, %c0_485] : memref<2x1x32xf32, #tpu.memory_space<vmem>>, vector<1x1x32xf32>
    %645 = vector.shape_cast %644 : vector<1x1x32xf32> to vector<1x32xf32>
    %c1_486 = arith.constant 1 : index
    %c0_487 = arith.constant 0 : index
    %c0_488 = arith.constant 0 : index
    %646 = vector.load %arg23[%c1_486, %c0_487, %c0_488] : memref<2x1x32xf32, #tpu.memory_space<vmem>>, vector<1x1x32xf32>
    %647 = vector.shape_cast %646 : vector<1x1x32xf32> to vector<1x32xf32>
    %c1_489 = arith.constant 1 : index
    %c0_490 = arith.constant 0 : index
    %c0_491 = arith.constant 0 : index
    %648 = vector.load %arg24[%c1_489, %c0_490, %c0_491] : memref<2x1x32xf32, #tpu.memory_space<vmem>>, vector<1x1x32xf32>
    %649 = vector.shape_cast %648 : vector<1x1x32xf32> to vector<1x32xf32>
    %650 = arith.truncf %611 : vector<16x32xf32> to vector<16x32xbf16>
    %cst_492 = arith.constant dense<0.000000e+00> : vector<16x8xf32>
    %651 = tpu.matmul %650, %613, %cst_492 {dimension_numbers = #tpu.dot_dimension_numbers<[1], [0], [0], [1], [0, 0, 1, 1], [], []>} : vector<16x32xbf16>, vector<32x8xbf16>, vector<16x8xf32> -> vector<16x8xf32>
    %652 = arith.truncf %611 : vector<16x32xf32> to vector<16x32xbf16>
    %cst_493 = arith.constant dense<0.000000e+00> : vector<16x8xf32>
    %653 = tpu.matmul %652, %615, %cst_493 {dimension_numbers = #tpu.dot_dimension_numbers<[1], [0], [0], [1], [0, 0, 1, 1], [], []>} : vector<16x32xbf16>, vector<32x8xbf16>, vector<16x8xf32> -> vector<16x8xf32>
    %654 = arith.truncf %611 : vector<16x32xf32> to vector<16x32xbf16>
    %cst_494 = arith.constant dense<0.000000e+00> : vector<16x8xf32>
    %655 = tpu.matmul %654, %617, %cst_494 {dimension_numbers = #tpu.dot_dimension_numbers<[1], [0], [0], [1], [0, 0, 1, 1], [], []>} : vector<16x32xbf16>, vector<32x8xbf16>, vector<16x8xf32> -> vector<16x8xf32>
    %656 = arith.truncf %611 : vector<16x32xf32> to vector<16x32xbf16>
    %cst_495 = arith.constant dense<0.000000e+00> : vector<16x8xf32>
    %657 = tpu.matmul %656, %619, %cst_495 {dimension_numbers = #tpu.dot_dimension_numbers<[1], [0], [0], [1], [0, 0, 1, 1], [], []>} : vector<16x32xbf16>, vector<32x8xbf16>, vector<16x8xf32> -> vector<16x8xf32>
    %658 = tpu.concatenate %651, %653, %655, %657 in 0 : vector<16x8xf32>, vector<16x8xf32>, vector<16x8xf32>, vector<16x8xf32> -> vector<64x8xf32>
    %659 = arith.truncf %611 : vector<16x32xf32> to vector<16x32xbf16>
    %cst_496 = arith.constant dense<0.000000e+00> : vector<16x8xf32>
    %660 = tpu.matmul %659, %621, %cst_496 {dimension_numbers = #tpu.dot_dimension_numbers<[1], [0], [0], [1], [0, 0, 1, 1], [], []>} : vector<16x32xbf16>, vector<32x8xbf16>, vector<16x8xf32> -> vector<16x8xf32>
    %661 = arith.truncf %611 : vector<16x32xf32> to vector<16x32xbf16>
    %cst_497 = arith.constant dense<0.000000e+00> : vector<16x8xf32>
    %662 = tpu.matmul %661, %623, %cst_497 {dimension_numbers = #tpu.dot_dimension_numbers<[1], [0], [0], [1], [0, 0, 1, 1], [], []>} : vector<16x32xbf16>, vector<32x8xbf16>, vector<16x8xf32> -> vector<16x8xf32>
    %663 = arith.truncf %611 : vector<16x32xf32> to vector<16x32xbf16>
    %cst_498 = arith.constant dense<0.000000e+00> : vector<16x8xf32>
    %664 = tpu.matmul %663, %625, %cst_498 {dimension_numbers = #tpu.dot_dimension_numbers<[1], [0], [0], [1], [0, 0, 1, 1], [], []>} : vector<16x32xbf16>, vector<32x8xbf16>, vector<16x8xf32> -> vector<16x8xf32>
    %665 = arith.truncf %611 : vector<16x32xf32> to vector<16x32xbf16>
    %cst_499 = arith.constant dense<0.000000e+00> : vector<16x8xf32>
    %666 = tpu.matmul %665, %627, %cst_499 {dimension_numbers = #tpu.dot_dimension_numbers<[1], [0], [0], [1], [0, 0, 1, 1], [], []>} : vector<16x32xbf16>, vector<32x8xbf16>, vector<16x8xf32> -> vector<16x8xf32>
    %667 = tpu.concatenate %660, %662, %664, %666 in 0 : vector<16x8xf32>, vector<16x8xf32>, vector<16x8xf32>, vector<16x8xf32> -> vector<64x8xf32>
    %668 = arith.truncf %611 : vector<16x32xf32> to vector<16x32xbf16>
    %cst_500 = arith.constant dense<0.000000e+00> : vector<16x8xf32>
    %669 = tpu.matmul %668, %629, %cst_500 {dimension_numbers = #tpu.dot_dimension_numbers<[1], [0], [0], [1], [0, 0, 1, 1], [], []>} : vector<16x32xbf16>, vector<32x8xbf16>, vector<16x8xf32> -> vector<16x8xf32>
    %670 = arith.truncf %611 : vector<16x32xf32> to vector<16x32xbf16>
    %cst_501 = arith.constant dense<0.000000e+00> : vector<16x8xf32>
    %671 = tpu.matmul %670, %631, %cst_501 {dimension_numbers = #tpu.dot_dimension_numbers<[1], [0], [0], [1], [0, 0, 1, 1], [], []>} : vector<16x32xbf16>, vector<32x8xbf16>, vector<16x8xf32> -> vector<16x8xf32>
    %672 = arith.truncf %611 : vector<16x32xf32> to vector<16x32xbf16>
    %cst_502 = arith.constant dense<0.000000e+00> : vector<16x8xf32>
    %673 = tpu.matmul %672, %633, %cst_502 {dimension_numbers = #tpu.dot_dimension_numbers<[1], [0], [0], [1], [0, 0, 1, 1], [], []>} : vector<16x32xbf16>, vector<32x8xbf16>, vector<16x8xf32> -> vector<16x8xf32>
    %674 = arith.truncf %611 : vector<16x32xf32> to vector<16x32xbf16>
    %cst_503 = arith.constant dense<0.000000e+00> : vector<16x8xf32>
    %675 = tpu.matmul %674, %635, %cst_503 {dimension_numbers = #tpu.dot_dimension_numbers<[1], [0], [0], [1], [0, 0, 1, 1], [], []>} : vector<16x32xbf16>, vector<32x8xbf16>, vector<16x8xf32> -> vector<16x8xf32>
    %676 = tpu.concatenate %669, %671, %673, %675 in 0 : vector<16x8xf32>, vector<16x8xf32>, vector<16x8xf32>, vector<16x8xf32> -> vector<64x8xf32>
    %677 = arith.truncf %658 : vector<64x8xf32> to vector<64x8xbf16>
    %678 = arith.truncf %667 : vector<64x8xf32> to vector<64x8xbf16>
    %cst_504 = arith.constant dense<0.000000e+00> : vector<64x64xf32>
    %679 = tpu.matmul %677, %678, %cst_504 {dimension_numbers = #tpu.dot_dimension_numbers<[1], [1], [0], [0], [0, 0, 1, 0], [], []>} : vector<64x8xbf16>, vector<64x8xbf16>, vector<64x64xf32> -> vector<64x64xf32>
    %cst_505 = arith.constant 0.353553385 : f32
    %680 = vector.broadcast %cst_505 : f32 to vector<64x64xf32>
    %681 = arith.mulf %679, %680 : vector<64x64xf32>
    %cst_506 = arith.constant 0.000000e+00 : f32
    %682 = vector.broadcast %cst_506 : f32 to vector<64x64xf32>
    %683 = arith.cmpf olt, %345, %682 : vector<64x64xf32>
    %684 = arith.select %683, %345, %681 : vector<64x64xi1>, vector<64x64xf32>
    %cst_507 = arith.constant dense<0xFF800000> : vector<64xf32>
    %685 = vector.multi_reduction <maximumf>, %684, %cst_507 [1] : vector<64x64xf32> to vector<64xf32>
    %686 = vector.shape_cast %685 : vector<64xf32> to vector<64x1xf32>
    %687 = vector.broadcast %686 : vector<64x1xf32> to vector<64x64xf32>
    %688 = arith.subf %684, %687 : vector<64x64xf32>
    %689 = math.exp %688 : vector<64x64xf32>
    %cst_508 = arith.constant dense<0.000000e+00> : vector<64xf32>
    %690 = vector.multi_reduction <add>, %689, %cst_508 [1] : vector<64x64xf32> to vector<64xf32>
    %691 = vector.shape_cast %690 : vector<64xf32> to vector<64x1xf32>
    %692 = tpu.reciprocal %691 {approx = true} : vector<64x1xf32> -> vector<64x1xf32>
    %693 = vector.broadcast %692 : vector<64x1xf32> to vector<64x64xf32>
    %694 = arith.mulf %689, %693 : vector<64x64xf32>
    %695 = arith.truncf %694 : vector<64x64xf32> to vector<64x64xbf16>
    %696 = arith.truncf %676 : vector<64x8xf32> to vector<64x8xbf16>
    %cst_509 = arith.constant dense<0.000000e+00> : vector<64x8xf32>
    %697 = tpu.matmul %695, %696, %cst_509 {dimension_numbers = #tpu.dot_dimension_numbers<[1], [0], [0], [1], [0, 0, 1, 1], [], []>} : vector<64x64xbf16>, vector<64x8xbf16>, vector<64x8xf32> -> vector<64x8xf32>
    %698 = vector.extract_strided_slice %697 {offsets = [0, 0], sizes = [16, 8], strides = [1, 1]} : vector<64x8xf32> to vector<16x8xf32>
    %699 = arith.truncf %698 : vector<16x8xf32> to vector<16x8xbf16>
    %cst_510 = arith.constant dense<0.000000e+00> : vector<16x32xf32>
    %700 = tpu.matmul %699, %637, %cst_510 {dimension_numbers = #tpu.dot_dimension_numbers<[1], [0], [0], [1], [0, 0, 1, 1], [], []>} : vector<16x8xbf16>, vector<8x32xbf16>, vector<16x32xf32> -> vector<16x32xf32>
    %701 = vector.broadcast %645 : vector<1x32xf32> to vector<16x32xf32>
    %702 = arith.addf %701, %700 : vector<16x32xf32>
    %703 = vector.extract_strided_slice %697 {offsets = [16, 0], sizes = [16, 8], strides = [1, 1]} : vector<64x8xf32> to vector<16x8xf32>
    %704 = arith.truncf %703 : vector<16x8xf32> to vector<16x8xbf16>
    %cst_511 = arith.constant dense<0.000000e+00> : vector<16x32xf32>
    %705 = tpu.matmul %704, %639, %cst_511 {dimension_numbers = #tpu.dot_dimension_numbers<[1], [0], [0], [1], [0, 0, 1, 1], [], []>} : vector<16x8xbf16>, vector<8x32xbf16>, vector<16x32xf32> -> vector<16x32xf32>
    %706 = arith.addf %702, %705 : vector<16x32xf32>
    %707 = vector.extract_strided_slice %697 {offsets = [32, 0], sizes = [16, 8], strides = [1, 1]} : vector<64x8xf32> to vector<16x8xf32>
    %708 = arith.truncf %707 : vector<16x8xf32> to vector<16x8xbf16>
    %cst_512 = arith.constant dense<0.000000e+00> : vector<16x32xf32>
    %709 = tpu.matmul %708, %641, %cst_512 {dimension_numbers = #tpu.dot_dimension_numbers<[1], [0], [0], [1], [0, 0, 1, 1], [], []>} : vector<16x8xbf16>, vector<8x32xbf16>, vector<16x32xf32> -> vector<16x32xf32>
    %710 = arith.addf %706, %709 : vector<16x32xf32>
    %711 = vector.extract_strided_slice %697 {offsets = [48, 0], sizes = [16, 8], strides = [1, 1]} : vector<64x8xf32> to vector<16x8xf32>
    %712 = arith.truncf %711 : vector<16x8xf32> to vector<16x8xbf16>
    %cst_513 = arith.constant dense<0.000000e+00> : vector<16x32xf32>
    %713 = tpu.matmul %712, %643, %cst_513 {dimension_numbers = #tpu.dot_dimension_numbers<[1], [0], [0], [1], [0, 0, 1, 1], [], []>} : vector<16x8xbf16>, vector<8x32xbf16>, vector<16x32xf32> -> vector<16x32xf32>
    %714 = arith.addf %710, %713 : vector<16x32xf32>
    %715 = arith.addf %611, %714 : vector<16x32xf32>
    %cst_514 = arith.constant dense<0.000000e+00> : vector<16xf32>
    %716 = vector.multi_reduction <add>, %715, %cst_514 [1] : vector<16x32xf32> to vector<16xf32>
    %717 = vector.shape_cast %716 : vector<16xf32> to vector<16x1xf32>
    %cst_515 = arith.constant 3.200000e+01 : f32
    %718 = vector.broadcast %cst_515 : f32 to vector<16x1xf32>
    %719 = arith.divf %717, %718 : vector<16x1xf32>
    %720 = vector.broadcast %719 : vector<16x1xf32> to vector<16x32xf32>
    %721 = arith.subf %715, %720 : vector<16x32xf32>
    %722 = arith.mulf %721, %721 : vector<16x32xf32>
    %cst_516 = arith.constant dense<0.000000e+00> : vector<16xf32>
    %723 = vector.multi_reduction <add>, %722, %cst_516 [1] : vector<16x32xf32> to vector<16xf32>
    %724 = vector.shape_cast %723 : vector<16xf32> to vector<16x1xf32>
    %cst_517 = arith.constant 3.200000e+01 : f32
    %725 = vector.broadcast %cst_517 : f32 to vector<16x1xf32>
    %726 = arith.divf %724, %725 : vector<16x1xf32>
    %727 = vector.broadcast %719 : vector<16x1xf32> to vector<16x32xf32>
    %728 = arith.subf %715, %727 : vector<16x32xf32>
    %cst_518 = arith.constant 9.99999974E-6 : f32
    %729 = vector.broadcast %cst_518 : f32 to vector<16x1xf32>
    %730 = arith.addf %726, %729 : vector<16x1xf32>
    %731 = math.rsqrt %730 : vector<16x1xf32>
    %732 = vector.broadcast %731 : vector<16x1xf32> to vector<16x32xf32>
    %733 = arith.mulf %728, %732 : vector<16x32xf32>
    %734 = vector.broadcast %647 : vector<1x32xf32> to vector<16x32xf32>
    %735 = arith.mulf %733, %734 : vector<16x32xf32>
    %736 = vector.broadcast %649 : vector<1x32xf32> to vector<16x32xf32>
    %737 = arith.addf %735, %736 : vector<16x32xf32>
    %c1_519 = arith.constant 1 : index
    %c0_520 = arith.constant 0 : index
    %c0_521 = arith.constant 0 : index
    %738 = vector.load %arg22[%c1_519, %c0_520, %c0_521] : memref<2x1x32xf32, #tpu.memory_space<vmem>>, vector<1x1x32xf32>
    %739 = vector.shape_cast %738 : vector<1x1x32xf32> to vector<1x32xf32>
    %c1_522 = arith.constant 1 : index
    %c0_523 = arith.constant 0 : index
    %c0_524 = arith.constant 0 : index
    %740 = vector.load %arg23[%c1_522, %c0_523, %c0_524] : memref<2x1x32xf32, #tpu.memory_space<vmem>>, vector<1x1x32xf32>
    %741 = vector.shape_cast %740 : vector<1x1x32xf32> to vector<1x32xf32>
    %c1_525 = arith.constant 1 : index
    %c0_526 = arith.constant 0 : index
    %c0_527 = arith.constant 0 : index
    %742 = vector.load %arg24[%c1_525, %c0_526, %c0_527] : memref<2x1x32xf32, #tpu.memory_space<vmem>>, vector<1x1x32xf32>
    %743 = vector.shape_cast %742 : vector<1x1x32xf32> to vector<1x32xf32>
    %744 = arith.truncf %343 : vector<16x32xf32> to vector<16x32xbf16>
    %cst_528 = arith.constant dense<0.000000e+00> : vector<16x8xf32>
    %745 = tpu.matmul %744, %613, %cst_528 {dimension_numbers = #tpu.dot_dimension_numbers<[1], [0], [0], [1], [0, 0, 1, 1], [], []>} : vector<16x32xbf16>, vector<32x8xbf16>, vector<16x8xf32> -> vector<16x8xf32>
    %746 = arith.truncf %343 : vector<16x32xf32> to vector<16x32xbf16>
    %cst_529 = arith.constant dense<0.000000e+00> : vector<16x8xf32>
    %747 = tpu.matmul %746, %615, %cst_529 {dimension_numbers = #tpu.dot_dimension_numbers<[1], [0], [0], [1], [0, 0, 1, 1], [], []>} : vector<16x32xbf16>, vector<32x8xbf16>, vector<16x8xf32> -> vector<16x8xf32>
    %748 = arith.truncf %343 : vector<16x32xf32> to vector<16x32xbf16>
    %cst_530 = arith.constant dense<0.000000e+00> : vector<16x8xf32>
    %749 = tpu.matmul %748, %617, %cst_530 {dimension_numbers = #tpu.dot_dimension_numbers<[1], [0], [0], [1], [0, 0, 1, 1], [], []>} : vector<16x32xbf16>, vector<32x8xbf16>, vector<16x8xf32> -> vector<16x8xf32>
    %750 = arith.truncf %343 : vector<16x32xf32> to vector<16x32xbf16>
    %cst_531 = arith.constant dense<0.000000e+00> : vector<16x8xf32>
    %751 = tpu.matmul %750, %619, %cst_531 {dimension_numbers = #tpu.dot_dimension_numbers<[1], [0], [0], [1], [0, 0, 1, 1], [], []>} : vector<16x32xbf16>, vector<32x8xbf16>, vector<16x8xf32> -> vector<16x8xf32>
    %752 = tpu.concatenate %745, %747, %749, %751 in 0 : vector<16x8xf32>, vector<16x8xf32>, vector<16x8xf32>, vector<16x8xf32> -> vector<64x8xf32>
    %753 = arith.truncf %343 : vector<16x32xf32> to vector<16x32xbf16>
    %cst_532 = arith.constant dense<0.000000e+00> : vector<16x8xf32>
    %754 = tpu.matmul %753, %621, %cst_532 {dimension_numbers = #tpu.dot_dimension_numbers<[1], [0], [0], [1], [0, 0, 1, 1], [], []>} : vector<16x32xbf16>, vector<32x8xbf16>, vector<16x8xf32> -> vector<16x8xf32>
    %755 = arith.truncf %343 : vector<16x32xf32> to vector<16x32xbf16>
    %cst_533 = arith.constant dense<0.000000e+00> : vector<16x8xf32>
    %756 = tpu.matmul %755, %623, %cst_533 {dimension_numbers = #tpu.dot_dimension_numbers<[1], [0], [0], [1], [0, 0, 1, 1], [], []>} : vector<16x32xbf16>, vector<32x8xbf16>, vector<16x8xf32> -> vector<16x8xf32>
    %757 = arith.truncf %343 : vector<16x32xf32> to vector<16x32xbf16>
    %cst_534 = arith.constant dense<0.000000e+00> : vector<16x8xf32>
    %758 = tpu.matmul %757, %625, %cst_534 {dimension_numbers = #tpu.dot_dimension_numbers<[1], [0], [0], [1], [0, 0, 1, 1], [], []>} : vector<16x32xbf16>, vector<32x8xbf16>, vector<16x8xf32> -> vector<16x8xf32>
    %759 = arith.truncf %343 : vector<16x32xf32> to vector<16x32xbf16>
    %cst_535 = arith.constant dense<0.000000e+00> : vector<16x8xf32>
    %760 = tpu.matmul %759, %627, %cst_535 {dimension_numbers = #tpu.dot_dimension_numbers<[1], [0], [0], [1], [0, 0, 1, 1], [], []>} : vector<16x32xbf16>, vector<32x8xbf16>, vector<16x8xf32> -> vector<16x8xf32>
    %761 = tpu.concatenate %754, %756, %758, %760 in 0 : vector<16x8xf32>, vector<16x8xf32>, vector<16x8xf32>, vector<16x8xf32> -> vector<64x8xf32>
    %762 = arith.truncf %737 : vector<16x32xf32> to vector<16x32xbf16>
    %cst_536 = arith.constant dense<0.000000e+00> : vector<16x8xf32>
    %763 = tpu.matmul %762, %629, %cst_536 {dimension_numbers = #tpu.dot_dimension_numbers<[1], [0], [0], [1], [0, 0, 1, 1], [], []>} : vector<16x32xbf16>, vector<32x8xbf16>, vector<16x8xf32> -> vector<16x8xf32>
    %764 = arith.truncf %737 : vector<16x32xf32> to vector<16x32xbf16>
    %cst_537 = arith.constant dense<0.000000e+00> : vector<16x8xf32>
    %765 = tpu.matmul %764, %631, %cst_537 {dimension_numbers = #tpu.dot_dimension_numbers<[1], [0], [0], [1], [0, 0, 1, 1], [], []>} : vector<16x32xbf16>, vector<32x8xbf16>, vector<16x8xf32> -> vector<16x8xf32>
    %766 = arith.truncf %737 : vector<16x32xf32> to vector<16x32xbf16>
    %cst_538 = arith.constant dense<0.000000e+00> : vector<16x8xf32>
    %767 = tpu.matmul %766, %633, %cst_538 {dimension_numbers = #tpu.dot_dimension_numbers<[1], [0], [0], [1], [0, 0, 1, 1], [], []>} : vector<16x32xbf16>, vector<32x8xbf16>, vector<16x8xf32> -> vector<16x8xf32>
    %768 = arith.truncf %737 : vector<16x32xf32> to vector<16x32xbf16>
    %cst_539 = arith.constant dense<0.000000e+00> : vector<16x8xf32>
    %769 = tpu.matmul %768, %635, %cst_539 {dimension_numbers = #tpu.dot_dimension_numbers<[1], [0], [0], [1], [0, 0, 1, 1], [], []>} : vector<16x32xbf16>, vector<32x8xbf16>, vector<16x8xf32> -> vector<16x8xf32>
    %770 = tpu.concatenate %763, %765, %767, %769 in 0 : vector<16x8xf32>, vector<16x8xf32>, vector<16x8xf32>, vector<16x8xf32> -> vector<64x8xf32>
    %771 = arith.truncf %752 : vector<64x8xf32> to vector<64x8xbf16>
    %772 = arith.truncf %761 : vector<64x8xf32> to vector<64x8xbf16>
    %cst_540 = arith.constant dense<0.000000e+00> : vector<64x64xf32>
    %773 = tpu.matmul %771, %772, %cst_540 {dimension_numbers = #tpu.dot_dimension_numbers<[1], [1], [0], [0], [0, 0, 1, 0], [], []>} : vector<64x8xbf16>, vector<64x8xbf16>, vector<64x64xf32> -> vector<64x64xf32>
    %cst_541 = arith.constant 0.353553385 : f32
    %774 = vector.broadcast %cst_541 : f32 to vector<64x64xf32>
    %775 = arith.mulf %773, %774 : vector<64x64xf32>
    %cst_542 = arith.constant 0.000000e+00 : f32
    %776 = vector.broadcast %cst_542 : f32 to vector<64x64xf32>
    %777 = arith.cmpf olt, %346, %776 : vector<64x64xf32>
    %778 = arith.select %777, %346, %775 : vector<64x64xi1>, vector<64x64xf32>
    %cst_543 = arith.constant dense<0xFF800000> : vector<64xf32>
    %779 = vector.multi_reduction <maximumf>, %778, %cst_543 [1] : vector<64x64xf32> to vector<64xf32>
    %780 = vector.shape_cast %779 : vector<64xf32> to vector<64x1xf32>
    %781 = vector.broadcast %780 : vector<64x1xf32> to vector<64x64xf32>
    %782 = arith.subf %778, %781 : vector<64x64xf32>
    %783 = math.exp %782 : vector<64x64xf32>
    %cst_544 = arith.constant dense<0.000000e+00> : vector<64xf32>
    %784 = vector.multi_reduction <add>, %783, %cst_544 [1] : vector<64x64xf32> to vector<64xf32>
    %785 = vector.shape_cast %784 : vector<64xf32> to vector<64x1xf32>
    %786 = tpu.reciprocal %785 {approx = true} : vector<64x1xf32> -> vector<64x1xf32>
    %787 = vector.broadcast %786 : vector<64x1xf32> to vector<64x64xf32>
    %788 = arith.mulf %783, %787 : vector<64x64xf32>
    %789 = arith.truncf %788 : vector<64x64xf32> to vector<64x64xbf16>
    %790 = arith.truncf %770 : vector<64x8xf32> to vector<64x8xbf16>
    %cst_545 = arith.constant dense<0.000000e+00> : vector<64x8xf32>
    %791 = tpu.matmul %789, %790, %cst_545 {dimension_numbers = #tpu.dot_dimension_numbers<[1], [0], [0], [1], [0, 0, 1, 1], [], []>} : vector<64x64xbf16>, vector<64x8xbf16>, vector<64x8xf32> -> vector<64x8xf32>
    %792 = vector.extract_strided_slice %791 {offsets = [0, 0], sizes = [16, 8], strides = [1, 1]} : vector<64x8xf32> to vector<16x8xf32>
    %793 = arith.truncf %792 : vector<16x8xf32> to vector<16x8xbf16>
    %cst_546 = arith.constant dense<0.000000e+00> : vector<16x32xf32>
    %794 = tpu.matmul %793, %637, %cst_546 {dimension_numbers = #tpu.dot_dimension_numbers<[1], [0], [0], [1], [0, 0, 1, 1], [], []>} : vector<16x8xbf16>, vector<8x32xbf16>, vector<16x32xf32> -> vector<16x32xf32>
    %795 = vector.broadcast %739 : vector<1x32xf32> to vector<16x32xf32>
    %796 = arith.addf %795, %794 : vector<16x32xf32>
    %797 = vector.extract_strided_slice %791 {offsets = [16, 0], sizes = [16, 8], strides = [1, 1]} : vector<64x8xf32> to vector<16x8xf32>
    %798 = arith.truncf %797 : vector<16x8xf32> to vector<16x8xbf16>
    %cst_547 = arith.constant dense<0.000000e+00> : vector<16x32xf32>
    %799 = tpu.matmul %798, %639, %cst_547 {dimension_numbers = #tpu.dot_dimension_numbers<[1], [0], [0], [1], [0, 0, 1, 1], [], []>} : vector<16x8xbf16>, vector<8x32xbf16>, vector<16x32xf32> -> vector<16x32xf32>
    %800 = arith.addf %796, %799 : vector<16x32xf32>
    %801 = vector.extract_strided_slice %791 {offsets = [32, 0], sizes = [16, 8], strides = [1, 1]} : vector<64x8xf32> to vector<16x8xf32>
    %802 = arith.truncf %801 : vector<16x8xf32> to vector<16x8xbf16>
    %cst_548 = arith.constant dense<0.000000e+00> : vector<16x32xf32>
    %803 = tpu.matmul %802, %641, %cst_548 {dimension_numbers = #tpu.dot_dimension_numbers<[1], [0], [0], [1], [0, 0, 1, 1], [], []>} : vector<16x8xbf16>, vector<8x32xbf16>, vector<16x32xf32> -> vector<16x32xf32>
    %804 = arith.addf %800, %803 : vector<16x32xf32>
    %805 = vector.extract_strided_slice %791 {offsets = [48, 0], sizes = [16, 8], strides = [1, 1]} : vector<64x8xf32> to vector<16x8xf32>
    %806 = arith.truncf %805 : vector<16x8xf32> to vector<16x8xbf16>
    %cst_549 = arith.constant dense<0.000000e+00> : vector<16x32xf32>
    %807 = tpu.matmul %806, %643, %cst_549 {dimension_numbers = #tpu.dot_dimension_numbers<[1], [0], [0], [1], [0, 0, 1, 1], [], []>} : vector<16x8xbf16>, vector<8x32xbf16>, vector<16x32xf32> -> vector<16x32xf32>
    %808 = arith.addf %804, %807 : vector<16x32xf32>
    %809 = arith.addf %343, %808 : vector<16x32xf32>
    %cst_550 = arith.constant dense<0.000000e+00> : vector<16xf32>
    %810 = vector.multi_reduction <add>, %809, %cst_550 [1] : vector<16x32xf32> to vector<16xf32>
    %811 = vector.shape_cast %810 : vector<16xf32> to vector<16x1xf32>
    %cst_551 = arith.constant 3.200000e+01 : f32
    %812 = vector.broadcast %cst_551 : f32 to vector<16x1xf32>
    %813 = arith.divf %811, %812 : vector<16x1xf32>
    %814 = vector.broadcast %813 : vector<16x1xf32> to vector<16x32xf32>
    %815 = arith.subf %809, %814 : vector<16x32xf32>
    %816 = arith.mulf %815, %815 : vector<16x32xf32>
    %cst_552 = arith.constant dense<0.000000e+00> : vector<16xf32>
    %817 = vector.multi_reduction <add>, %816, %cst_552 [1] : vector<16x32xf32> to vector<16xf32>
    %818 = vector.shape_cast %817 : vector<16xf32> to vector<16x1xf32>
    %cst_553 = arith.constant 3.200000e+01 : f32
    %819 = vector.broadcast %cst_553 : f32 to vector<16x1xf32>
    %820 = arith.divf %818, %819 : vector<16x1xf32>
    %821 = vector.broadcast %813 : vector<16x1xf32> to vector<16x32xf32>
    %822 = arith.subf %809, %821 : vector<16x32xf32>
    %cst_554 = arith.constant 9.99999974E-6 : f32
    %823 = vector.broadcast %cst_554 : f32 to vector<16x1xf32>
    %824 = arith.addf %820, %823 : vector<16x1xf32>
    %825 = math.rsqrt %824 : vector<16x1xf32>
    %826 = vector.broadcast %825 : vector<16x1xf32> to vector<16x32xf32>
    %827 = arith.mulf %822, %826 : vector<16x32xf32>
    %828 = vector.broadcast %741 : vector<1x32xf32> to vector<16x32xf32>
    %829 = arith.mulf %827, %828 : vector<16x32xf32>
    %830 = vector.broadcast %743 : vector<1x32xf32> to vector<16x32xf32>
    %831 = arith.addf %829, %830 : vector<16x32xf32>
    %c1_555 = arith.constant 1 : index
    %c0_556 = arith.constant 0 : index
    %c0_557 = arith.constant 0 : index
    %832 = vector.load %arg25[%c1_555, %c0_556, %c0_557] : memref<2x32x64xbf16, #tpu.memory_space<vmem>>, vector<1x32x64xbf16>
    %833 = vector.shape_cast %832 : vector<1x32x64xbf16> to vector<32x64xbf16>
    %c1_558 = arith.constant 1 : index
    %c0_559 = arith.constant 0 : index
    %c0_560 = arith.constant 0 : index
    %834 = vector.load %arg26[%c1_558, %c0_559, %c0_560] : memref<2x1x64xf32, #tpu.memory_space<vmem>>, vector<1x1x64xf32>
    %835 = vector.shape_cast %834 : vector<1x1x64xf32> to vector<1x64xf32>
    %c1_561 = arith.constant 1 : index
    %c0_562 = arith.constant 0 : index
    %c0_563 = arith.constant 0 : index
    %836 = vector.load %arg27[%c1_561, %c0_562, %c0_563] : memref<2x64x32xbf16, #tpu.memory_space<vmem>>, vector<1x64x32xbf16>
    %837 = vector.shape_cast %836 : vector<1x64x32xbf16> to vector<64x32xbf16>
    %c1_564 = arith.constant 1 : index
    %c0_565 = arith.constant 0 : index
    %c0_566 = arith.constant 0 : index
    %838 = vector.load %arg28[%c1_564, %c0_565, %c0_566] : memref<2x1x32xf32, #tpu.memory_space<vmem>>, vector<1x1x32xf32>
    %839 = vector.shape_cast %838 : vector<1x1x32xf32> to vector<1x32xf32>
    %c1_567 = arith.constant 1 : index
    %c0_568 = arith.constant 0 : index
    %c0_569 = arith.constant 0 : index
    %840 = vector.load %arg29[%c1_567, %c0_568, %c0_569] : memref<2x1x32xf32, #tpu.memory_space<vmem>>, vector<1x1x32xf32>
    %841 = vector.shape_cast %840 : vector<1x1x32xf32> to vector<1x32xf32>
    %c1_570 = arith.constant 1 : index
    %c0_571 = arith.constant 0 : index
    %c0_572 = arith.constant 0 : index
    %842 = vector.load %arg30[%c1_570, %c0_571, %c0_572] : memref<2x1x32xf32, #tpu.memory_space<vmem>>, vector<1x1x32xf32>
    %843 = vector.shape_cast %842 : vector<1x1x32xf32> to vector<1x32xf32>
    %844 = arith.truncf %831 : vector<16x32xf32> to vector<16x32xbf16>
    %cst_573 = arith.constant dense<0.000000e+00> : vector<16x64xf32>
    %845 = tpu.matmul %844, %833, %cst_573 {dimension_numbers = #tpu.dot_dimension_numbers<[1], [0], [0], [1], [0, 0, 1, 1], [], []>} : vector<16x32xbf16>, vector<32x64xbf16>, vector<16x64xf32> -> vector<16x64xf32>
    %846 = vector.broadcast %835 : vector<1x64xf32> to vector<16x64xf32>
    %847 = arith.addf %845, %846 : vector<16x64xf32>
    %cst_574 = arith.constant 0.000000e+00 : f32
    %848 = vector.broadcast %cst_574 : f32 to vector<16x64xf32>
    %849 = arith.maximumf %847, %848 : vector<16x64xf32>
    %850 = arith.truncf %849 : vector<16x64xf32> to vector<16x64xbf16>
    %cst_575 = arith.constant dense<0.000000e+00> : vector<16x32xf32>
    %851 = tpu.matmul %850, %837, %cst_575 {dimension_numbers = #tpu.dot_dimension_numbers<[1], [0], [0], [1], [0, 0, 1, 1], [], []>} : vector<16x64xbf16>, vector<64x32xbf16>, vector<16x32xf32> -> vector<16x32xf32>
    %852 = vector.broadcast %839 : vector<1x32xf32> to vector<16x32xf32>
    %853 = arith.addf %851, %852 : vector<16x32xf32>
    %854 = arith.addf %831, %853 : vector<16x32xf32>
    %cst_576 = arith.constant dense<0.000000e+00> : vector<16xf32>
    %855 = vector.multi_reduction <add>, %854, %cst_576 [1] : vector<16x32xf32> to vector<16xf32>
    %856 = vector.shape_cast %855 : vector<16xf32> to vector<16x1xf32>
    %cst_577 = arith.constant 3.200000e+01 : f32
    %857 = vector.broadcast %cst_577 : f32 to vector<16x1xf32>
    %858 = arith.divf %856, %857 : vector<16x1xf32>
    %859 = vector.broadcast %858 : vector<16x1xf32> to vector<16x32xf32>
    %860 = arith.subf %854, %859 : vector<16x32xf32>
    %861 = arith.mulf %860, %860 : vector<16x32xf32>
    %cst_578 = arith.constant dense<0.000000e+00> : vector<16xf32>
    %862 = vector.multi_reduction <add>, %861, %cst_578 [1] : vector<16x32xf32> to vector<16xf32>
    %863 = vector.shape_cast %862 : vector<16xf32> to vector<16x1xf32>
    %cst_579 = arith.constant 3.200000e+01 : f32
    %864 = vector.broadcast %cst_579 : f32 to vector<16x1xf32>
    %865 = arith.divf %863, %864 : vector<16x1xf32>
    %866 = vector.broadcast %858 : vector<16x1xf32> to vector<16x32xf32>
    %867 = arith.subf %854, %866 : vector<16x32xf32>
    %cst_580 = arith.constant 9.99999974E-6 : f32
    %868 = vector.broadcast %cst_580 : f32 to vector<16x1xf32>
    %869 = arith.addf %865, %868 : vector<16x1xf32>
    %870 = math.rsqrt %869 : vector<16x1xf32>
    %871 = vector.broadcast %870 : vector<16x1xf32> to vector<16x32xf32>
    %872 = arith.mulf %867, %871 : vector<16x32xf32>
    %873 = vector.broadcast %841 : vector<1x32xf32> to vector<16x32xf32>
    %874 = arith.mulf %872, %873 : vector<16x32xf32>
    %875 = vector.broadcast %843 : vector<1x32xf32> to vector<16x32xf32>
    %876 = arith.addf %874, %875 : vector<16x32xf32>
    %c0_581 = arith.constant 0 : index
    %c0_582 = arith.constant 0 : index
    %877 = vector.load %arg31[%c0_581, %c0_582] : memref<32x128xbf16, #tpu.memory_space<vmem>>, vector<32x128xbf16>
    %878 = arith.truncf %876 : vector<16x32xf32> to vector<16x32xbf16>
    %cst_583 = arith.constant dense<0.000000e+00> : vector<16x128xf32>
    %879 = tpu.matmul %878, %877, %cst_583 {dimension_numbers = #tpu.dot_dimension_numbers<[1], [0], [0], [1], [0, 0, 1, 1], [], []>} : vector<16x32xbf16>, vector<32x128xbf16>, vector<16x128xf32> -> vector<16x128xf32>
    %c0_584 = arith.constant 0 : index
    %c0_585 = arith.constant 0 : index
    %880 = vector.load %arg32[%c0_584, %c0_585] : memref<1x128xf32, #tpu.memory_space<vmem>>, vector<1x128xf32>
    %881 = vector.broadcast %880 : vector<1x128xf32> to vector<16x128xf32>
    %882 = arith.addf %879, %881 : vector<16x128xf32>
    %c0_586 = arith.constant 0 : index
    %c0_587 = arith.constant 0 : index
    %883 = vector.load %arg33[%c0_586, %c0_587] : memref<16x128xf32, #tpu.memory_space<vmem>>, vector<16x128xf32>
    tpu.vector_store %arg33[%c0_586, %c0_587], %882 {strides = array<i32>} : memref<16x128xf32, #tpu.memory_space<vmem>>, vector<16x128xf32>,
    return
  }
}

</mosaic_0001>

<bundles_post_ra>
// kernel: transformer_forward.1
= control target key start
LH: loop header
LB: loop body
LE: loop exit
PB: predicated region body
PF: predicated region fallthrough
CT: control target
= control target key end

     0   :  { %s6237_s3 = smov 5   ;;  %s6238_s10 = smov 6   ;;  %vm229_vm0 = vcmask 261120   ;;  %vm541_vm1 = vcmask 64512   ;;  %vm619_vm3 = vcmask 523264   ;;  %vm7641_vm11 = vcmask 1043456   ;;  %s7640_s0 = inlined_call_operand.smem [shape: u32[34], index: -1, kind: input, shape index: {}] }
   0x1   :  { %s6279_s6 = sld [smem:[%s7640_s0 + %s6237_s3]]   ;;  %s6239_s14 = smov 7  }
   0x2   :  { %s1_s9 = sld [smem:[%s7640_s0]]   ;;  %s6240_s18 = smov 2  }
   0x3   :  { %s6287_s13 = sld [smem:[%s7640_s0 + %s6238_s10]]   ;;  %s6241_s22 = smov 9  }
   0x4   :  { %s6322_s17 = sld [smem:[%s7640_s0 + %s6239_s14]]   ;;  %s6242_s26 = smov 8  }
   0x5   :  { %s6347_s21 = sld [smem:[%s7640_s0 + %s6240_s18]]   ;;  %s6243_s30 = smov 10  }
   0x6   :  { %s6428_s25 = sld [smem:[%s7640_s0 + %s6241_s22]]   ;;  %s6244_s4 = smov 11  }
   0x7   :  { %v5807_v0 = vld [vmem:[%s6279_s6 + $0x28] sm:$0xff]  ;;  %v5809_v1 = vld [vmem:[%s6279_s6 + $0x38] sm:$0xff]  ;;  %v5806_v2 = vld [vmem:[%s6279_s6 + $0x20] sm:$0xff]  ;;  %s6433_s29 = sld [smem:[%s7640_s0 + %s6242_s26]]   ;;  %s6247_s14 = smov 12  }
   0x8   :  { %v5808_v3 = vld [vmem:[%s6279_s6 + $0x30] sm:$0xff]  ;;  %291 = vmatpush.bf16.msra.mxu2 %v5807_v0  ;;  %317 = vmatpush.bf16.msra.mxu3 %v5809_v1  ;;  %v6293_v4 = vld [vmem:[%s1_s9] sm:$0xff]  ;;  %v6295_v5 = vld [vmem:[%s1_s9 + $0x8] sm:$0xff]  ;;  %s6453_s3 = sld [smem:[%s7640_s0 + %s6243_s30]]   ;;  %s6246_s9 = smov 13  }
   0x9   :  { %v5805_v6 = vld [vmem:[%s6279_s6 + $0x18] sm:$0xff]  ;;  %v5815_v8 = vld [vmem:[%s6287_s13 + $0x28] sm:$0xff]  ;;  %v5804_v9 = vld [vmem:[%s6279_s6 + $0x10] sm:$0xff]  ;;  %v216_v11 = vpack.c.bf16 %v6295_v5, %v6293_v4  ;;  %s6459_s8 = sld [smem:[%s7640_s0 + %s6244_s4]]   ;;  %s6248_s19 = smov 14  }
   0xa   :  { %v5817_v7 = vld [vmem:[%s6287_s13 + $0x38] sm:$0xff]  ;;  %265 = vmatpush.bf16.msra.mxu1 %v5805_v6  ;;  %v5803_v10 = vld [vmem:[%s6279_s6 + $0x8] sm:$0xff]  ;;  %v5816_v13 = vld [vmem:[%s6287_s13 + $0x30] sm:$0xff]  ;;  %s6471_s12 = sld [smem:[%s7640_s0 + %s6246_s9]]   ;;  %s6249_s23 = smov 15  }
   0xb   :  { %v5813_v12 = vld [vmem:[%s6287_s13 + $0x18] sm:$0xff]  ;;  %v5814_v14 = vld [vmem:[%s6287_s13 + $0x20] sm:$0xff]  ;;  %239 = vmatpush.bf16.msra.mxu0 %v5803_v10  ;;  %v5811_v16 = vld [vmem:[%s6287_s13 + $0x8] sm:$0xff]  ;;  %s6476_s18 = sld [smem:[%s7640_s0 + %s6247_s14]]   ;;  %s6250_s28 = smov 16  }
   0xc   :  { %292 = vmatpush.bf16.msra.mxu2 %v5806_v2  ;;  %318 = vmatpush.bf16.msra.mxu3 %v5808_v3  ;;  %v5802_v15 = vld [vmem:[%s6279_s6] sm:$0xff]  ;;  %v5812_v17 = vld [vmem:[%s6287_s13 + $0x10] sm:$0xff]  ;;  %v5825_v19 = vld [vmem:[%s6322_s17 + $0x38] sm:$0xff]  ;;  %s6482_s22 = sld [smem:[%s7640_s0 + %s6248_s19]]   ;;  %s6251_s4 = smov 17  }
   0xd   :  { %v5810_v18 = vld [vmem:[%s6287_s13] sm:$0xff]  ;;  %v5823_v20 = vld [vmem:[%s6322_s17 + $0x28] sm:$0xff]  ;;  %v5824_v21 = vld [vmem:[%s6322_s17 + $0x30] sm:$0xff]  ;;  %s6494_s27 = sld [smem:[%s7640_s0 + %s6249_s23]]   ;;  %s6254_s15 = smov 1  }
   0xe   :  { %266 = vmatpush.bf16.msra.mxu1 %v5804_v9  ;;  %v5822_v22 = vld [vmem:[%s6322_s17 + $0x20] sm:$0xff]  ;;  %v5819_v23 = vld [vmem:[%s6322_s17 + $0x8] sm:$0xff]  ;;  %v5821_v24 = vld [vmem:[%s6322_s17 + $0x18] sm:$0xff]  ;;  %s6506_s2 = sld [smem:[%s7640_s0 + %s6250_s28]]   ;;  %s6257_s26 = smov 21  }
   0xf   :  { %5006 = vmatmul.msk.bf16.vlgmr.msra.gmra.mxu2 %vm229_vm0, %v216_v11  ;;  %5015 = vmatmul.msk.bf16.vlgmr.msra.gmra.mxu3 %vm229_vm0, %v216_v11  ;;  %v5818_v25 = vld [vmem:[%s6322_s17] sm:$0xff]  ;;  %v5820_v26 = vld [vmem:[%s6322_s17 + $0x10] sm:$0xff]  ;;  %v6358_v10 = vld [vmem:[%s6347_s21 + $0x8] sm:$0xff]  ;;  %s6511_s9 = sld [smem:[%s7640_s0 + %s6251_s4]]   ;;  %s6258_s1 = smov 22  }
  0x10   :  { %421 = vmatpush.bf16.msrb.mxu3 %v5817_v7  ;;  %395 = vmatpush.bf16.msrb.mxu2 %v5815_v8  ;;  %v6350_v3 = vld [vmem:[%s6347_s21] sm:$0xff]  ;;  %vm604_vm4 = vcmp.lt.f32.partialorder %v6358_v10, 0.0  ;;  %s4908_s19 = sld [smem:[%s7640_s0 + %s6254_s15]]   ;;  %s6261_s15 = smov 4  }
  0x11   :  { %4997 = vmatmul.msk.bf16.vlgmr.msra.gmra.mxu1 %vm229_vm0, %v216_v11  ;;  %240 = vmatpush.bf16.msra.mxu0 %v5802_v15  ;;  %vm603_vm2 = vcmp.lt.f32.partialorder %v6350_v3, 0.0  ;;  %v6366_v15 = vld [vmem:[%s6347_s21 + $0x10] sm:$0xff]  ;;  %s6939_s30 = sld [smem:[%s7640_s0 + %s6257_s26]]   ;;  %s6264_s28 = smov 27  }
  0x12   :  { %369 = vmatpush.bf16.msrb.mxu1 %v5813_v12  ;;  %vm605_vm5 = vcmp.lt.f32.partialorder %v6366_v15, 0.0  ;;  %s6949_s7 = sld [smem:[%s7640_s0 + %s6258_s1]]  }
  0x13   :  { %s7200_s5 = sld [smem:[%s7640_s0 + %s6264_s28]]  }
  0x14   :  { %422 = vmatpush.bf16.msrb.mxu3 %v5816_v13  ;;  %396 = vmatpush.bf16.msrb.mxu2 %v5814_v14 }
  0x15   :  { %343 = vmatpush.bf16.msrb.mxu0 %v5811_v16 }
  0x16   :  { %370 = vmatpush.bf16.msrb.mxu1 %v5812_v17  ;;  %4988 = vmatmul.msk.bf16.vlgmr.msra.gmra.mxu0 %vm229_vm0, %v216_v11 }
  0x18   :  { %525 = vmatpush.bf16.msra.mxu3 %v5825_v19  ;;  %499 = vmatpush.bf16.msra.mxu2 %v5823_v20  ;;  %v6374_v20 = vld [vmem:[%s6347_s21 + $0x18] sm:$0xff] }
  0x19   :  { %344 = vmatpush.bf16.msrb.mxu0 %v5810_v18  ;;  %vm606_vm6 = vcmp.lt.f32.partialorder %v6374_v20, 0.0 }
  0x1a   :  { %473 = vmatpush.bf16.msra.mxu1 %v5821_v24 }
  0x1c   :  { %526 = vmatpush.bf16.msra.mxu3 %v5824_v21  ;;  %500 = vmatpush.bf16.msra.mxu2 %v5822_v22 }
  0x1d   :  { %447 = vmatpush.bf16.msra.mxu0 %v5819_v23 }
  0x1e   :  { %474 = vmatpush.bf16.msra.mxu1 %v5820_v26 }
  0x1f   :  { %5042 = vmatmul.msk.bf16.vlgmr.msrb.gmra.mxu2 %vm229_vm0, %v216_v11  ;;  %5051 = vmatmul.msk.bf16.vlgmr.msrb.gmra.mxu3 %vm229_vm0, %v216_v11 }
  0x21   :  { %5033 = vmatmul.msk.bf16.vlgmr.msrb.gmra.mxu1 %vm229_vm0, %v216_v11  ;;  %448 = vmatpush.bf16.msra.mxu0 %v5818_v25  ;;  %v6382_v25 = vld [vmem:[%s6347_s21 + $0x20] sm:$0xff] }
  0x22   :  { %vm607_vm7 = vcmp.lt.f32.partialorder %v6382_v25, 0.0 }
  0x26   :  { %5024 = vmatmul.msk.bf16.vlgmr.msrb.gmra.mxu0 %vm229_vm0, %v216_v11 }
  0x2f   :  { %5087 = vmatmul.msk.bf16.vlgmr.msra.gmra.mxu3 %vm229_vm0, %v216_v11  ;;  %5078 = vmatmul.msk.bf16.vlgmr.msra.gmra.mxu2 %vm229_vm0, %v216_v11 }
  0x31   :  { %5069 = vmatmul.msk.bf16.vlgmr.msra.gmra.mxu1 %vm229_vm0, %v216_v11 }
  0x36   :  { %5060 = vmatmul.msk.bf16.vlgmr.msra.gmra.mxu0 %vm229_vm0, %v216_v11 }
  0x8e   :  { %v268_v29 = vpop.f32.mrf.mxu1 }
  0x92   :  { %v294_v27 = vpop.f32.mrf.mxu2  ;;  %v320_v28 = vpop.f32.mrf.mxu3 }
  0x93   :  { %v242_v32 = vpop.f32.mrf.mxu0 }
  0x96   :  { %v270_v33 = vpop.f32.mrf.mxu1 }
  0x97   :  { %v534_v52 = vpack.c.bf16 %v270_v33, %v268_v29 }
  0x9a   :  { %v296_v30 = vpop.f32.mrf.mxu2  ;;  %v322_v31 = vpop.f32.mrf.mxu3 }
  0x9b   :  { %v244_v36 = vpop.f32.mrf.mxu0  ;;  %v535_v53 = vpack.c.bf16 %v296_v30, %v294_v27  ;;  %v536_v54 = vpack.c.bf16 %v322_v31, %v320_v28  ;;  %v6390_v30 = vld [vmem:[%s6347_s21 + $0x28] sm:$0xff] }
  0x9c   :  { %v533_v51 = vpack.c.bf16 %v244_v36, %v242_v32  ;;  %vm608_vm8 = vcmp.lt.f32.partialorder %v6390_v30, 0.0 }
  0x9e   :  { %v372_v39 = vpop.f32.mrf.mxu1 }
  0xa2   :  { %v424_v34 = vpop.f32.mrf.mxu3  ;;  %v398_v35 = vpop.f32.mrf.mxu2 }
  0xa3   :  { %v346_v43 = vpop.f32.mrf.mxu0 }
  0xa6   :  { %v374_v45 = vpop.f32.mrf.mxu1 }
  0xa7   :  { %v538_v46 = vpack.c.bf16 %v374_v45, %v372_v39 }
  0xa9   :  { %v558_v47 = vsel %vm541_vm1, %v538_v46, 0 }
  0xaa   :  { %v426_v37 = vpop.f32.mrf.mxu3  ;;  %v400_v41 = vpop.f32.mrf.mxu2 }
  0xab   :  { %v540_v38 = vpack.c.bf16 %v426_v37, %v424_v34  ;;  %v539_v42 = vpack.c.bf16 %v400_v41, %v398_v35  ;;  %v348_v48 = vpop.f32.mrf.mxu0  ;;  %v6398_v35 = vld [vmem:[%s6347_s21 + $0x30] sm:$0xff] }
  0xac   :  { %v537_v49 = vpack.c.bf16 %v348_v48, %v346_v43  ;;  %vm609_vm9 = vcmp.lt.f32.partialorder %v6398_v35, 0.0 }
  0xad   :  { %v564_v40 = vsel %vm541_vm1, %v540_v38, 0  ;;  %v561_v44 = vsel %vm541_vm1, %v539_v42, 0 }
  0xae   :  { %570 = vmatpush.bf16.xpose.msrb.mxu0 %v564_v40  ;;  %v555_v50 = vsel %vm541_vm1, %v537_v49, 0  ;;  %v476_v58 = vpop.f32.mrf.mxu1  ;;  %v6406_v40 = vld [vmem:[%s6347_s21 + $0x38] sm:$0xff]  ;;  %s6256_s21 = smov 3  }
  0xaf   :  { %vm7642_vm10 = vcmp.lt.f32.partialorder %v6406_v40, 0.0  ;;  %s6825_s24 = sld [smem:[%s7640_s0 + %s6256_s21]]  }
  0xb2   :  { %v528_v55 = vpop.f32.mrf.mxu3  ;;  %v502_v56 = vpop.f32.mrf.mxu2 }
  0xb3   :  { %v450_v57 = vpop.f32.mrf.mxu0 }
  0xb6   :  { %571 = vmatpush.bf16.xpose.msrb.mxu0 %v561_v44  ;;  %v478_v63 = vpop.f32.mrf.mxu1 }
  0xb7   :  { %v713_v1 = vpack.c.bf16 %v478_v63, %v476_v58 }
  0xba   :  { %v530_v59 = vpop.f32.mrf.mxu3  ;;  %v504_v61 = vpop.f32.mrf.mxu2 }
  0xbb   :  { %v715_v60 = vpack.c.bf16 %v530_v59, %v528_v55  ;;  %v714_v62 = vpack.c.bf16 %v504_v61, %v502_v56  ;;  %v452_v0 = vpop.f32.mrf.mxu0 }
  0xbc   :  { %v712_v2 = vpack.c.bf16 %v452_v0, %v450_v57 }
  0xbd   :  { %732 = vmatpush.bf16.msrb.mxu1 %v715_v60 }
  0xbe   :  { %572 = vmatpush.bf16.xpose.msrb.mxu0 %v558_v47 }
  0xc1   :  { %733 = vmatpush.bf16.msrb.mxu1 %v714_v62 }
  0xc5   :  { %734 = vmatpush.bf16.msrb.mxu1 %v713_v1 }
  0xc6   :  { %573 = vmatpush.bf16.xpose.msrb.mxu0 %v555_v50 }
  0xc9   :  { %735 = vmatpush.bf16.msrb.mxu1 %v712_v2 }
  0xcd   :  { %5088 = vmatmul.msk.bf16.vlgmr.msrb.gmra.mxu0 %vm541_vm1, %v533_v51 }
  0xdd   :  { %5089 = vmatmul.msk.bf16.gmra.mxu0 %vm541_vm1, %v534_v52 }
  0xed   :  { %5090 = vmatmul.msk.bf16.gmra.mxu0 %vm541_vm1, %v535_v53 }
  0xfd   :  { %5091 = vmatmul.msk.bf16.gmra.mxu0 %vm541_vm1, %v536_v54 }
 0x14a   :  { %v575_v6 = vpop.f32.mrf.mxu0 }
 0x14b   :  { %v595_v7 = vmul.f32 0.35355338, %v575_v6 }
 0x14d   :  { %v611_v8 = vsel %vm603_vm2, %v6350_v3, %v595_v7 }
 0x14e   :  { %v620_v9 = vsel %vm619_vm3, %v611_v8, -inf }
 0x14f   :  { %621 = vmax.xlane.f32.xlu0 %v620_v9 }
 0x152   :  { %v577_v11 = vpop.f32.mrf.mxu0 }
 0x153   :  { %v596_v12 = vmul.f32 0.35355338, %v577_v11 }
 0x155   :  { %v612_v13 = vsel %vm604_vm4, %v6358_v10, %v596_v12 }
 0x156   :  { %v623_v14 = vsel %vm619_vm3, %v612_v13, -inf }
 0x157   :  { %624 = vmax.xlane.f32.xlu0 %v623_v14 }
 0x15a   :  { %v580_v16 = vpop.f32.mrf.mxu0 }
 0x15b   :  { %v597_v17 = vmul.f32 0.35355338, %v580_v16 }
 0x15d   :  { %v613_v18 = vsel %vm605_vm5, %v6366_v15, %v597_v17 }
 0x15e   :  { %v626_v19 = vsel %vm619_vm3, %v613_v18, -inf }
 0x15f   :  { %627 = vmax.xlane.f32.xlu1 %v626_v19 }
 0x162   :  { %v582_v21 = vpop.f32.mrf.mxu0 }
 0x163   :  { %v598_v22 = vmul.f32 0.35355338, %v582_v21 }
 0x165   :  { %v614_v23 = vsel %vm606_vm6, %v6374_v20, %v598_v22 }
 0x166   :  { %v629_v24 = vsel %vm619_vm3, %v614_v23, -inf }
 0x167   :  { %630 = vmax.xlane.f32.xlu1 %v629_v24 }
 0x16a   :  { %v585_v26 = vpop.f32.mrf.mxu0 }
 0x16b   :  { %v599_v27 = vmul.f32 0.35355338, %v585_v26 }
 0x16d   :  { %v615_v28 = vsel %vm607_vm7, %v6382_v25, %v599_v27 }
 0x16e   :  { %v632_v29 = vsel %vm619_vm3, %v615_v28, -inf }
 0x16f   :  { %633 = vmax.xlane.f32.xlu2 %v632_v29 }
 0x172   :  { %v587_v31 = vpop.f32.mrf.mxu0 }
 0x173   :  { %v600_v32 = vmul.f32 0.35355338, %v587_v31 }
 0x175   :  { %v616_v33 = vsel %vm608_vm8, %v6390_v30, %v600_v32 }
 0x176   :  { %v635_v34 = vsel %vm619_vm3, %v616_v33, -inf }
 0x177   :  { %636 = vmax.xlane.f32.xlu2 %v635_v34 }
 0x17a   :  { %v590_v36 = vpop.f32.mrf.mxu0 }
 0x17b   :  { %v601_v37 = vmul.f32 0.35355338, %v590_v36 }
 0x17d   :  { %v617_v38 = vsel %vm609_vm9, %v6398_v35, %v601_v37 }
 0x17e   :  { %v638_v39 = vsel %vm619_vm3, %v617_v38, -inf }
 0x17f   :  { %639 = vmax.xlane.f32.xlu0 %v638_v39 }
 0x182   :  { %v592_v41 = vpop.f32.mrf.mxu0 }
 0x183   :  { %v602_v42 = vmul.f32 0.35355338, %v592_v41 }
 0x185   :  { %v618_v43 = vsel %vm7642_vm10, %v6406_v40, %v602_v42 }
 0x186   :  { %v641_v44 = vsel %vm619_vm3, %v618_v43, -inf }
 0x187   :  { %642 = vmax.xlane.f32.xlu1 %v641_v44 }
 0x1c2   :  { %v622_v45 = vpop.xlane.xlu0 %621 }
 0x1c3   :  { %v644_v46 = vsub.f32 %v611_v8, %v622_v45 }
 0x1c5   :  { %v652_v47 = vmul.f32 1.442695, %v644_v46 }
 0x1c7   :  { %5987 = vpow2.f32 %v652_v47 }
 0x1ca   :  { %v625_v48 = vpop.xlane.xlu0 %624 }
 0x1cb   :  { %v645_v49 = vsub.f32 %v612_v13, %v625_v48 }
 0x1cd   :  { %v5988_v50 = vpop.eup %5987  ;;  %v654_v51 = vmul.f32 1.442695, %v645_v49 }
 0x1ce   :  { %v668_v52 = vsel %vm619_vm3, %v5988_v50, 0.0 }
 0x1cf   :  { %5989 = vpow2.f32 %v654_v51  ;;  %669 = vadd.xlane.f32.xlu2 %v668_v52 }
 0x1d2   :  { %v628_v53 = vpop.xlane.xlu1 %627 }
 0x1d3   :  { %v646_v54 = vsub.f32 %v613_v18, %v628_v53 }
 0x1d5   :  { %v5990_v55 = vpop.eup %5989  ;;  %v656_v56 = vmul.f32 1.442695, %v646_v54 }
 0x1d6   :  { %v671_v57 = vsel %vm619_vm3, %v5990_v55, 0.0 }
 0x1d7   :  { %5991 = vpow2.f32 %v656_v56  ;;  %672 = vadd.xlane.f32.xlu0 %v671_v57 }
 0x1da   :  { %v631_v58 = vpop.xlane.xlu1 %630 }
 0x1db   :  { %v647_v59 = vsub.f32 %v614_v23, %v631_v58 }
 0x1dd   :  { %v5992_v60 = vpop.eup %5991  ;;  %v658_v61 = vmul.f32 1.442695, %v647_v59  ;;  %v206_v59 = vld [vmem:[%s6433_s29] sm:$0xf] }
 0x1de   :  { %v674_v62 = vsel %vm619_vm3, %v5992_v60, 0.0 }
 0x1df   :  { %5993 = vpow2.f32 %v658_v61  ;;  %675 = vadd.xlane.f32.xlu1 %v674_v62  ;;  %v4977_v61 = vld [vmem:[%s6433_s29 + $0x4] sm:$0xf] }
 0x1e0   :  { %v789_v62 = vsel %vm7641_vm11, %v4977_v61, 0  ;;  %v5827_v61 = vld [vmem:[%s6476_s18 + $0x8] sm:$0xff] }
 0x1e1   :  { %798 = vmatpush.bf16.msrb.mxu3 %v789_v62 }
 0x1e2   :  { %v634_v63 = vpop.xlane.xlu2 %633 }
 0x1e3   :  { %v648_v0 = vsub.f32 %v615_v28, %v634_v63 }
 0x1e5   :  { %v5994_v1 = vpop.eup %5993  ;;  %v660_v2 = vmul.f32 1.442695, %v648_v0  ;;  %v4978_v0 = vld [vmem:[%s6433_s29 + $0x8] sm:$0xf] }
 0x1e6   :  { %v677_v6 = vsel %vm619_vm3, %v5994_v1, 0.0 }
 0x1e7   :  { %5995 = vpow2.f32 %v660_v2  ;;  %678 = vadd.xlane.f32.xlu2 %v677_v6 }
 0x1ea   :  { %v637_v7 = vpop.xlane.xlu2 %636 }
 0x1eb   :  { %v649_v8 = vsub.f32 %v616_v33, %v637_v7  ;;  %v4979_v7 = vld [vmem:[%s6433_s29 + $0xc] sm:$0xf] }
 0x1ed   :  { %v5996_v9 = vpop.eup %5995  ;;  %v662_v11 = vmul.f32 1.442695, %v649_v8  ;;  %v835_v8 = vsel %vm7641_vm11, %v4979_v7, 0 }
 0x1ee   :  { %v680_v12 = vsel %vm619_vm3, %v5996_v9, 0.0  ;;  %844 = vmatpush.bf16.msra.mxu3 %v835_v8 }
 0x1ef   :  { %5997 = vpow2.f32 %v662_v11  ;;  %681 = vadd.xlane.f32.xlu0 %v680_v12 }
 0x1f2   :  { %v640_v13 = vpop.xlane.xlu0 %639 }
 0x1f3   :  { %v650_v14 = vsub.f32 %v617_v38, %v640_v13 }
 0x1f5   :  { %v5998_v16 = vpop.eup %5997  ;;  %v664_v17 = vmul.f32 1.442695, %v650_v14 }
 0x1f6   :  { %v683_v18 = vsel %vm619_vm3, %v5998_v16, 0.0 }
 0x1f7   :  { %5999 = vpow2.f32 %v664_v17  ;;  %684 = vadd.xlane.f32.xlu1 %v683_v18 }
 0x1fa   :  { %v643_v19 = vpop.xlane.xlu1 %642 }
 0x1fb   :  { %v651_v21 = vsub.f32 %v618_v43, %v643_v19 }
 0x1fd   :  { %v6000_v22 = vpop.eup %5999  ;;  %v666_v23 = vmul.f32 1.442695, %v651_v21 }
 0x1fe   :  { %v686_v24 = vsel %vm619_vm3, %v6000_v22, 0.0 }
 0x1ff   :  { %6001 = vpow2.f32 %v666_v23  ;;  %687 = vadd.xlane.f32.xlu2 %v686_v24  ;;  %v5958_v24 = vld [vmem:[%s6428_s25] ss:$0 sm:$0xff] }
 0x205   :  { %v6002_v26 = vpop.eup %6001 }
 0x206   :  { %v689_v27 = vsel %vm619_vm3, %v6002_v26, 0.0 }
 0x207   :  { %690 = vadd.xlane.f32.xlu0 %v689_v27 }
 0x242   :  { %v670_v28 = vpop.xlane.xlu2 %669 }
 0x243   :  { %6003 = vrcp.f32 %v670_v28 }
 0x249   :  { %v6004_v31 = vpop.eup %6003 }
 0x24a   :  { %v673_v29 = vpop.xlane.xlu0 %672  ;;  %v700_v33 = vmul.f32 %v6004_v31, %v5988_v50 }
 0x24b   :  { %6005 = vrcp.f32 %v673_v29 }
 0x251   :  { %v6006_v32 = vpop.eup %6005 }
 0x252   :  { %v701_v34 = vmul.f32 %v6006_v32, %v5990_v55  ;;  %v676_v37 = vpop.xlane.xlu1 %675 }
 0x253   :  { %6007 = vrcp.f32 %v676_v37 }
 0x254   :  { %v708_v36 = vpack.c.bf16 %v701_v34, %v700_v33 }
 0x256   :  { %5092 = vmatmul.msk.bf16.vlgmr.msrb.gmra.mxu1 %vm619_vm3, %v708_v36 }
 0x259   :  { %v6008_v39 = vpop.eup %6007 }
 0x25a   :  { %v679_v38 = vpop.xlane.xlu2 %678  ;;  %v702_v42 = vmul.f32 %v6008_v39, %v5992_v60  ;;  %v763_v60 = vsel %vm7641_vm11, %v206_v59, 0 }
 0x25b   :  { %6009 = vrcp.f32 %v679_v38  ;;  %772 = vmatpush.bf16.msrb.mxu2 %v763_v60 }
 0x261   :  { %v6010_v41 = vpop.eup %6009 }
 0x262   :  { %v703_v43 = vmul.f32 %v6010_v41, %v5994_v1  ;;  %v682_v45 = vpop.xlane.xlu0 %681  ;;  %v812_v1 = vsel %vm7641_vm11, %v4978_v0, 0  ;;  %v5826_v0 = vld [vmem:[%s6476_s18] sm:$0xff] }
 0x263   :  { %6011 = vrcp.f32 %v682_v45  ;;  %821 = vmatpush.bf16.msra.mxu2 %v812_v1  ;;  %v6245_v45 = vmov 32.0  }
 0x264   :  { %v709_v44 = vpack.c.bf16 %v703_v43, %v702_v42 }
 0x266   :  { %5093 = vmatmul.msk.bf16.gmra.mxu1 %vm619_vm3, %v709_v44 }
 0x269   :  { %v6012_v47 = vpop.eup %6011 }
 0x26a   :  { %v685_v46 = vpop.xlane.xlu1 %684  ;;  %v704_v49 = vmul.f32 %v6012_v47, %v5996_v9 }
 0x26b   :  { %6013 = vrcp.f32 %v685_v46 }
 0x271   :  { %v6014_v48 = vpop.eup %6013 }
 0x272   :  { %v705_v50 = vmul.f32 %v6014_v48, %v5998_v16  ;;  %v688_v52 = vpop.xlane.xlu2 %687 }
 0x273   :  { %6015 = vrcp.f32 %v688_v52 }
 0x274   :  { %v710_v51 = vpack.c.bf16 %v705_v50, %v704_v49 }
 0x276   :  { %5094 = vmatmul.msk.bf16.gmra.mxu1 %vm619_vm3, %v710_v51 }
 0x279   :  { %v6016_v54 = vpop.eup %6015 }
 0x27a   :  { %v691_v53 = vpop.xlane.xlu0 %690  ;;  %v706_v56 = vmul.f32 %v6016_v54, %v6000_v22 }
 0x27b   :  { %6017 = vrcp.f32 %v691_v53 }
 0x27c   :  { %6019 = vrcp.f32 %v6245_v45 }
 0x281   :  { %v6018_v55 = vpop.eup %6017 }
 0x282   :  { %v707_v57 = vmul.f32 %v6018_v55, %v6002_v26  ;;  %v6020_v46 = vpop.eup %6019 }
 0x283   :  { %v862_v47 = vmul.f32 32.0, %v6020_v46  ;;  %vm866_vm12 = vweird.f32 %v6020_v46 }
 0x284   :  { %v711_v58 = vpack.c.bf16 %v707_v57, %v706_v56 }
 0x285   :  { %v863_v48 = vsub.f32 1.0, %v862_v47 }
 0x286   :  { %5095 = vmatmul.msk.bf16.gmra.mxu1 %vm619_vm3, %v711_v58 }
 0x287   :  { %v864_v49 = vmul.f32 %v6020_v46, %v863_v48 }
 0x289   :  { %v865_v50 = vadd.f32 %v6020_v46, %v864_v49  ;;  %v5962_v49 = vld [vmem:[%s6494_s27] ss:$0 sm:$0xff] }
 0x28b   :  { %v6462_v51 = vsel %vm866_vm12, %v6020_v46, %v865_v50 }
 0x2d3   :  { %v737_v63 = vpop.f32.mrf.mxu1 }
 0x2db   :  { %v739_v2 = vpop.f32.mrf.mxu1 }
 0x2dc   :  { %v757_v6 = vpack.c.bf16 %v739_v2, %v737_v63  ;;  %v5831_v2 = vld [vmem:[%s6482_s22 + $0x18] sm:$0xff] }
 0x2de   :  { %5096 = vmatmul.msk.bf16.vlgmr.msrb.gmra.mxu2 %vm541_vm1, %v757_v6 }
 0x2df   :  { %957 = vmatpush.bf16.msrb.mxu2 %v5827_v61 }
 0x2e3   :  { %v742_v9 = vpop.f32.mrf.mxu1  ;;  %958 = vmatpush.bf16.msrb.mxu2 %v5826_v0 }
 0x2eb   :  { %v744_v11 = vpop.f32.mrf.mxu1 }
 0x2ec   :  { %v784_v12 = vpack.c.bf16 %v744_v11, %v742_v9 }
 0x2ee   :  { %5097 = vmatmul.msk.bf16.vlgmr.msrb.gmra.mxu3 %vm541_vm1, %v784_v12 }
 0x2ef   :  { %1002 = vmatpush.bf16.msrb.mxu3 %v5831_v2 }
 0x2f3   :  { %v747_v13 = vpop.f32.mrf.mxu1 }
 0x2fb   :  { %v749_v14 = vpop.f32.mrf.mxu1 }
 0x2fc   :  { %v807_v16 = vpack.c.bf16 %v749_v14, %v747_v13 }
 0x2fe   :  { %5098 = vmatmul.msk.bf16.vlgmr.msra.gmra.mxu2 %vm541_vm1, %v807_v16 }
 0x303   :  { %v752_v17 = vpop.f32.mrf.mxu1 }
 0x30b   :  { %v754_v18 = vpop.f32.mrf.mxu1 }
 0x30c   :  { %v830_v19 = vpack.c.bf16 %v754_v18, %v752_v17 }
 0x30e   :  { %5099 = vmatmul.msk.bf16.vlgmr.msra.gmra.mxu3 %vm541_vm1, %v830_v19 }
 0x361   :  { %v774_v21 = vpop.f32.mrf.mxu2 }
 0x362   :  { %v782_v28 = vadd.f32 %v5958_v24, %v774_v21 }
 0x369   :  { %v776_v23 = vpop.f32.mrf.mxu2 }
 0x36a   :  { %v783_v34 = vadd.f32 %v5958_v24, %v776_v23  ;;  %v5959_v24 = vld [vmem:[%s6453_s3] ss:$0 sm:$0xff] }
 0x371   :  { %v800_v22 = vpop.f32.mrf.mxu3 }
 0x372   :  { %v805_v29 = vadd.f32 %v800_v22, %v782_v28 }
 0x379   :  { %v802_v26 = vpop.f32.mrf.mxu3 }
 0x37a   :  { %v806_v38 = vadd.f32 %v802_v26, %v783_v34 }
 0x381   :  { %v823_v27 = vpop.f32.mrf.mxu2 }
 0x382   :  { %v828_v31 = vadd.f32 %v823_v27, %v805_v29  ;;  %v5960_v29 = vld [vmem:[%s6459_s8] ss:$0 sm:$0xff] }
 0x389   :  { %v825_v37 = vpop.f32.mrf.mxu2 }
 0x38a   :  { %v829_v41 = vadd.f32 %v825_v37, %v806_v38  ;;  %v5830_v38 = vld [vmem:[%s6482_s22 + $0x10] sm:$0xff] }
 0x38b   :  { %1003 = vmatpush.bf16.msrb.mxu3 %v5830_v38 }
 0x391   :  { %v846_v32 = vpop.f32.mrf.mxu3 }
 0x392   :  { %v851_v33 = vadd.f32 %v846_v32, %v828_v31 }
 0x394   :  { %v853_v36 = vadd.f32 %v851_v33, %v6293_v4 }
 0x396   :  { %v855_v39 = vsel %vm229_vm0, %v853_v36, 0.0 }
 0x397   :  { %856 = vadd.xlane.f32.xlu1 %v855_v39  ;;  %v5829_v39 = vld [vmem:[%s6482_s22 + $0x8] sm:$0xff] }
 0x398   :  { %1004 = vmatpush.bf16.msrb.mxu3 %v5829_v39 }
 0x399   :  { %v848_v42 = vpop.f32.mrf.mxu3 }
 0x39a   :  { %v852_v43 = vadd.f32 %v848_v42, %v829_v41  ;;  %v5828_v41 = vld [vmem:[%s6482_s22] sm:$0xff] }
 0x39c   :  { %v854_v44 = vadd.f32 %v852_v43, %v6295_v5  ;;  %1005 = vmatpush.bf16.msrb.mxu3 %v5828_v41  ;;  %v5961_v43 = vld [vmem:[%s6471_s12] ss:$0 sm:$0xff] }
 0x39e   :  { %v858_v4 = vsel %vm229_vm0, %v854_v44, 0.0 }
 0x39f   :  { %859 = vadd.xlane.f32.xlu2 %v858_v4 }
 0x40a   :  { %v857_v5 = vpop.xlane.xlu1 %856 }
 0x40b   :  { %v868_v52 = vmul.f32 %v6462_v51, %v857_v5 }
 0x40d   :  { %v870_v53 = vsub.f32 %v853_v36, %v868_v52 }
 0x40f   :  { %v872_v54 = vmul.f32 %v870_v53, %v870_v53 }
 0x411   :  { %v874_v55 = vsel %vm229_vm0, %v872_v54, 0.0 }
 0x412   :  { %875 = vadd.xlane.f32.xlu0 %v874_v55  ;;  %v860_v56 = vpop.xlane.xlu2 %859 }
 0x413   :  { %v869_v57 = vmul.f32 %v6462_v51, %v860_v56 }
 0x415   :  { %v871_v58 = vsub.f32 %v854_v44, %v869_v57 }
 0x417   :  { %v873_v59 = vmul.f32 %v871_v58, %v871_v58 }
 0x419   :  { %v877_v60 = vsel %vm229_vm0, %v873_v59, 0.0 }
 0x41a   :  { %878 = vadd.xlane.f32.xlu1 %v877_v60 }
 0x485   :  { %v876_v62 = vpop.xlane.xlu0 %875 }
 0x486   :  { %v880_v63 = vmul.f32 %v876_v62, %v6462_v51 }
 0x488   :  { %v882_v1 = vadd.f32 1e-05, %v880_v63 }
 0x48a   :  { %6021 = vrsqrt.f32 %v882_v1  ;;  %vm890_vm14 = vweird.f32 %v882_v1 }
 0x48d   :  { %v879_v6 = vpop.xlane.xlu1 %878 }
 0x48e   :  { %v881_v7 = vmul.f32 %v879_v6, %v6462_v51 }
 0x490   :  { %v6022_v8 = vpop.eup %6021  ;;  %v883_v9 = vadd.f32 1e-05, %v881_v7  ;;  %v5837_v7 = vld [vmem:[%s6279_s6 + $0x68] sm:$0xff] }
 0x491   :  { %v885_v11 = vmul.f32 %v6022_v8, %v882_v1  ;;  %vm891_vm13 = vweird.f32 %v6022_v8  ;;  %1216 = vmatpush.bf16.msra.mxu1 %v5837_v7 }
 0x492   :  { %6023 = vrsqrt.f32 %v883_v9  ;;  %vm892_vm15 = vmor %vm890_vm14, %vm891_vm13  ;;  %vm900_vm11 = vweird.f32 %v883_v9 }
 0x493   :  { %v886_v12 = vmul.f32 %v6022_v8, %v885_v11  ;;  %v5835_v11 = vld [vmem:[%s6279_s6 + $0x58] sm:$0xff] }
 0x494   :  { %1190 = vmatpush.bf16.msra.mxu3 %v5835_v11 }
 0x495   :  { %v887_v13 = vmul.f32 0.5, %v886_v12 }
 0x497   :  { %v888_v14 = vsub.f32 1.5, %v887_v13 }
 0x498   :  { %v6024_v16 = vpop.eup %6023 }
 0x499   :  { %v889_v17 = vmul.f32 %v6022_v8, %v888_v14  ;;  %v895_v18 = vmul.f32 %v6024_v16, %v883_v9  ;;  %vm901_vm12 = vweird.f32 %v6024_v16  ;;  %v5843_v9 = vld [vmem:[%s6287_s13 + $0x58] sm:$0xff]  ;;  %v5832_v14 = vld [vmem:[%s6279_s6 + $0x40] sm:$0xff] }
 0x49a   :  { %vm902_vm10 = vmor %vm900_vm11, %vm901_vm12  ;;  %1294 = vmatpush.bf16.msra.mxu0 %v5843_v9 }
 0x49b   :  { %v896_v19 = vmul.f32 %v6024_v16, %v895_v18  ;;  %v893_v21 = vsel %vm892_vm15, %v6022_v8, %v889_v17  ;;  %v5833_v8 = vld [vmem:[%s6279_s6 + $0x48] sm:$0xff]  ;;  %v5836_v17 = vld [vmem:[%s6279_s6 + $0x60] sm:$0xff] }
 0x49c   :  { %v904_v26 = vmul.f32 %v893_v21, %v870_v53  ;;  %1164 = vmatpush.bf16.msra.mxu2 %v5833_v8  ;;  %1217 = vmatpush.bf16.msra.mxu1 %v5836_v17 }
 0x49d   :  { %v897_v22 = vmul.f32 0.5, %v896_v19  ;;  %v5842_v19 = vld [vmem:[%s6287_s13 + $0x50] sm:$0xff] }
 0x49e   :  { %v909_v31 = vmul.f32 %v5959_v24, %v904_v26  ;;  %1295 = vmatpush.bf16.msra.mxu0 %v5842_v19  ;;  %v5845_v26 = vld [vmem:[%s6287_s13 + $0x68] sm:$0xff] }
 0x49f   :  { %v898_v23 = vsub.f32 1.5, %v897_v22  ;;  %v5839_v22 = vld [vmem:[%s6279_s6 + $0x78] sm:$0xff] }
 0x4a0   :  { %v914_v34 = vadd.f32 %v5960_v29, %v909_v31  ;;  %1165 = vmatpush.bf16.msra.mxu2 %v5832_v14  ;;  %1320 = vmatpush.bf16.msrb.mxu1 %v5845_v26 }
 0x4a1   :  { %v899_v27 = vmul.f32 %v6024_v16, %v898_v23  ;;  %v5841_v23 = vld [vmem:[%s6287_s13 + $0x48] sm:$0xff] }
 0x4a3   :  { %v903_v28 = vsel %vm902_vm10, %v6024_v16, %v899_v27  ;;  %v5834_v16 = vld [vmem:[%s6279_s6 + $0x50] sm:$0xff]  ;;  %v5851_v27 = vld [vmem:[%s6322_s17 + $0x58] sm:$0xff] }
 0x4a4   :  { %v905_v32 = vmul.f32 %v903_v28, %v871_v58  ;;  %1191 = vmatpush.bf16.msra.mxu3 %v5834_v16  ;;  %v5838_v28 = vld [vmem:[%s6279_s6 + $0x70] sm:$0xff]  ;;  %1398 = vmatpush.bf16.msrb.mxu0 %v5851_v27  ;;  %s6252_s6 = smov 18  }
 0x4a6   :  { %v910_v33 = vmul.f32 %v5959_v24, %v905_v32 }
 0x4a8   :  { %v915_v36 = vadd.f32 %v5960_v29, %v910_v33  ;;  %v5840_v29 = vld [vmem:[%s6287_s13 + $0x40] sm:$0xff] }
 0x4a9   :  { %v5844_v33 = vld [vmem:[%s6287_s13 + $0x60] sm:$0xff] }
 0x4aa   :  { %v932_v37 = vpack.c.bf16 %v915_v36, %v914_v34  ;;  %1321 = vmatpush.bf16.msrb.mxu1 %v5844_v33 }
 0x4ac   :  { %5108 = vmatmul.msk.bf16.vlgmr.msrb.gmra.mxu2 %vm229_vm0, %v932_v37 }
 0x4ad   :  { %1242 = vmatpush.bf16.msrb.mxu2 %v5839_v22 }
 0x4b1   :  { %1243 = vmatpush.bf16.msrb.mxu2 %v5838_v28 }
 0x52f   :  { %v960_v42 = vpop.f32.mrf.mxu2 }
 0x530   :  { %v961_v44 = vadd.f32 %v5961_v43, %v960_v42 }
 0x532   :  { %v965_v46 = vmax.f32 %v961_v44, 0.0 }
 0x537   :  { %v962_v4 = vpop.f32.mrf.mxu2 }
 0x538   :  { %v963_v45 = vadd.f32 %v5961_v43, %v962_v4 }
 0x53a   :  { %v966_v47 = vmax.f32 %v963_v45, 0.0 }
 0x53c   :  { %v967_v48 = vpack.c.bf16 %v966_v47, %v965_v46  ;;  %v5963_v47 = vld [vmem:[%s6506_s2] ss:$0 sm:$0xff] }
 0x53e   :  { %5125 = vmatmul.msk.bf16.vlgmr.msrb.gmra.mxu3 %vm619_vm3, %v967_v48 }
 0x53f   :  { %1268 = vmatpush.bf16.msrb.mxu3 %v5841_v23 }
 0x543   :  { %1269 = vmatpush.bf16.msrb.mxu3 %v5840_v29 }
 0x5c1   :  { %v1007_v50 = vpop.f32.mrf.mxu3 }
 0x5c2   :  { %v1008_v5 = vadd.f32 %v5962_v49, %v1007_v50 }
 0x5c4   :  { %v1012_v52 = vadd.f32 %v1008_v5, %v914_v34  ;;  %v5850_v34 = vld [vmem:[%s6322_s17 + $0x50] sm:$0xff]  ;;  %v5964_v5 = vld [vmem:[%s6511_s9] ss:$0 sm:$0xff] }
 0x5c5   :  { %1399 = vmatpush.bf16.msrb.mxu0 %v5850_v34 }
 0x5c6   :  { %v1014_v53 = vsel %vm229_vm0, %v1012_v52, 0.0 }
 0x5c7   :  { %1015 = vadd.xlane.f32.xlu2 %v1014_v53 }
 0x5c9   :  { %v1009_v54 = vpop.f32.mrf.mxu3 }
 0x5ca   :  { %v1010_v55 = vadd.f32 %v5962_v49, %v1009_v54 }
 0x5cc   :  { %v1013_v56 = vadd.f32 %v1010_v55, %v915_v36 }
 0x5ce   :  { %v1017_v57 = vsel %vm229_vm0, %v1013_v56, 0.0 }
 0x5cf   :  { %1018 = vadd.xlane.f32.xlu0 %v1017_v57 }
 0x63a   :  { %v1016_v58 = vpop.xlane.xlu2 %1015 }
 0x63b   :  { %v1020_v59 = vmul.f32 %v1016_v58, %v6462_v51  ;;  %v5847_v58 = vld [vmem:[%s6287_s13 + $0x78] sm:$0xff] }
 0x63d   :  { %v6515_v60 = vsub.f32 %v1012_v52, %v1020_v59  ;;  %v5849_v59 = vld [vmem:[%s6322_s17 + $0x48] sm:$0xff] }
 0x63f   :  { %v1024_v61 = vmul.f32 %v6515_v60, %v6515_v60 }
 0x641   :  { %v1026_v62 = vsel %vm229_vm0, %v1024_v61, 0.0  ;;  %v5846_v61 = vld [vmem:[%s6287_s13 + $0x70] sm:$0xff] }
 0x642   :  { %v1019_v63 = vpop.xlane.xlu0 %1018  ;;  %1027 = vadd.xlane.f32.xlu1 %v1026_v62  ;;  %v5848_v62 = vld [vmem:[%s6322_s17 + $0x40] sm:$0xff] }
 0x643   :  { %v1021_v0 = vmul.f32 %v1019_v63, %v6462_v51  ;;  %v5852_v63 = vld [vmem:[%s6322_s17 + $0x60] sm:$0xff] }
 0x645   :  { %v6521_v1 = vsub.f32 %v1013_v56, %v1021_v0  ;;  %v5855_v0 = vld [vmem:[%s6322_s17 + $0x78] sm:$0xff] }
 0x647   :  { %v1025_v2 = vmul.f32 %v6521_v1, %v6521_v1 }
 0x649   :  { %v1029_v6 = vsel %vm229_vm0, %v1025_v2, 0.0 }
 0x64a   :  { %1030 = vadd.xlane.f32.xlu2 %v1029_v6 }
 0x6b5   :  { %v1028_v12 = vpop.xlane.xlu1 %1027 }
 0x6b6   :  { %v1032_v13 = vmul.f32 %v1028_v12, %v6462_v51 }
 0x6b8   :  { %v1034_v18 = vadd.f32 1e-05, %v1032_v13 }
 0x6ba   :  { %6025 = vrsqrt.f32 %v1034_v18  ;;  %vm1042_vm11 = vweird.f32 %v1034_v18 }
 0x6bd   :  { %v1031_v21 = vpop.xlane.xlu2 %1030 }
 0x6be   :  { %v1033_v24 = vmul.f32 %v1031_v21, %v6462_v51 }
 0x6c0   :  { %v6026_v31 = vpop.eup %6025  ;;  %v1035_v32 = vadd.f32 1e-05, %v1033_v24 }
 0x6c1   :  { %v1037_v36 = vmul.f32 %v6026_v31, %v1034_v18  ;;  %vm1043_vm10 = vweird.f32 %v6026_v31 }
 0x6c2   :  { %6027 = vrsqrt.f32 %v1035_v32  ;;  %vm1044_vm13 = vmor %vm1042_vm11, %vm1043_vm10  ;;  %vm1052_vm15 = vweird.f32 %v1035_v32 }
 0x6c3   :  { %v1038_v37 = vmul.f32 %v6026_v31, %v1037_v36 }
 0x6c5   :  { %v1039_v38 = vmul.f32 0.5, %v1038_v37 }
 0x6c7   :  { %v1040_v39 = vsub.f32 1.5, %v1039_v38 }
 0x6c8   :  { %v6028_v41 = vpop.eup %6027 }
 0x6c9   :  { %v1041_v42 = vmul.f32 %v6026_v31, %v1040_v39  ;;  %v1047_v43 = vmul.f32 %v6028_v41, %v1035_v32  ;;  %vm1053_vm14 = vweird.f32 %v6028_v41 }
 0x6ca   :  { %vm1054_vm12 = vmor %vm1052_vm15, %vm1053_vm14 }
 0x6cb   :  { %v1048_v44 = vmul.f32 %v6028_v41, %v1047_v43  ;;  %v1045_v4 = vsel %vm1044_vm13, %v6026_v31, %v1041_v42 }
 0x6cc   :  { %v1056_v48 = vmul.f32 %v1045_v4, %v6515_v60  ;;  %v5853_v60 = vld [vmem:[%s6322_s17 + $0x68] sm:$0xff] }
 0x6cd   :  { %v1049_v45 = vmul.f32 0.5, %v1048_v44 }
 0x6ce   :  { %v1061_v52 = vmul.f32 %v5963_v47, %v1056_v48 }
 0x6cf   :  { %v1050_v46 = vsub.f32 1.5, %v1049_v45 }
 0x6d0   :  { %v6548_v55 = vadd.f32 %v5964_v5, %v1061_v52 }
 0x6d1   :  { %v1051_v49 = vmul.f32 %v6028_v41, %v1050_v46 }
 0x6d3   :  { %v1055_v50 = vsel %vm1054_vm12, %v6028_v41, %v1051_v49 }
 0x6d4   :  { %v1057_v53 = vmul.f32 %v1055_v50, %v6521_v1  ;;  %v5854_v1 = vld [vmem:[%s6322_s17 + $0x70] sm:$0xff]  ;;  %s6260_s17 = smov 24  }
 0x6d5   :  { %s7036_s11 = sld [smem:[%s7640_s0 + %s6260_s17]]  }
 0x6d6   :  { %v1062_v54 = vmul.f32 %v5963_v47, %v1057_v53 }
 0x6d8   :  { %v6550_v56 = vadd.f32 %v5964_v5, %v1062_v54 }
 0x6da   :  { %v1142_v57 = vpack.c.bf16 %v6550_v56, %v6548_v55 }
 0x6dc   :  { %5189 = vmatmul.msk.bf16.vlgmr.msra.gmra.mxu2 %vm229_vm0, %v1142_v57  ;;  %5198 = vmatmul.msk.bf16.vlgmr.msra.gmra.mxu3 %vm229_vm0, %v1142_v57 }
 0x6dd   :  { %5207 = vmatmul.msk.bf16.vlgmr.msra.gmra.mxu1 %vm229_vm0, %v1142_v57  ;;  %5234 = vmatmul.msk.bf16.vlgmr.msra.gmra.mxu0 %vm229_vm0, %v1142_v57 }
 0x6de   :  { %1346 = vmatpush.bf16.msra.mxu2 %v5847_v58  ;;  %1372 = vmatpush.bf16.msra.mxu3 %v5849_v59 }
 0x6df   :  { %1424 = vmatpush.bf16.msra.mxu1 %v5853_v60 }
 0x6e2   :  { %1347 = vmatpush.bf16.msra.mxu2 %v5846_v61  ;;  %1373 = vmatpush.bf16.msra.mxu3 %v5848_v62 }
 0x6e3   :  { %1425 = vmatpush.bf16.msra.mxu1 %v5852_v63 }
 0x6ec   :  { %5216 = vmatmul.msk.bf16.vlgmr.msrb.gmra.mxu2 %vm229_vm0, %v1142_v57  ;;  %5225 = vmatmul.msk.bf16.vlgmr.msrb.gmra.mxu3 %vm229_vm0, %v1142_v57 }
 0x6ed   :  { %5243 = vmatmul.msk.bf16.vlgmr.msrb.gmra.mxu1 %vm229_vm0, %v1142_v57  ;;  %5270 = vmatmul.msk.bf16.vlgmr.msrb.gmra.mxu0 %vm229_vm0, %v1142_v57 }
 0x6ee   :  { %1450 = vmatpush.bf16.msrb.mxu2 %v5855_v0 }
 0x6f2   :  { %1451 = vmatpush.bf16.msrb.mxu2 %v5854_v1 }
 0x6fc   :  { %5252 = vmatmul.msk.bf16.vlgmr.msra.gmra.mxu2 %vm229_vm0, %v1142_v57  ;;  %5261 = vmatmul.msk.bf16.vlgmr.msra.gmra.mxu3 %vm229_vm0, %v1142_v57 }
 0x6fd   :  { %5279 = vmatmul.msk.bf16.vlgmr.msra.gmra.mxu1 %vm229_vm0, %v1142_v57 }
 0x70c   :  { %5288 = vmatmul.msk.bf16.vlgmr.msrb.gmra.mxu2 %vm229_vm0, %v1142_v57 }
 0x75a   :  { %v1219_v6 = vpop.f32.mrf.mxu1  ;;  %v1297_v16 = vpop.f32.mrf.mxu0 }
 0x75f   :  { %v1167_v2 = vpop.f32.mrf.mxu2  ;;  %v1193_v8 = vpop.f32.mrf.mxu3 }
 0x762   :  { %v1221_v11 = vpop.f32.mrf.mxu1  ;;  %v1299_v23 = vpop.f32.mrf.mxu0 }
 0x763   :  { %v1463_v33 = vpack.c.bf16 %v1299_v23, %v1297_v16  ;;  %v1460_v49 = vpack.c.bf16 %v1221_v11, %v1219_v6 }
 0x765   :  { %v1482_v39 = vsel %vm541_vm1, %v1463_v33, 0 }
 0x767   :  { %v1169_v7 = vpop.f32.mrf.mxu2  ;;  %v1195_v13 = vpop.f32.mrf.mxu3 }
 0x768   :  { %v1458_v47 = vpack.c.bf16 %v1169_v7, %v1167_v2  ;;  %v1459_v48 = vpack.c.bf16 %v1195_v13, %v1193_v8 }
 0x76a   :  { %v1323_v14 = vpop.f32.mrf.mxu1  ;;  %v1401_v32 = vpop.f32.mrf.mxu0 }
 0x76f   :  { %v1245_v9 = vpop.f32.mrf.mxu2  ;;  %v1271_v18 = vpop.f32.mrf.mxu3 }
 0x772   :  { %v1325_v19 = vpop.f32.mrf.mxu1  ;;  %v1403_v42 = vpop.f32.mrf.mxu0 }
 0x773   :  { %v1464_v27 = vpack.c.bf16 %v1325_v19, %v1323_v14  ;;  %v1628_v44 = vpack.c.bf16 %v1403_v42, %v1401_v32 }
 0x775   :  { %v1485_v31 = vsel %vm541_vm1, %v1464_v27, 0 }
 0x777   :  { %v1247_v12 = vpop.f32.mrf.mxu2  ;;  %v1273_v26 = vpop.f32.mrf.mxu3 }
 0x778   :  { %v1462_v43 = vpack.c.bf16 %v1273_v26, %v1271_v18  ;;  %v1461_v50 = vpack.c.bf16 %v1247_v12, %v1245_v9 }
 0x77a   :  { %v1427_v28 = vpop.f32.mrf.mxu1  ;;  %v1479_v45 = vsel %vm541_vm1, %v1462_v43, 0 }
 0x77f   :  { %v1349_v17 = vpop.f32.mrf.mxu2  ;;  %v1375_v34 = vpop.f32.mrf.mxu3 }
 0x782   :  { %v1429_v38 = vpop.f32.mrf.mxu1 }
 0x783   :  { %v1629_v41 = vpack.c.bf16 %v1429_v38, %v1427_v28 }
 0x787   :  { %v1351_v21 = vpop.f32.mrf.mxu2  ;;  %v1377_v4 = vpop.f32.mrf.mxu3 }
 0x788   :  { %v1465_v22 = vpack.c.bf16 %v1351_v21, %v1349_v17  ;;  %v1627_v46 = vpack.c.bf16 %v1377_v4, %v1375_v34 }
 0x78a   :  { %v1488_v24 = vsel %vm541_vm1, %v1465_v22, 0 }
 0x78b   :  { %1494 = vmatpush.bf16.xpose.msrb.mxu3 %v1488_v24 }
 0x78f   :  { %v1453_v29 = vpop.f32.mrf.mxu2 }
 0x793   :  { %1495 = vmatpush.bf16.xpose.msrb.mxu3 %v1485_v31 }
 0x797   :  { %v1455_v36 = vpop.f32.mrf.mxu2 }
 0x798   :  { %v1630_v37 = vpack.c.bf16 %v1455_v36, %v1453_v29 }
 0x79a   :  { %1647 = vmatpush.bf16.msra.mxu0 %v1630_v37 }
 0x79b   :  { %1496 = vmatpush.bf16.xpose.msrb.mxu3 %v1482_v39 }
 0x79e   :  { %1648 = vmatpush.bf16.msra.mxu0 %v1629_v41 }
 0x7a2   :  { %1649 = vmatpush.bf16.msra.mxu0 %v1628_v44 }
 0x7a3   :  { %1497 = vmatpush.bf16.xpose.msrb.mxu3 %v1479_v45 }
 0x7a6   :  { %1650 = vmatpush.bf16.msra.mxu0 %v1627_v46 }
 0x7aa   :  { %5289 = vmatmul.msk.bf16.vlgmr.msrb.gmra.mxu3 %vm541_vm1, %v1458_v47 }
 0x7ba   :  { %5290 = vmatmul.msk.bf16.gmra.mxu3 %vm541_vm1, %v1459_v48 }
 0x7ca   :  { %5291 = vmatmul.msk.bf16.gmra.mxu3 %vm541_vm1, %v1460_v49 }
 0x7da   :  { %5292 = vmatmul.msk.bf16.gmra.mxu3 %vm541_vm1, %v1461_v50 }
 0x82d   :  { %v1499_v5 = vpop.f32.mrf.mxu3 }
 0x82e   :  { %v1519_v52 = vmul.f32 0.35355338, %v1499_v5 }
 0x830   :  { %v1527_v53 = vsel %vm603_vm2, %v6350_v3, %v1519_v52  ;;  %vm7662_vm2 = vcmp.lt.f32.partialorder %v6406_v40, 0.0 }
 0x831   :  { %v1535_v54 = vsel %vm619_vm3, %v1527_v53, -inf }
 0x832   :  { %1536 = vmax.xlane.f32.xlu0 %v1535_v54 }
 0x835   :  { %v1501_v57 = vpop.f32.mrf.mxu3 }
 0x836   :  { %v1520_v58 = vmul.f32 0.35355338, %v1501_v57 }
 0x838   :  { %v1528_v59 = vsel %vm604_vm4, %v6358_v10, %v1520_v58  ;;  %vm7663_vm4 = vcmask 1043456  }
 0x839   :  { %v1538_v60 = vsel %vm619_vm3, %v1528_v59, -inf }
 0x83a   :  { %1539 = vmax.xlane.f32.xlu1 %v1538_v60 }
 0x83d   :  { %v1504_v61 = vpop.f32.mrf.mxu3 }
 0x83e   :  { %v1521_v62 = vmul.f32 0.35355338, %v1504_v61 }
 0x840   :  { %v1529_v63 = vsel %vm605_vm5, %v6366_v15, %v1521_v62  ;;  %vm7664_vm5 = vmmov %vm7663_vm4 }
 0x841   :  { %v1541_v3 = vsel %vm619_vm3, %v1529_v63, -inf }
 0x842   :  { %1542 = vmax.xlane.f32.xlu2 %v1541_v3 }
 0x845   :  { %v1506_v0 = vpop.f32.mrf.mxu3 }
 0x846   :  { %v1522_v1 = vmul.f32 0.35355338, %v1506_v0 }
 0x848   :  { %v1530_v2 = vsel %vm606_vm6, %v6374_v20, %v1522_v1  ;;  %vm7665_vm6 = vmmov %vm7663_vm4 }
 0x849   :  { %v1544_v10 = vsel %vm619_vm3, %v1530_v2, -inf }
 0x84a   :  { %1545 = vmax.xlane.f32.xlu0 %v1544_v10 }
 0x84d   :  { %v1509_v6 = vpop.f32.mrf.mxu3 }
 0x84e   :  { %v1523_v7 = vmul.f32 0.35355338, %v1509_v6 }
 0x850   :  { %v1531_v8 = vsel %vm607_vm7, %v6382_v25, %v1523_v7  ;;  %vm7666_vm7 = vmmov %vm7663_vm4 }
 0x851   :  { %v1547_v15 = vsel %vm619_vm3, %v1531_v8, -inf }
 0x852   :  { %1548 = vmax.xlane.f32.xlu1 %v1547_v15 }
 0x855   :  { %v1511_v9 = vpop.f32.mrf.mxu3 }
 0x856   :  { %v1524_v11 = vmul.f32 0.35355338, %v1511_v9 }
 0x858   :  { %v1532_v12 = vsel %vm608_vm8, %v6390_v30, %v1524_v11 }
 0x859   :  { %v1550_v20 = vsel %vm619_vm3, %v1532_v12, -inf }
 0x85a   :  { %1551 = vmax.xlane.f32.xlu2 %v1550_v20 }
 0x85d   :  { %v1514_v13 = vpop.f32.mrf.mxu3 }
 0x85e   :  { %v1525_v14 = vmul.f32 0.35355338, %v1514_v13 }
 0x860   :  { %v1533_v16 = vsel %vm609_vm9, %v6398_v35, %v1525_v14 }
 0x861   :  { %v1553_v25 = vsel %vm619_vm3, %v1533_v16, -inf }
 0x862   :  { %1554 = vmax.xlane.f32.xlu0 %v1553_v25 }
 0x865   :  { %v1516_v17 = vpop.f32.mrf.mxu3 }
 0x866   :  { %v1526_v18 = vmul.f32 0.35355338, %v1516_v17 }
 0x868   :  { %v1534_v19 = vsel %vm7662_vm2, %v6406_v40, %v1526_v18 }
 0x869   :  { %v1556_v30 = vsel %vm619_vm3, %v1534_v19, -inf }
 0x86a   :  { %1557 = vmax.xlane.f32.xlu1 %v1556_v30 }
 0x8a5   :  { %v1537_v21 = vpop.xlane.xlu0 %1536 }
 0x8a6   :  { %v1559_v22 = vsub.f32 %v1527_v53, %v1537_v21 }
 0x8a8   :  { %v1567_v23 = vmul.f32 1.442695, %v1559_v22 }
 0x8aa   :  { %6029 = vpow2.f32 %v1567_v23 }
 0x8ad   :  { %v1540_v24 = vpop.xlane.xlu1 %1539 }
 0x8ae   :  { %v1560_v26 = vsub.f32 %v1528_v59, %v1540_v24 }
 0x8b0   :  { %v6030_v27 = vpop.eup %6029  ;;  %v1569_v35 = vmul.f32 1.442695, %v1560_v26 }
 0x8b1   :  { %v1583_v28 = vsel %vm619_vm3, %v6030_v27, 0.0 }
 0x8b2   :  { %6031 = vpow2.f32 %v1569_v35  ;;  %1584 = vadd.xlane.f32.xlu2 %v1583_v28  ;;  %v5174_v28 = vld [vmem:[%s6433_s29 + $0x10] sm:$0xf] }
 0x8b5   :  { %v1543_v29 = vpop.xlane.xlu2 %1542 }
 0x8b6   :  { %v1561_v31 = vsub.f32 %v1529_v63, %v1543_v29  ;;  %v1677_v29 = vsel %vm7663_vm4, %v5174_v28, 0 }
 0x8b7   :  { %1686 = vmatpush.bf16.msrb.mxu1 %v1677_v29 }
 0x8b8   :  { %v6032_v32 = vpop.eup %6031  ;;  %v1571_v33 = vmul.f32 1.442695, %v1561_v31  ;;  %v5175_v31 = vld [vmem:[%s6433_s29 + $0x14] sm:$0xf] }
 0x8b9   :  { %v1586_v40 = vsel %vm619_vm3, %v6032_v32, 0.0 }
 0x8ba   :  { %6033 = vpow2.f32 %v1571_v33  ;;  %1587 = vadd.xlane.f32.xlu0 %v1586_v40  ;;  %v5176_v40 = vld [vmem:[%s6433_s29 + $0x18] sm:$0xf] }
 0x8bd   :  { %v1546_v34 = vpop.xlane.xlu0 %1545 }
 0x8be   :  { %v1562_v36 = vsub.f32 %v1530_v2, %v1546_v34 }
 0x8c0   :  { %v6034_v37 = vpop.eup %6033  ;;  %v1573_v38 = vmul.f32 1.442695, %v1562_v36  ;;  %v1726_v36 = vsel %vm7665_vm6, %v5176_v40, 0 }
 0x8c1   :  { %v1589_v39 = vsel %vm619_vm3, %v6034_v37, 0.0  ;;  %1735 = vmatpush.bf16.msra.mxu1 %v1726_v36 }
 0x8c2   :  { %6035 = vpow2.f32 %v1573_v38  ;;  %1590 = vadd.xlane.f32.xlu1 %v1589_v39  ;;  %v5177_v38 = vld [vmem:[%s6433_s29 + $0x1c] sm:$0xf]  ;;  %s6253_s29 = smov 19  }
 0x8c3   :  { %v1749_v39 = vsel %vm7666_vm7, %v5177_v38, 0  ;;  %s6657_s14 = sld [smem:[%s7640_s0 + %s6253_s29]]   ;;  %v6680_v38 = vld [vmem:[%s4908_s19] sm:$0xff]  ;;  %s6266_s29 = smov 29  }
 0x8c4   :  { %s7226_s16 = sld [smem:[%s7640_s0 + %s6266_s29]]  }
 0x8c5   :  { %v1549_v41 = vpop.xlane.xlu1 %1548 }
 0x8c6   :  { %v1563_v42 = vsub.f32 %v1531_v8, %v1549_v41 }
 0x8c8   :  { %v6036_v43 = vpop.eup %6035  ;;  %v1575_v44 = vmul.f32 1.442695, %v1563_v42 }
 0x8c9   :  { %v1592_v4 = vsel %vm619_vm3, %v6036_v43, 0.0 }
 0x8ca   :  { %6037 = vpow2.f32 %v1575_v44  ;;  %1593 = vadd.xlane.f32.xlu2 %v1592_v4 }
 0x8cd   :  { %v1552_v45 = vpop.xlane.xlu2 %1551 }
 0x8ce   :  { %v1564_v46 = vsub.f32 %v1532_v12, %v1552_v45 }
 0x8d0   :  { %v6038_v47 = vpop.eup %6037  ;;  %v1577_v48 = vmul.f32 1.442695, %v1564_v46 }
 0x8d1   :  { %v1595_v49 = vsel %vm619_vm3, %v6038_v47, 0.0 }
 0x8d2   :  { %6039 = vpow2.f32 %v1577_v48  ;;  %1596 = vadd.xlane.f32.xlu0 %v1595_v49 }
 0x8d5   :  { %v1555_v50 = vpop.xlane.xlu0 %1554 }
 0x8d6   :  { %v1565_v5 = vsub.f32 %v1533_v16, %v1555_v50 }
 0x8d8   :  { %v6040_v52 = vpop.eup %6039  ;;  %v1579_v53 = vmul.f32 1.442695, %v1565_v5 }
 0x8d9   :  { %v1598_v54 = vsel %vm619_vm3, %v6040_v52, 0.0 }
 0x8da   :  { %6041 = vpow2.f32 %v1579_v53  ;;  %1599 = vadd.xlane.f32.xlu1 %v1598_v54 }
 0x8dd   :  { %v1558_v57 = vpop.xlane.xlu1 %1557 }
 0x8de   :  { %v1566_v58 = vsub.f32 %v1534_v19, %v1558_v57 }
 0x8e0   :  { %v6042_v59 = vpop.eup %6041  ;;  %v1581_v60 = vmul.f32 1.442695, %v1566_v58 }
 0x8e1   :  { %v1601_v61 = vsel %vm619_vm3, %v6042_v59, 0.0 }
 0x8e2   :  { %6043 = vpow2.f32 %v1581_v60  ;;  %1602 = vadd.xlane.f32.xlu2 %v1601_v61 }
 0x8e8   :  { %v6044_v62 = vpop.eup %6043 }
 0x8e9   :  { %v1604_v63 = vsel %vm619_vm3, %v6044_v62, 0.0 }
 0x8ea   :  { %1605 = vadd.xlane.f32.xlu0 %v1604_v63 }
 0x925   :  { %v1585_v3 = vpop.xlane.xlu2 %1584 }
 0x926   :  { %6045 = vrcp.f32 %v1585_v3 }
 0x92c   :  { %v6046_v1 = vpop.eup %6045 }
 0x92d   :  { %v1588_v0 = vpop.xlane.xlu0 %1587  ;;  %v1615_v10 = vmul.f32 %v6046_v1, %v6030_v27 }
 0x92e   :  { %6047 = vrcp.f32 %v1588_v0 }
 0x934   :  { %v6048_v2 = vpop.eup %6047 }
 0x935   :  { %v1616_v6 = vmul.f32 %v6048_v2, %v6032_v32  ;;  %v1591_v8 = vpop.xlane.xlu1 %1590  ;;  %v1703_v32 = vsel %vm7664_vm5, %v5175_v31, 0 }
 0x936   :  { %6049 = vrcp.f32 %v1591_v8  ;;  %1712 = vmatpush.bf16.msra.mxu2 %v1703_v32 }
 0x937   :  { %v1623_v7 = vpack.c.bf16 %v1616_v6, %v1615_v10 }
 0x939   :  { %5293 = vmatmul.msk.bf16.vlgmr.msra.gmra.mxu0 %vm619_vm3, %v1623_v7 }
 0x93a   :  { %1758 = vmatpush.bf16.msrb.mxu2 %v1749_v39  ;;  %v6682_v39 = vld [vmem:[%s4908_s19 + $0x8] sm:$0xff]  ;;  %s7094_s19 = sld [smem:[%s7640_s0 + %s6261_s15]]  }
 0x93c   :  { %v6050_v9 = vpop.eup %6049 }
 0x93d   :  { %v1594_v15 = vpop.xlane.xlu2 %1593  ;;  %v1617_v12 = vmul.f32 %v6050_v9, %v6034_v37 }
 0x93e   :  { %6051 = vrcp.f32 %v1594_v15 }
 0x944   :  { %v6052_v11 = vpop.eup %6051 }
 0x945   :  { %v1618_v20 = vmul.f32 %v6052_v11, %v6036_v43  ;;  %v1597_v14 = vpop.xlane.xlu0 %1596 }
 0x946   :  { %6053 = vrcp.f32 %v1597_v14 }
 0x947   :  { %v1624_v13 = vpack.c.bf16 %v1618_v20, %v1617_v12 }
 0x949   :  { %5294 = vmatmul.msk.bf16.gmra.mxu0 %vm619_vm3, %v1624_v13 }
 0x94c   :  { %v6054_v25 = vpop.eup %6053 }
 0x94d   :  { %v1600_v16 = vpop.xlane.xlu1 %1599  ;;  %v1619_v18 = vmul.f32 %v6054_v25, %v6038_v47 }
 0x94e   :  { %6055 = vrcp.f32 %v1600_v16 }
 0x954   :  { %v6056_v17 = vpop.eup %6055 }
 0x955   :  { %v1620_v19 = vmul.f32 %v6056_v17, %v6040_v52  ;;  %v1603_v21 = vpop.xlane.xlu2 %1602  ;;  %v5965_v52 = vld [vmem:[%s6428_s25 + $0x1] ss:$0 sm:$0xff]  ;;  %s6651_s25 = sld [smem:[%s7640_s0 + %s6252_s6]]  }
 0x956   :  { %6057 = vrcp.f32 %v1603_v21 }
 0x957   :  { %v1625_v30 = vpack.c.bf16 %v1620_v19, %v1619_v18 }
 0x959   :  { %5295 = vmatmul.msk.bf16.gmra.mxu0 %vm619_vm3, %v1625_v30  ;;  %v5856_v30 = vld [vmem:[%s6476_s18 + $0x10] sm:$0xff] }
 0x95b   :  { %v6661_v21 = vld [vmem:[%s6651_s25 + $0x28] sm:$0xff] }
 0x95c   :  { %v6058_v23 = vpop.eup %6057  ;;  %2140 = vmatpush.bf16.msrb.mxu0 %v6661_v21 }
 0x95d   :  { %v1606_v22 = vpop.xlane.xlu0 %1605  ;;  %v1621_v26 = vmul.f32 %v6058_v23, %v6042_v59  ;;  %v6667_v23 = vld [vmem:[%s6651_s25 + $0x8] sm:$0xff] }
 0x95e   :  { %6059 = vrcp.f32 %v1606_v22  ;;  %v6664_v22 = vld [vmem:[%s6657_s14 + $0x18] sm:$0xff] }
 0x95f   :  { %2218 = vmatpush.bf16.msra.mxu3 %v6664_v22 }
 0x964   :  { %v6060_v24 = vpop.eup %6059 }
 0x965   :  { %v1622_v27 = vmul.f32 %v6060_v24, %v6044_v62 }
 0x967   :  { %v1626_v35 = vpack.c.bf16 %v1622_v27, %v1621_v26  ;;  %v6674_v27 = vld [vmem:[%s6651_s25] sm:$0xff] }
 0x969   :  { %5296 = vmatmul.msk.bf16.gmra.mxu0 %vm619_vm3, %v1626_v35 }
 0x9b6   :  { %v1652_v33 = vpop.f32.mrf.mxu0 }
 0x9be   :  { %v1654_v34 = vpop.f32.mrf.mxu0 }
 0x9bf   :  { %v1672_v37 = vpack.c.bf16 %v1654_v34, %v1652_v33 }
 0x9c1   :  { %5297 = vmatmul.msk.bf16.vlgmr.msrb.gmra.mxu1 %vm541_vm1, %v1672_v37 }
 0x9c6   :  { %v1657_v41 = vpop.f32.mrf.mxu0 }
 0x9ce   :  { %v1659_v42 = vpop.f32.mrf.mxu0 }
 0x9cf   :  { %v1698_v43 = vpack.c.bf16 %v1659_v42, %v1657_v41  ;;  %v6685_v41 = vld [vmem:[%s6651_s25 + $0x20] sm:$0xff]  ;;  %v5861_v42 = vld [vmem:[%s6482_s22 + $0x38] sm:$0xff] }
 0x9d0   :  { %2141 = vmatpush.bf16.msrb.mxu0 %v6685_v41 }
 0x9d1   :  { %5298 = vmatmul.msk.bf16.vlgmr.msra.gmra.mxu2 %vm541_vm1, %v1698_v43 }
 0x9d2   :  { %1915 = vmatpush.bf16.msra.mxu2 %v5861_v42 }
 0x9d6   :  { %v1662_v44 = vpop.f32.mrf.mxu0 }
 0x9de   :  { %v1664_v4 = vpop.f32.mrf.mxu0 }
 0x9df   :  { %v1721_v45 = vpack.c.bf16 %v1664_v4, %v1662_v44 }
 0x9e1   :  { %5299 = vmatmul.msk.bf16.vlgmr.msra.gmra.mxu1 %vm541_vm1, %v1721_v45  ;;  %v6691_v45 = vpack.c.bf16 %v6682_v39, %v6680_v38 }
 0x9e3   :  { %5408 = vmatmul.msk.bf16.vlgmr.msrb.gmra.mxu0 %vm229_vm0, %v6691_v45 }
 0x9e6   :  { %v1667_v46 = vpop.f32.mrf.mxu0 }
 0x9ee   :  { %v1669_v47 = vpop.f32.mrf.mxu0 }
 0x9ef   :  { %v1744_v48 = vpack.c.bf16 %v1669_v47, %v1667_v46  ;;  %v5966_v46 = vld [vmem:[%s6453_s3 + $0x1] ss:$0 sm:$0xff]  ;;  %s6255_s3 = smov 20  }
 0x9f0   :  { %s6770_s20 = sld [smem:[%s7640_s0 + %s6255_s3]]   ;;  %s6262_s3 = smov 26  }
 0x9f1   :  { %5300 = vmatmul.msk.bf16.vlgmr.msrb.gmra.mxu2 %vm541_vm1, %v1744_v48  ;;  %s7189_s21 = sld [smem:[%s7640_s0 + %s6262_s3]]  }
 0xa3e   :  { %v1688_v49 = vpop.f32.mrf.mxu1 }
 0xa3f   :  { %v1696_v57 = vadd.f32 %v5965_v52, %v1688_v49 }
 0xa46   :  { %v1690_v5 = vpop.f32.mrf.mxu1 }
 0xa47   :  { %v1697_v62 = vadd.f32 %v5965_v52, %v1690_v5 }
 0xa54   :  { %v1714_v50 = vpop.f32.mrf.mxu2 }
 0xa55   :  { %v1719_v58 = vadd.f32 %v1714_v50, %v1696_v57  ;;  %v5967_v50 = vld [vmem:[%s6459_s8 + $0x1] ss:$0 sm:$0xff] }
 0xa5c   :  { %v1716_v53 = vpop.f32.mrf.mxu2 }
 0xa5d   :  { %v1720_v0 = vadd.f32 %v1716_v53, %v1697_v62  ;;  %v6716_v62 = vld [vmem:[%s6657_s14 + $0x10] sm:$0xff] }
 0xa5e   :  { %v1737_v54 = vpop.f32.mrf.mxu1  ;;  %2219 = vmatpush.bf16.msra.mxu3 %v6716_v62 }
 0xa5f   :  { %v1742_v59 = vadd.f32 %v1737_v54, %v1719_v58  ;;  %v6702_v58 = vld [vmem:[%s6651_s25 + $0x38] sm:$0xff] }
 0xa61   :  { %5435 = vmatmul.msk.bf16.vlgmr.msra.gmra.mxu3 %vm229_vm0, %v6691_v45 }
 0xa66   :  { %v1739_v3 = vpop.f32.mrf.mxu1 }
 0xa67   :  { %v1743_v2 = vadd.f32 %v1739_v3, %v1720_v0  ;;  %v5858_v3 = vld [vmem:[%s6482_s22 + $0x20] sm:$0xff]  ;;  %v6726_v0 = vld [vmem:[%s6657_s14 + $0x38] sm:$0xff] }
 0xa74   :  { %v1760_v60 = vpop.f32.mrf.mxu2 }
 0xa75   :  { %v1765_v61 = vadd.f32 %v1760_v60, %v1742_v59  ;;  %v6711_v60 = vld [vmem:[%s6651_s25 + $0x30] sm:$0xff] }
 0xa77   :  { %v1767_v63 = vadd.f32 %v1765_v61, %v6548_v55  ;;  %v5860_v61 = vld [vmem:[%s6482_s22 + $0x30] sm:$0xff] }
 0xa78   :  { %1916 = vmatpush.bf16.msra.mxu2 %v5860_v61 }
 0xa79   :  { %v1769_v1 = vsel %vm229_vm0, %v1767_v63, 0.0 }
 0xa7a   :  { %1770 = vadd.xlane.f32.xlu1 %v1769_v1  ;;  %v6730_v1 = vld [vmem:[%s6651_s25 + $0x18] sm:$0xff] }
 0xa7c   :  { %v1762_v10 = vpop.f32.mrf.mxu2 }
 0xa7d   :  { %v1766_v6 = vadd.f32 %v1762_v10, %v1743_v2  ;;  %v6733_v2 = vld [vmem:[%s6657_s14 + $0x30] sm:$0xff]  ;;  %v6736_v10 = vld [vmem:[%s6657_s14 + $0x28] sm:$0xff] }
 0xa7e   :  { %2244 = vmatpush.bf16.msra.mxu0 %v6736_v10 }
 0xa7f   :  { %v1768_v7 = vadd.f32 %v1766_v6, %v6550_v56  ;;  %v5857_v56 = vld [vmem:[%s6476_s18 + $0x18] sm:$0xff]  ;;  %v6741_v6 = vld [vmem:[%s6651_s25 + $0x10] sm:$0xff]  ;;  %s6267_s18 = smov 30  }
 0xa80   :  { %1870 = vmatpush.bf16.msrb.mxu1 %v5857_v56 }
 0xa81   :  { %v1772_v8 = vsel %vm229_vm0, %v1768_v7, 0.0 }
 0xa82   :  { %1773 = vadd.xlane.f32.xlu2 %v1772_v8 }
 0xa84   :  { %1871 = vmatpush.bf16.msrb.mxu1 %v5856_v30 }
 0xa88   :  { %2088 = vmatpush.bf16.msra.mxu1 %v6667_v23 }
 0xa8c   :  { %2089 = vmatpush.bf16.msra.mxu1 %v6674_v27 }
 0xaed   :  { %v1771_v15 = vpop.xlane.xlu1 %1770 }
 0xaee   :  { %v1775_v9 = vmul.f32 %v1771_v15, %v6462_v51  ;;  %v5968_v15 = vld [vmem:[%s6471_s12 + $0x1] ss:$0 sm:$0xff]  ;;  %s7231_s12 = sld [smem:[%s7640_s0 + %s6267_s18]]  }
 0xaf0   :  { %v1777_v11 = vsub.f32 %v1767_v63, %v1775_v9  ;;  %v5859_v63 = vld [vmem:[%s6482_s22 + $0x28] sm:$0xff]  ;;  %s6263_s22 = smov 25  }
 0xaf1   :  { %1917 = vmatpush.bf16.msra.mxu2 %v5859_v63 }
 0xaf2   :  { %v1779_v12 = vmul.f32 %v1777_v11, %v1777_v11 }
 0xaf4   :  { %v1781_v55 = vsel %vm229_vm0, %v1779_v12, 0.0 }
 0xaf5   :  { %1782 = vadd.xlane.f32.xlu0 %v1781_v55  ;;  %v1774_v20 = vpop.xlane.xlu2 %1773  ;;  %1918 = vmatpush.bf16.msra.mxu2 %v5858_v3 }
 0xaf6   :  { %v1776_v13 = vmul.f32 %v1774_v20, %v6462_v51 }
 0xaf8   :  { %v1778_v14 = vsub.f32 %v1768_v7, %v1776_v13  ;;  %v6744_v7 = vld [vmem:[%s6657_s14 + $0x20] sm:$0xff]  ;;  %v6755_v13 = vld [vmem:[%s6657_s14 + $0x8] sm:$0xff] }
 0xaf9   :  { %2114 = vmatpush.bf16.msrb.mxu2 %v6730_v1  ;;  %2245 = vmatpush.bf16.msra.mxu0 %v6744_v7 }
 0xafa   :  { %v1780_v16 = vmul.f32 %v1778_v14, %v1778_v14 }
 0xafc   :  { %v1784_v25 = vsel %vm229_vm0, %v1780_v16, 0.0  ;;  %5444 = vmatmul.msk.bf16.vlgmr.msra.gmra.mxu0 %vm229_vm0, %v6691_v45  ;;  %v6760_v16 = vld [vmem:[%s6657_s14] sm:$0xff] }
 0xafd   :  { %1785 = vadd.xlane.f32.xlu1 %v1784_v25  ;;  %2115 = vmatpush.bf16.msrb.mxu2 %v6741_v6 }
 0xb68   :  { %v1783_v17 = vpop.xlane.xlu0 %1782 }
 0xb69   :  { %v1787_v18 = vmul.f32 %v1783_v17, %v6462_v51 }
 0xb6b   :  { %v1789_v19 = vadd.f32 1e-05, %v1787_v18  ;;  %v2143_v18 = vpop.f32.mrf.mxu0 }
 0xb6d   :  { %6061 = vrsqrt.f32 %v1789_v19  ;;  %vm1797_vm9 = vweird.f32 %v1789_v19 }
 0xb70   :  { %v1786_v24 = vpop.xlane.xlu1 %1785 }
 0xb71   :  { %v1788_v26 = vmul.f32 %v1786_v24, %v6462_v51 }
 0xb73   :  { %v6062_v35 = vpop.eup %6061  ;;  %v1790_v28 = vadd.f32 1e-05, %v1788_v26  ;;  %v2145_v30 = vpop.f32.mrf.mxu0  ;;  %v6773_v26 = vld [vmem:[%s6770_s20 + $0x8] sm:$0xff] }
 0xb74   :  { %v1792_v29 = vmul.f32 %v6062_v35, %v1789_v19  ;;  %vm1798_vm8 = vweird.f32 %v6062_v35 }
 0xb75   :  { %6063 = vrsqrt.f32 %v1790_v28  ;;  %vm1799_vm10 = vmor %vm1797_vm9, %vm1798_vm8  ;;  %vm1807_vm13 = vweird.f32 %v1790_v28  ;;  %vm7667_vm9 = vcmask 1043456  }
 0xb76   :  { %v1793_v31 = vmul.f32 %v6062_v35, %v1792_v29  ;;  %v6777_v29 = vld [vmem:[%s6770_s20] sm:$0xff] }
 0xb78   :  { %v1794_v32 = vmul.f32 0.5, %v1793_v31  ;;  %v5885_v31 = vld [vmem:[%s6770_s20 + $0x38] sm:$0xff] }
 0xb7a   :  { %v1795_v33 = vsub.f32 1.5, %v1794_v32 }
 0xb7b   :  { %v6064_v40 = vpop.eup %6063 }
 0xb7c   :  { %v1796_v34 = vmul.f32 %v6062_v35, %v1795_v33  ;;  %v1802_v36 = vmul.f32 %v6064_v40, %v1790_v28  ;;  %vm1808_vm11 = vweird.f32 %v6064_v40 }
 0xb7d   :  { %vm1809_vm14 = vmor %vm1807_vm13, %vm1808_vm11 }
 0xb7e   :  { %v1803_v37 = vmul.f32 %v6064_v40, %v1802_v36  ;;  %v1800_v43 = vsel %vm1799_vm10, %v6062_v35, %v1796_v34  ;;  %v2247_v35 = vpop.f32.mrf.mxu0  ;;  %v2221_v34 = vpop.f32.mrf.mxu3  ;;  %v6788_v36 = vld [vmem:[%s6770_s20 + $0x28] sm:$0xff]  ;;  %vm7668_vm10 = vmmov %vm7667_vm9 }
 0xb7f   :  { %v1811_v47 = vmul.f32 %v1800_v43, %v1777_v11  ;;  %v6793_v43 = vld [vmem:[%s6770_s20 + $0x10] sm:$0xff]  ;;  %2348 = vmatpush.bf16.msrb.mxu0 %v6788_v36  ;;  %vm7669_vm11 = vmmov %vm7667_vm9 }
 0xb80   :  { %v1804_v44 = vmul.f32 0.5, %v1803_v37  ;;  %v5884_v37 = vld [vmem:[%s6770_s20 + $0x30] sm:$0xff]  ;;  %vm7670_vm13 = vmmov %vm7667_vm9 }
 0xb81   :  { %v1816_v5 = vmul.f32 %v5966_v46, %v1811_v47 }
 0xb82   :  { %v1805_v4 = vsub.f32 1.5, %v1804_v44 }
 0xb83   :  { %v6697_v54 = vadd.f32 %v5967_v50, %v1816_v5 }
 0xb84   :  { %v1806_v48 = vmul.f32 %v6064_v40, %v1805_v4  ;;  %v6797_v4 = vld [vmem:[%s6770_s20 + $0x20] sm:$0xff] }
 0xb85   :  { %2349 = vmatpush.bf16.msrb.mxu0 %v6797_v4 }
 0xb86   :  { %v1810_v49 = vsel %vm1809_vm14, %v6064_v40, %v1806_v48  ;;  %v6785_v40 = vld [vmem:[%s6770_s20 + $0x18] sm:$0xff]  ;;  %v2249_v42 = vpop.f32.mrf.mxu0  ;;  %v2223_v47 = vpop.f32.mrf.mxu3 }
 0xb87   :  { %v1812_v52 = vmul.f32 %v1810_v49, %v1778_v14  ;;  %2322 = vmatpush.bf16.msrb.mxu3 %v6785_v40  ;;  %v2388_v44 = vpack.c.bf16 %v2249_v42, %v2247_v35  ;;  %v2387_v48 = vpack.c.bf16 %v2223_v47, %v2221_v34 }
 0xb88   :  { %5480 = vmatmul.msk.bf16.vlgmr.msrb.gmra.mxu0 %vm229_vm0, %v6691_v45 }
 0xb89   :  { %v1817_v53 = vmul.f32 %v5966_v46, %v1812_v52  ;;  %v2409_v46 = vsel %vm541_vm1, %v2388_v44, 0  ;;  %v2406_v49 = vsel %vm541_vm1, %v2387_v48, 0  ;;  %v6852_v48 = vld [vmem:[%s6825_s24 + $0x18] sm:$0xff] }
 0xb8a   :  { %vm2454_vm4 = vcmp.lt.f32.partialorder %v6852_v48, 0.0 }
 0xb8b   :  { %v6699_v57 = vadd.f32 %v5967_v50, %v1817_v53  ;;  %2323 = vmatpush.bf16.msrb.mxu3 %v6793_v43 }
 0xb8d   :  { %v1845_v59 = vpack.c.bf16 %v6699_v57, %v6697_v54 }
 0xb8e   :  { %5471 = vmatmul.msk.bf16.vlgmr.msrb.gmra.mxu3 %vm229_vm0, %v6691_v45 }
 0xb8f   :  { %5325 = vmatmul.msk.bf16.vlgmr.msrb.gmra.mxu1 %vm229_vm0, %v1845_v59 }
 0xb90   :  { %2166 = vmatpush.bf16.msrb.mxu1 %v6702_v58 }
 0xb94   :  { %2167 = vmatpush.bf16.msrb.mxu1 %v6711_v60 }
 0xb9f   :  { %5390 = vmatmul.msk.bf16.vlgmr.msra.gmra.mxu1 %vm229_vm0, %v6691_v45 }
 0xba0   :  { %2270 = vmatpush.bf16.msra.mxu1 %v6726_v0 }
 0xba4   :  { %2271 = vmatpush.bf16.msra.mxu1 %v6733_v2 }
 0xbaf   :  { %5417 = vmatmul.msk.bf16.vlgmr.msrb.gmra.mxu1 %vm229_vm0, %v6691_v45 }
 0xbb0   :  { %2374 = vmatpush.bf16.msrb.mxu1 %v5885_v31 }
 0xbb4   :  { %2375 = vmatpush.bf16.msrb.mxu1 %v5884_v37 }
 0xbbf   :  { %5453 = vmatmul.msk.bf16.vlgmr.msra.gmra.mxu1 %vm229_vm0, %v6691_v45 }
 0xbcf   :  { %5489 = vmatmul.msk.bf16.vlgmr.msrb.gmra.mxu1 %vm229_vm0, %v6691_v45 }
 0xc0c   :  { %v1873_v8 = vpop.f32.mrf.mxu1 }
 0xc0d   :  { %v1874_v9 = vadd.f32 %v5968_v15, %v1873_v8 }
 0xc0f   :  { %v1878_v55 = vmax.f32 %v1874_v9, 0.0 }
 0xc14   :  { %v1875_v11 = vpop.f32.mrf.mxu1 }
 0xc15   :  { %v1876_v12 = vadd.f32 %v5968_v15, %v1875_v11  ;;  %v2384_v15 = vpack.c.bf16 %v2145_v30, %v2143_v18 }
 0xc17   :  { %v1879_v20 = vmax.f32 %v1876_v12, 0.0  ;;  %v2351_v12 = vpop.f32.mrf.mxu0 }
 0xc19   :  { %v1880_v14 = vpack.c.bf16 %v1879_v20, %v1878_v55 }
 0xc1b   :  { %5342 = vmatmul.msk.bf16.vlgmr.msra.gmra.mxu2 %vm619_vm3, %v1880_v14 }
 0xc1c   :  { %2192 = vmatpush.bf16.msra.mxu2 %v6755_v13  ;;  %v2091_v25 = vpop.f32.mrf.mxu1 }
 0xc20   :  { %2193 = vmatpush.bf16.msra.mxu2 %v6760_v16 }
 0xc24   :  { %v2093_v56 = vpop.f32.mrf.mxu1 }
 0xc25   :  { %v2382_v8 = vpack.c.bf16 %v2093_v56, %v2091_v25 }
 0xc2b   :  { %5399 = vmatmul.msk.bf16.vlgmr.msrb.gmra.mxu2 %vm229_vm0, %v6691_v45 }
 0xc2c   :  { %v2169_v17 = vpop.f32.mrf.mxu1  ;;  %2296 = vmatpush.bf16.msrb.mxu2 %v6773_v26 }
 0xc30   :  { %2297 = vmatpush.bf16.msrb.mxu2 %v6777_v29 }
 0xc34   :  { %v2171_v19 = vpop.f32.mrf.mxu1 }
 0xc35   :  { %v2385_v9 = vpack.c.bf16 %v2171_v19, %v2169_v17  ;;  %v6828_v17 = vld [vmem:[%s6825_s24] sm:$0xff] }
 0xc36   :  { %vm2451_vm15 = vcmp.lt.f32.partialorder %v6828_v17, 0.0 }
 0xc3b   :  { %5426 = vmatmul.msk.bf16.vlgmr.msra.gmra.mxu2 %vm229_vm0, %v6691_v45 }
 0xc3c   :  { %v2273_v24 = vpop.f32.mrf.mxu1 }
 0xc44   :  { %v2275_v28 = vpop.f32.mrf.mxu1 }
 0xc45   :  { %v2389_v32 = vpack.c.bf16 %v2275_v28, %v2273_v24  ;;  %v6836_v28 = vld [vmem:[%s6825_s24 + $0x8] sm:$0xff] }
 0xc46   :  { %vm2452_vm12 = vcmp.lt.f32.partialorder %v6836_v28, 0.0 }
 0xc47   :  { %v2412_v33 = vsel %vm541_vm1, %v2389_v32, 0 }
 0xc48   :  { %2418 = vmatpush.bf16.xpose.msra.mxu2 %v2412_v33 }
 0xc4b   :  { %5462 = vmatmul.msk.bf16.vlgmr.msrb.gmra.mxu2 %vm229_vm0, %v6691_v45 }
 0xc4c   :  { %v2377_v11 = vpop.f32.mrf.mxu1 }
 0xc50   :  { %2419 = vmatpush.bf16.xpose.msra.mxu2 %v2409_v46 }
 0xc54   :  { %v2379_v20 = vpop.f32.mrf.mxu1 }
 0xc55   :  { %v2562_v14 = vpack.c.bf16 %v2379_v20, %v2377_v11 }
 0xc57   :  { %2579 = vmatpush.bf16.msra.mxu3 %v2562_v14 }
 0xc58   :  { %2420 = vmatpush.bf16.xpose.msra.mxu2 %v2406_v49 }
 0xc9e   :  { %v6809_v50 = vpop.f32.mrf.mxu2 }
 0xca6   :  { %v6811_v5 = vpop.f32.mrf.mxu2 }
 0xcae   :  { %v2117_v52 = vpop.f32.mrf.mxu2 }
 0xcb6   :  { %v2119_v53 = vpop.f32.mrf.mxu2 }
 0xcb7   :  { %v2383_v45 = vpack.c.bf16 %v2119_v53, %v2117_v52 }
 0xcbe   :  { %v2195_v59 = vpop.f32.mrf.mxu2 }
 0xcc6   :  { %v2197_v61 = vpop.f32.mrf.mxu2 }
 0xcc7   :  { %v2386_v63 = vpack.c.bf16 %v2197_v61, %v2195_v59  ;;  %v6860_v61 = vld [vmem:[%s6825_s24 + $0x20] sm:$0xff] }
 0xcc8   :  { %vm2455_vm5 = vcmp.lt.f32.partialorder %v6860_v61, 0.0 }
 0xcc9   :  { %v2403_v3 = vsel %vm541_vm1, %v2386_v63, 0 }
 0xcca   :  { %2421 = vmatpush.bf16.xpose.msra.mxu2 %v2403_v3 }
 0xcce   :  { %v2299_v55 = vpop.f32.mrf.mxu2 }
 0xcd1   :  { %5490 = vmatmul.msk.bf16.vlgmr.msra.gmra.mxu2 %vm541_vm1, %v2382_v8 }
 0xcd2   :  { %2863 = vmatpush.bf16.msrb.mxu2 %v6726_v0  ;;  %v2325_v0 = vpop.f32.mrf.mxu3 }
 0xcd6   :  { %2864 = vmatpush.bf16.msrb.mxu2 %v6733_v2  ;;  %v2353_v2 = vpop.f32.mrf.mxu0  ;;  %v2301_v24 = vpop.f32.mrf.mxu2 }
 0xcd7   :  { %v2561_v25 = vpack.c.bf16 %v2353_v2, %v2351_v12  ;;  %v2559_v18 = vpack.c.bf16 %v2301_v24, %v2299_v55 }
 0xcd9   :  { %2580 = vmatpush.bf16.msra.mxu3 %v2561_v25 }
 0xcda   :  { %2923 = vmatpush.bf16.msra.mxu2 %v5885_v31  ;;  %v2327_v56 = vpop.f32.mrf.mxu3 }
 0xcdb   :  { %v2560_v35 = vpack.c.bf16 %v2327_v56, %v2325_v0  ;;  %v6876_v0 = vld [vmem:[%s6825_s24 + $0x30] sm:$0xff]  ;;  %v6884_v56 = vld [vmem:[%s6825_s24 + $0x38] sm:$0xff] }
 0xcdc   :  { %vm2457_vm7 = vcmp.lt.f32.partialorder %v6876_v0, 0.0  ;;  %vm7643_vm8 = vcmp.lt.f32.partialorder %v6884_v56, 0.0 }
 0xcdd   :  { %2581 = vmatpush.bf16.msra.mxu3 %v2560_v35 }
 0xcde   :  { %2924 = vmatpush.bf16.msra.mxu2 %v5884_v37  ;;  %v6844_v37 = vld [vmem:[%s6825_s24 + $0x10] sm:$0xff] }
 0xcdf   :  { %vm2453_vm2 = vcmp.lt.f32.partialorder %v6844_v37, 0.0 }
 0xce1   :  { %5491 = vmatmul.msk.bf16.gmra.mxu2 %vm541_vm1, %v2383_v45  ;;  %2582 = vmatpush.bf16.msra.mxu3 %v2559_v18 }
 0xce5   :  { %2821 = vmatpush.bf16.msrb.mxu3 %v6755_v13 }
 0xce9   :  { %2822 = vmatpush.bf16.msrb.mxu3 %v6760_v16 }
 0xcf1   :  { %5492 = vmatmul.msk.bf16.gmra.mxu2 %vm541_vm1, %v2384_v15  ;;  %v6868_v15 = vld [vmem:[%s6825_s24 + $0x28] sm:$0xff] }
 0xcf2   :  { %vm2456_vm6 = vcmp.lt.f32.partialorder %v6868_v15, 0.0 }
 0xd01   :  { %5493 = vmatmul.msk.bf16.gmra.mxu2 %vm541_vm1, %v2385_v9 }
 0xd54   :  { %v2423_v19 = vpop.f32.mrf.mxu2 }
 0xd55   :  { %v2443_v30 = vmul.f32 0.35355338, %v2423_v19 }
 0xd57   :  { %v2459_v13 = vsel %vm2451_vm15, %v6828_v17, %v2443_v30 }
 0xd58   :  { %v2467_v16 = vsel %vm619_vm3, %v2459_v13, -inf }
 0xd59   :  { %2468 = vmax.xlane.f32.xlu2 %v2467_v16 }
 0xd5c   :  { %v2425_v31 = vpop.f32.mrf.mxu2 }
 0xd5d   :  { %v2444_v32 = vmul.f32 0.35355338, %v2425_v31 }
 0xd5f   :  { %v2460_v33 = vsel %vm2452_vm12, %v6836_v28, %v2444_v32 }
 0xd60   :  { %v2470_v34 = vsel %vm619_vm3, %v2460_v33, -inf }
 0xd61   :  { %2471 = vmax.xlane.f32.xlu0 %v2470_v34 }
 0xd64   :  { %v2428_v42 = vpop.f32.mrf.mxu2 }
 0xd65   :  { %v2445_v44 = vmul.f32 0.35355338, %v2428_v42 }
 0xd67   :  { %v2461_v46 = vsel %vm2453_vm2, %v6844_v37, %v2445_v44 }
 0xd68   :  { %v2473_v47 = vsel %vm619_vm3, %v2461_v46, -inf }
 0xd69   :  { %2474 = vmax.xlane.f32.xlu1 %v2473_v47 }
 0xd6c   :  { %v2430_v49 = vpop.f32.mrf.mxu2 }
 0xd6d   :  { %v2446_v52 = vmul.f32 0.35355338, %v2430_v49 }
 0xd6f   :  { %v2462_v53 = vsel %vm2454_vm4, %v6852_v48, %v2446_v52 }
 0xd70   :  { %v2476_v59 = vsel %vm619_vm3, %v2462_v53, -inf }
 0xd71   :  { %2477 = vmax.xlane.f32.xlu2 %v2476_v59 }
 0xd74   :  { %v2433_v63 = vpop.f32.mrf.mxu2 }
 0xd75   :  { %v2447_v3 = vmul.f32 0.35355338, %v2433_v63 }
 0xd77   :  { %v2463_v8 = vsel %vm2455_vm5, %v6860_v61, %v2447_v3 }
 0xd78   :  { %v2479_v45 = vsel %vm619_vm3, %v2463_v8, -inf }
 0xd79   :  { %2480 = vmax.xlane.f32.xlu0 %v2479_v45 }
 0xd7c   :  { %v2435_v9 = vpop.f32.mrf.mxu2 }
 0xd7d   :  { %v2448_v11 = vmul.f32 0.35355338, %v2435_v9 }
 0xd7f   :  { %v2464_v12 = vsel %vm2456_vm6, %v6868_v15, %v2448_v11 }
 0xd80   :  { %v2482_v55 = vsel %vm619_vm3, %v2464_v12, -inf }
 0xd81   :  { %2483 = vmax.xlane.f32.xlu1 %v2482_v55 }
 0xd84   :  { %v2438_v20 = vpop.f32.mrf.mxu2 }
 0xd85   :  { %v2449_v14 = vmul.f32 0.35355338, %v2438_v20 }
 0xd87   :  { %v2465_v2 = vsel %vm2457_vm7, %v6876_v0, %v2449_v14 }
 0xd88   :  { %v2485_v25 = vsel %vm619_vm3, %v2465_v2, -inf }
 0xd89   :  { %2486 = vmax.xlane.f32.xlu2 %v2485_v25 }
 0xd8c   :  { %v2440_v24 = vpop.f32.mrf.mxu2 }
 0xd8d   :  { %v2450_v35 = vmul.f32 0.35355338, %v2440_v24 }
 0xd8f   :  { %v2466_v18 = vsel %vm7643_vm8, %v6884_v56, %v2450_v35 }
 0xd90   :  { %v2488_v19 = vsel %vm619_vm3, %v2466_v18, -inf }
 0xd91   :  { %2489 = vmax.xlane.f32.xlu0 %v2488_v19 }
 0xdcc   :  { %v2469_v30 = vpop.xlane.xlu2 %2468 }
 0xdcd   :  { %v2491_v16 = vsub.f32 %v2459_v13, %v2469_v30 }
 0xdcf   :  { %v2499_v31 = vmul.f32 1.442695, %v2491_v16  ;;  %v5969_v16 = vld [vmem:[%s6494_s27 + $0x1] ss:$0 sm:$0xff]  ;;  %s7194_s27 = sld [smem:[%s7640_s0 + %s6263_s22]]  }
 0xdd1   :  { %6065 = vpow2.f32 %v2499_v31 }
 0xdd4   :  { %v2472_v32 = vpop.xlane.xlu0 %2471 }
 0xdd5   :  { %v2492_v34 = vsub.f32 %v2460_v33, %v2472_v32 }
 0xdd7   :  { %v6891_v42 = vpop.eup %6065  ;;  %v2501_v44 = vmul.f32 1.442695, %v2492_v34 }
 0xdd8   :  { %v2515_v47 = vsel %vm619_vm3, %v6891_v42, 0.0 }
 0xdd9   :  { %6067 = vpow2.f32 %v2501_v44  ;;  %2516 = vadd.xlane.f32.xlu1 %v2515_v47 }
 0xddc   :  { %v2475_v49 = vpop.xlane.xlu1 %2474 }
 0xddd   :  { %v2493_v52 = vsub.f32 %v2461_v46, %v2475_v49 }
 0xddf   :  { %v6068_v59 = vpop.eup %6067  ;;  %v2503_v63 = vmul.f32 1.442695, %v2493_v52 }
 0xde0   :  { %v2518_v3 = vsel %vm619_vm3, %v6068_v59, 0.0 }
 0xde1   :  { %6069 = vpow2.f32 %v2503_v63  ;;  %2519 = vadd.xlane.f32.xlu2 %v2518_v3 }
 0xde4   :  { %v2478_v13 = vpop.xlane.xlu2 %2477 }
 0xde5   :  { %v2494_v45 = vsub.f32 %v2462_v53, %v2478_v13  ;;  %v1923_v13 = vadd.f32 %v5969_v16, %v6811_v5 }
 0xde7   :  { %v6896_v9 = vpop.eup %6069  ;;  %v2505_v33 = vmul.f32 1.442695, %v2494_v45 }
 0xde8   :  { %v2521_v11 = vsel %vm619_vm3, %v6896_v9, 0.0 }
 0xde9   :  { %6071 = vpow2.f32 %v2505_v33  ;;  %2522 = vadd.xlane.f32.xlu0 %v2521_v11 }
 0xdec   :  { %v2481_v55 = vpop.xlane.xlu0 %2480 }
 0xded   :  { %v2495_v20 = vsub.f32 %v2463_v8, %v2481_v55  ;;  %v1921_v8 = vadd.f32 %v5969_v16, %v6809_v50  ;;  %v1926_v50 = vadd.f32 %v1923_v13, %v6699_v57 }
 0xdef   :  { %v6072_v46 = vpop.eup %6071  ;;  %v2507_v14 = vmul.f32 1.442695, %v2495_v20 }
 0xdf0   :  { %v2524_v25 = vsel %vm619_vm3, %v6072_v46, 0.0 }
 0xdf1   :  { %6073 = vpow2.f32 %v2507_v14  ;;  %2525 = vadd.xlane.f32.xlu1 %v2524_v25 }
 0xdf4   :  { %v2484_v24 = vpop.xlane.xlu1 %2483 }
 0xdf5   :  { %v2496_v35 = vsub.f32 %v2464_v12, %v2484_v24  ;;  %v1925_v12 = vadd.f32 %v1921_v8, %v6697_v54  ;;  %v1930_v54 = vsel %vm229_vm0, %v1926_v50, 0.0 }
 0xdf7   :  { %v6074_v53 = vpop.eup %6073  ;;  %v2509_v19 = vmul.f32 1.442695, %v2496_v35  ;;  %v1927_v45 = vsel %vm229_vm0, %v1925_v12, 0.0 }
 0xdf8   :  { %v2527_v30 = vsel %vm619_vm3, %v6074_v53, 0.0 }
 0xdf9   :  { %6075 = vpow2.f32 %v2509_v19  ;;  %2528 = vadd.xlane.f32.xlu2 %v2527_v30 }
 0xdfc   :  { %v2487_v31 = vpop.xlane.xlu2 %2486 }
 0xdfd   :  { %v2497_v32 = vsub.f32 %v2465_v2, %v2487_v31 }
 0xdff   :  { %v6076_v34 = vpop.eup %6075  ;;  %v2511_v44 = vmul.f32 1.442695, %v2497_v32 }
 0xe00   :  { %v2530_v47 = vsel %vm619_vm3, %v6076_v34, 0.0 }
 0xe01   :  { %6077 = vpow2.f32 %v2511_v44  ;;  %2531 = vadd.xlane.f32.xlu0 %v2530_v47 }
 0xe04   :  { %v2490_v49 = vpop.xlane.xlu0 %2489 }
 0xe05   :  { %v2498_v52 = vsub.f32 %v2466_v18, %v2490_v49 }
 0xe07   :  { %v6906_v63 = vpop.eup %6077  ;;  %v2513_v3 = vmul.f32 1.442695, %v2498_v52 }
 0xe08   :  { %v2533_v2 = vsel %vm619_vm3, %v6906_v63, 0.0 }
 0xe09   :  { %6079 = vpow2.f32 %v2513_v3  ;;  %2534 = vadd.xlane.f32.xlu1 %v2533_v2  ;;  %1928 = vadd.xlane.f32.xlu0 %v1927_v45 }
 0xe0f   :  { %v6080_v33 = vpop.eup %6079 }
 0xe10   :  { %v2536_v11 = vsel %vm619_vm3, %v6080_v33, 0.0 }
 0xe11   :  { %2537 = vadd.xlane.f32.xlu2 %v2536_v11  ;;  %1931 = vadd.xlane.f32.xlu1 %v1930_v54 }
 0xe4c   :  { %v2517_v18 = vpop.xlane.xlu1 %2516 }
 0xe4d   :  { %6081 = vrcp.f32 %v2517_v18 }
 0xe53   :  { %v6082_v55 = vpop.eup %6081 }
 0xe54   :  { %v2520_v5 = vpop.xlane.xlu2 %2519  ;;  %v2547_v14 = vmul.f32 %v6082_v55, %v6891_v42 }
 0xe55   :  { %6083 = vrcp.f32 %v2520_v5 }
 0xe5b   :  { %v6084_v20 = vpop.eup %6083 }
 0xe5c   :  { %v2548_v25 = vmul.f32 %v6084_v20, %v6068_v59  ;;  %v2523_v35 = vpop.xlane.xlu0 %2522 }
 0xe5d   :  { %6085 = vrcp.f32 %v2523_v35 }
 0xe5e   :  { %v2555_v24 = vpack.c.bf16 %v2548_v25, %v2547_v14 }
 0xe60   :  { %5494 = vmatmul.msk.bf16.vlgmr.msra.gmra.mxu3 %vm619_vm3, %v2555_v24  ;;  %v5380_v24 = vld [vmem:[%s6939_s30 + $0x8] sm:$0xf] }
 0xe61   :  { %2881 = vmatpush.bf16.msra.mxu3 %v6773_v26 }
 0xe63   :  { %v6086_v19 = vpop.eup %6085 }
 0xe64   :  { %v2526_v57 = vpop.xlane.xlu1 %2525  ;;  %v2549_v16 = vmul.f32 %v6086_v19, %v6896_v9 }
 0xe65   :  { %6087 = vrcp.f32 %v2526_v57  ;;  %2882 = vmatpush.bf16.msra.mxu3 %v6777_v29  ;;  %v6958_v57 = vsel %vm7669_vm11, %v5380_v24, 0 }
 0xe6b   :  { %v6088_v30 = vpop.eup %6087 }
 0xe6c   :  { %v2550_v31 = vmul.f32 %v6088_v30, %v6072_v46  ;;  %v2529_v44 = vpop.xlane.xlu2 %2528 }
 0xe6d   :  { %6089 = vrcp.f32 %v2529_v44  ;;  %v5381_v44 = vld [vmem:[%s6939_s30 + $0xc] sm:$0xf] }
 0xe6e   :  { %v2556_v32 = vpack.c.bf16 %v2550_v31, %v2549_v16 }
 0xe70   :  { %5495 = vmatmul.msk.bf16.gmra.mxu3 %vm619_vm3, %v2556_v32 }
 0xe73   :  { %v6090_v59 = vpop.eup %6089 }
 0xe74   :  { %v2532_v42 = vpop.xlane.xlu0 %2531  ;;  %v2551_v26 = vmul.f32 %v6090_v59, %v6074_v53  ;;  %v6967_v59 = vsel %vm7670_vm13, %v5381_v44, 0 }
 0xe75   :  { %6091 = vrcp.f32 %v2532_v42 }
 0xe7b   :  { %v6092_v8 = vpop.eup %6091 }
 0xe7c   :  { %v2552_v47 = vmul.f32 %v6092_v8, %v6076_v34  ;;  %v2535_v49 = vpop.xlane.xlu1 %2534  ;;  %v1929_v52 = vpop.xlane.xlu0 %1928 }
 0xe7d   :  { %v1933_v29 = vmul.f32 %v1929_v52, %v6462_v51  ;;  %6093 = vrcp.f32 %v2535_v49 }
 0xe7e   :  { %v2557_v3 = vpack.c.bf16 %v2552_v47, %v2551_v26 }
 0xe7f   :  { %v6922_v13 = vsub.f32 %v1925_v12, %v1933_v29 }
 0xe80   :  { %5496 = vmatmul.msk.bf16.gmra.mxu3 %vm619_vm3, %v2557_v3 }
 0xe81   :  { %v1937_v9 = vmul.f32 %v6922_v13, %v6922_v13 }
 0xe83   :  { %v1939_v46 = vsel %vm229_vm0, %v1937_v9, 0.0  ;;  %v6094_v11 = vpop.eup %6093 }
 0xe84   :  { %v2538_v2 = vpop.xlane.xlu2 %2537  ;;  %v1932_v45 = vpop.xlane.xlu1 %1931  ;;  %1940 = vadd.xlane.f32.xlu2 %v1939_v46  ;;  %v2553_v5 = vmul.f32 %v6094_v11, %v6906_v63  ;;  %v5379_v63 = vld [vmem:[%s6939_s30 + $0x4] sm:$0xf] }
 0xe85   :  { %6095 = vrcp.f32 %v2538_v2  ;;  %v1934_v53 = vmul.f32 %v1932_v45, %v6462_v51 }
 0xe87   :  { %v6929_v34 = vsub.f32 %v1926_v50, %v1934_v53  ;;  %v2056_v50 = vld [vmem:[%s6939_s30] sm:$0xf] }
 0xe88   :  { %v6943_v14 = vsel %vm7667_vm9, %v2056_v50, 0 }
 0xe89   :  { %v1938_v12 = vmul.f32 %v6929_v34, %v6929_v34  ;;  %2618 = vmatpush.bf16.msra.mxu0 %v6943_v14 }
 0xe8b   :  { %v6096_v54 = vpop.eup %6095  ;;  %v1942_v18 = vsel %vm229_vm0, %v1938_v12, 0.0 }
 0xe8c   :  { %v2554_v55 = vmul.f32 %v6096_v54, %v6080_v33  ;;  %1943 = vadd.xlane.f32.xlu0 %v1942_v18  ;;  %v6953_v33 = vsel %vm7668_vm10, %v5379_v63, 0  ;;  %v5970_v18 = vld [vmem:[%s6506_s2 + $0x1] ss:$0 sm:$0xff]  ;;  %s6259_s2 = smov 23  }
 0xe8d   :  { %2644 = vmatpush.bf16.msra.mxu1 %v6953_v33  ;;  %2667 = vmatpush.bf16.msrb.mxu0 %v6958_v57  ;;  %v5971_v63 = vld [vmem:[%s6511_s9 + $0x1] ss:$0 sm:$0xff]  ;;  %s7030_s13 = sld [smem:[%s7640_s0 + %s6259_s2]]   ;;  %s6265_s2 = smov 28  }
 0xe8e   :  { %v2558_v20 = vpack.c.bf16 %v2554_v55, %v2553_v5  ;;  %s7214_s17 = sld [smem:[%s7640_s0 + %s6265_s2]]  }
 0xe90   :  { %5497 = vmatmul.msk.bf16.gmra.mxu3 %vm619_vm3, %v2558_v20 }
 0xe91   :  { %2690 = vmatpush.bf16.msrb.mxu1 %v6967_v59 }
 0xee3   :  { %v2584_v25 = vpop.f32.mrf.mxu3 }
 0xeeb   :  { %v2586_v35 = vpop.f32.mrf.mxu3 }
 0xeec   :  { %v2604_v19 = vpack.c.bf16 %v2586_v35, %v2584_v25 }
 0xeee   :  { %5498 = vmatmul.msk.bf16.vlgmr.msra.gmra.mxu0 %vm541_vm1, %v2604_v19 }
 0xeef   :  { %2765 = vmatpush.bf16.msra.mxu0 %v6667_v23 }
 0xef3   :  { %v2589_v30 = vpop.f32.mrf.mxu3  ;;  %2766 = vmatpush.bf16.msra.mxu0 %v6674_v27 }
 0xef7   :  { %v1941_v16 = vpop.xlane.xlu2 %1940 }
 0xef8   :  { %v1945_v31 = vmul.f32 %v1941_v16, %v6462_v51 }
 0xefa   :  { %v1947_v32 = vadd.f32 1e-05, %v1945_v31 }
 0xefb   :  { %v2591_v42 = vpop.f32.mrf.mxu3 }
 0xefc   :  { %6097 = vrsqrt.f32 %v1947_v32  ;;  %v2630_v8 = vpack.c.bf16 %v2591_v42, %v2589_v30  ;;  %vm1955_vm9 = vweird.f32 %v1947_v32 }
 0xefe   :  { %5499 = vmatmul.msk.bf16.vlgmr.msra.gmra.mxu1 %vm541_vm1, %v2630_v8 }
 0xeff   :  { %v1944_v26 = vpop.xlane.xlu0 %1943  ;;  %2779 = vmatpush.bf16.msra.mxu1 %v6730_v1 }
 0xf00   :  { %v1946_v23 = vmul.f32 %v1944_v26, %v6462_v51 }
 0xf02   :  { %v6098_v27 = vpop.eup %6097  ;;  %v1948_v47 = vadd.f32 1e-05, %v1946_v23 }
 0xf03   :  { %v1950_v49 = vmul.f32 %v6098_v27, %v1947_v32  ;;  %v2594_v52 = vpop.f32.mrf.mxu3  ;;  %2780 = vmatpush.bf16.msra.mxu1 %v6741_v6  ;;  %vm1956_vm14 = vweird.f32 %v6098_v27 }
 0xf04   :  { %6099 = vrsqrt.f32 %v1948_v47  ;;  %vm1957_vm10 = vmor %vm1955_vm9, %vm1956_vm14  ;;  %vm1965_vm13 = vweird.f32 %v1948_v47 }
 0xf05   :  { %v1951_v29 = vmul.f32 %v6098_v27, %v1950_v49 }
 0xf07   :  { %v1952_v3 = vmul.f32 0.5, %v1951_v29 }
 0xf09   :  { %v1953_v9 = vsub.f32 1.5, %v1952_v3 }
 0xf0a   :  { %v6100_v46 = vpop.eup %6099 }
 0xf0b   :  { %v1954_v2 = vmul.f32 %v6098_v27, %v1953_v9  ;;  %v1960_v45 = vmul.f32 %v6100_v46, %v1948_v47  ;;  %v2596_v53 = vpop.f32.mrf.mxu3  ;;  %vm1966_vm11 = vweird.f32 %v6100_v46 }
 0xf0c   :  { %v2653_v11 = vpack.c.bf16 %v2596_v53, %v2594_v52  ;;  %vm1967_vm8 = vmor %vm1965_vm13, %vm1966_vm11 }
 0xf0d   :  { %v1961_v1 = vmul.f32 %v6100_v46, %v1960_v45  ;;  %v1958_v12 = vsel %vm1957_vm10, %v6098_v27, %v1954_v2 }
 0xf0e   :  { %5500 = vmatmul.msk.bf16.vlgmr.msrb.gmra.mxu0 %vm541_vm1, %v2653_v11  ;;  %v1969_v5 = vmul.f32 %v1958_v12, %v6922_v13 }
 0xf0f   :  { %v1962_v54 = vmul.f32 0.5, %v1961_v1  ;;  %2793 = vmatpush.bf16.msrb.mxu0 %v6661_v21 }
 0xf10   :  { %v1974_v25 = vmul.f32 %v5970_v18, %v1969_v5 }
 0xf11   :  { %v1963_v6 = vsub.f32 1.5, %v1962_v54 }
 0xf12   :  { %v6981_v19 = vadd.f32 %v5971_v63, %v1974_v25 }
 0xf13   :  { %v1964_v55 = vmul.f32 %v6100_v46, %v1963_v6  ;;  %v2599_v20 = vpop.f32.mrf.mxu3  ;;  %2794 = vmatpush.bf16.msrb.mxu0 %v6685_v41 }
 0xf14   :  { %7671 = vst [vmem:[#allocation2_spill] sm:$0xff] %v6981_v19 }
 0xf15   :  { %v1968_v50 = vsel %vm1967_vm8, %v6100_v46, %v1964_v55 }
 0xf16   :  { %v1970_v24 = vmul.f32 %v1968_v50, %v6929_v34 }
 0xf18   :  { %v1975_v35 = vmul.f32 %v5970_v18, %v1970_v24 }
 0xf1a   :  { %v6983_v21 = vadd.f32 %v5971_v63, %v1975_v35 }
 0xf1b   :  { %v2601_v30 = vpop.f32.mrf.mxu3 }
 0xf1c   :  { %7672 = vst [vmem:[#allocation3_spill] sm:$0xff] %v6983_v21  ;;  %v6987_v13 = vpack.c.bf16 %v6983_v21, %v6981_v19  ;;  %v2676_v16 = vpack.c.bf16 %v2601_v30, %v2599_v20 }
 0xf1e   :  { %5501 = vmatmul.msk.bf16.vlgmr.msrb.gmra.mxu1 %vm541_vm1, %v2676_v16  ;;  %5502 = vmatmul.msk.bf16.vlgmr.msra.gmra.mxu0 %vm229_vm0, %v6987_v13 }
 0xf1f   :  { %5506 = vmatmul.msk.bf16.vlgmr.msrb.gmra.mxu3 %vm229_vm0, %v6987_v13  ;;  %5509 = vmatmul.msk.bf16.vlgmr.msrb.gmra.mxu2 %vm229_vm0, %v6987_v13 }
 0xf20   :  { %2807 = vmatpush.bf16.msrb.mxu1 %v6702_v58  ;;  %2835 = vmatpush.bf16.msra.mxu0 %v6664_v22 }
 0xf21   :  { %3184 = vmatpush.bf16.msrb.mxu2 %v6953_v33 }
 0xf24   :  { %2808 = vmatpush.bf16.msrb.mxu1 %v6711_v60  ;;  %2836 = vmatpush.bf16.msra.mxu0 %v6716_v62  ;;  %v7019_v62 = vld [vmem:[%s6949_s7] ss:$0 sm:$0xff] }
 0xf2e   :  { %5503 = vmatmul.msk.bf16.vlgmr.msra.gmra.mxu1 %vm229_vm0, %v6987_v13  ;;  %5504 = vmatmul.msk.bf16.vlgmr.msrb.gmra.mxu0 %vm229_vm0, %v6987_v13 }
 0xf2f   :  { %2849 = vmatpush.bf16.msra.mxu1 %v6736_v10  ;;  %2895 = vmatpush.bf16.msrb.mxu0 %v6785_v40 }
 0xf33   :  { %2850 = vmatpush.bf16.msra.mxu1 %v6744_v7  ;;  %2896 = vmatpush.bf16.msrb.mxu0 %v6793_v43 }
 0xf3e   :  { %5505 = vmatmul.msk.bf16.vlgmr.msrb.gmra.mxu1 %vm229_vm0, %v6987_v13  ;;  %5507 = vmatmul.msk.bf16.vlgmr.msra.gmra.mxu0 %vm229_vm0, %v6987_v13 }
 0xf3f   :  { %2909 = vmatpush.bf16.msrb.mxu1 %v6788_v36 }
 0xf43   :  { %2910 = vmatpush.bf16.msrb.mxu1 %v6797_v4 }
 0xf4e   :  { %5508 = vmatmul.msk.bf16.vlgmr.msra.gmra.mxu1 %vm229_vm0, %v6987_v13 }
 0xf4f   :  { %3164 = vmatpush.bf16.msra.mxu1 %v6943_v14 }
 0xf6b   :  { %v2620_v22 = vpop.f32.mrf.mxu0 }
 0xf6c   :  { %v2628_v7 = vadd.f32 %v7019_v62, %v2620_v22 }
 0xf73   :  { %v2622_v41 = vpop.f32.mrf.mxu0 }
 0xf74   :  { %v2629_v4 = vadd.f32 %v7019_v62, %v2622_v41 }
 0xf7b   :  { %v2646_v58 = vpop.f32.mrf.mxu1 }
 0xf7c   :  { %v2651_v40 = vadd.f32 %v2646_v58, %v2628_v7 }
 0xf83   :  { %v2648_v10 = vpop.f32.mrf.mxu1 }
 0xf84   :  { %v2652_v32 = vadd.f32 %v2648_v10, %v2629_v4 }
 0xf8b   :  { %v2669_v60 = vpop.f32.mrf.mxu0 }
 0xf8c   :  { %v2674_v43 = vadd.f32 %v2669_v60, %v2651_v40 }
 0xf93   :  { %v2671_v34 = vpop.f32.mrf.mxu0 }
 0xf94   :  { %v2675_v44 = vadd.f32 %v2671_v34, %v2652_v32 }
 0xf9b   :  { %v2692_v36 = vpop.f32.mrf.mxu1  ;;  %v7025_v23 = vpop.f32.mrf.mxu0 }
 0xf9c   :  { %v2697_v33 = vadd.f32 %v2692_v36, %v2674_v43 }
 0xf9e   :  { %v2699_v31 = vadd.f32 %v2697_v33, %v6680_v38 }
 0xfa0   :  { %v2701_v14 = vsel %vm229_vm0, %v2699_v31, 0.0 }
 0xfa1   :  { %2702 = vadd.xlane.f32.xlu1 %v2701_v14 }
 0xfa2   :  { %v2866_v42 = vpop.f32.mrf.mxu2  ;;  %v2824_v54 = vpop.f32.mrf.mxu3 }
 0xfa3   :  { %v2694_v8 = vpop.f32.mrf.mxu1  ;;  %v7042_v3 = vpop.f32.mrf.mxu0 }
 0xfa4   :  { %v2698_v26 = vadd.f32 %v2694_v8, %v2675_v44 }
 0xfa6   :  { %v2700_v27 = vadd.f32 %v2698_v26, %v6682_v39 }
 0xfa8   :  { %v2704_v38 = vsel %vm229_vm0, %v2700_v27, 0.0 }
 0xfa9   :  { %2705 = vadd.xlane.f32.xlu2 %v2704_v38 }
 0xfaa   :  { %v2868_v47 = vpop.f32.mrf.mxu2  ;;  %v2826_v20 = vpop.f32.mrf.mxu3 }
 0xfab   :  { %v2938_v49 = vpack.c.bf16 %v2868_v47, %v2866_v42  ;;  %v7039_v52 = vpop.f32.mrf.mxu1  ;;  %v7046_v39 = vpop.f32.mrf.mxu0  ;;  %v2935_v50 = vpack.c.bf16 %v2826_v20, %v2824_v54 }
 0xfad   :  { %v2961_v29 = vsel %vm541_vm1, %v2938_v49, 0  ;;  %v2952_v63 = vsel %vm541_vm1, %v2935_v50, 0  ;;  %v2931_v50 = vpack.c.bf16 %v7042_v3, %v7025_v23 }
 0xfae   :  { %2967 = vmatpush.bf16.xpose.msrb.mxu3 %v2961_v29  ;;  %v7064_v29 = vld [vmem:[%s7030_s13] ss:$0 sm:$0xff] }
 0xfb3   :  { %v7044_v9 = vpop.f32.mrf.mxu1  ;;  %v7050_v2 = vpop.f32.mrf.mxu0 }
 0xfbb   :  { %v7048_v46 = vpop.f32.mrf.mxu1  ;;  %v2838_v11 = vpop.f32.mrf.mxu0 }
 0xfc3   :  { %v7052_v45 = vpop.f32.mrf.mxu1  ;;  %v2840_v18 = vpop.f32.mrf.mxu0 }
 0xfc4   :  { %v2936_v5 = vpack.c.bf16 %v2840_v18, %v2838_v11 }
 0xfc6   :  { %v2955_v55 = vsel %vm541_vm1, %v2936_v5, 0 }
 0xfcb   :  { %v2852_v53 = vpop.f32.mrf.mxu1 }
 0xfd3   :  { %v2854_v1 = vpop.f32.mrf.mxu1 }
 0xfd4   :  { %v2937_v12 = vpack.c.bf16 %v2854_v1, %v2852_v53 }
 0xfd6   :  { %v2958_v6 = vsel %vm541_vm1, %v2937_v12, 0  ;;  %v7067_v12 = vld [vmem:[%s7036_s11] ss:$0 sm:$0xff] }
 0xfd7   :  { %2968 = vmatpush.bf16.xpose.msrb.mxu3 %v2958_v6 }
 0xfdf   :  { %2969 = vmatpush.bf16.xpose.msrb.mxu3 %v2955_v55 }
 0xfe7   :  { %2970 = vmatpush.bf16.xpose.msrb.mxu3 %v2952_v63  ;;  %v2932_v63 = vpack.c.bf16 %v7044_v9, %v7039_v52 }
0x1014   :  { %v2703_v25 = vpop.xlane.xlu1 %2702 }
0x1015   :  { %v2707_v24 = vmul.f32 %v2703_v25, %v6462_v51  ;;  %v2933_v25 = vpack.c.bf16 %v7050_v2, %v7046_v39 }
0x1017   :  { %v2709_v35 = vsub.f32 %v2699_v31, %v2707_v24 }
0x1019   :  { %v2711_v30 = vmul.f32 %v2709_v35, %v2709_v35 }
0x101b   :  { %v2713_v16 = vsel %vm229_vm0, %v2711_v30, 0.0 }
0x101c   :  { %2714 = vadd.xlane.f32.xlu0 %v2713_v16  ;;  %v2706_v22 = vpop.xlane.xlu2 %2705 }
0x101d   :  { %v2708_v41 = vmul.f32 %v2706_v22, %v6462_v51 }
0x101f   :  { %v2710_v58 = vsub.f32 %v2700_v27, %v2708_v41 }
0x1021   :  { %v2712_v60 = vmul.f32 %v2710_v58, %v2710_v58 }
0x1023   :  { %v2716_v10 = vsel %vm229_vm0, %v2712_v60, 0.0  ;;  %v7105_v60 = vld [vmem:[%s7094_s19 + $0x8] sm:$0xff] }
0x1024   :  { %2717 = vadd.xlane.f32.xlu1 %v2716_v10  ;;  %7674 = vst [vmem:[#allocation5_spill] sm:$0xff] %v7105_v60 }
0x108f   :  { %v2715_v7 = vpop.xlane.xlu0 %2714 }
0x1090   :  { %v2719_v40 = vmul.f32 %v2715_v7, %v6462_v51 }
0x1092   :  { %v2721_v43 = vadd.f32 1e-05, %v2719_v40 }
0x1094   :  { %6101 = vrsqrt.f32 %v2721_v43  ;;  %vm2729_vm14 = vweird.f32 %v2721_v43 }
0x1097   :  { %v2718_v34 = vpop.xlane.xlu1 %2717 }
0x1098   :  { %v2720_v36 = vmul.f32 %v2718_v34, %v6462_v51 }
0x109a   :  { %v6102_v33 = vpop.eup %6101  ;;  %v2722_v4 = vadd.f32 1e-05, %v2720_v36  ;;  %v7113_v36 = vld [vmem:[%s7094_s19 + $0x10] sm:$0xff] }
0x109b   :  { %v2724_v31 = vmul.f32 %v6102_v33, %v2721_v43  ;;  %vm2730_vm8 = vweird.f32 %v6102_v33  ;;  %7675 = vst [vmem:[#allocation6_spill] sm:$0xff] %v7113_v36 }
0x109c   :  { %6103 = vrsqrt.f32 %v2722_v4  ;;  %vm2731_vm9 = vmor %vm2729_vm14, %vm2730_vm8  ;;  %vm2739_vm11 = vweird.f32 %v2722_v4  ;;  %vm7650_vm14 = vcmp.lt.f32.partialorder %v7105_v60, 0.0 }
0x109d   :  { %v2725_v32 = vmul.f32 %v6102_v33, %v2724_v31 }
0x109f   :  { %v2726_v14 = vmul.f32 0.5, %v2725_v32 }
0x10a1   :  { %v2727_v44 = vsub.f32 1.5, %v2726_v14  ;;  %v7121_v14 = vld [vmem:[%s7094_s19 + $0x18] sm:$0xff] }
0x10a2   :  { %v6104_v42 = vpop.eup %6103  ;;  %7676 = vst [vmem:[#allocation7_spill] sm:$0xff] %v7121_v14 }
0x10a3   :  { %v2728_v8 = vmul.f32 %v6102_v33, %v2727_v44  ;;  %v2734_v26 = vmul.f32 %v6104_v42, %v2722_v4  ;;  %vm2740_vm10 = vweird.f32 %v6104_v42 }
0x10a4   :  { %vm2741_vm13 = vmor %vm2739_vm11, %vm2740_vm10  ;;  %vm7648_vm10 = vcmp.lt.f32.partialorder %v7121_v14, 0.0 }
0x10a5   :  { %v2735_v27 = vmul.f32 %v6104_v42, %v2734_v26  ;;  %v2732_v38 = vsel %vm2731_vm9, %v6102_v33, %v2728_v8  ;;  %vm7649_vm9 = vcmp.lt.f32.partialorder %v7113_v36, 0.0 }
0x10a6   :  { %v2743_v53 = vmul.f32 %v2732_v38, %v2709_v35 }
0x10a7   :  { %v2736_v47 = vmul.f32 0.5, %v2735_v27  ;;  %v7129_v27 = vld [vmem:[%s7094_s19 + $0x20] sm:$0xff] }
0x10a8   :  { %v2748_v54 = vmul.f32 %v7064_v29, %v2743_v53  ;;  %7677 = vst [vmem:[#allocation8_spill] sm:$0xff] %v7129_v27  ;;  %vm7644_vm11 = vcmp.lt.f32.partialorder %v7129_v27, 0.0 }
0x10a9   :  { %v2737_v49 = vsub.f32 1.5, %v2736_v47 }
0x10aa   :  { %v2753_v5 = vadd.f32 %v7067_v12, %v2748_v54 }
0x10ab   :  { %v2738_v11 = vmul.f32 %v6104_v42, %v2737_v49 }
0x10ad   :  { %v2742_v1 = vsel %vm2741_vm13, %v6104_v42, %v2738_v11  ;;  %v7137_v11 = vld [vmem:[%s7094_s19 + $0x28] sm:$0xff] }
0x10ae   :  { %v2744_v6 = vmul.f32 %v2742_v1, %v2710_v58  ;;  %7678 = vst [vmem:[#allocation9_spill] sm:$0xff] %v7137_v11  ;;  %vm7645_vm13 = vcmp.lt.f32.partialorder %v7137_v11, 0.0 }
0x10b0   :  { %v2749_v18 = vmul.f32 %v7064_v29, %v2744_v6 }
0x10b2   :  { %v2754_v55 = vadd.f32 %v7067_v12, %v2749_v18 }
0x10b4   :  { %v2871_v20 = vpack.c.bf16 %v2754_v55, %v2753_v5  ;;  %v7145_v5 = vld [vmem:[%s7094_s19 + $0x30] sm:$0xff] }
0x10b5   :  { %7679 = vst [vmem:[#allocation10_spill] sm:$0xff] %v7145_v5 }
0x10b6   :  { %5510 = vmatmul.msk.bf16.vlgmr.msra.gmra.mxu3 %vm229_vm0, %v2871_v20  ;;  %5511 = vmatmul.msk.bf16.vlgmr.msrb.gmra.mxu0 %vm229_vm0, %v2871_v20 }
0x10b7   :  { %5512 = vmatmul.msk.bf16.vlgmr.msrb.gmra.mxu1 %vm229_vm0, %v2871_v20  ;;  %5513 = vmatmul.msk.bf16.vlgmr.msra.gmra.mxu2 %vm229_vm0, %v2871_v20 }
0x10b8   :  { %3204 = vmatpush.bf16.msrb.mxu1 %v6958_v57  ;;  %3224 = vmatpush.bf16.msra.mxu2 %v6967_v59  ;;  %v2934_v57 = vpack.c.bf16 %v7052_v45, %v7048_v46  ;;  %v7097_v46 = vld [vmem:[%s7094_s19] sm:$0xff] }
0x10b9   :  { %7673 = vst [vmem:[#allocation4_spill] sm:$0xff] %v7097_v46  ;;  %vm7651_vm8 = vcmp.lt.f32.partialorder %v7097_v46, 0.0 }
0x10c6   :  { %5514 = vmatmul.msk.bf16.vlgmr.msrb.gmra.mxu3 %vm541_vm1, %v2931_v50 }
0x10d6   :  { %5515 = vmatmul.msk.bf16.gmra.mxu3 %vm541_vm1, %v2932_v63 }
0x10e6   :  { %5516 = vmatmul.msk.bf16.gmra.mxu3 %vm541_vm1, %v2933_v25  ;;  %v7153_v25 = vld [vmem:[%s7094_s19 + $0x38] sm:$0xff] }
0x10e7   :  { %7680 = vst [vmem:[#allocation11_spill] sm:$0xff] %v7153_v25 }
0x10f6   :  { %5517 = vmatmul.msk.bf16.gmra.mxu3 %vm541_vm1, %v2934_v57 }
0x1133   :  { %v2898_v3 = vpop.f32.mrf.mxu0 }
0x1134   :  { %v2912_v24 = vpop.f32.mrf.mxu1 }
0x1139   :  { %v2884_v59 = vpop.f32.mrf.mxu3 }
0x113a   :  { %v2926_v23 = vpop.f32.mrf.mxu2 }
0x113b   :  { %v2900_v35 = vpop.f32.mrf.mxu0 }
0x113c   :  { %v2914_v2 = vpop.f32.mrf.mxu1  ;;  %v3109_v22 = vpack.c.bf16 %v2900_v35, %v2898_v3 }
0x113d   :  { %v3110_v45 = vpack.c.bf16 %v2914_v2, %v2912_v24 }
0x1141   :  { %v2886_v52 = vpop.f32.mrf.mxu3 }
0x1142   :  { %v2928_v9 = vpop.f32.mrf.mxu2  ;;  %v3108_v10 = vpack.c.bf16 %v2886_v52, %v2884_v59 }
0x1143   :  { %v3111_v39 = vpack.c.bf16 %v2928_v9, %v2926_v23 }
0x1145   :  { %3128 = vmatpush.bf16.msra.mxu0 %v3111_v39 }
0x1149   :  { %3129 = vmatpush.bf16.msra.mxu0 %v3110_v45  ;;  %v2972_v30 = vpop.f32.mrf.mxu3 }
0x114a   :  { %v2992_v16 = vmul.f32 0.35355338, %v2972_v30 }
0x114c   :  { %v3008_v41 = vsel %vm7651_vm8, %v7097_v46, %v2992_v16 }
0x114d   :  { %3130 = vmatpush.bf16.msra.mxu0 %v3109_v22  ;;  %v3016_v58 = vsel %vm619_vm3, %v3008_v41, -inf }
0x114e   :  { %3017 = vmax.xlane.f32.xlu2 %v3016_v58 }
0x1151   :  { %3131 = vmatpush.bf16.msra.mxu0 %v3108_v10  ;;  %v2974_v7 = vpop.f32.mrf.mxu3 }
0x1152   :  { %v2993_v40 = vmul.f32 0.35355338, %v2974_v7 }
0x1154   :  { %v3009_v43 = vsel %vm7650_vm14, %v7105_v60, %v2993_v40 }
0x1155   :  { %v3019_v34 = vsel %vm619_vm3, %v3009_v43, -inf }
0x1156   :  { %3020 = vmax.xlane.f32.xlu0 %v3019_v34 }
0x1159   :  { %v2977_v33 = vpop.f32.mrf.mxu3 }
0x115a   :  { %v2994_v4 = vmul.f32 0.35355338, %v2977_v33 }
0x115c   :  { %v3010_v31 = vsel %vm7649_vm9, %v7113_v36, %v2994_v4 }
0x115d   :  { %v3022_v32 = vsel %vm619_vm3, %v3010_v31, -inf }
0x115e   :  { %3023 = vmax.xlane.f32.xlu1 %v3022_v32 }
0x1161   :  { %v2979_v44 = vpop.f32.mrf.mxu3 }
0x1162   :  { %v2995_v42 = vmul.f32 0.35355338, %v2979_v44 }
0x1164   :  { %v3011_v8 = vsel %vm7648_vm10, %v7121_v14, %v2995_v42 }
0x1165   :  { %v3025_v26 = vsel %vm619_vm3, %v3011_v8, -inf }
0x1166   :  { %3026 = vmax.xlane.f32.xlu2 %v3025_v26 }
0x1169   :  { %v2982_v38 = vpop.f32.mrf.mxu3 }
0x116a   :  { %v2996_v47 = vmul.f32 0.35355338, %v2982_v38 }
0x116c   :  { %v3012_v49 = vsel %vm7644_vm11, %v7129_v27, %v2996_v47  ;;  %vm7647_vm11 = vcmp.lt.f32.partialorder %v7145_v5, 0.0 }
0x116d   :  { %v3028_v53 = vsel %vm619_vm3, %v3012_v49, -inf }
0x116e   :  { %3029 = vmax.xlane.f32.xlu0 %v3028_v53 }
0x1171   :  { %v2984_v1 = vpop.f32.mrf.mxu3 }
0x1172   :  { %v2997_v54 = vmul.f32 0.35355338, %v2984_v1 }
0x1174   :  { %v3013_v6 = vsel %vm7645_vm13, %v7137_v11, %v2997_v54  ;;  %vm7646_vm13 = vcmp.lt.f32.partialorder %v7153_v25, 0.0 }
0x1175   :  { %v3031_v18 = vsel %vm619_vm3, %v3013_v6, -inf }
0x1176   :  { %3032 = vmax.xlane.f32.xlu1 %v3031_v18 }
0x1179   :  { %v2987_v55 = vpop.f32.mrf.mxu3 }
0x117a   :  { %v2998_v20 = vmul.f32 0.35355338, %v2987_v55 }
0x117c   :  { %v3014_v50 = vsel %vm7647_vm11, %v7145_v5, %v2998_v20 }
0x117d   :  { %v3034_v63 = vsel %vm619_vm3, %v3014_v50, -inf }
0x117e   :  { %3035 = vmax.xlane.f32.xlu2 %v3034_v63 }
0x1181   :  { %v2989_v57 = vpop.f32.mrf.mxu3 }
0x1182   :  { %v2999_v59 = vmul.f32 0.35355338, %v2989_v57 }
0x1184   :  { %v3015_v24 = vsel %vm7646_vm13, %v7153_v25, %v2999_v59 }
0x1185   :  { %v3037_v23 = vsel %vm619_vm3, %v3015_v24, -inf }
0x1186   :  { %3038 = vmax.xlane.f32.xlu0 %v3037_v23 }
0x11c1   :  { %v3018_v3 = vpop.xlane.xlu2 %3017 }
0x11c2   :  { %v3040_v52 = vsub.f32 %v3008_v41, %v3018_v3 }
0x11c4   :  { %v3048_v9 = vmul.f32 1.442695, %v3040_v52 }
0x11c6   :  { %6105 = vpow2.f32 %v3048_v9 }
0x11c9   :  { %v3021_v39 = vpop.xlane.xlu0 %3020 }
0x11ca   :  { %v3041_v2 = vsub.f32 %v3009_v43, %v3021_v39 }
0x11cc   :  { %v6106_v45 = vpop.eup %6105  ;;  %v3050_v35 = vmul.f32 1.442695, %v3041_v2 }
0x11cd   :  { %v3064_v30 = vsel %vm619_vm3, %v6106_v45, 0.0 }
0x11ce   :  { %6107 = vpow2.f32 %v3050_v35  ;;  %3065 = vadd.xlane.f32.xlu1 %v3064_v30 }
0x11d1   :  { %v3024_v16 = vpop.xlane.xlu1 %3023 }
0x11d2   :  { %v3042_v22 = vsub.f32 %v3010_v31, %v3024_v16 }
0x11d4   :  { %v6108_v58 = vpop.eup %6107  ;;  %v3052_v10 = vmul.f32 1.442695, %v3042_v22 }
0x11d5   :  { %v3067_v7 = vsel %vm619_vm3, %v6108_v58, 0.0 }
0x11d6   :  { %6109 = vpow2.f32 %v3052_v10  ;;  %3068 = vadd.xlane.f32.xlu2 %v3067_v7 }
0x11d9   :  { %v3027_v40 = vpop.xlane.xlu2 %3026 }
0x11da   :  { %v3043_v41 = vsub.f32 %v3011_v8, %v3027_v40 }
0x11dc   :  { %v6110_v34 = vpop.eup %6109  ;;  %v3054_v33 = vmul.f32 1.442695, %v3043_v41 }
0x11dd   :  { %v3070_v43 = vsel %vm619_vm3, %v6110_v34, 0.0 }
0x11de   :  { %6111 = vpow2.f32 %v3054_v33  ;;  %3071 = vadd.xlane.f32.xlu0 %v3070_v43 }
0x11e1   :  { %v3030_v4 = vpop.xlane.xlu0 %3029 }
0x11e2   :  { %v3044_v32 = vsub.f32 %v3012_v49, %v3030_v4 }
0x11e4   :  { %v6112_v44 = vpop.eup %6111  ;;  %v3056_v42 = vmul.f32 1.442695, %v3044_v32 }
0x11e5   :  { %v3073_v31 = vsel %vm619_vm3, %v6112_v44, 0.0 }
0x11e6   :  { %6113 = vpow2.f32 %v3056_v42  ;;  %3074 = vadd.xlane.f32.xlu1 %v3073_v31 }
0x11e9   :  { %v3033_v26 = vpop.xlane.xlu1 %3032 }
0x11ea   :  { %v3045_v38 = vsub.f32 %v3013_v6, %v3033_v26 }
0x11ec   :  { %v6114_v47 = vpop.eup %6113  ;;  %v3058_v53 = vmul.f32 1.442695, %v3045_v38 }
0x11ed   :  { %v3076_v8 = vsel %vm619_vm3, %v6114_v47, 0.0 }
0x11ee   :  { %6115 = vpow2.f32 %v3058_v53  ;;  %3077 = vadd.xlane.f32.xlu2 %v3076_v8 }
0x11f1   :  { %v3036_v1 = vpop.xlane.xlu2 %3035 }
0x11f2   :  { %v3046_v54 = vsub.f32 %v3014_v50, %v3036_v1 }
0x11f4   :  { %v6116_v18 = vpop.eup %6115  ;;  %v3060_v55 = vmul.f32 1.442695, %v3046_v54 }
0x11f5   :  { %v3079_v49 = vsel %vm619_vm3, %v6116_v18, 0.0 }
0x11f6   :  { %6117 = vpow2.f32 %v3060_v55  ;;  %3080 = vadd.xlane.f32.xlu0 %v3079_v49 }
0x11f9   :  { %v3039_v20 = vpop.xlane.xlu0 %3038 }
0x11fa   :  { %v3047_v63 = vsub.f32 %v3015_v24, %v3039_v20 }
0x11fc   :  { %v6118_v57 = vpop.eup %6117  ;;  %v3062_v59 = vmul.f32 1.442695, %v3047_v63 }
0x11fd   :  { %v3082_v6 = vsel %vm619_vm3, %v6118_v57, 0.0 }
0x11fe   :  { %6119 = vpow2.f32 %v3062_v59  ;;  %3083 = vadd.xlane.f32.xlu1 %v3082_v6 }
0x1204   :  { %v6120_v23 = vpop.eup %6119 }
0x1205   :  { %v3085_v3 = vsel %vm619_vm3, %v6120_v23, 0.0 }
0x1206   :  { %3086 = vadd.xlane.f32.xlu2 %v3085_v3 }
0x1241   :  { %v3066_v52 = vpop.xlane.xlu1 %3065 }
0x1242   :  { %6121 = vrcp.f32 %v3066_v52 }
0x1248   :  { %v6122_v9 = vpop.eup %6121 }
0x1249   :  { %v3069_v50 = vpop.xlane.xlu2 %3068  ;;  %v3096_v2 = vmul.f32 %v6122_v9, %v6106_v45 }
0x124a   :  { %6123 = vrcp.f32 %v3069_v50 }
0x1250   :  { %v6124_v39 = vpop.eup %6123 }
0x1251   :  { %v3097_v35 = vmul.f32 %v6124_v39, %v6108_v58  ;;  %v3072_v24 = vpop.xlane.xlu0 %3071 }
0x1252   :  { %6125 = vrcp.f32 %v3072_v24 }
0x1253   :  { %v3104_v30 = vpack.c.bf16 %v3097_v35, %v3096_v2 }
0x1255   :  { %5518 = vmatmul.msk.bf16.vlgmr.msra.gmra.mxu0 %vm619_vm3, %v3104_v30 }
0x1258   :  { %v6126_v22 = vpop.eup %6125 }
0x1259   :  { %v3075_v16 = vpop.xlane.xlu1 %3074  ;;  %v3098_v7 = vmul.f32 %v6126_v22, %v6110_v34 }
0x125a   :  { %6127 = vrcp.f32 %v3075_v16 }
0x1260   :  { %v6128_v10 = vpop.eup %6127 }
0x1261   :  { %v3099_v40 = vmul.f32 %v6128_v10, %v6112_v44  ;;  %v3078_v33 = vpop.xlane.xlu2 %3077 }
0x1262   :  { %6129 = vrcp.f32 %v3078_v33 }
0x1263   :  { %v3105_v41 = vpack.c.bf16 %v3099_v40, %v3098_v7 }
0x1265   :  { %5519 = vmatmul.msk.bf16.gmra.mxu0 %vm619_vm3, %v3105_v41 }
0x1268   :  { %v6130_v45 = vpop.eup %6129 }
0x1269   :  { %v3081_v43 = vpop.xlane.xlu0 %3080  ;;  %v3100_v4 = vmul.f32 %v6130_v45, %v6114_v47 }
0x126a   :  { %6131 = vrcp.f32 %v3081_v43 }
0x1270   :  { %v6132_v58 = vpop.eup %6131 }
0x1271   :  { %v3101_v32 = vmul.f32 %v6132_v58, %v6116_v18  ;;  %v3084_v31 = vpop.xlane.xlu1 %3083 }
0x1272   :  { %6133 = vrcp.f32 %v3084_v31 }
0x1273   :  { %v3106_v42 = vpack.c.bf16 %v3101_v32, %v3100_v4 }
0x1275   :  { %5520 = vmatmul.msk.bf16.gmra.mxu0 %vm619_vm3, %v3106_v42 }
0x1278   :  { %v6134_v34 = vpop.eup %6133 }
0x1279   :  { %v3087_v26 = vpop.xlane.xlu2 %3086  ;;  %v3102_v38 = vmul.f32 %v6134_v34, %v6118_v57 }
0x127a   :  { %6135 = vrcp.f32 %v3087_v26 }
0x1280   :  { %v6136_v44 = vpop.eup %6135 }
0x1281   :  { %v3103_v53 = vmul.f32 %v6136_v44, %v6120_v23 }
0x1283   :  { %v3107_v8 = vpack.c.bf16 %v3103_v53, %v3102_v38 }
0x1285   :  { %5521 = vmatmul.msk.bf16.gmra.mxu0 %vm619_vm3, %v3107_v8 }
0x12d2   :  { %v3133_v1 = vpop.f32.mrf.mxu0 }
0x12da   :  { %v3135_v54 = vpop.f32.mrf.mxu0 }
0x12db   :  { %v3153_v55 = vpack.c.bf16 %v3135_v54, %v3133_v1  ;;  %v5887_v1 = vld [vmem:[%s7194_s27 + $0x8] sm:$0xff] }
0x12dd   :  { %5522 = vmatmul.msk.bf16.vlgmr.msra.gmra.mxu1 %vm541_vm1, %v3153_v55 }
0x12de   :  { %3324 = vmatpush.bf16.msra.mxu1 %v5887_v1 }
0x12e2   :  { %v3138_v47 = vpop.f32.mrf.mxu0 }
0x12ea   :  { %v3140_v18 = vpop.f32.mrf.mxu0 }
0x12eb   :  { %v3173_v49 = vpack.c.bf16 %v3140_v18, %v3138_v47  ;;  %v5886_v18 = vld [vmem:[%s7194_s27] sm:$0xff] }
0x12ec   :  { %3325 = vmatpush.bf16.msra.mxu1 %v5886_v18 }
0x12ed   :  { %5523 = vmatmul.msk.bf16.vlgmr.msrb.gmra.mxu2 %vm541_vm1, %v3173_v49  ;;  %v5891_v49 = vld [vmem:[%s7200_s5 + $0x18] sm:$0xff] }
0x12ee   :  { %3369 = vmatpush.bf16.msrb.mxu2 %v5891_v49 }
0x12f2   :  { %v3143_v20 = vpop.f32.mrf.mxu0 }
0x12fa   :  { %v3145_v63 = vpop.f32.mrf.mxu0 }
0x12fb   :  { %v3193_v59 = vpack.c.bf16 %v3145_v63, %v3143_v20 }
0x12fd   :  { %5524 = vmatmul.msk.bf16.vlgmr.msrb.gmra.mxu1 %vm541_vm1, %v3193_v59 }
0x1302   :  { %v3148_v57 = vpop.f32.mrf.mxu0 }
0x130a   :  { %v3150_v6 = vpop.f32.mrf.mxu0 }
0x130b   :  { %v3213_v23 = vpack.c.bf16 %v3150_v6, %v3148_v57 }
0x130d   :  { %5525 = vmatmul.msk.bf16.vlgmr.msra.gmra.mxu2 %vm541_vm1, %v3213_v23 }
0x135a   :  { %v3166_v3 = vpop.f32.mrf.mxu1 }
0x135b   :  { %v3171_v2 = vadd.f32 %v7019_v62, %v3166_v3 }
0x1362   :  { %v3168_v50 = vpop.f32.mrf.mxu1 }
0x1363   :  { %v3172_v22 = vadd.f32 %v7019_v62, %v3168_v50 }
0x1370   :  { %v3186_v52 = vpop.f32.mrf.mxu2 }
0x1371   :  { %v3191_v35 = vadd.f32 %v3186_v52, %v3171_v2 }
0x1378   :  { %v3188_v9 = vpop.f32.mrf.mxu2 }
0x1379   :  { %v3192_v40 = vadd.f32 %v3188_v9, %v3172_v22 }
0x137a   :  { %v3206_v39 = vpop.f32.mrf.mxu1 }
0x137b   :  { %v3211_v30 = vadd.f32 %v3206_v39, %v3191_v35 }
0x1382   :  { %v3208_v7 = vpop.f32.mrf.mxu1 }
0x1383   :  { %v3212_v33 = vadd.f32 %v3208_v7, %v3192_v40 }
0x1390   :  { %v3226_v24 = vpop.f32.mrf.mxu2 }
0x1391   :  { %v3231_v16 = vadd.f32 %v3226_v24, %v3211_v30 }
0x1393   :  { %v3233_v10 = vadd.f32 %v3231_v16, %v6981_v19 }
0x1395   :  { %v3235_v41 = vsel %vm229_vm0, %v3233_v10, 0.0 }
0x1396   :  { %3236 = vadd.xlane.f32.xlu0 %v3235_v41 }
0x1398   :  { %v3228_v43 = vpop.f32.mrf.mxu2 }
0x1399   :  { %v3232_v45 = vadd.f32 %v3228_v43, %v3212_v33 }
0x139b   :  { %v3234_v58 = vadd.f32 %v3232_v45, %v6983_v21 }
0x139d   :  { %v3238_v4 = vsel %vm229_vm0, %v3234_v58, 0.0 }
0x139e   :  { %3239 = vadd.xlane.f32.xlu1 %v3238_v4  ;;  %v5889_v4 = vld [vmem:[%s7200_s5 + $0x8] sm:$0xff] }
0x1409   :  { %v3237_v32 = vpop.xlane.xlu0 %3236 }
0x140a   :  { %v3241_v42 = vmul.f32 %v3237_v32, %v6462_v51  ;;  %v5888_v32 = vld [vmem:[%s7200_s5] sm:$0xff] }
0x140c   :  { %v3243_v31 = vsub.f32 %v3233_v10, %v3241_v42  ;;  %v5975_v42 = vld [vmem:[%s7189_s21] ss:$0 sm:$0xff] }
0x140e   :  { %v3245_v62 = vmul.f32 %v3243_v31, %v3243_v31 }
0x1410   :  { %v3247_v26 = vsel %vm229_vm0, %v3245_v62, 0.0 }
0x1411   :  { %3248 = vadd.xlane.f32.xlu2 %v3247_v26  ;;  %v3240_v34 = vpop.xlane.xlu1 %3239 }
0x1412   :  { %v3242_v44 = vmul.f32 %v3240_v34, %v6462_v51 }
0x1414   :  { %v3244_v38 = vsub.f32 %v3234_v58, %v3242_v44  ;;  %v5890_v58 = vld [vmem:[%s7200_s5 + $0x10] sm:$0xff] }
0x1415   :  { %3370 = vmatpush.bf16.msrb.mxu2 %v5890_v58 }
0x1416   :  { %v3246_v53 = vmul.f32 %v3244_v38, %v3244_v38 }
0x1418   :  { %v3250_v8 = vsel %vm229_vm0, %v3246_v53, 0.0 }
0x1419   :  { %3251 = vadd.xlane.f32.xlu0 %v3250_v8  ;;  %3371 = vmatpush.bf16.msrb.mxu2 %v5889_v4  ;;  %v7287_v4 = vld [vmem:[%s6657_s14 + $0x68] sm:$0xff] }
0x141d   :  { %3372 = vmatpush.bf16.msrb.mxu2 %v5888_v32  ;;  %v7290_v32 = vld [vmem:[%s6770_s20 + $0x58] sm:$0xff] }
0x1484   :  { %v3249_v54 = vpop.xlane.xlu2 %3248 }
0x1485   :  { %v3253_v55 = vmul.f32 %v3249_v54, %v6462_v51 }
0x1487   :  { %v3255_v47 = vadd.f32 1e-05, %v3253_v55 }
0x1489   :  { %6137 = vrsqrt.f32 %v3255_v47  ;;  %vm3263_vm11 = vweird.f32 %v3255_v47 }
0x148c   :  { %v3252_v20 = vpop.xlane.xlu0 %3251 }
0x148d   :  { %v3254_v63 = vmul.f32 %v3252_v20, %v6462_v51  ;;  %v7235_v20 = vld [vmem:[%s6651_s25 + $0x68] sm:$0xff] }
0x148e   :  { %3583 = vmatpush.bf16.msrb.mxu0 %v7235_v20 }
0x148f   :  { %v6138_v59 = vpop.eup %6137  ;;  %v3256_v57 = vadd.f32 1e-05, %v3254_v63 }
0x1490   :  { %v3258_v6 = vmul.f32 %v6138_v59, %v3255_v47  ;;  %vm3264_vm13 = vweird.f32 %v6138_v59 }
0x1491   :  { %6139 = vrsqrt.f32 %v3256_v57  ;;  %vm3265_vm10 = vmor %vm3263_vm11, %vm3264_vm13  ;;  %vm3273_vm14 = vweird.f32 %v3256_v57 }
0x1492   :  { %v3259_v23 = vmul.f32 %v6138_v59, %v3258_v6 }
0x1494   :  { %v3260_v3 = vmul.f32 0.5, %v3259_v23 }
0x1496   :  { %v3261_v52 = vsub.f32 1.5, %v3260_v3 }
0x1497   :  { %v6140_v50 = vpop.eup %6139 }
0x1498   :  { %v3262_v9 = vmul.f32 %v6138_v59, %v3261_v52  ;;  %v3268_v39 = vmul.f32 %v6140_v50, %v3256_v57  ;;  %vm3274_vm9 = vweird.f32 %v6140_v50 }
0x1499   :  { %vm3275_vm8 = vmor %vm3273_vm14, %vm3274_vm9 }
0x149a   :  { %v3269_v2 = vmul.f32 %v6140_v50, %v3268_v39  ;;  %v3266_v35 = vsel %vm3265_vm10, %v6138_v59, %v3262_v9 }
0x149b   :  { %v3277_v16 = vmul.f32 %v3266_v35, %v3243_v31  ;;  %v7254_v35 = vld [vmem:[%s6651_s25 + $0x48] sm:$0xff] }
0x149c   :  { %v3270_v30 = vmul.f32 0.5, %v3269_v2  ;;  %v7251_v2 = vld [vmem:[%s6657_s14 + $0x58] sm:$0xff]  ;;  %3531 = vmatpush.bf16.msrb.mxu1 %v7254_v35 }
0x149d   :  { %v3279_v7 = vmul.f32 %v7064_v29, %v3277_v16  ;;  %3661 = vmatpush.bf16.msra.mxu3 %v7251_v2 }
0x149e   :  { %v3271_v24 = vsub.f32 1.5, %v3270_v30  ;;  %v7257_v30 = vld [vmem:[%s6651_s25 + $0x58] sm:$0xff] }
0x149f   :  { %v3281_v33 = vadd.f32 %v7067_v12, %v3279_v7  ;;  %3557 = vmatpush.bf16.msra.mxu2 %v7257_v30  ;;  %v7267_v7 = vld [vmem:[%s6651_s25 + $0x60] sm:$0xff] }
0x14a0   :  { %v3272_v22 = vmul.f32 %v6140_v50, %v3271_v24  ;;  %3584 = vmatpush.bf16.msrb.mxu0 %v7267_v7 }
0x14a2   :  { %v3276_v10 = vsel %vm3275_vm8, %v6140_v50, %v3272_v22 }
0x14a3   :  { %v3278_v40 = vmul.f32 %v3276_v10, %v3244_v38  ;;  %v5976_v38 = vld [vmem:[%s7214_s17] ss:$0 sm:$0xff] }
0x14a4   :  { %v7264_v10 = vld [vmem:[%s6651_s25 + $0x40] sm:$0xff]  ;;  %3687 = vmatpush.bf16.msra.mxu0 %v7287_v4 }
0x14a5   :  { %v3280_v41 = vmul.f32 %v7064_v29, %v3278_v40  ;;  %v7270_v40 = vld [vmem:[%s6651_s25 + $0x50] sm:$0xff]  ;;  %3532 = vmatpush.bf16.msrb.mxu1 %v7264_v10 }
0x14a6   :  { %3558 = vmatpush.bf16.msra.mxu2 %v7270_v40 }
0x14a7   :  { %v3282_v43 = vadd.f32 %v7067_v12, %v3280_v41  ;;  %v7273_v41 = vld [vmem:[%s6657_s14 + $0x50] sm:$0xff] }
0x14a8   :  { %3662 = vmatpush.bf16.msra.mxu3 %v7273_v41 }
0x14a9   :  { %v3299_v45 = vpack.c.bf16 %v3282_v43, %v3281_v33 }
0x14ab   :  { %5534 = vmatmul.msk.bf16.vlgmr.msra.gmra.mxu1 %vm229_vm0, %v3299_v45  ;;  %v7283_v45 = vld [vmem:[%s6657_s14 + $0x48] sm:$0xff] }
0x14ac   :  { %3765 = vmatpush.bf16.msrb.mxu3 %v7290_v32 }
0x1528   :  { %v3327_v29 = vpop.f32.mrf.mxu1 }
0x1529   :  { %v3328_v31 = vadd.f32 %v5975_v42, %v3327_v29  ;;  %v7294_v29 = vld [vmem:[%s6651_s25 + $0x70] sm:$0xff] }
0x152b   :  { %v3332_v26 = vmax.f32 %v3328_v31, 0.0 }
0x1530   :  { %v3329_v12 = vpop.f32.mrf.mxu1 }
0x1531   :  { %v3330_v62 = vadd.f32 %v5975_v42, %v3329_v12  ;;  %v7298_v42 = vld [vmem:[%s6657_s14 + $0x40] sm:$0xff] }
0x1533   :  { %v3333_v34 = vmax.f32 %v3330_v62, 0.0  ;;  %v7303_v62 = vld [vmem:[%s6657_s14 + $0x60] sm:$0xff] }
0x1534   :  { %3688 = vmatpush.bf16.msra.mxu0 %v7303_v62 }
0x1535   :  { %v3334_v44 = vpack.c.bf16 %v3333_v34, %v3332_v26  ;;  %v7306_v26 = vld [vmem:[%s6770_s20 + $0x50] sm:$0xff] }
0x1536   :  { %3766 = vmatpush.bf16.msrb.mxu3 %v7306_v26 }
0x1537   :  { %5551 = vmatmul.msk.bf16.vlgmr.msrb.gmra.mxu2 %vm619_vm3, %v3334_v44 }
0x1538   :  { %3635 = vmatpush.bf16.msrb.mxu2 %v7283_v45 }
0x153c   :  { %3636 = vmatpush.bf16.msrb.mxu2 %v7298_v42 }
0x15ba   :  { %v3374_v53 = vpop.f32.mrf.mxu2 }
0x15bb   :  { %v3375_v8 = vadd.f32 %v5976_v38, %v3374_v53 }
0x15bd   :  { %v3379_v1 = vadd.f32 %v3375_v8, %v3281_v33 }
0x15bf   :  { %v3381_v54 = vsel %vm229_vm0, %v3379_v1, 0.0 }
0x15c0   :  { %3382 = vadd.xlane.f32.xlu1 %v3381_v54 }
0x15c2   :  { %v3376_v55 = vpop.f32.mrf.mxu2 }
0x15c3   :  { %v3377_v47 = vadd.f32 %v5976_v38, %v3376_v55 }
0x15c5   :  { %v3380_v18 = vadd.f32 %v3377_v47, %v3282_v43  ;;  %v7280_v43 = vld [vmem:[%s6651_s25 + $0x78] sm:$0xff]  ;;  %s6268_s25 = smov 32  }
0x15c6   :  { %3609 = vmatpush.bf16.msra.mxu1 %v7280_v43 }
0x15c7   :  { %v3384_v49 = vsel %vm229_vm0, %v3380_v18, 0.0 }
0x15c8   :  { %3385 = vadd.xlane.f32.xlu2 %v3384_v49 }
0x15ca   :  { %3610 = vmatpush.bf16.msra.mxu1 %v7294_v29 }
0x1633   :  { %v3383_v63 = vpop.xlane.xlu1 %3382 }
0x1634   :  { %v3387_v59 = vmul.f32 %v3383_v63, %v6462_v51  ;;  %v5977_v63 = vld [vmem:[%s7226_s16] ss:$0 sm:$0xff] }
0x1636   :  { %v7239_v57 = vsub.f32 %v3379_v1, %v3387_v59 }
0x1638   :  { %v3391_v6 = vmul.f32 %v7239_v57, %v7239_v57 }
0x163a   :  { %v3393_v23 = vsel %vm229_vm0, %v3391_v6, 0.0 }
0x163b   :  { %v3386_v3 = vpop.xlane.xlu2 %3385  ;;  %3394 = vadd.xlane.f32.xlu0 %v3393_v23 }
0x163c   :  { %v3388_v52 = vmul.f32 %v3386_v3, %v6462_v51  ;;  %v5978_v3 = vld [vmem:[%s7231_s12] ss:$0 sm:$0xff] }
0x163e   :  { %v7245_v50 = vsub.f32 %v3380_v18, %v3388_v52 }
0x1640   :  { %v3392_v9 = vmul.f32 %v7245_v50, %v7245_v50 }
0x1642   :  { %v3396_v39 = vsel %vm229_vm0, %v3392_v9, 0.0 }
0x1643   :  { %3397 = vadd.xlane.f32.xlu1 %v3396_v39 }
0x16ae   :  { %v3395_v24 = vpop.xlane.xlu0 %3394 }
0x16af   :  { %v3399_v16 = vmul.f32 %v3395_v24, %v6462_v51 }
0x16b1   :  { %v3401_v22 = vadd.f32 1e-05, %v3399_v16 }
0x16b3   :  { %6141 = vrsqrt.f32 %v3401_v22  ;;  %vm3409_vm14 = vweird.f32 %v3401_v22 }
0x16b6   :  { %v3398_v33 = vpop.xlane.xlu1 %3397 }
0x16b7   :  { %v3400_v58 = vmul.f32 %v3398_v33, %v6462_v51  ;;  %v7326_v33 = vld [vmem:[%s6770_s20 + $0x48] sm:$0xff] }
0x16b9   :  { %v6142_v31 = vpop.eup %6141  ;;  %v3402_v12 = vadd.f32 1e-05, %v3400_v58  ;;  %v7329_v58 = vld [vmem:[%s6770_s20 + $0x68] sm:$0xff] }
0x16ba   :  { %v3404_v34 = vmul.f32 %v6142_v31, %v3401_v22  ;;  %vm3410_vm8 = vweird.f32 %v6142_v31 }
0x16bb   :  { %6143 = vrsqrt.f32 %v3402_v12  ;;  %vm3411_vm9 = vmor %vm3409_vm14, %vm3410_vm8  ;;  %vm3419_vm11 = vweird.f32 %v3402_v12 }
0x16bc   :  { %v3405_v44 = vmul.f32 %v6142_v31, %v3404_v34  ;;  %v5915_v34 = vld [vmem:[%s6770_s20 + $0x78] sm:$0xff] }
0x16be   :  { %v3406_v38 = vmul.f32 0.5, %v3405_v44  ;;  %v5914_v44 = vld [vmem:[%s6770_s20 + $0x70] sm:$0xff] }
0x16c0   :  { %v3407_v53 = vsub.f32 1.5, %v3406_v38 }
0x16c1   :  { %v6144_v8 = vpop.eup %6143 }
0x16c2   :  { %v3408_v1 = vmul.f32 %v6142_v31, %v3407_v53  ;;  %v3414_v54 = vmul.f32 %v6144_v8, %v3402_v12  ;;  %vm3420_vm10 = vweird.f32 %v6144_v8  ;;  %v7345_v12 = vld [vmem:[%s6770_s20 + $0x60] sm:$0xff] }
0x16c3   :  { %vm3421_vm13 = vmor %vm3419_vm11, %vm3420_vm10 }
0x16c4   :  { %v3415_v55 = vmul.f32 %v6144_v8, %v3414_v54  ;;  %v3412_v47 = vsel %vm3411_vm9, %v6142_v31, %v3408_v1  ;;  %v7341_v31 = vld [vmem:[%s6770_s20 + $0x40] sm:$0xff] }
0x16c5   :  { %v3423_v59 = vmul.f32 %v3412_v47, %v7239_v57  ;;  %v7323_v57 = vld [vmem:[%s6657_s14 + $0x78] sm:$0xff] }
0x16c6   :  { %v3416_v18 = vmul.f32 0.5, %v3415_v55 }
0x16c7   :  { %v3428_v52 = vmul.f32 %v5977_v63, %v3423_v59 }
0x16c8   :  { %v3417_v49 = vsub.f32 1.5, %v3416_v18 }
0x16c9   :  { %v7316_v24 = vadd.f32 %v5978_v3, %v3428_v52 }
0x16ca   :  { %v3418_v6 = vmul.f32 %v6144_v8, %v3417_v49 }
0x16cc   :  { %v3422_v23 = vsel %vm3421_vm13, %v6144_v8, %v3418_v6 }
0x16cd   :  { %v3424_v9 = vmul.f32 %v3422_v23, %v7245_v50  ;;  %v7337_v50 = vld [vmem:[%s6657_s14 + $0x70] sm:$0xff] }
0x16cf   :  { %v3429_v39 = vmul.f32 %v5977_v63, %v3424_v9 }
0x16d1   :  { %v7318_v16 = vadd.f32 %v5978_v3, %v3429_v39 }
0x16d3   :  { %v3509_v22 = vpack.c.bf16 %v7318_v16, %v7316_v24 }
0x16d5   :  { %5615 = vmatmul.msk.bf16.vlgmr.msrb.gmra.mxu1 %vm229_vm0, %v3509_v22  ;;  %5624 = vmatmul.msk.bf16.vlgmr.msra.gmra.mxu2 %vm229_vm0, %v3509_v22 }
0x16d6   :  { %5633 = vmatmul.msk.bf16.vlgmr.msrb.gmra.mxu0 %vm229_vm0, %v3509_v22  ;;  %5660 = vmatmul.msk.bf16.vlgmr.msra.gmra.mxu3 %vm229_vm0, %v3509_v22 }
0x16d7   :  { %3713 = vmatpush.bf16.msrb.mxu1 %v7323_v57  ;;  %3739 = vmatpush.bf16.msra.mxu2 %v7326_v33 }
0x16d8   :  { %3791 = vmatpush.bf16.msrb.mxu0 %v7329_v58 }
0x16db   :  { %3714 = vmatpush.bf16.msrb.mxu1 %v7337_v50  ;;  %3740 = vmatpush.bf16.msra.mxu2 %v7341_v31 }
0x16dc   :  { %3792 = vmatpush.bf16.msrb.mxu0 %v7345_v12 }
0x16e5   :  { %5642 = vmatmul.msk.bf16.vlgmr.msra.gmra.mxu1 %vm229_vm0, %v3509_v22  ;;  %5651 = vmatmul.msk.bf16.vlgmr.msrb.gmra.mxu2 %vm229_vm0, %v3509_v22 }
0x16e6   :  { %5669 = vmatmul.msk.bf16.vlgmr.msra.gmra.mxu0 %vm229_vm0, %v3509_v22  ;;  %5696 = vmatmul.msk.bf16.vlgmr.msrb.gmra.mxu3 %vm229_vm0, %v3509_v22 }
0x16e7   :  { %3817 = vmatpush.bf16.msra.mxu1 %v5915_v34 }
0x16eb   :  { %3818 = vmatpush.bf16.msra.mxu1 %v5914_v44 }
0x16f5   :  { %5678 = vmatmul.msk.bf16.vlgmr.msrb.gmra.mxu1 %vm229_vm0, %v3509_v22  ;;  %5687 = vmatmul.msk.bf16.vlgmr.msra.gmra.mxu2 %vm229_vm0, %v3509_v22 }
0x16f6   :  { %5705 = vmatmul.msk.bf16.vlgmr.msrb.gmra.mxu0 %vm229_vm0, %v3509_v22 }
0x1705   :  { %5714 = vmatmul.msk.bf16.vlgmr.msra.gmra.mxu1 %vm229_vm0, %v3509_v22 }
0x1752   :  { %v3534_v38 = vpop.f32.mrf.mxu1 }
0x1753   :  { %v3586_v53 = vpop.f32.mrf.mxu0 }
0x1758   :  { %v3560_v1 = vpop.f32.mrf.mxu2 }
0x1759   :  { %v3664_v63 = vpop.f32.mrf.mxu3 }
0x175a   :  { %v3536_v8 = vpop.f32.mrf.mxu1 }
0x175b   :  { %v3588_v55 = vpop.f32.mrf.mxu0 }
0x1760   :  { %v3562_v18 = vpop.f32.mrf.mxu2 }
0x1761   :  { %v3666_v9 = vpop.f32.mrf.mxu3 }
0x1762   :  { %v3612_v54 = vpop.f32.mrf.mxu1  ;;  %v3830_v27 = vpack.c.bf16 %v3666_v9, %v3664_v63  ;;  %v6225_v9 = vld [vmem:[%s6825_s24 + $0x20] sm:$0xff] }
0x1763   :  { %v3690_v49 = vpop.f32.mrf.mxu0 }
0x1768   :  { %v3638_v6 = vpop.f32.mrf.mxu2 }
0x1769   :  { %v3768_v11 = vpop.f32.mrf.mxu3 }
0x176a   :  { %v3614_v47 = vpop.f32.mrf.mxu1 }
0x176b   :  { %v3692_v23 = vpop.f32.mrf.mxu0 }
0x176c   :  { %v3831_v21 = vpack.c.bf16 %v3692_v23, %v3690_v49 }
0x176e   :  { %v3852_v5 = vsel %vm541_vm1, %v3831_v21, 0 }
0x1770   :  { %v3640_v22 = vpop.f32.mrf.mxu2 }
0x1772   :  { %v3716_v59 = vpop.f32.mrf.mxu1 }
0x1773   :  { %v3794_v19 = vpop.f32.mrf.mxu0 }
0x1778   :  { %v3742_v14 = vpop.f32.mrf.mxu2 }
0x177a   :  { %v3718_v3 = vpop.f32.mrf.mxu1 }
0x177b   :  { %v3832_v52 = vpack.c.bf16 %v3718_v3, %v3716_v59  ;;  %v3796_v46 = vpop.f32.mrf.mxu0  ;;  %v3849_v59 = vsel %vm541_vm1, %v3830_v27, 0 }
0x177c   :  { %v3996_v3 = vpack.c.bf16 %v3796_v46, %v3794_v19  ;;  %v3826_v19 = vpack.c.bf16 %v3562_v18, %v3560_v1  ;;  %v3827_v46 = vpack.c.bf16 %v3588_v55, %v3586_v53 }
0x177d   :  { %v3855_v39 = vsel %vm541_vm1, %v3832_v52, 0  ;;  %v3770_v52 = vpop.f32.mrf.mxu3 }
0x177e   :  { %3861 = vmatpush.bf16.xpose.msrb.mxu2 %v3855_v39  ;;  %v3829_v39 = vpack.c.bf16 %v3640_v22, %v3638_v6  ;;  %v3995_v49 = vpack.c.bf16 %v3770_v52, %v3768_v11  ;;  %v6221_v11 = vld [vmem:[%s6825_s24] sm:$0xff]  ;;  %v6226_v52 = vld [vmem:[%s6825_s24 + $0x28] sm:$0xff] }
0x1780   :  { %v3744_v23 = vpop.f32.mrf.mxu2  ;;  %v3846_v21 = vsel %vm541_vm1, %v3829_v39, 0 }
0x1782   :  { %v3820_v25 = vpop.f32.mrf.mxu1 }
0x1786   :  { %3862 = vmatpush.bf16.xpose.msrb.mxu2 %v3852_v5  ;;  %v3994_v5 = vpack.c.bf16 %v3744_v23, %v3742_v14 }
0x178a   :  { %v3822_v36 = vpop.f32.mrf.mxu1 }
0x178b   :  { %v3997_v60 = vpack.c.bf16 %v3822_v36, %v3820_v25  ;;  %v3828_v36 = vpack.c.bf16 %v3614_v47, %v3612_v54  ;;  %v6224_v47 = vld [vmem:[%s6825_s24 + $0x18] sm:$0xff] }
0x178d   :  { %4014 = vmatpush.bf16.msra.mxu3 %v3997_v60  ;;  %v3825_v60 = vpack.c.bf16 %v3536_v8, %v3534_v38  ;;  %v6223_v8 = vld [vmem:[%s6825_s24 + $0x10] sm:$0xff] }
0x178e   :  { %3863 = vmatpush.bf16.xpose.msrb.mxu2 %v3849_v59 }
0x1791   :  { %4015 = vmatpush.bf16.msra.mxu3 %v3996_v3 }
0x1795   :  { %4016 = vmatpush.bf16.msra.mxu3 %v3995_v49 }
0x1796   :  { %3864 = vmatpush.bf16.xpose.msrb.mxu2 %v3846_v21  ;;  %v6227_v21 = vld [vmem:[%s6825_s24 + $0x30] sm:$0xff] }
0x1799   :  { %4017 = vmatpush.bf16.msra.mxu3 %v3994_v5 }
0x179d   :  { %4252 = vmatpush.bf16.msrb.mxu3 %v7283_v45  ;;  %5715 = vmatmul.msk.bf16.vlgmr.msrb.gmra.mxu2 %vm541_vm1, %v3825_v60 }
0x179e   :  { %4294 = vmatpush.bf16.msra.mxu2 %v7323_v57 }
0x17a1   :  { %4253 = vmatpush.bf16.msrb.mxu3 %v7298_v42 }
0x17a2   :  { %4295 = vmatpush.bf16.msra.mxu2 %v7337_v50  ;;  %v6222_v50 = vld [vmem:[%s6825_s24 + $0x8] sm:$0xff] }
0x17a6   :  { %4354 = vmatpush.bf16.msrb.mxu2 %v5915_v34 }
0x17aa   :  { %4355 = vmatpush.bf16.msrb.mxu2 %v5914_v44 }
0x17ad   :  { %5716 = vmatmul.msk.bf16.gmra.mxu2 %vm541_vm1, %v3826_v19 }
0x17bd   :  { %5717 = vmatmul.msk.bf16.gmra.mxu2 %vm541_vm1, %v3827_v46  ;;  %v6228_v46 = vld [vmem:[%s6825_s24 + $0x38] sm:$0xff]  ;;  %s7626_s24 = sld [smem:[%s7640_s0 + %s6268_s25]]  }
0x17cd   :  { %5718 = vmatmul.msk.bf16.gmra.mxu2 %vm541_vm1, %v3828_v36 }
0x17dd   :  { %5734 = vmatmul.msk.bf16.vlgmr.msra.gmra.mxu2 %vm229_vm0, %v6987_v13 }
0x1820   :  { %v3866_v14 = vpop.f32.mrf.mxu2 }
0x1821   :  { %v3886_v27 = vmul.f32 0.35355338, %v3866_v14 }
0x1823   :  { %v3894_v25 = vsel %vm2451_vm15, %v6221_v11, %v3886_v27  ;;  %vm7681_vm15 = vcmp.lt.f32.partialorder %v6884_v56, 0.0 }
0x1824   :  { %v3902_v45 = vsel %vm619_vm3, %v3894_v25, -inf }
0x1825   :  { %3903 = vmax.xlane.f32.xlu2 %v3902_v45 }
0x1828   :  { %v3868_v42 = vpop.f32.mrf.mxu2 }
0x1829   :  { %v3887_v57 = vmul.f32 0.35355338, %v3868_v42 }
0x182b   :  { %v3895_v34 = vsel %vm2452_vm12, %v6222_v50, %v3887_v57  ;;  %vm7682_vm12 = vcmask 1043456  }
0x182c   :  { %v3905_v44 = vsel %vm619_vm3, %v3895_v34, -inf }
0x182d   :  { %3906 = vmax.xlane.f32.xlu0 %v3905_v44 }
0x1830   :  { %v3871_v38 = vpop.f32.mrf.mxu2 }
0x1831   :  { %v3888_v53 = vmul.f32 0.35355338, %v3871_v38 }
0x1833   :  { %v3896_v17 = vsel %vm2453_vm2, %v6223_v8, %v3888_v53  ;;  %vm7683_vm2 = vmmov %vm7682_vm12 }
0x1834   :  { %v3908_v1 = vsel %vm619_vm3, %v3896_v17, -inf }
0x1835   :  { %3909 = vmax.xlane.f32.xlu1 %v3908_v1 }
0x1838   :  { %v3873_v54 = vpop.f32.mrf.mxu2 }
0x1839   :  { %v3889_v55 = vmul.f32 0.35355338, %v3873_v54 }
0x183b   :  { %v3897_v28 = vsel %vm2454_vm4, %v6224_v47, %v3889_v55  ;;  %vm7684_vm4 = vmmov %vm7683_vm2 }
0x183c   :  { %v3911_v18 = vsel %vm619_vm3, %v3897_v28, -inf }
0x183d   :  { %3912 = vmax.xlane.f32.xlu2 %v3911_v18 }
0x1840   :  { %v3876_v63 = vpop.f32.mrf.mxu2 }
0x1841   :  { %v3890_v6 = vmul.f32 0.35355338, %v3876_v63 }
0x1843   :  { %v3898_v37 = vsel %vm2455_vm5, %v6225_v9, %v3890_v6  ;;  %vm7685_vm5 = vmmov %vm7683_vm2 }
0x1844   :  { %v3914_v22 = vsel %vm619_vm3, %v3898_v37, -inf }
0x1845   :  { %3915 = vmax.xlane.f32.xlu0 %v3914_v22 }
0x1848   :  { %v3878_v59 = vpop.f32.mrf.mxu2 }
0x1849   :  { %v3891_v3 = vmul.f32 0.35355338, %v3878_v59 }
0x184b   :  { %v3899_v48 = vsel %vm2456_vm6, %v6226_v52, %v3891_v3 }
0x184c   :  { %v3917_v39 = vsel %vm619_vm3, %v3899_v48, -inf }
0x184d   :  { %3918 = vmax.xlane.f32.xlu1 %v3917_v39 }
0x1850   :  { %v3881_v49 = vpop.f32.mrf.mxu2 }
0x1851   :  { %v3892_v23 = vmul.f32 0.35355338, %v3881_v49 }
0x1853   :  { %v3900_v61 = vsel %vm2457_vm7, %v6227_v21, %v3892_v23 }
0x1854   :  { %v3920_v5 = vsel %vm619_vm3, %v3900_v61, -inf }
0x1855   :  { %3921 = vmax.xlane.f32.xlu2 %v3920_v5 }
0x1858   :  { %v3883_v60 = vpop.f32.mrf.mxu2 }
0x1859   :  { %v3893_v19 = vmul.f32 0.35355338, %v3883_v60 }
0x185b   :  { %v3901_v36 = vsel %vm7681_vm15, %v6228_v46, %v3893_v19 }
0x185c   :  { %v3923_v15 = vsel %vm619_vm3, %v3901_v36, -inf }
0x185d   :  { %3924 = vmax.xlane.f32.xlu0 %v3923_v15 }
0x1898   :  { %v3904_v14 = vpop.xlane.xlu2 %3903 }
0x1899   :  { %v3926_v27 = vsub.f32 %v3894_v25, %v3904_v14 }
0x189b   :  { %v3934_v11 = vmul.f32 1.442695, %v3926_v27 }
0x189d   :  { %6145 = vpow2.f32 %v3934_v11 }
0x18a0   :  { %v3907_v45 = vpop.xlane.xlu0 %3906 }
0x18a1   :  { %v3927_v42 = vsub.f32 %v3895_v34, %v3907_v45 }
0x18a3   :  { %v6146_v0 = vpop.eup %6145  ;;  %v3936_v57 = vmul.f32 1.442695, %v3927_v42 }
0x18a4   :  { %v3950_v50 = vsel %vm619_vm3, %v6146_v0, 0.0 }
0x18a5   :  { %6147 = vpow2.f32 %v3936_v57  ;;  %3951 = vadd.xlane.f32.xlu1 %v3950_v50 }
0x18a8   :  { %v3910_v44 = vpop.xlane.xlu1 %3909 }
0x18a9   :  { %v3928_v38 = vsub.f32 %v3896_v17, %v3910_v44 }
0x18ab   :  { %v6148_v53 = vpop.eup %6147  ;;  %v3938_v56 = vmul.f32 1.442695, %v3928_v38 }
0x18ac   :  { %v3953_v8 = vsel %vm619_vm3, %v6148_v53, 0.0 }
0x18ad   :  { %6149 = vpow2.f32 %v3938_v56  ;;  %3954 = vadd.xlane.f32.xlu2 %v3953_v8 }
0x18b0   :  { %v3913_v1 = vpop.xlane.xlu2 %3912 }
0x18b1   :  { %v3929_v25 = vsub.f32 %v3897_v28, %v3913_v1 }
0x18b3   :  { %v6150_v54 = vpop.eup %6149  ;;  %v3940_v55 = vmul.f32 1.442695, %v3929_v25 }
0x18b4   :  { %v3956_v34 = vsel %vm619_vm3, %v6150_v54, 0.0 }
0x18b5   :  { %6151 = vpow2.f32 %v3940_v55  ;;  %3957 = vadd.xlane.f32.xlu0 %v3956_v34 }
0x18b8   :  { %v3916_v47 = vpop.xlane.xlu0 %3915 }
0x18b9   :  { %v3930_v18 = vsub.f32 %v3898_v37, %v3916_v47 }
0x18bb   :  { %v6152_v63 = vpop.eup %6151  ;;  %v3942_v6 = vmul.f32 1.442695, %v3930_v18 }
0x18bc   :  { %v3959_v17 = vsel %vm619_vm3, %v6152_v63, 0.0 }
0x18bd   :  { %6153 = vpow2.f32 %v3942_v6  ;;  %3960 = vadd.xlane.f32.xlu1 %v3959_v17 }
0x18c0   :  { %v3919_v9 = vpop.xlane.xlu1 %3918 }
0x18c1   :  { %v3931_v22 = vsub.f32 %v3899_v48, %v3919_v9 }
0x18c3   :  { %v6154_v59 = vpop.eup %6153  ;;  %v3944_v3 = vmul.f32 1.442695, %v3931_v22  ;;  %v4297_v22 = vpop.f32.mrf.mxu2 }
0x18c4   :  { %v3962_v28 = vsel %vm619_vm3, %v6154_v59, 0.0 }
0x18c5   :  { %6155 = vpow2.f32 %v3944_v3  ;;  %3963 = vadd.xlane.f32.xlu2 %v3962_v28 }
0x18c8   :  { %v3922_v52 = vpop.xlane.xlu2 %3921 }
0x18c9   :  { %v3932_v39 = vsub.f32 %v3900_v61, %v3922_v52  ;;  %v5600_v52 = vld [vmem:[%s6939_s30 + $0x10] sm:$0xf] }
0x18cb   :  { %v6156_v49 = vpop.eup %6155  ;;  %v3946_v23 = vmul.f32 1.442695, %v3932_v39  ;;  %v4044_v39 = vsel %vm7682_vm12, %v5600_v52, 0 }
0x18cc   :  { %v3965_v37 = vsel %vm619_vm3, %v6156_v49, 0.0  ;;  %4053 = vmatpush.bf16.msra.mxu0 %v4044_v39 }
0x18cd   :  { %6157 = vpow2.f32 %v3946_v23  ;;  %3966 = vadd.xlane.f32.xlu0 %v3965_v37 }
0x18d0   :  { %v3925_v21 = vpop.xlane.xlu0 %3924 }
0x18d1   :  { %v3933_v5 = vsub.f32 %v3901_v36, %v3925_v21  ;;  %v5602_v21 = vld [vmem:[%s6939_s30 + $0x18] sm:$0xf] }
0x18d3   :  { %v6158_v60 = vpop.eup %6157  ;;  %v3948_v19 = vmul.f32 1.442695, %v3933_v5 }
0x18d4   :  { %v3968_v48 = vsel %vm619_vm3, %v6158_v60, 0.0 }
0x18d5   :  { %6159 = vpow2.f32 %v3948_v19  ;;  %3969 = vadd.xlane.f32.xlu1 %v3968_v48  ;;  %v5603_v48 = vld [vmem:[%s6939_s30 + $0x1c] sm:$0xf] }
0x18db   :  { %v6160_v46 = vpop.eup %6159 }
0x18dc   :  { %v3971_v15 = vsel %vm619_vm3, %v6160_v46, 0.0 }
0x18dd   :  { %3972 = vadd.xlane.f32.xlu2 %v3971_v15 }
0x1918   :  { %v3952_v14 = vpop.xlane.xlu1 %3951 }
0x1919   :  { %6161 = vrcp.f32 %v3952_v14 }
0x191f   :  { %v6162_v27 = vpop.eup %6161 }
0x1920   :  { %v3955_v61 = vpop.xlane.xlu2 %3954  ;;  %v3982_v45 = vmul.f32 %v6162_v27, %v6146_v0 }
0x1921   :  { %6163 = vrcp.f32 %v3955_v61 }
0x1927   :  { %v6164_v11 = vpop.eup %6163 }
0x1928   :  { %v3983_v42 = vmul.f32 %v6164_v11, %v6148_v53  ;;  %v3958_v36 = vpop.xlane.xlu0 %3957 }
0x1929   :  { %6165 = vrcp.f32 %v3958_v36 }
0x192a   :  { %v3990_v57 = vpack.c.bf16 %v3983_v42, %v3982_v45 }
0x192c   :  { %5719 = vmatmul.msk.bf16.vlgmr.msra.gmra.mxu3 %vm619_vm3, %v3990_v57 }
0x192d   :  { %4312 = vmatpush.bf16.msra.mxu3 %v7326_v33 }
0x192f   :  { %v6166_v44 = vpop.eup %6165 }
0x1930   :  { %v3961_v50 = vpop.xlane.xlu1 %3960  ;;  %v3984_v56 = vmul.f32 %v6166_v44, %v6150_v54 }
0x1931   :  { %6167 = vrcp.f32 %v3961_v50  ;;  %4313 = vmatpush.bf16.msra.mxu3 %v7341_v31 }
0x1937   :  { %v6168_v38 = vpop.eup %6167 }
0x1938   :  { %v3985_v8 = vmul.f32 %v6168_v38, %v6152_v63  ;;  %v3964_v25 = vpop.xlane.xlu2 %3963 }
0x1939   :  { %6169 = vrcp.f32 %v3964_v25 }
0x193a   :  { %v3991_v1 = vpack.c.bf16 %v3985_v8, %v3984_v56 }
0x193c   :  { %5720 = vmatmul.msk.bf16.gmra.mxu3 %vm619_vm3, %v3991_v1 }
0x193f   :  { %v6170_v53 = vpop.eup %6169 }
0x1940   :  { %v3967_v0 = vpop.xlane.xlu0 %3966  ;;  %v3986_v34 = vmul.f32 %v6170_v53, %v6154_v59  ;;  %v4299_v59 = vpop.f32.mrf.mxu2 }
0x1941   :  { %6171 = vrcp.f32 %v3967_v0  ;;  %v4369_v3 = vpack.c.bf16 %v4299_v59, %v4297_v22 }
0x1943   :  { %v4392_v28 = vsel %vm541_vm1, %v4369_v3, 0 }
0x1947   :  { %v6172_v55 = vpop.eup %6171 }
0x1948   :  { %v3987_v33 = vmul.f32 %v6172_v55, %v6156_v49  ;;  %v3970_v18 = vpop.xlane.xlu1 %3969  ;;  %v5601_v49 = vld [vmem:[%s6939_s30 + $0x14] sm:$0xf]  ;;  %s6269_s30 = smov 31  }
0x1949   :  { %6173 = vrcp.f32 %v3970_v18  ;;  %v4070_v23 = vsel %vm7683_vm2, %v5601_v49, 0 }
0x194a   :  { %v3992_v47 = vpack.c.bf16 %v3987_v33, %v3986_v34  ;;  %4079 = vmatpush.bf16.msrb.mxu1 %v4070_v23  ;;  %4607 = vmatpush.bf16.msra.mxu2 %v4070_v23 }
0x194c   :  { %5721 = vmatmul.msk.bf16.gmra.mxu3 %vm619_vm3, %v3992_v47 }
0x194f   :  { %v6174_v54 = vpop.eup %6173 }
0x1950   :  { %v3973_v31 = vpop.xlane.xlu2 %3972  ;;  %v3988_v6 = vmul.f32 %v6174_v54, %v6158_v60  ;;  %v7429_v60 = vsel %vm7684_vm4, %v5602_v21, 0 }
0x1951   :  { %6175 = vrcp.f32 %v3973_v31  ;;  %4102 = vmatpush.bf16.msrb.mxu0 %v7429_v60 }
0x1957   :  { %v6176_v63 = vpop.eup %6175 }
0x1958   :  { %v3989_v17 = vmul.f32 %v6176_v63, %v6160_v46  ;;  %v7435_v46 = vsel %vm7685_vm5, %v5603_v48, 0 }
0x1959   :  { %4125 = vmatpush.bf16.msra.mxu1 %v7435_v46 }
0x195a   :  { %v3993_v9 = vpack.c.bf16 %v3989_v17, %v3988_v6 }
0x195c   :  { %5722 = vmatmul.msk.bf16.gmra.mxu3 %vm619_vm3, %v3993_v9 }
0x196c   :  { %5731 = vmatmul.msk.bf16.vlgmr.msrb.gmra.mxu3 %vm229_vm0, %v6987_v13 }
0x196d   :  { %4398 = vmatpush.bf16.xpose.msrb.mxu3 %v4392_v28 }
0x19af   :  { %v4019_v37 = vpop.f32.mrf.mxu3 }
0x19b7   :  { %v4021_v5 = vpop.f32.mrf.mxu3 }
0x19b8   :  { %v4039_v19 = vpack.c.bf16 %v4021_v5, %v4019_v37 }
0x19ba   :  { %5723 = vmatmul.msk.bf16.vlgmr.msra.gmra.mxu0 %vm541_vm1, %v4039_v19 }
0x19bb   :  { %4196 = vmatpush.bf16.msra.mxu0 %v7254_v35 }
0x19bf   :  { %v4024_v15 = vpop.f32.mrf.mxu3  ;;  %4197 = vmatpush.bf16.msra.mxu0 %v7264_v10 }
0x19c7   :  { %v4026_v14 = vpop.f32.mrf.mxu3 }
0x19c8   :  { %v4065_v61 = vpack.c.bf16 %v4026_v14, %v4024_v15 }
0x19ca   :  { %5724 = vmatmul.msk.bf16.vlgmr.msrb.gmra.mxu1 %vm541_vm1, %v4065_v61 }
0x19cb   :  { %4210 = vmatpush.bf16.msrb.mxu1 %v7257_v30 }
0x19cf   :  { %v4029_v27 = vpop.f32.mrf.mxu3  ;;  %4211 = vmatpush.bf16.msrb.mxu1 %v7270_v40  ;;  %v7470_v40 = vld [vmem:[%s6949_s7 + $0x1] ss:$0 sm:$0xff] }
0x19d7   :  { %v4031_v11 = vpop.f32.mrf.mxu3 }
0x19d8   :  { %v4088_v45 = vpack.c.bf16 %v4031_v11, %v4029_v27 }
0x19da   :  { %5725 = vmatmul.msk.bf16.vlgmr.msrb.gmra.mxu0 %vm541_vm1, %v4088_v45 }
0x19db   :  { %4224 = vmatpush.bf16.msrb.mxu0 %v7235_v20 }
0x19df   :  { %v4034_v35 = vpop.f32.mrf.mxu3  ;;  %4225 = vmatpush.bf16.msrb.mxu0 %v7267_v7 }
0x19e7   :  { %v4036_v42 = vpop.f32.mrf.mxu3 }
0x19e8   :  { %v4111_v10 = vpack.c.bf16 %v4036_v42, %v4034_v35 }
0x19ea   :  { %5726 = vmatmul.msk.bf16.vlgmr.msra.gmra.mxu1 %vm541_vm1, %v4111_v10  ;;  %5727 = vmatmul.msk.bf16.vlgmr.msra.gmra.mxu0 %vm229_vm0, %v6987_v13 }
0x19eb   :  { %4238 = vmatpush.bf16.msra.mxu1 %v7280_v43  ;;  %4266 = vmatpush.bf16.msra.mxu0 %v7251_v2 }
0x19ef   :  { %4239 = vmatpush.bf16.msra.mxu1 %v7294_v29  ;;  %4267 = vmatpush.bf16.msra.mxu0 %v7273_v41  ;;  %v4255_v17 = vpop.f32.mrf.mxu3 }
0x19f7   :  { %v4257_v28 = vpop.f32.mrf.mxu3 }
0x19f8   :  { %v4366_v52 = vpack.c.bf16 %v4257_v28, %v4255_v17  ;;  %v6230_v28 = vld [vmem:[%s7094_s19 + $0x8] sm:$0xff] }
0x19fa   :  { %5728 = vmatmul.msk.bf16.vlgmr.msrb.gmra.mxu1 %vm229_vm0, %v6987_v13  ;;  %5729 = vmatmul.msk.bf16.vlgmr.msrb.gmra.mxu0 %vm229_vm0, %v6987_v13 }
0x19fb   :  { %4280 = vmatpush.bf16.msrb.mxu1 %v7287_v4  ;;  %4326 = vmatpush.bf16.msrb.mxu0 %v7290_v32 }
0x19ff   :  { %4281 = vmatpush.bf16.msrb.mxu1 %v7303_v62  ;;  %4327 = vmatpush.bf16.msrb.mxu0 %v7306_v26 }
0x1a0a   :  { %5730 = vmatmul.msk.bf16.vlgmr.msra.gmra.mxu1 %vm229_vm0, %v6987_v13  ;;  %5732 = vmatmul.msk.bf16.vlgmr.msra.gmra.mxu0 %vm229_vm0, %v6987_v13 }
0x1a0b   :  { %4340 = vmatpush.bf16.msra.mxu1 %v7329_v58 }
0x1a0f   :  { %4341 = vmatpush.bf16.msra.mxu1 %v7345_v12 }
0x1a1a   :  { %5733 = vmatmul.msk.bf16.vlgmr.msrb.gmra.mxu1 %vm229_vm0, %v6987_v13 }
0x1a1b   :  { %4587 = vmatpush.bf16.msrb.mxu1 %v4044_v39  ;;  %v4383_v39 = vsel %vm541_vm1, %v4366_v52, 0  ;;  %v7688_v52 = vld [vmem:[#allocation5_spill] sm:$0xff] }
0x1a1c   :  { %vm7689_vm13 = vcmp.lt.f32.partialorder %v7688_v52, 0.0 }
0x1a37   :  { %v4055_v20 = vpop.f32.mrf.mxu0 }
0x1a38   :  { %v4063_v4 = vadd.f32 %v7470_v40, %v4055_v20 }
0x1a3f   :  { %v4057_v2 = vpop.f32.mrf.mxu0 }
0x1a40   :  { %v4064_v12 = vadd.f32 %v7470_v40, %v4057_v2 }
0x1a47   :  { %v4081_v30 = vpop.f32.mrf.mxu1 }
0x1a48   :  { %v4086_v32 = vadd.f32 %v4081_v30, %v4063_v4 }
0x1a4f   :  { %v4083_v41 = vpop.f32.mrf.mxu1 }
0x1a50   :  { %v4087_v57 = vadd.f32 %v4083_v41, %v4064_v12 }
0x1a57   :  { %v4104_v7 = vpop.f32.mrf.mxu0 }
0x1a58   :  { %v4109_v29 = vadd.f32 %v4104_v7, %v4086_v32 }
0x1a5f   :  { %v4106_v43 = vpop.f32.mrf.mxu0 }
0x1a60   :  { %v4110_v50 = vadd.f32 %v4106_v43, %v4087_v57 }
0x1a67   :  { %v4127_v62 = vpop.f32.mrf.mxu1  ;;  %v7473_v26 = vpop.f32.mrf.mxu0 }
0x1a68   :  { %v4132_v58 = vadd.f32 %v4127_v62, %v4109_v29 }
0x1a6a   :  { %v4134_v13 = vadd.f32 %v4132_v58, %v7316_v24 }
0x1a6c   :  { %v4136_v36 = vsel %vm229_vm0, %v4134_v13, 0.0 }
0x1a6d   :  { %4137 = vadd.xlane.f32.xlu0 %v4136_v36 }
0x1a6f   :  { %v4129_v44 = vpop.f32.mrf.mxu1  ;;  %v7478_v38 = vpop.f32.mrf.mxu0 }
0x1a70   :  { %v4133_v56 = vadd.f32 %v4129_v44, %v4110_v50  ;;  %v4362_v8 = vpack.c.bf16 %v7478_v38, %v7473_v26  ;;  %v7515_v44 = vld [vmem:[%s7036_s11 + $0x1] ss:$0 sm:$0xff]  ;;  %s4938_s11 = sld [smem:[%s7640_s0 + %s6269_s30]]  }
0x1a72   :  { %v4135_v1 = vadd.f32 %v4133_v56, %v7318_v16 }
0x1a74   :  { %v4139_v25 = vsel %vm229_vm0, %v4135_v1, 0.0 }
0x1a75   :  { %4140 = vadd.xlane.f32.xlu1 %v4139_v25 }
0x1a77   :  { %v7484_v0 = vpop.f32.mrf.mxu1  ;;  %v7486_v24 = vpop.f32.mrf.mxu0 }
0x1a7f   :  { %v7488_v53 = vpop.f32.mrf.mxu1  ;;  %v7490_v55 = vpop.f32.mrf.mxu0 }
0x1a80   :  { %v4363_v34 = vpack.c.bf16 %v7488_v53, %v7484_v0  ;;  %v4364_v33 = vpack.c.bf16 %v7490_v55, %v7486_v24 }
0x1a87   :  { %v7496_v47 = vpop.f32.mrf.mxu1  ;;  %v4269_v54 = vpop.f32.mrf.mxu0 }
0x1a8f   :  { %v7498_v16 = vpop.f32.mrf.mxu1  ;;  %v4271_v22 = vpop.f32.mrf.mxu0 }
0x1a90   :  { %v4365_v18 = vpack.c.bf16 %v7498_v16, %v7496_v47  ;;  %v4367_v59 = vpack.c.bf16 %v4271_v22, %v4269_v54  ;;  %v6229_v47 = vld [vmem:[%s7094_s19] sm:$0xff]  ;;  %v7686_v16 = vld [vmem:[#allocation4_spill] sm:$0xff] }
0x1a91   :  { %vm7687_vm11 = vcmp.lt.f32.partialorder %v7686_v16, 0.0 }
0x1a92   :  { %v4386_v3 = vsel %vm541_vm1, %v4367_v59, 0 }
0x1a97   :  { %v4283_v31 = vpop.f32.mrf.mxu1 }
0x1a9f   :  { %v4285_v63 = vpop.f32.mrf.mxu1 }
0x1aa0   :  { %v4368_v6 = vpack.c.bf16 %v4285_v63, %v4283_v31 }
0x1aa2   :  { %v4389_v9 = vsel %vm541_vm1, %v4368_v6, 0 }
0x1aa3   :  { %4399 = vmatpush.bf16.xpose.msrb.mxu3 %v4389_v9 }
0x1aab   :  { %4400 = vmatpush.bf16.xpose.msrb.mxu3 %v4386_v3 }
0x1ab3   :  { %4401 = vmatpush.bf16.xpose.msrb.mxu3 %v4383_v39 }
0x1ae0   :  { %v4138_v49 = vpop.xlane.xlu0 %4137 }
0x1ae1   :  { %v4142_v23 = vmul.f32 %v4138_v49, %v6462_v51 }
0x1ae3   :  { %v4144_v37 = vsub.f32 %v4134_v13, %v4142_v23  ;;  %v7512_v13 = vld [vmem:[%s7030_s13 + $0x1] ss:$0 sm:$0xff] }
0x1ae5   :  { %v4146_v21 = vmul.f32 %v4144_v37, %v4144_v37 }
0x1ae7   :  { %v4148_v5 = vsel %vm229_vm0, %v4146_v21, 0.0  ;;  %v6231_v21 = vld [vmem:[%s7094_s19 + $0x10] sm:$0xff] }
0x1ae8   :  { %4149 = vadd.xlane.f32.xlu2 %v4148_v5  ;;  %v4141_v19 = vpop.xlane.xlu1 %4140  ;;  %v7690_v5 = vld [vmem:[#allocation6_spill] sm:$0xff] }
0x1ae9   :  { %v4143_v48 = vmul.f32 %v4141_v19, %v6462_v51  ;;  %vm7691_vm15 = vcmp.lt.f32.partialorder %v7690_v5, 0.0 }
0x1aeb   :  { %v4145_v15 = vsub.f32 %v4135_v1, %v4143_v48 }
0x1aed   :  { %v4147_v14 = vmul.f32 %v4145_v15, %v4145_v15 }
0x1aef   :  { %v4151_v61 = vsel %vm229_vm0, %v4147_v14, 0.0 }
0x1af0   :  { %4152 = vadd.xlane.f32.xlu0 %v4151_v61  ;;  %v6232_v61 = vld [vmem:[%s7094_s19 + $0x18] sm:$0xff] }
0x1b5b   :  { %v4150_v27 = vpop.xlane.xlu2 %4149 }
0x1b5c   :  { %v4154_v11 = vmul.f32 %v4150_v27, %v6462_v51  ;;  %v7692_v27 = vld [vmem:[#allocation7_spill] sm:$0xff] }
0x1b5d   :  { %vm7693_vm12 = vcmp.lt.f32.partialorder %v7692_v27, 0.0 }
0x1b5e   :  { %v4156_v45 = vadd.f32 1e-05, %v4154_v11 }
0x1b60   :  { %6177 = vrsqrt.f32 %v4156_v45  ;;  %vm4164_vm7 = vweird.f32 %v4156_v45 }
0x1b63   :  { %v4153_v35 = vpop.xlane.xlu0 %4152 }
0x1b64   :  { %v4155_v42 = vmul.f32 %v4153_v35, %v6462_v51 }
0x1b66   :  { %v6178_v10 = vpop.eup %6177  ;;  %v4157_v20 = vadd.f32 1e-05, %v4155_v42 }
0x1b67   :  { %v4159_v2 = vmul.f32 %v6178_v10, %v4156_v45  ;;  %vm4165_vm6 = vweird.f32 %v6178_v10 }
0x1b68   :  { %6179 = vrsqrt.f32 %v4157_v20  ;;  %vm4166_vm8 = vmor %vm4164_vm7, %vm4165_vm6  ;;  %vm4174_vm9 = vweird.f32 %v4157_v20 }
0x1b69   :  { %v4160_v30 = vmul.f32 %v6178_v10, %v4159_v2 }
0x1b6b   :  { %v4161_v7 = vmul.f32 0.5, %v4160_v30 }
0x1b6d   :  { %v4162_v41 = vsub.f32 1.5, %v4161_v7 }
0x1b6e   :  { %v6180_v43 = vpop.eup %6179 }
0x1b6f   :  { %v4163_v4 = vmul.f32 %v6178_v10, %v4162_v41  ;;  %v4169_v32 = vmul.f32 %v6180_v43, %v4157_v20  ;;  %vm4175_vm14 = vweird.f32 %v6180_v43  ;;  %v7694_v20 = vld [vmem:[#allocation8_spill] sm:$0xff] }
0x1b70   :  { %vm4176_vm10 = vmor %vm4174_vm9, %vm4175_vm14  ;;  %vm7695_vm2 = vcmp.lt.f32.partialorder %v7694_v20, 0.0 }
0x1b71   :  { %v4170_v29 = vmul.f32 %v6180_v43, %v4169_v32  ;;  %v4167_v62 = vsel %vm4166_vm8, %v6178_v10, %v4163_v4  ;;  %v6233_v10 = vld [vmem:[%s7094_s19 + $0x20] sm:$0xff]  ;;  %v7696_v4 = vld [vmem:[#allocation9_spill] sm:$0xff] }
0x1b72   :  { %v4178_v57 = vmul.f32 %v4167_v62, %v4144_v37  ;;  %vm7697_vm4 = vcmp.lt.f32.partialorder %v7696_v4, 0.0 }
0x1b73   :  { %v4171_v58 = vmul.f32 0.5, %v4170_v29 }
0x1b74   :  { %v4183_v56 = vmul.f32 %v7512_v13, %v4178_v57  ;;  %v7698_v57 = vld [vmem:[#allocation10_spill] sm:$0xff] }
0x1b75   :  { %v4172_v12 = vsub.f32 1.5, %v4171_v58  ;;  %vm7699_vm5 = vcmp.lt.f32.partialorder %v7698_v57, 0.0 }
0x1b76   :  { %v4188_v31 = vadd.f32 %v7515_v44, %v4183_v56 }
0x1b77   :  { %v4173_v36 = vmul.f32 %v6180_v43, %v4172_v12  ;;  %v6235_v12 = vld [vmem:[%s7094_s19 + $0x30] sm:$0xff] }
0x1b79   :  { %v4177_v50 = vsel %vm4176_vm10, %v6180_v43, %v4173_v36  ;;  %v6234_v43 = vld [vmem:[%s7094_s19 + $0x28] sm:$0xff] }
0x1b7a   :  { %v4179_v1 = vmul.f32 %v4177_v50, %v4145_v15 }
0x1b7c   :  { %v4184_v25 = vmul.f32 %v7512_v13, %v4179_v1 }
0x1b7e   :  { %v4189_v54 = vadd.f32 %v7515_v44, %v4184_v25  ;;  %v6236_v25 = vld [vmem:[%s7094_s19 + $0x38] sm:$0xff]  ;;  %s6270_s19 = smov 33  }
0x1b7f   :  { %s4940_s23 = sld [smem:[%s7640_s0 + %s6270_s19]]  }
0x1b80   :  { %v4302_v63 = vpack.c.bf16 %v4189_v54, %v4188_v31  ;;  %v7700_v31 = vld [vmem:[#allocation11_spill] sm:$0xff] }
0x1b81   :  { %vm7701_vm6 = vcmp.lt.f32.partialorder %v7700_v31, 0.0 }
0x1b82   :  { %5735 = vmatmul.msk.bf16.vlgmr.msra.gmra.mxu3 %vm229_vm0, %v4302_v63  ;;  %5736 = vmatmul.msk.bf16.vlgmr.msrb.gmra.mxu0 %vm229_vm0, %v4302_v63 }
0x1b83   :  { %5737 = vmatmul.msk.bf16.vlgmr.msra.gmra.mxu1 %vm229_vm0, %v4302_v63  ;;  %5738 = vmatmul.msk.bf16.vlgmr.msrb.gmra.mxu2 %vm229_vm0, %v4302_v63 }
0x1b84   :  { %4627 = vmatpush.bf16.msra.mxu1 %v7429_v60  ;;  %4647 = vmatpush.bf16.msrb.mxu2 %v7435_v46 }
0x1b92   :  { %5739 = vmatmul.msk.bf16.vlgmr.msrb.gmra.mxu3 %vm541_vm1, %v4362_v8 }
0x1ba2   :  { %5740 = vmatmul.msk.bf16.gmra.mxu3 %vm541_vm1, %v4363_v34 }
0x1bb2   :  { %5741 = vmatmul.msk.bf16.gmra.mxu3 %vm541_vm1, %v4364_v33 }
0x1bc2   :  { %5742 = vmatmul.msk.bf16.gmra.mxu3 %vm541_vm1, %v4365_v18 }
0x1bff   :  { %v4329_v38 = vpop.f32.mrf.mxu0 }
0x1c00   :  { %v4343_v46 = vpop.f32.mrf.mxu1 }
0x1c05   :  { %v4315_v60 = vpop.f32.mrf.mxu3 }
0x1c06   :  { %v4357_v26 = vpop.f32.mrf.mxu2 }
0x1c07   :  { %v4331_v24 = vpop.f32.mrf.mxu0 }
0x1c08   :  { %v4345_v53 = vpop.f32.mrf.mxu1  ;;  %v4532_v17 = vpack.c.bf16 %v4331_v24, %v4329_v38 }
0x1c09   :  { %v4533_v34 = vpack.c.bf16 %v4345_v53, %v4343_v46 }
0x1c0d   :  { %v4317_v8 = vpop.f32.mrf.mxu3 }
0x1c0e   :  { %v4359_v6 = vpop.f32.mrf.mxu2  ;;  %v4531_v22 = vpack.c.bf16 %v4317_v8, %v4315_v60 }
0x1c0f   :  { %v4534_v0 = vpack.c.bf16 %v4359_v6, %v4357_v26 }
0x1c11   :  { %4551 = vmatpush.bf16.msra.mxu0 %v4534_v0 }
0x1c15   :  { %4552 = vmatpush.bf16.msra.mxu0 %v4533_v34  ;;  %v4403_v55 = vpop.f32.mrf.mxu3 }
0x1c16   :  { %v4423_v33 = vmul.f32 0.35355338, %v4403_v55 }
0x1c18   :  { %v4431_v18 = vsel %vm7687_vm11, %v6229_v47, %v4423_v33 }
0x1c19   :  { %4553 = vmatpush.bf16.msra.mxu0 %v4532_v17  ;;  %v4439_v9 = vsel %vm619_vm3, %v4431_v18, -inf }
0x1c1a   :  { %4440 = vmax.xlane.f32.xlu1 %v4439_v9 }
0x1c1d   :  { %4554 = vmatpush.bf16.msra.mxu0 %v4531_v22  ;;  %v4405_v59 = vpop.f32.mrf.mxu3 }
0x1c1e   :  { %v4424_v3 = vmul.f32 0.35355338, %v4405_v59 }
0x1c20   :  { %v4432_v39 = vsel %vm7689_vm13, %v6230_v28, %v4424_v3 }
0x1c21   :  { %v4442_v49 = vsel %vm619_vm3, %v4432_v39, -inf }
0x1c22   :  { %4443 = vmax.xlane.f32.xlu2 %v4442_v49 }
0x1c25   :  { %v4408_v23 = vpop.f32.mrf.mxu3 }
0x1c26   :  { %v4425_v37 = vmul.f32 0.35355338, %v4408_v23 }
0x1c28   :  { %v4433_v19 = vsel %vm7691_vm15, %v6231_v21, %v4425_v37 }
0x1c29   :  { %v4445_v48 = vsel %vm619_vm3, %v4433_v19, -inf }
0x1c2a   :  { %4446 = vmax.xlane.f32.xlu0 %v4445_v48 }
0x1c2d   :  { %v4410_v15 = vpop.f32.mrf.mxu3 }
0x1c2e   :  { %v4426_v14 = vmul.f32 0.35355338, %v4410_v15 }
0x1c30   :  { %v4434_v11 = vsel %vm7693_vm12, %v6232_v61, %v4426_v14 }
0x1c31   :  { %v4448_v45 = vsel %vm619_vm3, %v4434_v11, -inf }
0x1c32   :  { %4449 = vmax.xlane.f32.xlu1 %v4448_v45 }
0x1c35   :  { %v4413_v35 = vpop.f32.mrf.mxu3 }
0x1c36   :  { %v4427_v42 = vmul.f32 0.35355338, %v4413_v35 }
0x1c38   :  { %v4435_v2 = vsel %vm7695_vm2, %v6233_v10, %v4427_v42 }
0x1c39   :  { %v4451_v30 = vsel %vm619_vm3, %v4435_v2, -inf }
0x1c3a   :  { %4452 = vmax.xlane.f32.xlu2 %v4451_v30 }
0x1c3d   :  { %v4415_v7 = vpop.f32.mrf.mxu3 }
0x1c3e   :  { %v4428_v41 = vmul.f32 0.35355338, %v4415_v7 }
0x1c40   :  { %v4436_v32 = vsel %vm7697_vm4, %v6234_v43, %v4428_v41 }
0x1c41   :  { %v4454_v29 = vsel %vm619_vm3, %v4436_v32, -inf }
0x1c42   :  { %4455 = vmax.xlane.f32.xlu0 %v4454_v29 }
0x1c45   :  { %v4418_v62 = vpop.f32.mrf.mxu3 }
0x1c46   :  { %v4429_v58 = vmul.f32 0.35355338, %v4418_v62 }
0x1c48   :  { %v4437_v36 = vsel %vm7699_vm5, %v6235_v12, %v4429_v58 }
0x1c49   :  { %v4457_v50 = vsel %vm619_vm3, %v4437_v36, -inf }
0x1c4a   :  { %4458 = vmax.xlane.f32.xlu1 %v4457_v50 }
0x1c4d   :  { %v4420_v56 = vpop.f32.mrf.mxu3 }
0x1c4e   :  { %v4430_v1 = vmul.f32 0.35355338, %v4420_v56 }
0x1c50   :  { %v4438_v54 = vsel %vm7701_vm6, %v6236_v25, %v4430_v1 }
0x1c51   :  { %v4460_v63 = vsel %vm619_vm3, %v4438_v54, -inf }
0x1c52   :  { %4461 = vmax.xlane.f32.xlu2 %v4460_v63 }
0x1c8d   :  { %v4441_v60 = vpop.xlane.xlu1 %4440 }
0x1c8e   :  { %v4463_v46 = vsub.f32 %v4431_v18, %v4441_v60 }
0x1c90   :  { %v4471_v26 = vmul.f32 1.442695, %v4463_v46 }
0x1c92   :  { %6181 = vpow2.f32 %v4471_v26 }
0x1c95   :  { %v4444_v38 = vpop.xlane.xlu2 %4443 }
0x1c96   :  { %v4464_v8 = vsub.f32 %v4432_v39, %v4444_v38 }
0x1c98   :  { %v6182_v6 = vpop.eup %6181  ;;  %v4473_v0 = vmul.f32 1.442695, %v4464_v8 }
0x1c99   :  { %v4487_v53 = vsel %vm619_vm3, %v6182_v6, 0.0 }
0x1c9a   :  { %6183 = vpow2.f32 %v4473_v0  ;;  %4488 = vadd.xlane.f32.xlu0 %v4487_v53 }
0x1c9d   :  { %v4447_v34 = vpop.xlane.xlu0 %4446 }
0x1c9e   :  { %v4465_v24 = vsub.f32 %v4433_v19, %v4447_v34 }
0x1ca0   :  { %v6184_v55 = vpop.eup %6183  ;;  %v4475_v33 = vmul.f32 1.442695, %v4465_v24 }
0x1ca1   :  { %v4490_v17 = vsel %vm619_vm3, %v6184_v55, 0.0 }
0x1ca2   :  { %6185 = vpow2.f32 %v4475_v33  ;;  %4491 = vadd.xlane.f32.xlu1 %v4490_v17 }
0x1ca5   :  { %v4450_v47 = vpop.xlane.xlu1 %4449 }
0x1ca6   :  { %v4466_v16 = vsub.f32 %v4434_v11, %v4450_v47 }
0x1ca8   :  { %v6186_v18 = vpop.eup %6185  ;;  %v4477_v9 = vmul.f32 1.442695, %v4466_v16 }
0x1ca9   :  { %v4493_v22 = vsel %vm619_vm3, %v6186_v18, 0.0 }
0x1caa   :  { %6187 = vpow2.f32 %v4477_v9  ;;  %4494 = vadd.xlane.f32.xlu2 %v4493_v22 }
0x1cad   :  { %v4453_v59 = vpop.xlane.xlu2 %4452 }
0x1cae   :  { %v4467_v3 = vsub.f32 %v4435_v2, %v4453_v59 }
0x1cb0   :  { %v6188_v28 = vpop.eup %6187  ;;  %v4479_v52 = vmul.f32 1.442695, %v4467_v3 }
0x1cb1   :  { %v4496_v39 = vsel %vm619_vm3, %v6188_v28, 0.0 }
0x1cb2   :  { %6189 = vpow2.f32 %v4479_v52  ;;  %4497 = vadd.xlane.f32.xlu0 %v4496_v39 }
0x1cb5   :  { %v4456_v49 = vpop.xlane.xlu0 %4455 }
0x1cb6   :  { %v4468_v23 = vsub.f32 %v4436_v32, %v4456_v49 }
0x1cb8   :  { %v6190_v37 = vpop.eup %6189  ;;  %v4481_v21 = vmul.f32 1.442695, %v4468_v23 }
0x1cb9   :  { %v4499_v5 = vsel %vm619_vm3, %v6190_v37, 0.0 }
0x1cba   :  { %6191 = vpow2.f32 %v4481_v21  ;;  %4500 = vadd.xlane.f32.xlu1 %v4499_v5 }
0x1cbd   :  { %v4459_v19 = vpop.xlane.xlu1 %4458 }
0x1cbe   :  { %v4469_v48 = vsub.f32 %v4437_v36, %v4459_v19 }
0x1cc0   :  { %v6192_v15 = vpop.eup %6191  ;;  %v4483_v14 = vmul.f32 1.442695, %v4469_v48 }
0x1cc1   :  { %v4502_v61 = vsel %vm619_vm3, %v6192_v15, 0.0 }
0x1cc2   :  { %6193 = vpow2.f32 %v4483_v14  ;;  %4503 = vadd.xlane.f32.xlu2 %v4502_v61  ;;  %v7702_v14 = vld [vmem:[#allocation2_spill] sm:$0xff] }
0x1cc5   :  { %v4462_v27 = vpop.xlane.xlu2 %4461 }
0x1cc6   :  { %v4470_v11 = vsub.f32 %v4438_v54, %v4462_v27 }
0x1cc8   :  { %v6194_v45 = vpop.eup %6193  ;;  %v4485_v35 = vmul.f32 1.442695, %v4470_v11 }
0x1cc9   :  { %v4505_v42 = vsel %vm619_vm3, %v6194_v45, 0.0 }
0x1cca   :  { %6195 = vpow2.f32 %v4485_v35  ;;  %4506 = vadd.xlane.f32.xlu0 %v4505_v42 }
0x1cd0   :  { %v6196_v10 = vpop.eup %6195 }
0x1cd1   :  { %v4508_v20 = vsel %vm619_vm3, %v6196_v10, 0.0 }
0x1cd2   :  { %4509 = vadd.xlane.f32.xlu1 %v4508_v20  ;;  %v7703_v20 = vld [vmem:[#allocation3_spill] sm:$0xff] }
0x1d0d   :  { %v4489_v2 = vpop.xlane.xlu0 %4488 }
0x1d0e   :  { %6197 = vrcp.f32 %v4489_v2 }
0x1d14   :  { %v6198_v7 = vpop.eup %6197 }
0x1d15   :  { %v4492_v30 = vpop.xlane.xlu1 %4491  ;;  %v4519_v43 = vmul.f32 %v6198_v7, %v6182_v6 }
0x1d16   :  { %6199 = vrcp.f32 %v4492_v30 }
0x1d1c   :  { %v6200_v41 = vpop.eup %6199 }
0x1d1d   :  { %v4520_v4 = vmul.f32 %v6200_v41, %v6184_v55  ;;  %v4495_v29 = vpop.xlane.xlu2 %4494 }
0x1d1e   :  { %6201 = vrcp.f32 %v4495_v29 }
0x1d1f   :  { %v4527_v32 = vpack.c.bf16 %v4520_v4, %v4519_v43 }
0x1d21   :  { %5743 = vmatmul.msk.bf16.vlgmr.msra.gmra.mxu0 %vm619_vm3, %v4527_v32 }
0x1d24   :  { %v6202_v58 = vpop.eup %6201 }
0x1d25   :  { %v4498_v62 = vpop.xlane.xlu0 %4497  ;;  %v4521_v57 = vmul.f32 %v6202_v58, %v6186_v18 }
0x1d26   :  { %6203 = vrcp.f32 %v4498_v62 }
0x1d2c   :  { %v6204_v12 = vpop.eup %6203 }
0x1d2d   :  { %v4522_v36 = vmul.f32 %v6204_v12, %v6188_v28  ;;  %v4501_v56 = vpop.xlane.xlu1 %4500 }
0x1d2e   :  { %6205 = vrcp.f32 %v4501_v56 }
0x1d2f   :  { %v4528_v50 = vpack.c.bf16 %v4522_v36, %v4521_v57  ;;  %v5917_v57 = vld [vmem:[%s7194_s27 + $0x18] sm:$0xff] }
0x1d31   :  { %5744 = vmatmul.msk.bf16.gmra.mxu0 %vm619_vm3, %v4528_v50 }
0x1d34   :  { %v6206_v25 = vpop.eup %6205 }
0x1d35   :  { %v4504_v1 = vpop.xlane.xlu2 %4503  ;;  %v4523_v54 = vmul.f32 %v6206_v25, %v6190_v37  ;;  %v5921_v25 = vld [vmem:[%s7200_s5 + $0x38] sm:$0xff] }
0x1d36   :  { %6207 = vrcp.f32 %v4504_v1  ;;  %v5916_v1 = vld [vmem:[%s7194_s27 + $0x10] sm:$0xff] }
0x1d3c   :  { %v6208_v31 = vpop.eup %6207 }
0x1d3d   :  { %v4524_v63 = vmul.f32 %v6208_v31, %v6192_v15  ;;  %v4507_v46 = vpop.xlane.xlu0 %4506 }
0x1d3e   :  { %6209 = vrcp.f32 %v4507_v46 }
0x1d3f   :  { %v4529_v60 = vpack.c.bf16 %v4524_v63, %v4523_v54 }
0x1d41   :  { %5745 = vmatmul.msk.bf16.gmra.mxu0 %vm619_vm3, %v4529_v60 }
0x1d44   :  { %v6210_v38 = vpop.eup %6209 }
0x1d45   :  { %v4510_v26 = vpop.xlane.xlu1 %4509  ;;  %v4525_v6 = vmul.f32 %v6210_v38, %v6194_v45 }
0x1d46   :  { %6211 = vrcp.f32 %v4510_v26 }
0x1d4c   :  { %v6212_v8 = vpop.eup %6211 }
0x1d4d   :  { %v4526_v0 = vmul.f32 %v6212_v8, %v6196_v10 }
0x1d4f   :  { %v4530_v53 = vpack.c.bf16 %v4526_v0, %v4525_v6 }
0x1d51   :  { %5746 = vmatmul.msk.bf16.gmra.mxu0 %vm619_vm3, %v4530_v53 }
0x1d9e   :  { %v4556_v34 = vpop.f32.mrf.mxu0 }
0x1da6   :  { %v4558_v24 = vpop.f32.mrf.mxu0 }
0x1da7   :  { %v4576_v55 = vpack.c.bf16 %v4558_v24, %v4556_v34 }
0x1da9   :  { %5747 = vmatmul.msk.bf16.vlgmr.msrb.gmra.mxu1 %vm541_vm1, %v4576_v55 }
0x1daa   :  { %4753 = vmatpush.bf16.msrb.mxu1 %v5917_v57 }
0x1dae   :  { %v4561_v33 = vpop.f32.mrf.mxu0  ;;  %4754 = vmatpush.bf16.msrb.mxu1 %v5916_v1 }
0x1db6   :  { %v4563_v17 = vpop.f32.mrf.mxu0 }
0x1db7   :  { %v4596_v47 = vpack.c.bf16 %v4563_v17, %v4561_v33 }
0x1db9   :  { %5748 = vmatmul.msk.bf16.vlgmr.msra.gmra.mxu2 %vm541_vm1, %v4596_v47 }
0x1dba   :  { %4798 = vmatpush.bf16.msra.mxu2 %v5921_v25 }
0x1dbe   :  { %v4566_v16 = vpop.f32.mrf.mxu0 }
0x1dc6   :  { %v4568_v18 = vpop.f32.mrf.mxu0 }
0x1dc7   :  { %v4616_v9 = vpack.c.bf16 %v4568_v18, %v4566_v16 }
0x1dc9   :  { %5749 = vmatmul.msk.bf16.vlgmr.msra.gmra.mxu1 %vm541_vm1, %v4616_v9 }
0x1dce   :  { %v4571_v22 = vpop.f32.mrf.mxu0 }
0x1dd6   :  { %v4573_v59 = vpop.f32.mrf.mxu0 }
0x1dd7   :  { %v4636_v3 = vpack.c.bf16 %v4573_v59, %v4571_v22 }
0x1dd9   :  { %5750 = vmatmul.msk.bf16.vlgmr.msrb.gmra.mxu2 %vm541_vm1, %v4636_v3 }
0x1e26   :  { %v4589_v28 = vpop.f32.mrf.mxu1 }
0x1e27   :  { %v4594_v37 = vadd.f32 %v7470_v40, %v4589_v28 }
0x1e2e   :  { %v4591_v39 = vpop.f32.mrf.mxu1 }
0x1e2f   :  { %v4595_v15 = vadd.f32 %v7470_v40, %v4591_v39  ;;  %v5919_v39 = vld [vmem:[%s7200_s5 + $0x28] sm:$0xff] }
0x1e3c   :  { %v4609_v52 = vpop.f32.mrf.mxu2 }
0x1e3d   :  { %v4614_v21 = vadd.f32 %v4609_v52, %v4594_v37  ;;  %v5920_v52 = vld [vmem:[%s7200_s5 + $0x30] sm:$0xff]  ;;  %v5982_v37 = vld [vmem:[%s7189_s21 + $0x1] ss:$0 sm:$0xff] }
0x1e3e   :  { %4799 = vmatpush.bf16.msra.mxu2 %v5920_v52 }
0x1e42   :  { %4800 = vmatpush.bf16.msra.mxu2 %v5919_v39 }
0x1e44   :  { %v4611_v49 = vpop.f32.mrf.mxu2 }
0x1e45   :  { %v4615_v11 = vadd.f32 %v4611_v49, %v4595_v15  ;;  %v5918_v49 = vld [vmem:[%s7200_s5 + $0x20] sm:$0xff] }
0x1e46   :  { %v4629_v23 = vpop.f32.mrf.mxu1  ;;  %4801 = vmatpush.bf16.msra.mxu2 %v5918_v49 }
0x1e47   :  { %v4634_v5 = vadd.f32 %v4629_v23, %v4614_v21 }
0x1e4e   :  { %v4631_v27 = vpop.f32.mrf.mxu1 }
0x1e4f   :  { %v4635_v35 = vadd.f32 %v4631_v27, %v4615_v11 }
0x1e5c   :  { %v4649_v19 = vpop.f32.mrf.mxu2 }
0x1e5d   :  { %v4654_v48 = vadd.f32 %v4649_v19, %v4634_v5 }
0x1e5f   :  { %v4656_v61 = vadd.f32 %v4654_v48, %v7702_v14 }
0x1e61   :  { %v4658_v45 = vsel %vm229_vm0, %v4656_v61, 0.0 }
0x1e62   :  { %4659 = vadd.xlane.f32.xlu2 %v4658_v45 }
0x1e64   :  { %v4651_v42 = vpop.f32.mrf.mxu2 }
0x1e65   :  { %v4655_v10 = vadd.f32 %v4651_v42, %v4635_v35 }
0x1e67   :  { %v4657_v2 = vadd.f32 %v4655_v10, %v7703_v20 }
0x1e69   :  { %v4661_v30 = vsel %vm229_vm0, %v4657_v2, 0.0 }
0x1e6a   :  { %4662 = vadd.xlane.f32.xlu0 %v4661_v30 }
0x1ed5   :  { %v4660_v7 = vpop.xlane.xlu2 %4659 }
0x1ed6   :  { %v4664_v41 = vmul.f32 %v4660_v7, %v6462_v51 }
0x1ed8   :  { %v4666_v40 = vsub.f32 %v4656_v61, %v4664_v41 }
0x1eda   :  { %v4668_v43 = vmul.f32 %v4666_v40, %v4666_v40 }
0x1edc   :  { %v4670_v4 = vsel %vm229_vm0, %v4668_v43, 0.0 }
0x1edd   :  { %4671 = vadd.xlane.f32.xlu1 %v4670_v4  ;;  %v4663_v32 = vpop.xlane.xlu0 %4662 }
0x1ede   :  { %v4665_v29 = vmul.f32 %v4663_v32, %v6462_v51 }
0x1ee0   :  { %v4667_v62 = vsub.f32 %v4657_v2, %v4665_v29 }
0x1ee2   :  { %v4669_v58 = vmul.f32 %v4667_v62, %v4667_v62 }
0x1ee4   :  { %v4673_v12 = vsel %vm229_vm0, %v4669_v58, 0.0 }
0x1ee5   :  { %4674 = vadd.xlane.f32.xlu2 %v4673_v12 }
0x1f50   :  { %v4672_v36 = vpop.xlane.xlu1 %4671 }
0x1f51   :  { %v4676_v50 = vmul.f32 %v4672_v36, %v6462_v51  ;;  %v5922_v36 = vld [vmem:[%s4938_s11] sm:$0xff] }
0x1f53   :  { %v4678_v56 = vadd.f32 1e-05, %v4676_v50 }
0x1f55   :  { %6213 = vrsqrt.f32 %v4678_v56  ;;  %vm4686_vm7 = vweird.f32 %v4678_v56 }
0x1f58   :  { %v4675_v31 = vpop.xlane.xlu2 %4674 }
0x1f59   :  { %v4677_v54 = vmul.f32 %v4675_v31, %v6462_v51 }
0x1f5b   :  { %v6214_v63 = vpop.eup %6213  ;;  %v4679_v60 = vadd.f32 1e-05, %v4677_v54 }
0x1f5c   :  { %v4681_v46 = vmul.f32 %v6214_v63, %v4678_v56  ;;  %vm4687_vm1 = vweird.f32 %v6214_v63 }
0x1f5d   :  { %6215 = vrsqrt.f32 %v4679_v60  ;;  %vm4688_vm8 = vmor %vm4686_vm7, %vm4687_vm1  ;;  %vm4696_vm9 = vweird.f32 %v4679_v60 }
0x1f5e   :  { %v4682_v26 = vmul.f32 %v6214_v63, %v4681_v46 }
0x1f60   :  { %v4683_v38 = vmul.f32 0.5, %v4682_v26 }
0x1f62   :  { %v4684_v8 = vsub.f32 1.5, %v4683_v38 }
0x1f63   :  { %v6216_v6 = vpop.eup %6215 }
0x1f64   :  { %v4685_v0 = vmul.f32 %v6214_v63, %v4684_v8  ;;  %v4691_v53 = vmul.f32 %v6216_v6, %v4679_v60  ;;  %vm4697_vm14 = vweird.f32 %v6216_v6 }
0x1f65   :  { %vm4698_vm10 = vmor %vm4696_vm9, %vm4697_vm14 }
0x1f66   :  { %v4692_v34 = vmul.f32 %v6216_v6, %v4691_v53  ;;  %v4689_v24 = vsel %vm4688_vm8, %v6214_v63, %v4685_v0 }
0x1f67   :  { %v4700_v17 = vmul.f32 %v4689_v24, %v4666_v40 }
0x1f68   :  { %v4693_v55 = vmul.f32 0.5, %v4692_v34 }
0x1f69   :  { %v4702_v18 = vmul.f32 %v7512_v13, %v4700_v17 }
0x1f6a   :  { %v4694_v33 = vsub.f32 1.5, %v4693_v55 }
0x1f6b   :  { %v4704_v59 = vadd.f32 %v7515_v44, %v4702_v18 }
0x1f6c   :  { %v4695_v47 = vmul.f32 %v6216_v6, %v4694_v33  ;;  %v5985_v33 = vld [vmem:[%s7231_s12 + $0x1] ss:$0 sm:$0xff] }
0x1f6e   :  { %v4699_v16 = vsel %vm4698_vm10, %v6216_v6, %v4695_v47 }
0x1f6f   :  { %v4701_v9 = vmul.f32 %v4699_v16, %v4667_v62  ;;  %v5923_v62 = vld [vmem:[%s4938_s11 + $0x8] sm:$0xff] }
0x1f70   :  { %4894 = vmatpush.bf16.msra.mxu1 %v5923_v62 }
0x1f71   :  { %v4703_v22 = vmul.f32 %v7512_v13, %v4701_v9 }
0x1f73   :  { %v4705_v3 = vadd.f32 %v7515_v44, %v4703_v22  ;;  %v5983_v44 = vld [vmem:[%s7214_s17 + $0x1] ss:$0 sm:$0xff] }
0x1f74   :  { %4895 = vmatpush.bf16.msra.mxu1 %v5922_v36 }
0x1f75   :  { %v4728_v28 = vpack.c.bf16 %v4705_v3, %v4704_v59 }
0x1f77   :  { %5775 = vmatmul.msk.bf16.vlgmr.msrb.gmra.mxu1 %vm229_vm0, %v4728_v28 }
0x1ff4   :  { %v4756_v23 = vpop.f32.mrf.mxu1 }
0x1ff5   :  { %v4757_v21 = vadd.f32 %v5982_v37, %v4756_v23 }
0x1ff7   :  { %v4761_v13 = vmax.f32 %v4757_v21, 0.0 }
0x1ffc   :  { %v4758_v5 = vpop.f32.mrf.mxu1 }
0x1ffd   :  { %v4759_v19 = vadd.f32 %v5982_v37, %v4758_v5 }
0x1fff   :  { %v4762_v48 = vmax.f32 %v4759_v19, 0.0 }
0x2001   :  { %v4763_v15 = vpack.c.bf16 %v4762_v48, %v4761_v13 }
0x2003   :  { %5792 = vmatmul.msk.bf16.vlgmr.msra.gmra.mxu2 %vm619_vm3, %v4763_v15 }
0x2086   :  { %v4803_v14 = vpop.f32.mrf.mxu2 }
0x2087   :  { %v4804_v61 = vadd.f32 %v5983_v44, %v4803_v14 }
0x2089   :  { %v4808_v27 = vadd.f32 %v4804_v61, %v4704_v59  ;;  %v5986_v59 = vld [vmem:[%s7626_s24] ss:$0 sm:$0xff] }
0x208b   :  { %v4810_v11 = vsel %vm229_vm0, %v4808_v27, 0.0 }
0x208c   :  { %4811 = vadd.xlane.f32.xlu0 %v4810_v11 }
0x208e   :  { %v4805_v45 = vpop.f32.mrf.mxu2 }
0x208f   :  { %v4806_v35 = vadd.f32 %v5983_v44, %v4805_v45 }
0x2091   :  { %v4809_v42 = vadd.f32 %v4806_v35, %v4705_v3 }
0x2093   :  { %v4813_v10 = vsel %vm229_vm0, %v4809_v42, 0.0 }
0x2094   :  { %4814 = vadd.xlane.f32.xlu1 %v4813_v10 }
0x20ff   :  { %v4812_v20 = vpop.xlane.xlu0 %4811 }
0x2100   :  { %v4816_v2 = vmul.f32 %v4812_v20, %v6462_v51 }
0x2102   :  { %v4818_v30 = vsub.f32 %v4808_v27, %v4816_v2 }
0x2104   :  { %v4820_v7 = vmul.f32 %v4818_v30, %v4818_v30 }
0x2106   :  { %v4822_v41 = vsel %vm229_vm0, %v4820_v7, 0.0 }
0x2107   :  { %v4815_v40 = vpop.xlane.xlu1 %4814  ;;  %4823 = vadd.xlane.f32.xlu2 %v4822_v41 }
0x2108   :  { %v4817_v43 = vmul.f32 %v4815_v40, %v6462_v51 }
0x210a   :  { %v4819_v4 = vsub.f32 %v4809_v42, %v4817_v43 }
0x210c   :  { %v4821_v32 = vmul.f32 %v4819_v4, %v4819_v4 }
0x210e   :  { %v4825_v29 = vsel %vm229_vm0, %v4821_v32, 0.0 }
0x210f   :  { %4826 = vadd.xlane.f32.xlu0 %v4825_v29 }
0x217a   :  { %v4824_v58 = vpop.xlane.xlu2 %4823 }
0x217b   :  { %v4828_v12 = vmul.f32 %v4824_v58, %v6462_v51 }
0x217d   :  { %v4830_v57 = vadd.f32 1e-05, %v4828_v12 }
0x217f   :  { %6217 = vrsqrt.f32 %v4830_v57  ;;  %vm4838_vm11 = vweird.f32 %v4830_v57 }
0x2182   :  { %v4827_v50 = vpop.xlane.xlu0 %4826 }
0x2183   :  { %v4829_v56 = vmul.f32 %v4827_v50, %v6462_v51  ;;  %v5984_v51 = vld [vmem:[%s7226_s16 + $0x1] ss:$0 sm:$0xff] }
0x2185   :  { %v6218_v1 = vpop.eup %6217  ;;  %v4831_v25 = vadd.f32 1e-05, %v4829_v56 }
0x2186   :  { %v4833_v31 = vmul.f32 %v6218_v1, %v4830_v57  ;;  %vm4839_vm3 = vweird.f32 %v6218_v1 }
0x2187   :  { %6219 = vrsqrt.f32 %v4831_v25  ;;  %vm4840_vm13 = vmor %vm4838_vm11, %vm4839_vm3  ;;  %vm4848_vm12 = vweird.f32 %v4831_v25 }
0x2188   :  { %v4834_v54 = vmul.f32 %v6218_v1, %v4833_v31 }
0x218a   :  { %v4835_v63 = vmul.f32 0.5, %v4834_v54 }
0x218c   :  { %v4836_v60 = vsub.f32 1.5, %v4835_v63 }
0x218d   :  { %v6220_v46 = vpop.eup %6219 }
0x218e   :  { %v4837_v26 = vmul.f32 %v6218_v1, %v4836_v60  ;;  %v4843_v38 = vmul.f32 %v6220_v46, %v4831_v25  ;;  %vm4849_vm15 = vweird.f32 %v6220_v46 }
0x218f   :  { %vm4850_vm2 = vmor %vm4848_vm12, %vm4849_vm15 }
0x2190   :  { %v4844_v8 = vmul.f32 %v6220_v46, %v4843_v38  ;;  %v4841_v6 = vsel %vm4840_vm13, %v6218_v1, %v4837_v26 }
0x2191   :  { %v4852_v34 = vmul.f32 %v4841_v6, %v4818_v30 }
0x2192   :  { %v4845_v0 = vmul.f32 0.5, %v4844_v8 }
0x2193   :  { %v4857_v17 = vmul.f32 %v5984_v51, %v4852_v34 }
0x2194   :  { %v4846_v53 = vsub.f32 1.5, %v4845_v0 }
0x2195   :  { %v4862_v18 = vadd.f32 %v5985_v33, %v4857_v17 }
0x2196   :  { %v4847_v24 = vmul.f32 %v6220_v46, %v4846_v53 }
0x2198   :  { %v4851_v55 = vsel %vm4850_vm2, %v6220_v46, %v4847_v24 }
0x2199   :  { %v4853_v47 = vmul.f32 %v4851_v55, %v4819_v4 }
0x219b   :  { %v4858_v16 = vmul.f32 %v5984_v51, %v4853_v47 }
0x219d   :  { %v4863_v9 = vadd.f32 %v5985_v33, %v4858_v16 }
0x219f   :  { %v4868_v22 = vpack.c.bf16 %v4863_v9, %v4862_v18 }
0x21a1   :  { %5801 = vmatmul.msk.bf16.vlgmr.msra.gmra.mxu1 %vm229_vm0, %v4868_v22 }
0x221e   :  { %v4897_v3 = vpop.f32.mrf.mxu1 }
0x221f   :  { %v4898_v28 = vadd.f32 %v5986_v59, %v4897_v3 }
0x2221   :  { %4902 = vst [vmem:[%s4940_s23] sm:$0xff] %v4898_v28 }
0x2226   :  { %v4899_v52 = vpop.f32.mrf.mxu1 }
0x2227   :  { %v4900_v39 = vadd.f32 %v5986_v59, %v4899_v52 }
0x2229   :  { %4903 = vst [vmem:[%s4940_s23 + $0x8] sm:$0xff] %v4900_v39 }

</bundles_post_ra>
